<compile_context>
chip_gen: v5e
topology: v5e:2x2
jax: 0.10.0
libtpu: 0.0.40
codegen_flags: <defaults>
</compile_context>

<pallas_src>
import math
import functools

import jax
import jax.numpy as jnp
from jax.experimental import pallas as pl
from jax.experimental.pallas import tpu as pltpu

_OUT_LANES = 128  # lane-dense output slab width


# ----------------------------------------------------------------------------
# In-kernel building blocks
# ----------------------------------------------------------------------------
def _stable_sigmoid(z):
    pos = 1.0 / (1.0 + jnp.exp(-z))
    ez = jnp.exp(z)
    neg = ez / (1.0 + ez)
    return jnp.where(z >= 0, pos, neg)


def _mab_compute(xq, xk, p, num_heads):
    """Canonical Set-Transformer MAB for one batch element.

    xq: (Nq, Dq), xk: (Nk, Dk) -> (Nq, Dv).
    Matches Lee et al.'s reference: scale = 1/sqrt(dim_V) (not 1/sqrt(d_head))
    and residual with the *projected* Q, then O = O + relu(fc_o(O)).
    """
    q = jnp.dot(xq, p["wq"][...], preferred_element_type=jnp.float32) + p["bq"][...]
    k = jnp.dot(xk, p["wk"][...], preferred_element_type=jnp.float32) + p["bk"][...]
    v = jnp.dot(xk, p["wv"][...], preferred_element_type=jnp.float32) + p["bv"][...]

    dv = q.shape[-1]
    dh = dv // num_heads
    scale = 1.0 / math.sqrt(dv)

    # Head-batched layout (H, N, dh); attention = two batched dot_generals.
    qh = jnp.stack([q[:, h * dh:(h + 1) * dh] for h in range(num_heads)], axis=0)
    kh = jnp.stack([k[:, h * dh:(h + 1) * dh] for h in range(num_heads)], axis=0)
    vh = jnp.stack([v[:, h * dh:(h + 1) * dh] for h in range(num_heads)], axis=0)

    s = jnp.einsum("hqd,hkd->hqk", qh, kh,
                   preferred_element_type=jnp.float32) * scale
    s = s - jnp.max(s, axis=-1, keepdims=True)
    e = jnp.exp(s)
    a = e / jnp.sum(e, axis=-1, keepdims=True)
    att = jnp.einsum("hqk,hkd->hqd", a, vh, preferred_element_type=jnp.float32)

    oh = qh + att                                                 # per-head residual
    o = jnp.concatenate([oh[h] for h in range(num_heads)], axis=-1)  # (Nq, Dv)

    ff = jnp.dot(o, p["wo"][...], preferred_element_type=jnp.float32) + p["bo"][...]
    return o + jnp.maximum(ff, 0.0)


def _sthvnet_kernel(*refs, treedef, num_heads, use_sab):
    x_ref = refs[0]
    out_ref = refs[-1]
    p = jax.tree_util.tree_unflatten(treedef, refs[1:-1])

    h = x_ref[0]                                     # (N, Din)

    # ---- SetTransformer encoder (ISAB x2 or SAB x2) ------------------------
    for enc_p in p["enc"]:
        if use_sab:
            h = _mab_compute(h, h, enc_p["mab"], num_heads)
        else:
            ind = enc_p["I"][...]                    # (num_inds, Dh), shared across batch
            t = _mab_compute(ind, h, enc_p["mab0"], num_heads)
            h = _mab_compute(h, t, enc_p["mab1"], num_heads)

    # ---- SetTransformer decoder: PMA, SAB, SAB, Linear ---------------------
    h = _mab_compute(p["pma"]["S"][...], h, p["pma"]["mab"], num_heads)
    for sab_p in p["dec_sab"]:
        h = _mab_compute(h, h, sab_p["mab"], num_heads)
    wdec, bdec = p["dec_lin"]
    y = jnp.dot(h, wdec[...], preferred_element_type=jnp.float32) + bdec[...]

    # ---- torch.sum(out, dim=1) ---------------------------------------------
    out = jnp.sum(y, axis=0, keepdims=True)          # (1, Dout)

    # TODO(synk): resOn residual path not implemented (module default resOn=False).

    # ---- decoder Linear+ReLU stack + aggregation Linear + Sigmoid ----------
    for (w, b) in p["fwd"]:
        out = jnp.maximum(
            jnp.dot(out, w[...], preferred_element_type=jnp.float32) + b[...], 0.0)
    wagg, bagg = p["agg"]
    z = jnp.dot(out, wagg[...], preferred_element_type=jnp.float32) + bagg[...]
    val = _stable_sigmoid(z)                         # (1, 1)

    # Lane-dense store (value broadcast across 128 lanes); sliced in wrapper.
    out_ref[0] = jnp.broadcast_to(val, (1, _OUT_LANES)).astype(out_ref.dtype)


# ----------------------------------------------------------------------------
# Wrapper: one pallas_call for the whole forward pass
# ----------------------------------------------------------------------------
def _full_block_spec(shape):
    nd = len(shape)

    def index_map(b):
        return (0,) * nd

    return pl.BlockSpec(shape, index_map)


def sthvnet_forward(params, x, *, num_heads, use_sab):
    leaves, treedef = jax.tree_util.tree_flatten(params)
    B, N, Din = x.shape

    kernel = functools.partial(_sthvnet_kernel, treedef=treedef,
                               num_heads=num_heads, use_sab=use_sab)

    y = pl.pallas_call(
        kernel,
        out_shape=jax.ShapeDtypeStruct((B, 1, _OUT_LANES), jnp.float32),
        grid=(B,),
        in_specs=[pl.BlockSpec((1, N, Din), lambda b: (b, 0, 0))]
                 + [_full_block_spec(tuple(l.shape)) for l in leaves],
        out_specs=pl.BlockSpec((1, 1, _OUT_LANES), lambda b: (b, 0, 0)),
        compiler_params=pltpu.CompilerParams(
            dimension_semantics=("parallel",)),
    )(x, *leaves)

    return jnp.squeeze(y[:, 0, :1])                  # (B, 1) -> torch.squeeze


# ----------------------------------------------------------------------------
# Parameter initialization (deterministic, synthetic)
# ----------------------------------------------------------------------------
def _init_linear(key, din, dout):
    kw, kb = jax.random.split(key)
    bound = 1.0 / math.sqrt(din)
    w = jax.random.uniform(kw, (din, dout), jnp.float32, -bound, bound)
    b = jax.random.uniform(kb, (1, dout), jnp.float32, -bound, bound)
    return w, b


def _init_mab(key, dq, dk, dv):
    ks = jax.random.split(key, 4)
    wq, bq = _init_linear(ks[0], dq, dv)
    wk, bk = _init_linear(ks[1], dk, dv)
    wv, bv = _init_linear(ks[2], dk, dv)
    wo, bo = _init_linear(ks[3], dv, dv)
    return dict(wq=wq, bq=bq, wk=wk, bk=bk, wv=wv, bv=bv, wo=wo, bo=bo)


def _xavier(key, shape):
    fan_in, fan_out = shape[-2], shape[-1]
    bound = math.sqrt(6.0 / (fan_in + fan_out))
    return jax.random.uniform(key, shape, jnp.float32, -bound, bound)


def init_sthvnet_params(key, din, dhid, dout, nout, num_inds, forward_layers,
                        use_sab):
    keys = jax.random.split(key, 16)
    params = {}
    if use_sab:
        enc0 = {"mab": _init_mab(keys[0], din, din, dhid)}
        enc1 = {"mab": _init_mab(keys[1], dhid, dhid, dhid)}
    else:
        enc0 = {"I": _xavier(keys[2], (num_inds, dhid)),
                "mab0": _init_mab(keys[0], dhid, din, dhid),
                "mab1": _init_mab(keys[1], din, dhid, dhid)}
        enc1 = {"I": _xavier(keys[5], (num_inds, dhid)),
                "mab0": _init_mab(keys[3], dhid, dhid, dhid),
                "mab1": _init_mab(keys[4], dhid, dhid, dhid)}
    params["enc"] = [enc0, enc1]
    params["pma"] = {"S": _xavier(keys[6], (nout, dhid)),
                     "mab": _init_mab(keys[7], dhid, dhid, dhid)}
    params["dec_sab"] = [{"mab": _init_mab(keys[8], dhid, dhid, dhid)},
                         {"mab": _init_mab(keys[9], dhid, dhid, dhid)}]
    params["dec_lin"] = _init_linear(keys[10], dhid, dout)
    fkeys = jax.random.split(keys[11], forward_layers)
    params["fwd"] = [_init_linear(fkeys[i], dout, dout)
                     for i in range(forward_layers)]
    params["agg"] = _init_linear(keys[12], dout, 1)
    return params


# ----------------------------------------------------------------------------
if __name__ == "__main__":
    # Small shapes consistent with the module's forward.
    B, N, D_IN = 2, 8, 8               # x: batch of sets, each set has N points
    N_HEAD, D_HID, D_OUT = 4, 32, 32   # transNHead, hiddenDim, transOutputDim
    N_OUT, N_INDS, FWD = 1, 16, 4      # transOutputNum, ISABInds, forwardLayers
    USE_SAB = False

    key = jax.random.PRNGKey(0)
    pkey, xkey = jax.random.split(key)
    params = init_sthvnet_params(pkey, D_IN, D_HID, D_OUT, N_OUT, N_INDS,
                                 FWD, USE_SAB)
    x = jax.random.normal(xkey, (B, N, D_IN), jnp.float32)

    fwd = jax.jit(functools.partial(sthvnet_forward, num_heads=N_HEAD,
                                    use_sab=USE_SAB))
    out = jax.block_until_ready(fwd(params, x))
    assert out.shape == (B,), out.shape
    assert bool(jnp.all(jnp.isfinite(out)))
    print("KERNEL_OK")
</pallas_src>

<mosaic_0001>
module attributes {stable_mosaic.version = 11 : i64} {
  func.func @_sthvnet_kernel(%arg0: i32, %arg1: memref<1x8x8xf32, #tpu.memory_space<vmem>>, %arg2: memref<32x1xf32, #tpu.memory_space<vmem>>, %arg3: memref<1x1xf32, #tpu.memory_space<vmem>>, %arg4: memref<32x32xf32, #tpu.memory_space<vmem>>, %arg5: memref<1x32xf32, #tpu.memory_space<vmem>>, %arg6: memref<1x32xf32, #tpu.memory_space<vmem>>, %arg7: memref<1x32xf32, #tpu.memory_space<vmem>>, %arg8: memref<1x32xf32, #tpu.memory_space<vmem>>, %arg9: memref<1x32xf32, #tpu.memory_space<vmem>>, %arg10: memref<32x32xf32, #tpu.memory_space<vmem>>, %arg11: memref<32x32xf32, #tpu.memory_space<vmem>>, %arg12: memref<32x32xf32, #tpu.memory_space<vmem>>, %arg13: memref<32x32xf32, #tpu.memory_space<vmem>>, %arg14: memref<1x32xf32, #tpu.memory_space<vmem>>, %arg15: memref<1x32xf32, #tpu.memory_space<vmem>>, %arg16: memref<1x32xf32, #tpu.memory_space<vmem>>, %arg17: memref<1x32xf32, #tpu.memory_space<vmem>>, %arg18: memref<32x32xf32, #tpu.memory_space<vmem>>, %arg19: memref<32x32xf32, #tpu.memory_space<vmem>>, %arg20: memref<32x32xf32, #tpu.memory_space<vmem>>, %arg21: memref<32x32xf32, #tpu.memory_space<vmem>>, %arg22: memref<16x32xf32, #tpu.memory_space<vmem>>, %arg23: memref<1x32xf32, #tpu.memory_space<vmem>>, %arg24: memref<1x32xf32, #tpu.memory_space<vmem>>, %arg25: memref<1x32xf32, #tpu.memory_space<vmem>>, %arg26: memref<1x32xf32, #tpu.memory_space<vmem>>, %arg27: memref<8x32xf32, #tpu.memory_space<vmem>>, %arg28: memref<32x32xf32, #tpu.memory_space<vmem>>, %arg29: memref<32x32xf32, #tpu.memory_space<vmem>>, %arg30: memref<8x32xf32, #tpu.memory_space<vmem>>, %arg31: memref<1x32xf32, #tpu.memory_space<vmem>>, %arg32: memref<1x32xf32, #tpu.memory_space<vmem>>, %arg33: memref<1x32xf32, #tpu.memory_space<vmem>>, %arg34: memref<1x32xf32, #tpu.memory_space<vmem>>, %arg35: memref<32x32xf32, #tpu.memory_space<vmem>>, %arg36: memref<32x32xf32, #tpu.memory_space<vmem>>, %arg37: memref<8x32xf32, #tpu.memory_space<vmem>>, %arg38: memref<32x32xf32, #tpu.memory_space<vmem>>, %arg39: memref<16x32xf32, #tpu.memory_space<vmem>>, %arg40: memref<1x32xf32, #tpu.memory_space<vmem>>, %arg41: memref<1x32xf32, #tpu.memory_space<vmem>>, %arg42: memref<1x32xf32, #tpu.memory_space<vmem>>, %arg43: memref<1x32xf32, #tpu.memory_space<vmem>>, %arg44: memref<32x32xf32, #tpu.memory_space<vmem>>, %arg45: memref<32x32xf32, #tpu.memory_space<vmem>>, %arg46: memref<32x32xf32, #tpu.memory_space<vmem>>, %arg47: memref<32x32xf32, #tpu.memory_space<vmem>>, %arg48: memref<1x32xf32, #tpu.memory_space<vmem>>, %arg49: memref<1x32xf32, #tpu.memory_space<vmem>>, %arg50: memref<1x32xf32, #tpu.memory_space<vmem>>, %arg51: memref<1x32xf32, #tpu.memory_space<vmem>>, %arg52: memref<32x32xf32, #tpu.memory_space<vmem>>, %arg53: memref<32x32xf32, #tpu.memory_space<vmem>>, %arg54: memref<32x32xf32, #tpu.memory_space<vmem>>, %arg55: memref<32x32xf32, #tpu.memory_space<vmem>>, %arg56: memref<32x32xf32, #tpu.memory_space<vmem>>, %arg57: memref<1x32xf32, #tpu.memory_space<vmem>>, %arg58: memref<32x32xf32, #tpu.memory_space<vmem>>, %arg59: memref<1x32xf32, #tpu.memory_space<vmem>>, %arg60: memref<32x32xf32, #tpu.memory_space<vmem>>, %arg61: memref<1x32xf32, #tpu.memory_space<vmem>>, %arg62: memref<32x32xf32, #tpu.memory_space<vmem>>, %arg63: memref<1x32xf32, #tpu.memory_space<vmem>>, %arg64: memref<1x32xf32, #tpu.memory_space<vmem>>, %arg65: memref<1x32xf32, #tpu.memory_space<vmem>>, %arg66: memref<1x32xf32, #tpu.memory_space<vmem>>, %arg67: memref<1x32xf32, #tpu.memory_space<vmem>>, %arg68: memref<1x32xf32, #tpu.memory_space<vmem>>, %arg69: memref<32x32xf32, #tpu.memory_space<vmem>>, %arg70: memref<32x32xf32, #tpu.memory_space<vmem>>, %arg71: memref<32x32xf32, #tpu.memory_space<vmem>>, %arg72: memref<32x32xf32, #tpu.memory_space<vmem>>, %arg73: memref<1x1x128xf32, #tpu.memory_space<vmem>>) attributes {dimension_semantics = [#tpu.dimension_semantics<parallel>], iteration_bounds = array<i64: 2>, scalar_prefetch = 0 : i64, scratch_operands = 0 : i64, tpu.core_type = #tpu.core_type<tc>, window_params = [{transform_indices = @transform_0, window_bounds = array<i64: 1, 8, 8>}, {pipeline_mode = #tpu.pipeline_mode<synchronous>, transform_indices = @transform_1, window_bounds = array<i64: 32, 1>}, {pipeline_mode = #tpu.pipeline_mode<synchronous>, transform_indices = @transform_2, window_bounds = array<i64: 1, 1>}, {pipeline_mode = #tpu.pipeline_mode<synchronous>, transform_indices = @transform_3, window_bounds = array<i64: 32, 32>}, {pipeline_mode = #tpu.pipeline_mode<synchronous>, transform_indices = @transform_4, window_bounds = array<i64: 1, 32>}, {pipeline_mode = #tpu.pipeline_mode<synchronous>, transform_indices = @transform_5, window_bounds = array<i64: 1, 32>}, {pipeline_mode = #tpu.pipeline_mode<synchronous>, transform_indices = @transform_6, window_bounds = array<i64: 1, 32>}, {pipeline_mode = #tpu.pipeline_mode<synchronous>, transform_indices = @transform_7, window_bounds = array<i64: 1, 32>}, {pipeline_mode = #tpu.pipeline_mode<synchronous>, transform_indices = @transform_8, window_bounds = array<i64: 1, 32>}, {pipeline_mode = #tpu.pipeline_mode<synchronous>, transform_indices = @transform_9, window_bounds = array<i64: 32, 32>}, {pipeline_mode = #tpu.pipeline_mode<synchronous>, transform_indices = @transform_10, window_bounds = array<i64: 32, 32>}, {pipeline_mode = #tpu.pipeline_mode<synchronous>, transform_indices = @transform_11, window_bounds = array<i64: 32, 32>}, {pipeline_mode = #tpu.pipeline_mode<synchronous>, transform_indices = @transform_12, window_bounds = array<i64: 32, 32>}, {pipeline_mode = #tpu.pipeline_mode<synchronous>, transform_indices = @transform_13, window_bounds = array<i64: 1, 32>}, {pipeline_mode = #tpu.pipeline_mode<synchronous>, transform_indices = @transform_14, window_bounds = array<i64: 1, 32>}, {pipeline_mode = #tpu.pipeline_mode<synchronous>, transform_indices = @transform_15, window_bounds = array<i64: 1, 32>}, {pipeline_mode = #tpu.pipeline_mode<synchronous>, transform_indices = @transform_16, window_bounds = array<i64: 1, 32>}, {pipeline_mode = #tpu.pipeline_mode<synchronous>, transform_indices = @transform_17, window_bounds = array<i64: 32, 32>}, {pipeline_mode = #tpu.pipeline_mode<synchronous>, transform_indices = @transform_18, window_bounds = array<i64: 32, 32>}, {pipeline_mode = #tpu.pipeline_mode<synchronous>, transform_indices = @transform_19, window_bounds = array<i64: 32, 32>}, {pipeline_mode = #tpu.pipeline_mode<synchronous>, transform_indices = @transform_20, window_bounds = array<i64: 32, 32>}, {pipeline_mode = #tpu.pipeline_mode<synchronous>, transform_indices = @transform_21, window_bounds = array<i64: 16, 32>}, {pipeline_mode = #tpu.pipeline_mode<synchronous>, transform_indices = @transform_22, window_bounds = array<i64: 1, 32>}, {pipeline_mode = #tpu.pipeline_mode<synchronous>, transform_indices = @transform_23, window_bounds = array<i64: 1, 32>}, {pipeline_mode = #tpu.pipeline_mode<synchronous>, transform_indices = @transform_24, window_bounds = array<i64: 1, 32>}, {pipeline_mode = #tpu.pipeline_mode<synchronous>, transform_indices = @transform_25, window_bounds = array<i64: 1, 32>}, {pipeline_mode = #tpu.pipeline_mode<synchronous>, transform_indices = @transform_26, window_bounds = array<i64: 8, 32>}, {pipeline_mode = #tpu.pipeline_mode<synchronous>, transform_indices = @transform_27, window_bounds = array<i64: 32, 32>}, {pipeline_mode = #tpu.pipeline_mode<synchronous>, transform_indices = @transform_28, window_bounds = array<i64: 32, 32>}, {pipeline_mode = #tpu.pipeline_mode<synchronous>, transform_indices = @transform_29, window_bounds = array<i64: 8, 32>}, {pipeline_mode = #tpu.pipeline_mode<synchronous>, transform_indices = @transform_30, window_bounds = array<i64: 1, 32>}, {pipeline_mode = #tpu.pipeline_mode<synchronous>, transform_indices = @transform_31, window_bounds = array<i64: 1, 32>}, {pipeline_mode = #tpu.pipeline_mode<synchronous>, transform_indices = @transform_32, window_bounds = array<i64: 1, 32>}, {pipeline_mode = #tpu.pipeline_mode<synchronous>, transform_indices = @transform_33, window_bounds = array<i64: 1, 32>}, {pipeline_mode = #tpu.pipeline_mode<synchronous>, transform_indices = @transform_34, window_bounds = array<i64: 32, 32>}, {pipeline_mode = #tpu.pipeline_mode<synchronous>, transform_indices = @transform_35, window_bounds = array<i64: 32, 32>}, {pipeline_mode = #tpu.pipeline_mode<synchronous>, transform_indices = @transform_36, window_bounds = array<i64: 8, 32>}, {pipeline_mode = #tpu.pipeline_mode<synchronous>, transform_indices = @transform_37, window_bounds = array<i64: 32, 32>}, {pipeline_mode = #tpu.pipeline_mode<synchronous>, transform_indices = @transform_38, window_bounds = array<i64: 16, 32>}, {pipeline_mode = #tpu.pipeline_mode<synchronous>, transform_indices = @transform_39, window_bounds = array<i64: 1, 32>}, {pipeline_mode = #tpu.pipeline_mode<synchronous>, transform_indices = @transform_40, window_bounds = array<i64: 1, 32>}, {pipeline_mode = #tpu.pipeline_mode<synchronous>, transform_indices = @transform_41, window_bounds = array<i64: 1, 32>}, {pipeline_mode = #tpu.pipeline_mode<synchronous>, transform_indices = @transform_42, window_bounds = array<i64: 1, 32>}, {pipeline_mode = #tpu.pipeline_mode<synchronous>, transform_indices = @transform_43, window_bounds = array<i64: 32, 32>}, {pipeline_mode = #tpu.pipeline_mode<synchronous>, transform_indices = @transform_44, window_bounds = array<i64: 32, 32>}, {pipeline_mode = #tpu.pipeline_mode<synchronous>, transform_indices = @transform_45, window_bounds = array<i64: 32, 32>}, {pipeline_mode = #tpu.pipeline_mode<synchronous>, transform_indices = @transform_46, window_bounds = array<i64: 32, 32>}, {pipeline_mode = #tpu.pipeline_mode<synchronous>, transform_indices = @transform_47, window_bounds = array<i64: 1, 32>}, {pipeline_mode = #tpu.pipeline_mode<synchronous>, transform_indices = @transform_48, window_bounds = array<i64: 1, 32>}, {pipeline_mode = #tpu.pipeline_mode<synchronous>, transform_indices = @transform_49, window_bounds = array<i64: 1, 32>}, {pipeline_mode = #tpu.pipeline_mode<synchronous>, transform_indices = @transform_50, window_bounds = array<i64: 1, 32>}, {pipeline_mode = #tpu.pipeline_mode<synchronous>, transform_indices = @transform_51, window_bounds = array<i64: 32, 32>}, {pipeline_mode = #tpu.pipeline_mode<synchronous>, transform_indices = @transform_52, window_bounds = array<i64: 32, 32>}, {pipeline_mode = #tpu.pipeline_mode<synchronous>, transform_indices = @transform_53, window_bounds = array<i64: 32, 32>}, {pipeline_mode = #tpu.pipeline_mode<synchronous>, transform_indices = @transform_54, window_bounds = array<i64: 32, 32>}, {pipeline_mode = #tpu.pipeline_mode<synchronous>, transform_indices = @transform_55, window_bounds = array<i64: 32, 32>}, {pipeline_mode = #tpu.pipeline_mode<synchronous>, transform_indices = @transform_56, window_bounds = array<i64: 1, 32>}, {pipeline_mode = #tpu.pipeline_mode<synchronous>, transform_indices = @transform_57, window_bounds = array<i64: 32, 32>}, {pipeline_mode = #tpu.pipeline_mode<synchronous>, transform_indices = @transform_58, window_bounds = array<i64: 1, 32>}, {pipeline_mode = #tpu.pipeline_mode<synchronous>, transform_indices = @transform_59, window_bounds = array<i64: 32, 32>}, {pipeline_mode = #tpu.pipeline_mode<synchronous>, transform_indices = @transform_60, window_bounds = array<i64: 1, 32>}, {pipeline_mode = #tpu.pipeline_mode<synchronous>, transform_indices = @transform_61, window_bounds = array<i64: 32, 32>}, {pipeline_mode = #tpu.pipeline_mode<synchronous>, transform_indices = @transform_62, window_bounds = array<i64: 1, 32>}, {pipeline_mode = #tpu.pipeline_mode<synchronous>, transform_indices = @transform_63, window_bounds = array<i64: 1, 32>}, {pipeline_mode = #tpu.pipeline_mode<synchronous>, transform_indices = @transform_64, window_bounds = array<i64: 1, 32>}, {pipeline_mode = #tpu.pipeline_mode<synchronous>, transform_indices = @transform_65, window_bounds = array<i64: 1, 32>}, {pipeline_mode = #tpu.pipeline_mode<synchronous>, transform_indices = @transform_66, window_bounds = array<i64: 1, 32>}, {pipeline_mode = #tpu.pipeline_mode<synchronous>, transform_indices = @transform_67, window_bounds = array<i64: 1, 32>}, {pipeline_mode = #tpu.pipeline_mode<synchronous>, transform_indices = @transform_68, window_bounds = array<i64: 32, 32>}, {pipeline_mode = #tpu.pipeline_mode<synchronous>, transform_indices = @transform_69, window_bounds = array<i64: 32, 32>}, {pipeline_mode = #tpu.pipeline_mode<synchronous>, transform_indices = @transform_70, window_bounds = array<i64: 32, 32>}, {pipeline_mode = #tpu.pipeline_mode<synchronous>, transform_indices = @transform_71, window_bounds = array<i64: 32, 32>}, {transform_indices = @transform_72, window_bounds = array<i64: 1, 1, 128>}]} {
    %c0 = arith.constant 0 : index
    %c0_0 = arith.constant 0 : index
    %c0_1 = arith.constant 0 : index
    %0 = vector.load %arg1[%c0, %c0_0, %c0_1] : memref<1x8x8xf32, #tpu.memory_space<vmem>>, vector<1x8x8xf32>
    %1 = vector.shape_cast %0 : vector<1x8x8xf32> to vector<8x8xf32>
    %c0_2 = arith.constant 0 : index
    %c0_3 = arith.constant 0 : index
    %2 = vector.load %arg22[%c0_2, %c0_3] : memref<16x32xf32, #tpu.memory_space<vmem>>, vector<16x32xf32>
    %c0_4 = arith.constant 0 : index
    %c0_5 = arith.constant 0 : index
    %3 = vector.load %arg29[%c0_4, %c0_5] : memref<32x32xf32, #tpu.memory_space<vmem>>, vector<32x32xf32>
    %cst = arith.constant dense<0.000000e+00> : vector<16x32xf32>
    %4 = tpu.matmul %2, %3, %cst {dimension_numbers = #tpu.dot_dimension_numbers<[1], [0], [0], [1], [0, 0, 1, 1], [], []>} : vector<16x32xf32>, vector<32x32xf32>, vector<16x32xf32> -> vector<16x32xf32>
    %c0_6 = arith.constant 0 : index
    %c0_7 = arith.constant 0 : index
    %5 = vector.load %arg25[%c0_6, %c0_7] : memref<1x32xf32, #tpu.memory_space<vmem>>, vector<1x32xf32>
    %6 = vector.broadcast %5 : vector<1x32xf32> to vector<16x32xf32>
    %7 = arith.addf %4, %6 : vector<16x32xf32>
    %c0_8 = arith.constant 0 : index
    %c0_9 = arith.constant 0 : index
    %8 = vector.load %arg27[%c0_8, %c0_9] : memref<8x32xf32, #tpu.memory_space<vmem>>, vector<8x32xf32>
    %cst_10 = arith.constant dense<0.000000e+00> : vector<8x32xf32>
    %9 = tpu.matmul %1, %8, %cst_10 {dimension_numbers = #tpu.dot_dimension_numbers<[1], [0], [0], [1], [0, 0, 1, 1], [], []>} : vector<8x8xf32>, vector<8x32xf32>, vector<8x32xf32> -> vector<8x32xf32>
    %c0_11 = arith.constant 0 : index
    %c0_12 = arith.constant 0 : index
    %10 = vector.load %arg23[%c0_11, %c0_12] : memref<1x32xf32, #tpu.memory_space<vmem>>, vector<1x32xf32>
    %11 = vector.broadcast %10 : vector<1x32xf32> to vector<8x32xf32>
    %12 = arith.addf %9, %11 : vector<8x32xf32>
    %c0_13 = arith.constant 0 : index
    %c0_14 = arith.constant 0 : index
    %13 = vector.load %arg30[%c0_13, %c0_14] : memref<8x32xf32, #tpu.memory_space<vmem>>, vector<8x32xf32>
    %cst_15 = arith.constant dense<0.000000e+00> : vector<8x32xf32>
    %14 = tpu.matmul %1, %13, %cst_15 {dimension_numbers = #tpu.dot_dimension_numbers<[1], [0], [0], [1], [0, 0, 1, 1], [], []>} : vector<8x8xf32>, vector<8x32xf32>, vector<8x32xf32> -> vector<8x32xf32>
    %c0_16 = arith.constant 0 : index
    %c0_17 = arith.constant 0 : index
    %15 = vector.load %arg26[%c0_16, %c0_17] : memref<1x32xf32, #tpu.memory_space<vmem>>, vector<1x32xf32>
    %16 = vector.broadcast %15 : vector<1x32xf32> to vector<8x32xf32>
    %17 = arith.addf %14, %16 : vector<8x32xf32>
    %18 = vector.extract_strided_slice %7 {offsets = [0, 0], sizes = [16, 8], strides = [1, 1]} : vector<16x32xf32> to vector<16x8xf32>
    %19 = vector.extract_strided_slice %7 {offsets = [0, 8], sizes = [16, 8], strides = [1, 1]} : vector<16x32xf32> to vector<16x8xf32>
    %20 = vector.extract_strided_slice %7 {offsets = [0, 16], sizes = [16, 8], strides = [1, 1]} : vector<16x32xf32> to vector<16x8xf32>
    %21 = vector.extract_strided_slice %7 {offsets = [0, 24], sizes = [16, 8], strides = [1, 1]} : vector<16x32xf32> to vector<16x8xf32>
    %22 = vector.shape_cast %18 : vector<16x8xf32> to vector<1x16x8xf32>
    %23 = vector.shape_cast %19 : vector<16x8xf32> to vector<1x16x8xf32>
    %24 = vector.shape_cast %20 : vector<16x8xf32> to vector<1x16x8xf32>
    %25 = vector.shape_cast %21 : vector<16x8xf32> to vector<1x16x8xf32>
    %26 = tpu.concatenate %22, %23, %24, %25 in 0 : vector<1x16x8xf32>, vector<1x16x8xf32>, vector<1x16x8xf32>, vector<1x16x8xf32> -> vector<4x16x8xf32>
    %27 = vector.extract_strided_slice %12 {offsets = [0, 0], sizes = [8, 8], strides = [1, 1]} : vector<8x32xf32> to vector<8x8xf32>
    %28 = vector.extract_strided_slice %12 {offsets = [0, 8], sizes = [8, 8], strides = [1, 1]} : vector<8x32xf32> to vector<8x8xf32>
    %29 = vector.extract_strided_slice %12 {offsets = [0, 16], sizes = [8, 8], strides = [1, 1]} : vector<8x32xf32> to vector<8x8xf32>
    %30 = vector.extract_strided_slice %12 {offsets = [0, 24], sizes = [8, 8], strides = [1, 1]} : vector<8x32xf32> to vector<8x8xf32>
    %31 = vector.shape_cast %27 : vector<8x8xf32> to vector<1x8x8xf32>
    %32 = vector.shape_cast %28 : vector<8x8xf32> to vector<1x8x8xf32>
    %33 = vector.shape_cast %29 : vector<8x8xf32> to vector<1x8x8xf32>
    %34 = vector.shape_cast %30 : vector<8x8xf32> to vector<1x8x8xf32>
    %35 = tpu.concatenate %31, %32, %33, %34 in 0 : vector<1x8x8xf32>, vector<1x8x8xf32>, vector<1x8x8xf32>, vector<1x8x8xf32> -> vector<4x8x8xf32>
    %36 = vector.extract_strided_slice %17 {offsets = [0, 0], sizes = [8, 8], strides = [1, 1]} : vector<8x32xf32> to vector<8x8xf32>
    %37 = vector.extract_strided_slice %17 {offsets = [0, 8], sizes = [8, 8], strides = [1, 1]} : vector<8x32xf32> to vector<8x8xf32>
    %38 = vector.extract_strided_slice %17 {offsets = [0, 16], sizes = [8, 8], strides = [1, 1]} : vector<8x32xf32> to vector<8x8xf32>
    %39 = vector.extract_strided_slice %17 {offsets = [0, 24], sizes = [8, 8], strides = [1, 1]} : vector<8x32xf32> to vector<8x8xf32>
    %40 = vector.shape_cast %36 : vector<8x8xf32> to vector<1x8x8xf32>
    %41 = vector.shape_cast %37 : vector<8x8xf32> to vector<1x8x8xf32>
    %42 = vector.shape_cast %38 : vector<8x8xf32> to vector<1x8x8xf32>
    %43 = vector.shape_cast %39 : vector<8x8xf32> to vector<1x8x8xf32>
    %44 = tpu.concatenate %40, %41, %42, %43 in 0 : vector<1x8x8xf32>, vector<1x8x8xf32>, vector<1x8x8xf32>, vector<1x8x8xf32> -> vector<4x8x8xf32>
    "tpu.trace_start"() <{level = 10 : i32, message = "hqd,hkd->hqk"}> : () -> ()
    %cst_18 = arith.constant dense<0.000000e+00> : vector<4x16x8xf32>
    %45 = tpu.matmul %26, %35, %cst_18 {dimension_numbers = #tpu.dot_dimension_numbers<[2], [2], [1], [1], [0, 0, 0, 1, 1, 1], [0], [0]>} : vector<4x16x8xf32>, vector<4x8x8xf32>, vector<4x16x8xf32> -> vector<4x16x8xf32>
    "tpu.trace_stop"() : () -> ()
    %cst_19 = arith.constant 0.176776692 : f32
    %46 = vector.broadcast %cst_19 : f32 to vector<4x16x8xf32>
    %47 = arith.mulf %45, %46 : vector<4x16x8xf32>
    %cst_20 = arith.constant dense<0xFF800000> : vector<4x16xf32>
    %48 = vector.multi_reduction <maximumf>, %47, %cst_20 [2] : vector<4x16x8xf32> to vector<4x16xf32>
    %49 = vector.shape_cast %48 : vector<4x16xf32> to vector<4x16x1xf32>
    %50 = vector.broadcast %49 : vector<4x16x1xf32> to vector<4x16x8xf32>
    %51 = arith.subf %47, %50 : vector<4x16x8xf32>
    %52 = math.exp %51 : vector<4x16x8xf32>
    %cst_21 = arith.constant dense<0.000000e+00> : vector<4x16xf32>
    %53 = vector.multi_reduction <add>, %52, %cst_21 [2] : vector<4x16x8xf32> to vector<4x16xf32>
    %54 = vector.shape_cast %53 : vector<4x16xf32> to vector<4x16x1xf32>
    %55 = vector.broadcast %54 : vector<4x16x1xf32> to vector<4x16x8xf32>
    %56 = arith.divf %52, %55 : vector<4x16x8xf32>
    "tpu.trace_start"() <{level = 10 : i32, message = "hqk,hkd->hqd"}> : () -> ()
    %cst_22 = arith.constant dense<0.000000e+00> : vector<4x16x8xf32>
    %57 = tpu.matmul %56, %44, %cst_22 {dimension_numbers = #tpu.dot_dimension_numbers<[2], [1], [1], [2], [0, 0, 0, 1, 1, 2], [0], [0]>} : vector<4x16x8xf32>, vector<4x8x8xf32>, vector<4x16x8xf32> -> vector<4x16x8xf32>
    "tpu.trace_stop"() : () -> ()
    %58 = arith.addf %26, %57 : vector<4x16x8xf32>
    %59 = vector.extract_strided_slice %58 {offsets = [0, 0, 0], sizes = [1, 16, 8], strides = [1, 1, 1]} : vector<4x16x8xf32> to vector<1x16x8xf32>
    %60 = vector.shape_cast %59 : vector<1x16x8xf32> to vector<16x8xf32>
    %61 = vector.extract_strided_slice %58 {offsets = [1, 0, 0], sizes = [1, 16, 8], strides = [1, 1, 1]} : vector<4x16x8xf32> to vector<1x16x8xf32>
    %62 = vector.shape_cast %61 : vector<1x16x8xf32> to vector<16x8xf32>
    %63 = vector.extract_strided_slice %58 {offsets = [2, 0, 0], sizes = [1, 16, 8], strides = [1, 1, 1]} : vector<4x16x8xf32> to vector<1x16x8xf32>
    %64 = vector.shape_cast %63 : vector<1x16x8xf32> to vector<16x8xf32>
    %65 = vector.extract_strided_slice %58 {offsets = [3, 0, 0], sizes = [1, 16, 8], strides = [1, 1, 1]} : vector<4x16x8xf32> to vector<1x16x8xf32>
    %66 = vector.shape_cast %65 : vector<1x16x8xf32> to vector<16x8xf32>
    %67 = tpu.concatenate %60, %62, %64, %66 in 1 : vector<16x8xf32>, vector<16x8xf32>, vector<16x8xf32>, vector<16x8xf32> -> vector<16x32xf32>
    %c0_23 = arith.constant 0 : index
    %c0_24 = arith.constant 0 : index
    %68 = vector.load %arg28[%c0_23, %c0_24] : memref<32x32xf32, #tpu.memory_space<vmem>>, vector<32x32xf32>
    %cst_25 = arith.constant dense<0.000000e+00> : vector<16x32xf32>
    %69 = tpu.matmul %67, %68, %cst_25 {dimension_numbers = #tpu.dot_dimension_numbers<[1], [0], [0], [1], [0, 0, 1, 1], [], []>} : vector<16x32xf32>, vector<32x32xf32>, vector<16x32xf32> -> vector<16x32xf32>
    %c0_26 = arith.constant 0 : index
    %c0_27 = arith.constant 0 : index
    %70 = vector.load %arg24[%c0_26, %c0_27] : memref<1x32xf32, #tpu.memory_space<vmem>>, vector<1x32xf32>
    %71 = vector.broadcast %70 : vector<1x32xf32> to vector<16x32xf32>
    %72 = arith.addf %69, %71 : vector<16x32xf32>
    %cst_28 = arith.constant 0.000000e+00 : f32
    %73 = vector.broadcast %cst_28 : f32 to vector<16x32xf32>
    %74 = arith.maximumf %72, %73 : vector<16x32xf32>
    %75 = arith.addf %67, %74 : vector<16x32xf32>
    %c0_29 = arith.constant 0 : index
    %c0_30 = arith.constant 0 : index
    %76 = vector.load %arg37[%c0_29, %c0_30] : memref<8x32xf32, #tpu.memory_space<vmem>>, vector<8x32xf32>
    %cst_31 = arith.constant dense<0.000000e+00> : vector<8x32xf32>
    %77 = tpu.matmul %1, %76, %cst_31 {dimension_numbers = #tpu.dot_dimension_numbers<[1], [0], [0], [1], [0, 0, 1, 1], [], []>} : vector<8x8xf32>, vector<8x32xf32>, vector<8x32xf32> -> vector<8x32xf32>
    %c0_32 = arith.constant 0 : index
    %c0_33 = arith.constant 0 : index
    %78 = vector.load %arg33[%c0_32, %c0_33] : memref<1x32xf32, #tpu.memory_space<vmem>>, vector<1x32xf32>
    %79 = vector.broadcast %78 : vector<1x32xf32> to vector<8x32xf32>
    %80 = arith.addf %77, %79 : vector<8x32xf32>
    %c0_34 = arith.constant 0 : index
    %c0_35 = arith.constant 0 : index
    %81 = vector.load %arg35[%c0_34, %c0_35] : memref<32x32xf32, #tpu.memory_space<vmem>>, vector<32x32xf32>
    %cst_36 = arith.constant dense<0.000000e+00> : vector<16x32xf32>
    %82 = tpu.matmul %75, %81, %cst_36 {dimension_numbers = #tpu.dot_dimension_numbers<[1], [0], [0], [1], [0, 0, 1, 1], [], []>} : vector<16x32xf32>, vector<32x32xf32>, vector<16x32xf32> -> vector<16x32xf32>
    %c0_37 = arith.constant 0 : index
    %c0_38 = arith.constant 0 : index
    %83 = vector.load %arg31[%c0_37, %c0_38] : memref<1x32xf32, #tpu.memory_space<vmem>>, vector<1x32xf32>
    %84 = vector.broadcast %83 : vector<1x32xf32> to vector<16x32xf32>
    %85 = arith.addf %82, %84 : vector<16x32xf32>
    %c0_39 = arith.constant 0 : index
    %c0_40 = arith.constant 0 : index
    %86 = vector.load %arg38[%c0_39, %c0_40] : memref<32x32xf32, #tpu.memory_space<vmem>>, vector<32x32xf32>
    %cst_41 = arith.constant dense<0.000000e+00> : vector<16x32xf32>
    %87 = tpu.matmul %75, %86, %cst_41 {dimension_numbers = #tpu.dot_dimension_numbers<[1], [0], [0], [1], [0, 0, 1, 1], [], []>} : vector<16x32xf32>, vector<32x32xf32>, vector<16x32xf32> -> vector<16x32xf32>
    %c0_42 = arith.constant 0 : index
    %c0_43 = arith.constant 0 : index
    %88 = vector.load %arg34[%c0_42, %c0_43] : memref<1x32xf32, #tpu.memory_space<vmem>>, vector<1x32xf32>
    %89 = vector.broadcast %88 : vector<1x32xf32> to vector<16x32xf32>
    %90 = arith.addf %87, %89 : vector<16x32xf32>
    %91 = vector.extract_strided_slice %80 {offsets = [0, 0], sizes = [8, 8], strides = [1, 1]} : vector<8x32xf32> to vector<8x8xf32>
    %92 = vector.extract_strided_slice %80 {offsets = [0, 8], sizes = [8, 8], strides = [1, 1]} : vector<8x32xf32> to vector<8x8xf32>
    %93 = vector.extract_strided_slice %80 {offsets = [0, 16], sizes = [8, 8], strides = [1, 1]} : vector<8x32xf32> to vector<8x8xf32>
    %94 = vector.extract_strided_slice %80 {offsets = [0, 24], sizes = [8, 8], strides = [1, 1]} : vector<8x32xf32> to vector<8x8xf32>
    %95 = vector.shape_cast %91 : vector<8x8xf32> to vector<1x8x8xf32>
    %96 = vector.shape_cast %92 : vector<8x8xf32> to vector<1x8x8xf32>
    %97 = vector.shape_cast %93 : vector<8x8xf32> to vector<1x8x8xf32>
    %98 = vector.shape_cast %94 : vector<8x8xf32> to vector<1x8x8xf32>
    %99 = tpu.concatenate %95, %96, %97, %98 in 0 : vector<1x8x8xf32>, vector<1x8x8xf32>, vector<1x8x8xf32>, vector<1x8x8xf32> -> vector<4x8x8xf32>
    %100 = vector.extract_strided_slice %85 {offsets = [0, 0], sizes = [16, 8], strides = [1, 1]} : vector<16x32xf32> to vector<16x8xf32>
    %101 = vector.extract_strided_slice %85 {offsets = [0, 8], sizes = [16, 8], strides = [1, 1]} : vector<16x32xf32> to vector<16x8xf32>
    %102 = vector.extract_strided_slice %85 {offsets = [0, 16], sizes = [16, 8], strides = [1, 1]} : vector<16x32xf32> to vector<16x8xf32>
    %103 = vector.extract_strided_slice %85 {offsets = [0, 24], sizes = [16, 8], strides = [1, 1]} : vector<16x32xf32> to vector<16x8xf32>
    %104 = vector.shape_cast %100 : vector<16x8xf32> to vector<1x16x8xf32>
    %105 = vector.shape_cast %101 : vector<16x8xf32> to vector<1x16x8xf32>
    %106 = vector.shape_cast %102 : vector<16x8xf32> to vector<1x16x8xf32>
    %107 = vector.shape_cast %103 : vector<16x8xf32> to vector<1x16x8xf32>
    %108 = tpu.concatenate %104, %105, %106, %107 in 0 : vector<1x16x8xf32>, vector<1x16x8xf32>, vector<1x16x8xf32>, vector<1x16x8xf32> -> vector<4x16x8xf32>
    %109 = vector.extract_strided_slice %90 {offsets = [0, 0], sizes = [16, 8], strides = [1, 1]} : vector<16x32xf32> to vector<16x8xf32>
    %110 = vector.extract_strided_slice %90 {offsets = [0, 8], sizes = [16, 8], strides = [1, 1]} : vector<16x32xf32> to vector<16x8xf32>
    %111 = vector.extract_strided_slice %90 {offsets = [0, 16], sizes = [16, 8], strides = [1, 1]} : vector<16x32xf32> to vector<16x8xf32>
    %112 = vector.extract_strided_slice %90 {offsets = [0, 24], sizes = [16, 8], strides = [1, 1]} : vector<16x32xf32> to vector<16x8xf32>
    %113 = vector.shape_cast %109 : vector<16x8xf32> to vector<1x16x8xf32>
    %114 = vector.shape_cast %110 : vector<16x8xf32> to vector<1x16x8xf32>
    %115 = vector.shape_cast %111 : vector<16x8xf32> to vector<1x16x8xf32>
    %116 = vector.shape_cast %112 : vector<16x8xf32> to vector<1x16x8xf32>
    %117 = tpu.concatenate %113, %114, %115, %116 in 0 : vector<1x16x8xf32>, vector<1x16x8xf32>, vector<1x16x8xf32>, vector<1x16x8xf32> -> vector<4x16x8xf32>
    "tpu.trace_start"() <{level = 10 : i32, message = "hqd,hkd->hqk"}> : () -> ()
    %cst_44 = arith.constant dense<0.000000e+00> : vector<4x8x16xf32>
    %118 = tpu.matmul %99, %108, %cst_44 {dimension_numbers = #tpu.dot_dimension_numbers<[2], [2], [1], [1], [0, 0, 0, 1, 1, 1], [0], [0]>} : vector<4x8x8xf32>, vector<4x16x8xf32>, vector<4x8x16xf32> -> vector<4x8x16xf32>
    "tpu.trace_stop"() : () -> ()
    %cst_45 = arith.constant 0.176776692 : f32
    %119 = vector.broadcast %cst_45 : f32 to vector<4x8x16xf32>
    %120 = arith.mulf %118, %119 : vector<4x8x16xf32>
    %cst_46 = arith.constant dense<0xFF800000> : vector<4x8xf32>
    %121 = vector.multi_reduction <maximumf>, %120, %cst_46 [2] : vector<4x8x16xf32> to vector<4x8xf32>
    %122 = vector.shape_cast %121 : vector<4x8xf32> to vector<4x8x1xf32>
    %123 = vector.broadcast %122 : vector<4x8x1xf32> to vector<4x8x16xf32>
    %124 = arith.subf %120, %123 : vector<4x8x16xf32>
    %125 = math.exp %124 : vector<4x8x16xf32>
    %cst_47 = arith.constant dense<0.000000e+00> : vector<4x8xf32>
    %126 = vector.multi_reduction <add>, %125, %cst_47 [2] : vector<4x8x16xf32> to vector<4x8xf32>
    %127 = vector.shape_cast %126 : vector<4x8xf32> to vector<4x8x1xf32>
    %128 = vector.broadcast %127 : vector<4x8x1xf32> to vector<4x8x16xf32>
    %129 = arith.divf %125, %128 : vector<4x8x16xf32>
    "tpu.trace_start"() <{level = 10 : i32, message = "hqk,hkd->hqd"}> : () -> ()
    %cst_48 = arith.constant dense<0.000000e+00> : vector<4x8x8xf32>
    %130 = tpu.matmul %129, %117, %cst_48 {dimension_numbers = #tpu.dot_dimension_numbers<[2], [1], [1], [2], [0, 0, 0, 1, 1, 2], [0], [0]>} : vector<4x8x16xf32>, vector<4x16x8xf32>, vector<4x8x8xf32> -> vector<4x8x8xf32>
    "tpu.trace_stop"() : () -> ()
    %131 = arith.addf %99, %130 : vector<4x8x8xf32>
    %132 = vector.extract_strided_slice %131 {offsets = [0, 0, 0], sizes = [1, 8, 8], strides = [1, 1, 1]} : vector<4x8x8xf32> to vector<1x8x8xf32>
    %133 = vector.shape_cast %132 : vector<1x8x8xf32> to vector<8x8xf32>
    %134 = vector.extract_strided_slice %131 {offsets = [1, 0, 0], sizes = [1, 8, 8], strides = [1, 1, 1]} : vector<4x8x8xf32> to vector<1x8x8xf32>
    %135 = vector.shape_cast %134 : vector<1x8x8xf32> to vector<8x8xf32>
    %136 = vector.extract_strided_slice %131 {offsets = [2, 0, 0], sizes = [1, 8, 8], strides = [1, 1, 1]} : vector<4x8x8xf32> to vector<1x8x8xf32>
    %137 = vector.shape_cast %136 : vector<1x8x8xf32> to vector<8x8xf32>
    %138 = vector.extract_strided_slice %131 {offsets = [3, 0, 0], sizes = [1, 8, 8], strides = [1, 1, 1]} : vector<4x8x8xf32> to vector<1x8x8xf32>
    %139 = vector.shape_cast %138 : vector<1x8x8xf32> to vector<8x8xf32>
    %140 = tpu.concatenate %133, %135, %137, %139 in 1 : vector<8x8xf32>, vector<8x8xf32>, vector<8x8xf32>, vector<8x8xf32> -> vector<8x32xf32>
    %c0_49 = arith.constant 0 : index
    %c0_50 = arith.constant 0 : index
    %141 = vector.load %arg36[%c0_49, %c0_50] : memref<32x32xf32, #tpu.memory_space<vmem>>, vector<32x32xf32>
    %cst_51 = arith.constant dense<0.000000e+00> : vector<8x32xf32>
    %142 = tpu.matmul %140, %141, %cst_51 {dimension_numbers = #tpu.dot_dimension_numbers<[1], [0], [0], [1], [0, 0, 1, 1], [], []>} : vector<8x32xf32>, vector<32x32xf32>, vector<8x32xf32> -> vector<8x32xf32>
    %c0_52 = arith.constant 0 : index
    %c0_53 = arith.constant 0 : index
    %143 = vector.load %arg32[%c0_52, %c0_53] : memref<1x32xf32, #tpu.memory_space<vmem>>, vector<1x32xf32>
    %144 = vector.broadcast %143 : vector<1x32xf32> to vector<8x32xf32>
    %145 = arith.addf %142, %144 : vector<8x32xf32>
    %cst_54 = arith.constant 0.000000e+00 : f32
    %146 = vector.broadcast %cst_54 : f32 to vector<8x32xf32>
    %147 = arith.maximumf %145, %146 : vector<8x32xf32>
    %148 = arith.addf %140, %147 : vector<8x32xf32>
    %c0_55 = arith.constant 0 : index
    %c0_56 = arith.constant 0 : index
    %149 = vector.load %arg39[%c0_55, %c0_56] : memref<16x32xf32, #tpu.memory_space<vmem>>, vector<16x32xf32>
    %c0_57 = arith.constant 0 : index
    %c0_58 = arith.constant 0 : index
    %150 = vector.load %arg46[%c0_57, %c0_58] : memref<32x32xf32, #tpu.memory_space<vmem>>, vector<32x32xf32>
    %cst_59 = arith.constant dense<0.000000e+00> : vector<16x32xf32>
    %151 = tpu.matmul %149, %150, %cst_59 {dimension_numbers = #tpu.dot_dimension_numbers<[1], [0], [0], [1], [0, 0, 1, 1], [], []>} : vector<16x32xf32>, vector<32x32xf32>, vector<16x32xf32> -> vector<16x32xf32>
    %c0_60 = arith.constant 0 : index
    %c0_61 = arith.constant 0 : index
    %152 = vector.load %arg42[%c0_60, %c0_61] : memref<1x32xf32, #tpu.memory_space<vmem>>, vector<1x32xf32>
    %153 = vector.broadcast %152 : vector<1x32xf32> to vector<16x32xf32>
    %154 = arith.addf %151, %153 : vector<16x32xf32>
    %c0_62 = arith.constant 0 : index
    %c0_63 = arith.constant 0 : index
    %155 = vector.load %arg44[%c0_62, %c0_63] : memref<32x32xf32, #tpu.memory_space<vmem>>, vector<32x32xf32>
    %cst_64 = arith.constant dense<0.000000e+00> : vector<8x32xf32>
    %156 = tpu.matmul %148, %155, %cst_64 {dimension_numbers = #tpu.dot_dimension_numbers<[1], [0], [0], [1], [0, 0, 1, 1], [], []>} : vector<8x32xf32>, vector<32x32xf32>, vector<8x32xf32> -> vector<8x32xf32>
    %c0_65 = arith.constant 0 : index
    %c0_66 = arith.constant 0 : index
    %157 = vector.load %arg40[%c0_65, %c0_66] : memref<1x32xf32, #tpu.memory_space<vmem>>, vector<1x32xf32>
    %158 = vector.broadcast %157 : vector<1x32xf32> to vector<8x32xf32>
    %159 = arith.addf %156, %158 : vector<8x32xf32>
    %c0_67 = arith.constant 0 : index
    %c0_68 = arith.constant 0 : index
    %160 = vector.load %arg47[%c0_67, %c0_68] : memref<32x32xf32, #tpu.memory_space<vmem>>, vector<32x32xf32>
    %cst_69 = arith.constant dense<0.000000e+00> : vector<8x32xf32>
    %161 = tpu.matmul %148, %160, %cst_69 {dimension_numbers = #tpu.dot_dimension_numbers<[1], [0], [0], [1], [0, 0, 1, 1], [], []>} : vector<8x32xf32>, vector<32x32xf32>, vector<8x32xf32> -> vector<8x32xf32>
    %c0_70 = arith.constant 0 : index
    %c0_71 = arith.constant 0 : index
    %162 = vector.load %arg43[%c0_70, %c0_71] : memref<1x32xf32, #tpu.memory_space<vmem>>, vector<1x32xf32>
    %163 = vector.broadcast %162 : vector<1x32xf32> to vector<8x32xf32>
    %164 = arith.addf %161, %163 : vector<8x32xf32>
    %165 = vector.extract_strided_slice %154 {offsets = [0, 0], sizes = [16, 8], strides = [1, 1]} : vector<16x32xf32> to vector<16x8xf32>
    %166 = vector.extract_strided_slice %154 {offsets = [0, 8], sizes = [16, 8], strides = [1, 1]} : vector<16x32xf32> to vector<16x8xf32>
    %167 = vector.extract_strided_slice %154 {offsets = [0, 16], sizes = [16, 8], strides = [1, 1]} : vector<16x32xf32> to vector<16x8xf32>
    %168 = vector.extract_strided_slice %154 {offsets = [0, 24], sizes = [16, 8], strides = [1, 1]} : vector<16x32xf32> to vector<16x8xf32>
    %169 = vector.shape_cast %165 : vector<16x8xf32> to vector<1x16x8xf32>
    %170 = vector.shape_cast %166 : vector<16x8xf32> to vector<1x16x8xf32>
    %171 = vector.shape_cast %167 : vector<16x8xf32> to vector<1x16x8xf32>
    %172 = vector.shape_cast %168 : vector<16x8xf32> to vector<1x16x8xf32>
    %173 = tpu.concatenate %169, %170, %171, %172 in 0 : vector<1x16x8xf32>, vector<1x16x8xf32>, vector<1x16x8xf32>, vector<1x16x8xf32> -> vector<4x16x8xf32>
    %174 = vector.extract_strided_slice %159 {offsets = [0, 0], sizes = [8, 8], strides = [1, 1]} : vector<8x32xf32> to vector<8x8xf32>
    %175 = vector.extract_strided_slice %159 {offsets = [0, 8], sizes = [8, 8], strides = [1, 1]} : vector<8x32xf32> to vector<8x8xf32>
    %176 = vector.extract_strided_slice %159 {offsets = [0, 16], sizes = [8, 8], strides = [1, 1]} : vector<8x32xf32> to vector<8x8xf32>
    %177 = vector.extract_strided_slice %159 {offsets = [0, 24], sizes = [8, 8], strides = [1, 1]} : vector<8x32xf32> to vector<8x8xf32>
    %178 = vector.shape_cast %174 : vector<8x8xf32> to vector<1x8x8xf32>
    %179 = vector.shape_cast %175 : vector<8x8xf32> to vector<1x8x8xf32>
    %180 = vector.shape_cast %176 : vector<8x8xf32> to vector<1x8x8xf32>
    %181 = vector.shape_cast %177 : vector<8x8xf32> to vector<1x8x8xf32>
    %182 = tpu.concatenate %178, %179, %180, %181 in 0 : vector<1x8x8xf32>, vector<1x8x8xf32>, vector<1x8x8xf32>, vector<1x8x8xf32> -> vector<4x8x8xf32>
    %183 = vector.extract_strided_slice %164 {offsets = [0, 0], sizes = [8, 8], strides = [1, 1]} : vector<8x32xf32> to vector<8x8xf32>
    %184 = vector.extract_strided_slice %164 {offsets = [0, 8], sizes = [8, 8], strides = [1, 1]} : vector<8x32xf32> to vector<8x8xf32>
    %185 = vector.extract_strided_slice %164 {offsets = [0, 16], sizes = [8, 8], strides = [1, 1]} : vector<8x32xf32> to vector<8x8xf32>
    %186 = vector.extract_strided_slice %164 {offsets = [0, 24], sizes = [8, 8], strides = [1, 1]} : vector<8x32xf32> to vector<8x8xf32>
    %187 = vector.shape_cast %183 : vector<8x8xf32> to vector<1x8x8xf32>
    %188 = vector.shape_cast %184 : vector<8x8xf32> to vector<1x8x8xf32>
    %189 = vector.shape_cast %185 : vector<8x8xf32> to vector<1x8x8xf32>
    %190 = vector.shape_cast %186 : vector<8x8xf32> to vector<1x8x8xf32>
    %191 = tpu.concatenate %187, %188, %189, %190 in 0 : vector<1x8x8xf32>, vector<1x8x8xf32>, vector<1x8x8xf32>, vector<1x8x8xf32> -> vector<4x8x8xf32>
    "tpu.trace_start"() <{level = 10 : i32, message = "hqd,hkd->hqk"}> : () -> ()
    %cst_72 = arith.constant dense<0.000000e+00> : vector<4x16x8xf32>
    %192 = tpu.matmul %173, %182, %cst_72 {dimension_numbers = #tpu.dot_dimension_numbers<[2], [2], [1], [1], [0, 0, 0, 1, 1, 1], [0], [0]>} : vector<4x16x8xf32>, vector<4x8x8xf32>, vector<4x16x8xf32> -> vector<4x16x8xf32>
    "tpu.trace_stop"() : () -> ()
    %cst_73 = arith.constant 0.176776692 : f32
    %193 = vector.broadcast %cst_73 : f32 to vector<4x16x8xf32>
    %194 = arith.mulf %192, %193 : vector<4x16x8xf32>
    %cst_74 = arith.constant dense<0xFF800000> : vector<4x16xf32>
    %195 = vector.multi_reduction <maximumf>, %194, %cst_74 [2] : vector<4x16x8xf32> to vector<4x16xf32>
    %196 = vector.shape_cast %195 : vector<4x16xf32> to vector<4x16x1xf32>
    %197 = vector.broadcast %196 : vector<4x16x1xf32> to vector<4x16x8xf32>
    %198 = arith.subf %194, %197 : vector<4x16x8xf32>
    %199 = math.exp %198 : vector<4x16x8xf32>
    %cst_75 = arith.constant dense<0.000000e+00> : vector<4x16xf32>
    %200 = vector.multi_reduction <add>, %199, %cst_75 [2] : vector<4x16x8xf32> to vector<4x16xf32>
    %201 = vector.shape_cast %200 : vector<4x16xf32> to vector<4x16x1xf32>
    %202 = vector.broadcast %201 : vector<4x16x1xf32> to vector<4x16x8xf32>
    %203 = arith.divf %199, %202 : vector<4x16x8xf32>
    "tpu.trace_start"() <{level = 10 : i32, message = "hqk,hkd->hqd"}> : () -> ()
    %cst_76 = arith.constant dense<0.000000e+00> : vector<4x16x8xf32>
    %204 = tpu.matmul %203, %191, %cst_76 {dimension_numbers = #tpu.dot_dimension_numbers<[2], [1], [1], [2], [0, 0, 0, 1, 1, 2], [0], [0]>} : vector<4x16x8xf32>, vector<4x8x8xf32>, vector<4x16x8xf32> -> vector<4x16x8xf32>
    "tpu.trace_stop"() : () -> ()
    %205 = arith.addf %173, %204 : vector<4x16x8xf32>
    %206 = vector.extract_strided_slice %205 {offsets = [0, 0, 0], sizes = [1, 16, 8], strides = [1, 1, 1]} : vector<4x16x8xf32> to vector<1x16x8xf32>
    %207 = vector.shape_cast %206 : vector<1x16x8xf32> to vector<16x8xf32>
    %208 = vector.extract_strided_slice %205 {offsets = [1, 0, 0], sizes = [1, 16, 8], strides = [1, 1, 1]} : vector<4x16x8xf32> to vector<1x16x8xf32>
    %209 = vector.shape_cast %208 : vector<1x16x8xf32> to vector<16x8xf32>
    %210 = vector.extract_strided_slice %205 {offsets = [2, 0, 0], sizes = [1, 16, 8], strides = [1, 1, 1]} : vector<4x16x8xf32> to vector<1x16x8xf32>
    %211 = vector.shape_cast %210 : vector<1x16x8xf32> to vector<16x8xf32>
    %212 = vector.extract_strided_slice %205 {offsets = [3, 0, 0], sizes = [1, 16, 8], strides = [1, 1, 1]} : vector<4x16x8xf32> to vector<1x16x8xf32>
    %213 = vector.shape_cast %212 : vector<1x16x8xf32> to vector<16x8xf32>
    %214 = tpu.concatenate %207, %209, %211, %213 in 1 : vector<16x8xf32>, vector<16x8xf32>, vector<16x8xf32>, vector<16x8xf32> -> vector<16x32xf32>
    %c0_77 = arith.constant 0 : index
    %c0_78 = arith.constant 0 : index
    %215 = vector.load %arg45[%c0_77, %c0_78] : memref<32x32xf32, #tpu.memory_space<vmem>>, vector<32x32xf32>
    %cst_79 = arith.constant dense<0.000000e+00> : vector<16x32xf32>
    %216 = tpu.matmul %214, %215, %cst_79 {dimension_numbers = #tpu.dot_dimension_numbers<[1], [0], [0], [1], [0, 0, 1, 1], [], []>} : vector<16x32xf32>, vector<32x32xf32>, vector<16x32xf32> -> vector<16x32xf32>
    %c0_80 = arith.constant 0 : index
    %c0_81 = arith.constant 0 : index
    %217 = vector.load %arg41[%c0_80, %c0_81] : memref<1x32xf32, #tpu.memory_space<vmem>>, vector<1x32xf32>
    %218 = vector.broadcast %217 : vector<1x32xf32> to vector<16x32xf32>
    %219 = arith.addf %216, %218 : vector<16x32xf32>
    %cst_82 = arith.constant 0.000000e+00 : f32
    %220 = vector.broadcast %cst_82 : f32 to vector<16x32xf32>
    %221 = arith.maximumf %219, %220 : vector<16x32xf32>
    %222 = arith.addf %214, %221 : vector<16x32xf32>
    %c0_83 = arith.constant 0 : index
    %c0_84 = arith.constant 0 : index
    %223 = vector.load %arg54[%c0_83, %c0_84] : memref<32x32xf32, #tpu.memory_space<vmem>>, vector<32x32xf32>
    %cst_85 = arith.constant dense<0.000000e+00> : vector<8x32xf32>
    %224 = tpu.matmul %148, %223, %cst_85 {dimension_numbers = #tpu.dot_dimension_numbers<[1], [0], [0], [1], [0, 0, 1, 1], [], []>} : vector<8x32xf32>, vector<32x32xf32>, vector<8x32xf32> -> vector<8x32xf32>
    %c0_86 = arith.constant 0 : index
    %c0_87 = arith.constant 0 : index
    %225 = vector.load %arg50[%c0_86, %c0_87] : memref<1x32xf32, #tpu.memory_space<vmem>>, vector<1x32xf32>
    %226 = vector.broadcast %225 : vector<1x32xf32> to vector<8x32xf32>
    %227 = arith.addf %224, %226 : vector<8x32xf32>
    %c0_88 = arith.constant 0 : index
    %c0_89 = arith.constant 0 : index
    %228 = vector.load %arg52[%c0_88, %c0_89] : memref<32x32xf32, #tpu.memory_space<vmem>>, vector<32x32xf32>
    %cst_90 = arith.constant dense<0.000000e+00> : vector<16x32xf32>
    %229 = tpu.matmul %222, %228, %cst_90 {dimension_numbers = #tpu.dot_dimension_numbers<[1], [0], [0], [1], [0, 0, 1, 1], [], []>} : vector<16x32xf32>, vector<32x32xf32>, vector<16x32xf32> -> vector<16x32xf32>
    %c0_91 = arith.constant 0 : index
    %c0_92 = arith.constant 0 : index
    %230 = vector.load %arg48[%c0_91, %c0_92] : memref<1x32xf32, #tpu.memory_space<vmem>>, vector<1x32xf32>
    %231 = vector.broadcast %230 : vector<1x32xf32> to vector<16x32xf32>
    %232 = arith.addf %229, %231 : vector<16x32xf32>
    %c0_93 = arith.constant 0 : index
    %c0_94 = arith.constant 0 : index
    %233 = vector.load %arg55[%c0_93, %c0_94] : memref<32x32xf32, #tpu.memory_space<vmem>>, vector<32x32xf32>
    %cst_95 = arith.constant dense<0.000000e+00> : vector<16x32xf32>
    %234 = tpu.matmul %222, %233, %cst_95 {dimension_numbers = #tpu.dot_dimension_numbers<[1], [0], [0], [1], [0, 0, 1, 1], [], []>} : vector<16x32xf32>, vector<32x32xf32>, vector<16x32xf32> -> vector<16x32xf32>
    %c0_96 = arith.constant 0 : index
    %c0_97 = arith.constant 0 : index
    %235 = vector.load %arg51[%c0_96, %c0_97] : memref<1x32xf32, #tpu.memory_space<vmem>>, vector<1x32xf32>
    %236 = vector.broadcast %235 : vector<1x32xf32> to vector<16x32xf32>
    %237 = arith.addf %234, %236 : vector<16x32xf32>
    %238 = vector.extract_strided_slice %227 {offsets = [0, 0], sizes = [8, 8], strides = [1, 1]} : vector<8x32xf32> to vector<8x8xf32>
    %239 = vector.extract_strided_slice %227 {offsets = [0, 8], sizes = [8, 8], strides = [1, 1]} : vector<8x32xf32> to vector<8x8xf32>
    %240 = vector.extract_strided_slice %227 {offsets = [0, 16], sizes = [8, 8], strides = [1, 1]} : vector<8x32xf32> to vector<8x8xf32>
    %241 = vector.extract_strided_slice %227 {offsets = [0, 24], sizes = [8, 8], strides = [1, 1]} : vector<8x32xf32> to vector<8x8xf32>
    %242 = vector.shape_cast %238 : vector<8x8xf32> to vector<1x8x8xf32>
    %243 = vector.shape_cast %239 : vector<8x8xf32> to vector<1x8x8xf32>
    %244 = vector.shape_cast %240 : vector<8x8xf32> to vector<1x8x8xf32>
    %245 = vector.shape_cast %241 : vector<8x8xf32> to vector<1x8x8xf32>
    %246 = tpu.concatenate %242, %243, %244, %245 in 0 : vector<1x8x8xf32>, vector<1x8x8xf32>, vector<1x8x8xf32>, vector<1x8x8xf32> -> vector<4x8x8xf32>
    %247 = vector.extract_strided_slice %232 {offsets = [0, 0], sizes = [16, 8], strides = [1, 1]} : vector<16x32xf32> to vector<16x8xf32>
    %248 = vector.extract_strided_slice %232 {offsets = [0, 8], sizes = [16, 8], strides = [1, 1]} : vector<16x32xf32> to vector<16x8xf32>
    %249 = vector.extract_strided_slice %232 {offsets = [0, 16], sizes = [16, 8], strides = [1, 1]} : vector<16x32xf32> to vector<16x8xf32>
    %250 = vector.extract_strided_slice %232 {offsets = [0, 24], sizes = [16, 8], strides = [1, 1]} : vector<16x32xf32> to vector<16x8xf32>
    %251 = vector.shape_cast %247 : vector<16x8xf32> to vector<1x16x8xf32>
    %252 = vector.shape_cast %248 : vector<16x8xf32> to vector<1x16x8xf32>
    %253 = vector.shape_cast %249 : vector<16x8xf32> to vector<1x16x8xf32>
    %254 = vector.shape_cast %250 : vector<16x8xf32> to vector<1x16x8xf32>
    %255 = tpu.concatenate %251, %252, %253, %254 in 0 : vector<1x16x8xf32>, vector<1x16x8xf32>, vector<1x16x8xf32>, vector<1x16x8xf32> -> vector<4x16x8xf32>
    %256 = vector.extract_strided_slice %237 {offsets = [0, 0], sizes = [16, 8], strides = [1, 1]} : vector<16x32xf32> to vector<16x8xf32>
    %257 = vector.extract_strided_slice %237 {offsets = [0, 8], sizes = [16, 8], strides = [1, 1]} : vector<16x32xf32> to vector<16x8xf32>
    %258 = vector.extract_strided_slice %237 {offsets = [0, 16], sizes = [16, 8], strides = [1, 1]} : vector<16x32xf32> to vector<16x8xf32>
    %259 = vector.extract_strided_slice %237 {offsets = [0, 24], sizes = [16, 8], strides = [1, 1]} : vector<16x32xf32> to vector<16x8xf32>
    %260 = vector.shape_cast %256 : vector<16x8xf32> to vector<1x16x8xf32>
    %261 = vector.shape_cast %257 : vector<16x8xf32> to vector<1x16x8xf32>
    %262 = vector.shape_cast %258 : vector<16x8xf32> to vector<1x16x8xf32>
    %263 = vector.shape_cast %259 : vector<16x8xf32> to vector<1x16x8xf32>
    %264 = tpu.concatenate %260, %261, %262, %263 in 0 : vector<1x16x8xf32>, vector<1x16x8xf32>, vector<1x16x8xf32>, vector<1x16x8xf32> -> vector<4x16x8xf32>
    "tpu.trace_start"() <{level = 10 : i32, message = "hqd,hkd->hqk"}> : () -> ()
    %cst_98 = arith.constant dense<0.000000e+00> : vector<4x8x16xf32>
    %265 = tpu.matmul %246, %255, %cst_98 {dimension_numbers = #tpu.dot_dimension_numbers<[2], [2], [1], [1], [0, 0, 0, 1, 1, 1], [0], [0]>} : vector<4x8x8xf32>, vector<4x16x8xf32>, vector<4x8x16xf32> -> vector<4x8x16xf32>
    "tpu.trace_stop"() : () -> ()
    %cst_99 = arith.constant 0.176776692 : f32
    %266 = vector.broadcast %cst_99 : f32 to vector<4x8x16xf32>
    %267 = arith.mulf %265, %266 : vector<4x8x16xf32>
    %cst_100 = arith.constant dense<0xFF800000> : vector<4x8xf32>
    %268 = vector.multi_reduction <maximumf>, %267, %cst_100 [2] : vector<4x8x16xf32> to vector<4x8xf32>
    %269 = vector.shape_cast %268 : vector<4x8xf32> to vector<4x8x1xf32>
    %270 = vector.broadcast %269 : vector<4x8x1xf32> to vector<4x8x16xf32>
    %271 = arith.subf %267, %270 : vector<4x8x16xf32>
    %272 = math.exp %271 : vector<4x8x16xf32>
    %cst_101 = arith.constant dense<0.000000e+00> : vector<4x8xf32>
    %273 = vector.multi_reduction <add>, %272, %cst_101 [2] : vector<4x8x16xf32> to vector<4x8xf32>
    %274 = vector.shape_cast %273 : vector<4x8xf32> to vector<4x8x1xf32>
    %275 = vector.broadcast %274 : vector<4x8x1xf32> to vector<4x8x16xf32>
    %276 = arith.divf %272, %275 : vector<4x8x16xf32>
    "tpu.trace_start"() <{level = 10 : i32, message = "hqk,hkd->hqd"}> : () -> ()
    %cst_102 = arith.constant dense<0.000000e+00> : vector<4x8x8xf32>
    %277 = tpu.matmul %276, %264, %cst_102 {dimension_numbers = #tpu.dot_dimension_numbers<[2], [1], [1], [2], [0, 0, 0, 1, 1, 2], [0], [0]>} : vector<4x8x16xf32>, vector<4x16x8xf32>, vector<4x8x8xf32> -> vector<4x8x8xf32>
    "tpu.trace_stop"() : () -> ()
    %278 = arith.addf %246, %277 : vector<4x8x8xf32>
    %279 = vector.extract_strided_slice %278 {offsets = [0, 0, 0], sizes = [1, 8, 8], strides = [1, 1, 1]} : vector<4x8x8xf32> to vector<1x8x8xf32>
    %280 = vector.shape_cast %279 : vector<1x8x8xf32> to vector<8x8xf32>
    %281 = vector.extract_strided_slice %278 {offsets = [1, 0, 0], sizes = [1, 8, 8], strides = [1, 1, 1]} : vector<4x8x8xf32> to vector<1x8x8xf32>
    %282 = vector.shape_cast %281 : vector<1x8x8xf32> to vector<8x8xf32>
    %283 = vector.extract_strided_slice %278 {offsets = [2, 0, 0], sizes = [1, 8, 8], strides = [1, 1, 1]} : vector<4x8x8xf32> to vector<1x8x8xf32>
    %284 = vector.shape_cast %283 : vector<1x8x8xf32> to vector<8x8xf32>
    %285 = vector.extract_strided_slice %278 {offsets = [3, 0, 0], sizes = [1, 8, 8], strides = [1, 1, 1]} : vector<4x8x8xf32> to vector<1x8x8xf32>
    %286 = vector.shape_cast %285 : vector<1x8x8xf32> to vector<8x8xf32>
    %287 = tpu.concatenate %280, %282, %284, %286 in 1 : vector<8x8xf32>, vector<8x8xf32>, vector<8x8xf32>, vector<8x8xf32> -> vector<8x32xf32>
    %c0_103 = arith.constant 0 : index
    %c0_104 = arith.constant 0 : index
    %288 = vector.load %arg53[%c0_103, %c0_104] : memref<32x32xf32, #tpu.memory_space<vmem>>, vector<32x32xf32>
    %cst_105 = arith.constant dense<0.000000e+00> : vector<8x32xf32>
    %289 = tpu.matmul %287, %288, %cst_105 {dimension_numbers = #tpu.dot_dimension_numbers<[1], [0], [0], [1], [0, 0, 1, 1], [], []>} : vector<8x32xf32>, vector<32x32xf32>, vector<8x32xf32> -> vector<8x32xf32>
    %c0_106 = arith.constant 0 : index
    %c0_107 = arith.constant 0 : index
    %290 = vector.load %arg49[%c0_106, %c0_107] : memref<1x32xf32, #tpu.memory_space<vmem>>, vector<1x32xf32>
    %291 = vector.broadcast %290 : vector<1x32xf32> to vector<8x32xf32>
    %292 = arith.addf %289, %291 : vector<8x32xf32>
    %cst_108 = arith.constant 0.000000e+00 : f32
    %293 = vector.broadcast %cst_108 : f32 to vector<8x32xf32>
    %294 = arith.maximumf %292, %293 : vector<8x32xf32>
    %295 = arith.addf %287, %294 : vector<8x32xf32>
    %c0_109 = arith.constant 0 : index
    %c0_110 = arith.constant 0 : index
    %296 = vector.load %arg64[%c0_109, %c0_110] : memref<1x32xf32, #tpu.memory_space<vmem>>, vector<1x32xf32>
    %c0_111 = arith.constant 0 : index
    %c0_112 = arith.constant 0 : index
    %297 = vector.load %arg71[%c0_111, %c0_112] : memref<32x32xf32, #tpu.memory_space<vmem>>, vector<32x32xf32>
    %cst_113 = arith.constant dense<0.000000e+00> : vector<1x32xf32>
    %298 = tpu.matmul %296, %297, %cst_113 {dimension_numbers = #tpu.dot_dimension_numbers<[1], [0], [0], [1], [0, 0, 1, 1], [], []>} : vector<1x32xf32>, vector<32x32xf32>, vector<1x32xf32> -> vector<1x32xf32>
    %c0_114 = arith.constant 0 : index
    %c0_115 = arith.constant 0 : index
    %299 = vector.load %arg67[%c0_114, %c0_115] : memref<1x32xf32, #tpu.memory_space<vmem>>, vector<1x32xf32>
    %300 = arith.addf %298, %299 : vector<1x32xf32>
    %c0_116 = arith.constant 0 : index
    %c0_117 = arith.constant 0 : index
    %301 = vector.load %arg69[%c0_116, %c0_117] : memref<32x32xf32, #tpu.memory_space<vmem>>, vector<32x32xf32>
    %cst_118 = arith.constant dense<0.000000e+00> : vector<8x32xf32>
    %302 = tpu.matmul %295, %301, %cst_118 {dimension_numbers = #tpu.dot_dimension_numbers<[1], [0], [0], [1], [0, 0, 1, 1], [], []>} : vector<8x32xf32>, vector<32x32xf32>, vector<8x32xf32> -> vector<8x32xf32>
    %c0_119 = arith.constant 0 : index
    %c0_120 = arith.constant 0 : index
    %303 = vector.load %arg65[%c0_119, %c0_120] : memref<1x32xf32, #tpu.memory_space<vmem>>, vector<1x32xf32>
    %304 = vector.broadcast %303 : vector<1x32xf32> to vector<8x32xf32>
    %305 = arith.addf %302, %304 : vector<8x32xf32>
    %c0_121 = arith.constant 0 : index
    %c0_122 = arith.constant 0 : index
    %306 = vector.load %arg72[%c0_121, %c0_122] : memref<32x32xf32, #tpu.memory_space<vmem>>, vector<32x32xf32>
    %cst_123 = arith.constant dense<0.000000e+00> : vector<8x32xf32>
    %307 = tpu.matmul %295, %306, %cst_123 {dimension_numbers = #tpu.dot_dimension_numbers<[1], [0], [0], [1], [0, 0, 1, 1], [], []>} : vector<8x32xf32>, vector<32x32xf32>, vector<8x32xf32> -> vector<8x32xf32>
    %c0_124 = arith.constant 0 : index
    %c0_125 = arith.constant 0 : index
    %308 = vector.load %arg68[%c0_124, %c0_125] : memref<1x32xf32, #tpu.memory_space<vmem>>, vector<1x32xf32>
    %309 = vector.broadcast %308 : vector<1x32xf32> to vector<8x32xf32>
    %310 = arith.addf %307, %309 : vector<8x32xf32>
    %311 = vector.extract_strided_slice %300 {offsets = [0, 0], sizes = [1, 8], strides = [1, 1]} : vector<1x32xf32> to vector<1x8xf32>
    %312 = vector.extract_strided_slice %300 {offsets = [0, 8], sizes = [1, 8], strides = [1, 1]} : vector<1x32xf32> to vector<1x8xf32>
    %313 = vector.extract_strided_slice %300 {offsets = [0, 16], sizes = [1, 8], strides = [1, 1]} : vector<1x32xf32> to vector<1x8xf32>
    %314 = vector.extract_strided_slice %300 {offsets = [0, 24], sizes = [1, 8], strides = [1, 1]} : vector<1x32xf32> to vector<1x8xf32>
    %315 = vector.shape_cast %311 : vector<1x8xf32> to vector<1x1x8xf32>
    %316 = vector.shape_cast %312 : vector<1x8xf32> to vector<1x1x8xf32>
    %317 = vector.shape_cast %313 : vector<1x8xf32> to vector<1x1x8xf32>
    %318 = vector.shape_cast %314 : vector<1x8xf32> to vector<1x1x8xf32>
    %319 = tpu.concatenate %315, %316, %317, %318 in 0 : vector<1x1x8xf32>, vector<1x1x8xf32>, vector<1x1x8xf32>, vector<1x1x8xf32> -> vector<4x1x8xf32>
    %320 = vector.extract_strided_slice %305 {offsets = [0, 0], sizes = [8, 8], strides = [1, 1]} : vector<8x32xf32> to vector<8x8xf32>
    %321 = vector.extract_strided_slice %305 {offsets = [0, 8], sizes = [8, 8], strides = [1, 1]} : vector<8x32xf32> to vector<8x8xf32>
    %322 = vector.extract_strided_slice %305 {offsets = [0, 16], sizes = [8, 8], strides = [1, 1]} : vector<8x32xf32> to vector<8x8xf32>
    %323 = vector.extract_strided_slice %305 {offsets = [0, 24], sizes = [8, 8], strides = [1, 1]} : vector<8x32xf32> to vector<8x8xf32>
    %324 = vector.shape_cast %320 : vector<8x8xf32> to vector<1x8x8xf32>
    %325 = vector.shape_cast %321 : vector<8x8xf32> to vector<1x8x8xf32>
    %326 = vector.shape_cast %322 : vector<8x8xf32> to vector<1x8x8xf32>
    %327 = vector.shape_cast %323 : vector<8x8xf32> to vector<1x8x8xf32>
    %328 = tpu.concatenate %324, %325, %326, %327 in 0 : vector<1x8x8xf32>, vector<1x8x8xf32>, vector<1x8x8xf32>, vector<1x8x8xf32> -> vector<4x8x8xf32>
    %329 = vector.extract_strided_slice %310 {offsets = [0, 0], sizes = [8, 8], strides = [1, 1]} : vector<8x32xf32> to vector<8x8xf32>
    %330 = vector.extract_strided_slice %310 {offsets = [0, 8], sizes = [8, 8], strides = [1, 1]} : vector<8x32xf32> to vector<8x8xf32>
    %331 = vector.extract_strided_slice %310 {offsets = [0, 16], sizes = [8, 8], strides = [1, 1]} : vector<8x32xf32> to vector<8x8xf32>
    %332 = vector.extract_strided_slice %310 {offsets = [0, 24], sizes = [8, 8], strides = [1, 1]} : vector<8x32xf32> to vector<8x8xf32>
    %333 = vector.shape_cast %329 : vector<8x8xf32> to vector<1x8x8xf32>
    %334 = vector.shape_cast %330 : vector<8x8xf32> to vector<1x8x8xf32>
    %335 = vector.shape_cast %331 : vector<8x8xf32> to vector<1x8x8xf32>
    %336 = vector.shape_cast %332 : vector<8x8xf32> to vector<1x8x8xf32>
    %337 = tpu.concatenate %333, %334, %335, %336 in 0 : vector<1x8x8xf32>, vector<1x8x8xf32>, vector<1x8x8xf32>, vector<1x8x8xf32> -> vector<4x8x8xf32>
    "tpu.trace_start"() <{level = 10 : i32, message = "hqd,hkd->hqk"}> : () -> ()
    %cst_126 = arith.constant dense<0.000000e+00> : vector<4x1x8xf32>
    %338 = tpu.matmul %319, %328, %cst_126 {dimension_numbers = #tpu.dot_dimension_numbers<[2], [2], [1], [1], [0, 0, 0, 1, 1, 1], [0], [0]>} : vector<4x1x8xf32>, vector<4x8x8xf32>, vector<4x1x8xf32> -> vector<4x1x8xf32>
    "tpu.trace_stop"() : () -> ()
    %cst_127 = arith.constant 0.176776692 : f32
    %339 = vector.broadcast %cst_127 : f32 to vector<4x1x8xf32>
    %340 = arith.mulf %338, %339 : vector<4x1x8xf32>
    %cst_128 = arith.constant dense<0xFF800000> : vector<4x1xf32>
    %341 = vector.multi_reduction <maximumf>, %340, %cst_128 [2] : vector<4x1x8xf32> to vector<4x1xf32>
    %342 = vector.shape_cast %341 : vector<4x1xf32> to vector<4x1x1xf32>
    %343 = vector.broadcast %342 : vector<4x1x1xf32> to vector<4x1x8xf32>
    %344 = arith.subf %340, %343 : vector<4x1x8xf32>
    %345 = math.exp %344 : vector<4x1x8xf32>
    %cst_129 = arith.constant dense<0.000000e+00> : vector<4x1xf32>
    %346 = vector.multi_reduction <add>, %345, %cst_129 [2] : vector<4x1x8xf32> to vector<4x1xf32>
    %347 = vector.shape_cast %346 : vector<4x1xf32> to vector<4x1x1xf32>
    %348 = vector.broadcast %347 : vector<4x1x1xf32> to vector<4x1x8xf32>
    %349 = arith.divf %345, %348 : vector<4x1x8xf32>
    "tpu.trace_start"() <{level = 10 : i32, message = "hqk,hkd->hqd"}> : () -> ()
    %cst_130 = arith.constant dense<0.000000e+00> : vector<4x1x8xf32>
    %350 = tpu.matmul %349, %337, %cst_130 {dimension_numbers = #tpu.dot_dimension_numbers<[2], [1], [1], [2], [0, 0, 0, 1, 1, 2], [0], [0]>} : vector<4x1x8xf32>, vector<4x8x8xf32>, vector<4x1x8xf32> -> vector<4x1x8xf32>
    "tpu.trace_stop"() : () -> ()
    %351 = arith.addf %319, %350 : vector<4x1x8xf32>
    %352 = vector.extract_strided_slice %351 {offsets = [0, 0, 0], sizes = [1, 1, 8], strides = [1, 1, 1]} : vector<4x1x8xf32> to vector<1x1x8xf32>
    %353 = vector.shape_cast %352 : vector<1x1x8xf32> to vector<1x8xf32>
    %354 = vector.extract_strided_slice %351 {offsets = [1, 0, 0], sizes = [1, 1, 8], strides = [1, 1, 1]} : vector<4x1x8xf32> to vector<1x1x8xf32>
    %355 = vector.shape_cast %354 : vector<1x1x8xf32> to vector<1x8xf32>
    %356 = vector.extract_strided_slice %351 {offsets = [2, 0, 0], sizes = [1, 1, 8], strides = [1, 1, 1]} : vector<4x1x8xf32> to vector<1x1x8xf32>
    %357 = vector.shape_cast %356 : vector<1x1x8xf32> to vector<1x8xf32>
    %358 = vector.extract_strided_slice %351 {offsets = [3, 0, 0], sizes = [1, 1, 8], strides = [1, 1, 1]} : vector<4x1x8xf32> to vector<1x1x8xf32>
    %359 = vector.shape_cast %358 : vector<1x1x8xf32> to vector<1x8xf32>
    %360 = tpu.concatenate %353, %355, %357, %359 in 1 : vector<1x8xf32>, vector<1x8xf32>, vector<1x8xf32>, vector<1x8xf32> -> vector<1x32xf32>
    %c0_131 = arith.constant 0 : index
    %c0_132 = arith.constant 0 : index
    %361 = vector.load %arg70[%c0_131, %c0_132] : memref<32x32xf32, #tpu.memory_space<vmem>>, vector<32x32xf32>
    %cst_133 = arith.constant dense<0.000000e+00> : vector<1x32xf32>
    %362 = tpu.matmul %360, %361, %cst_133 {dimension_numbers = #tpu.dot_dimension_numbers<[1], [0], [0], [1], [0, 0, 1, 1], [], []>} : vector<1x32xf32>, vector<32x32xf32>, vector<1x32xf32> -> vector<1x32xf32>
    %c0_134 = arith.constant 0 : index
    %c0_135 = arith.constant 0 : index
    %363 = vector.load %arg66[%c0_134, %c0_135] : memref<1x32xf32, #tpu.memory_space<vmem>>, vector<1x32xf32>
    %364 = arith.addf %362, %363 : vector<1x32xf32>
    %cst_136 = arith.constant 0.000000e+00 : f32
    %365 = vector.broadcast %cst_136 : f32 to vector<1x32xf32>
    %366 = arith.maximumf %364, %365 : vector<1x32xf32>
    %367 = arith.addf %360, %366 : vector<1x32xf32>
    %c0_137 = arith.constant 0 : index
    %c0_138 = arith.constant 0 : index
    %368 = vector.load %arg12[%c0_137, %c0_138] : memref<32x32xf32, #tpu.memory_space<vmem>>, vector<32x32xf32>
    %cst_139 = arith.constant dense<0.000000e+00> : vector<1x32xf32>
    %369 = tpu.matmul %367, %368, %cst_139 {dimension_numbers = #tpu.dot_dimension_numbers<[1], [0], [0], [1], [0, 0, 1, 1], [], []>} : vector<1x32xf32>, vector<32x32xf32>, vector<1x32xf32> -> vector<1x32xf32>
    %c0_140 = arith.constant 0 : index
    %c0_141 = arith.constant 0 : index
    %370 = vector.load %arg8[%c0_140, %c0_141] : memref<1x32xf32, #tpu.memory_space<vmem>>, vector<1x32xf32>
    %371 = arith.addf %369, %370 : vector<1x32xf32>
    %c0_142 = arith.constant 0 : index
    %c0_143 = arith.constant 0 : index
    %372 = vector.load %arg10[%c0_142, %c0_143] : memref<32x32xf32, #tpu.memory_space<vmem>>, vector<32x32xf32>
    %cst_144 = arith.constant dense<0.000000e+00> : vector<1x32xf32>
    %373 = tpu.matmul %367, %372, %cst_144 {dimension_numbers = #tpu.dot_dimension_numbers<[1], [0], [0], [1], [0, 0, 1, 1], [], []>} : vector<1x32xf32>, vector<32x32xf32>, vector<1x32xf32> -> vector<1x32xf32>
    %c0_145 = arith.constant 0 : index
    %c0_146 = arith.constant 0 : index
    %374 = vector.load %arg6[%c0_145, %c0_146] : memref<1x32xf32, #tpu.memory_space<vmem>>, vector<1x32xf32>
    %375 = arith.addf %373, %374 : vector<1x32xf32>
    %c0_147 = arith.constant 0 : index
    %c0_148 = arith.constant 0 : index
    %376 = vector.load %arg13[%c0_147, %c0_148] : memref<32x32xf32, #tpu.memory_space<vmem>>, vector<32x32xf32>
    %cst_149 = arith.constant dense<0.000000e+00> : vector<1x32xf32>
    %377 = tpu.matmul %367, %376, %cst_149 {dimension_numbers = #tpu.dot_dimension_numbers<[1], [0], [0], [1], [0, 0, 1, 1], [], []>} : vector<1x32xf32>, vector<32x32xf32>, vector<1x32xf32> -> vector<1x32xf32>
    %c0_150 = arith.constant 0 : index
    %c0_151 = arith.constant 0 : index
    %378 = vector.load %arg9[%c0_150, %c0_151] : memref<1x32xf32, #tpu.memory_space<vmem>>, vector<1x32xf32>
    %379 = arith.addf %377, %378 : vector<1x32xf32>
    %380 = vector.extract_strided_slice %371 {offsets = [0, 0], sizes = [1, 8], strides = [1, 1]} : vector<1x32xf32> to vector<1x8xf32>
    %381 = vector.extract_strided_slice %371 {offsets = [0, 8], sizes = [1, 8], strides = [1, 1]} : vector<1x32xf32> to vector<1x8xf32>
    %382 = vector.extract_strided_slice %371 {offsets = [0, 16], sizes = [1, 8], strides = [1, 1]} : vector<1x32xf32> to vector<1x8xf32>
    %383 = vector.extract_strided_slice %371 {offsets = [0, 24], sizes = [1, 8], strides = [1, 1]} : vector<1x32xf32> to vector<1x8xf32>
    %384 = vector.shape_cast %380 : vector<1x8xf32> to vector<1x1x8xf32>
    %385 = vector.shape_cast %381 : vector<1x8xf32> to vector<1x1x8xf32>
    %386 = vector.shape_cast %382 : vector<1x8xf32> to vector<1x1x8xf32>
    %387 = vector.shape_cast %383 : vector<1x8xf32> to vector<1x1x8xf32>
    %388 = tpu.concatenate %384, %385, %386, %387 in 0 : vector<1x1x8xf32>, vector<1x1x8xf32>, vector<1x1x8xf32>, vector<1x1x8xf32> -> vector<4x1x8xf32>
    %389 = vector.extract_strided_slice %375 {offsets = [0, 0], sizes = [1, 8], strides = [1, 1]} : vector<1x32xf32> to vector<1x8xf32>
    %390 = vector.extract_strided_slice %375 {offsets = [0, 8], sizes = [1, 8], strides = [1, 1]} : vector<1x32xf32> to vector<1x8xf32>
    %391 = vector.extract_strided_slice %375 {offsets = [0, 16], sizes = [1, 8], strides = [1, 1]} : vector<1x32xf32> to vector<1x8xf32>
    %392 = vector.extract_strided_slice %375 {offsets = [0, 24], sizes = [1, 8], strides = [1, 1]} : vector<1x32xf32> to vector<1x8xf32>
    %393 = vector.shape_cast %389 : vector<1x8xf32> to vector<1x1x8xf32>
    %394 = vector.shape_cast %390 : vector<1x8xf32> to vector<1x1x8xf32>
    %395 = vector.shape_cast %391 : vector<1x8xf32> to vector<1x1x8xf32>
    %396 = vector.shape_cast %392 : vector<1x8xf32> to vector<1x1x8xf32>
    %397 = tpu.concatenate %393, %394, %395, %396 in 0 : vector<1x1x8xf32>, vector<1x1x8xf32>, vector<1x1x8xf32>, vector<1x1x8xf32> -> vector<4x1x8xf32>
    %398 = vector.extract_strided_slice %379 {offsets = [0, 0], sizes = [1, 8], strides = [1, 1]} : vector<1x32xf32> to vector<1x8xf32>
    %399 = vector.extract_strided_slice %379 {offsets = [0, 8], sizes = [1, 8], strides = [1, 1]} : vector<1x32xf32> to vector<1x8xf32>
    %400 = vector.extract_strided_slice %379 {offsets = [0, 16], sizes = [1, 8], strides = [1, 1]} : vector<1x32xf32> to vector<1x8xf32>
    %401 = vector.extract_strided_slice %379 {offsets = [0, 24], sizes = [1, 8], strides = [1, 1]} : vector<1x32xf32> to vector<1x8xf32>
    %402 = vector.shape_cast %398 : vector<1x8xf32> to vector<1x1x8xf32>
    %403 = vector.shape_cast %399 : vector<1x8xf32> to vector<1x1x8xf32>
    %404 = vector.shape_cast %400 : vector<1x8xf32> to vector<1x1x8xf32>
    %405 = vector.shape_cast %401 : vector<1x8xf32> to vector<1x1x8xf32>
    %406 = tpu.concatenate %402, %403, %404, %405 in 0 : vector<1x1x8xf32>, vector<1x1x8xf32>, vector<1x1x8xf32>, vector<1x1x8xf32> -> vector<4x1x8xf32>
    "tpu.trace_start"() <{level = 10 : i32, message = "hqd,hkd->hqk"}> : () -> ()
    %cst_152 = arith.constant dense<0.000000e+00> : vector<4x1x1xf32>
    %407 = tpu.matmul %388, %397, %cst_152 {dimension_numbers = #tpu.dot_dimension_numbers<[2], [2], [1], [1], [0, 0, 0, 1, 1, 1], [0], [0]>} : vector<4x1x8xf32>, vector<4x1x8xf32>, vector<4x1x1xf32> -> vector<4x1x1xf32>
    "tpu.trace_stop"() : () -> ()
    %cst_153 = arith.constant 0.176776692 : f32
    %408 = vector.broadcast %cst_153 : f32 to vector<4x1x1xf32>
    %409 = arith.mulf %407, %408 : vector<4x1x1xf32>
    %cst_154 = arith.constant dense<0xFF800000> : vector<4x1xf32>
    %410 = vector.multi_reduction <maximumf>, %409, %cst_154 [2] : vector<4x1x1xf32> to vector<4x1xf32>
    %411 = vector.shape_cast %410 : vector<4x1xf32> to vector<4x1x1xf32>
    %412 = arith.subf %409, %411 : vector<4x1x1xf32>
    %413 = math.exp %412 : vector<4x1x1xf32>
    %cst_155 = arith.constant dense<0.000000e+00> : vector<4x1xf32>
    %414 = vector.multi_reduction <add>, %413, %cst_155 [2] : vector<4x1x1xf32> to vector<4x1xf32>
    %415 = vector.shape_cast %414 : vector<4x1xf32> to vector<4x1x1xf32>
    %416 = arith.divf %413, %415 : vector<4x1x1xf32>
    "tpu.trace_start"() <{level = 10 : i32, message = "hqk,hkd->hqd"}> : () -> ()
    %cst_156 = arith.constant dense<0.000000e+00> : vector<4x1x8xf32>
    %417 = tpu.matmul %416, %406, %cst_156 {dimension_numbers = #tpu.dot_dimension_numbers<[2], [1], [1], [2], [0, 0, 0, 1, 1, 2], [0], [0]>} : vector<4x1x1xf32>, vector<4x1x8xf32>, vector<4x1x8xf32> -> vector<4x1x8xf32>
    "tpu.trace_stop"() : () -> ()
    %418 = arith.addf %388, %417 : vector<4x1x8xf32>
    %419 = vector.extract_strided_slice %418 {offsets = [0, 0, 0], sizes = [1, 1, 8], strides = [1, 1, 1]} : vector<4x1x8xf32> to vector<1x1x8xf32>
    %420 = vector.shape_cast %419 : vector<1x1x8xf32> to vector<1x8xf32>
    %421 = vector.extract_strided_slice %418 {offsets = [1, 0, 0], sizes = [1, 1, 8], strides = [1, 1, 1]} : vector<4x1x8xf32> to vector<1x1x8xf32>
    %422 = vector.shape_cast %421 : vector<1x1x8xf32> to vector<1x8xf32>
    %423 = vector.extract_strided_slice %418 {offsets = [2, 0, 0], sizes = [1, 1, 8], strides = [1, 1, 1]} : vector<4x1x8xf32> to vector<1x1x8xf32>
    %424 = vector.shape_cast %423 : vector<1x1x8xf32> to vector<1x8xf32>
    %425 = vector.extract_strided_slice %418 {offsets = [3, 0, 0], sizes = [1, 1, 8], strides = [1, 1, 1]} : vector<4x1x8xf32> to vector<1x1x8xf32>
    %426 = vector.shape_cast %425 : vector<1x1x8xf32> to vector<1x8xf32>
    %427 = tpu.concatenate %420, %422, %424, %426 in 1 : vector<1x8xf32>, vector<1x8xf32>, vector<1x8xf32>, vector<1x8xf32> -> vector<1x32xf32>
    %c0_157 = arith.constant 0 : index
    %c0_158 = arith.constant 0 : index
    %428 = vector.load %arg11[%c0_157, %c0_158] : memref<32x32xf32, #tpu.memory_space<vmem>>, vector<32x32xf32>
    %cst_159 = arith.constant dense<0.000000e+00> : vector<1x32xf32>
    %429 = tpu.matmul %427, %428, %cst_159 {dimension_numbers = #tpu.dot_dimension_numbers<[1], [0], [0], [1], [0, 0, 1, 1], [], []>} : vector<1x32xf32>, vector<32x32xf32>, vector<1x32xf32> -> vector<1x32xf32>
    %c0_160 = arith.constant 0 : index
    %c0_161 = arith.constant 0 : index
    %430 = vector.load %arg7[%c0_160, %c0_161] : memref<1x32xf32, #tpu.memory_space<vmem>>, vector<1x32xf32>
    %431 = arith.addf %429, %430 : vector<1x32xf32>
    %cst_162 = arith.constant 0.000000e+00 : f32
    %432 = vector.broadcast %cst_162 : f32 to vector<1x32xf32>
    %433 = arith.maximumf %431, %432 : vector<1x32xf32>
    %434 = arith.addf %427, %433 : vector<1x32xf32>
    %c0_163 = arith.constant 0 : index
    %c0_164 = arith.constant 0 : index
    %435 = vector.load %arg20[%c0_163, %c0_164] : memref<32x32xf32, #tpu.memory_space<vmem>>, vector<32x32xf32>
    %cst_165 = arith.constant dense<0.000000e+00> : vector<1x32xf32>
    %436 = tpu.matmul %434, %435, %cst_165 {dimension_numbers = #tpu.dot_dimension_numbers<[1], [0], [0], [1], [0, 0, 1, 1], [], []>} : vector<1x32xf32>, vector<32x32xf32>, vector<1x32xf32> -> vector<1x32xf32>
    %c0_166 = arith.constant 0 : index
    %c0_167 = arith.constant 0 : index
    %437 = vector.load %arg16[%c0_166, %c0_167] : memref<1x32xf32, #tpu.memory_space<vmem>>, vector<1x32xf32>
    %438 = arith.addf %436, %437 : vector<1x32xf32>
    %c0_168 = arith.constant 0 : index
    %c0_169 = arith.constant 0 : index
    %439 = vector.load %arg18[%c0_168, %c0_169] : memref<32x32xf32, #tpu.memory_space<vmem>>, vector<32x32xf32>
    %cst_170 = arith.constant dense<0.000000e+00> : vector<1x32xf32>
    %440 = tpu.matmul %434, %439, %cst_170 {dimension_numbers = #tpu.dot_dimension_numbers<[1], [0], [0], [1], [0, 0, 1, 1], [], []>} : vector<1x32xf32>, vector<32x32xf32>, vector<1x32xf32> -> vector<1x32xf32>
    %c0_171 = arith.constant 0 : index
    %c0_172 = arith.constant 0 : index
    %441 = vector.load %arg14[%c0_171, %c0_172] : memref<1x32xf32, #tpu.memory_space<vmem>>, vector<1x32xf32>
    %442 = arith.addf %440, %441 : vector<1x32xf32>
    %c0_173 = arith.constant 0 : index
    %c0_174 = arith.constant 0 : index
    %443 = vector.load %arg21[%c0_173, %c0_174] : memref<32x32xf32, #tpu.memory_space<vmem>>, vector<32x32xf32>
    %cst_175 = arith.constant dense<0.000000e+00> : vector<1x32xf32>
    %444 = tpu.matmul %434, %443, %cst_175 {dimension_numbers = #tpu.dot_dimension_numbers<[1], [0], [0], [1], [0, 0, 1, 1], [], []>} : vector<1x32xf32>, vector<32x32xf32>, vector<1x32xf32> -> vector<1x32xf32>
    %c0_176 = arith.constant 0 : index
    %c0_177 = arith.constant 0 : index
    %445 = vector.load %arg17[%c0_176, %c0_177] : memref<1x32xf32, #tpu.memory_space<vmem>>, vector<1x32xf32>
    %446 = arith.addf %444, %445 : vector<1x32xf32>
    %447 = vector.extract_strided_slice %438 {offsets = [0, 0], sizes = [1, 8], strides = [1, 1]} : vector<1x32xf32> to vector<1x8xf32>
    %448 = vector.extract_strided_slice %438 {offsets = [0, 8], sizes = [1, 8], strides = [1, 1]} : vector<1x32xf32> to vector<1x8xf32>
    %449 = vector.extract_strided_slice %438 {offsets = [0, 16], sizes = [1, 8], strides = [1, 1]} : vector<1x32xf32> to vector<1x8xf32>
    %450 = vector.extract_strided_slice %438 {offsets = [0, 24], sizes = [1, 8], strides = [1, 1]} : vector<1x32xf32> to vector<1x8xf32>
    %451 = vector.shape_cast %447 : vector<1x8xf32> to vector<1x1x8xf32>
    %452 = vector.shape_cast %448 : vector<1x8xf32> to vector<1x1x8xf32>
    %453 = vector.shape_cast %449 : vector<1x8xf32> to vector<1x1x8xf32>
    %454 = vector.shape_cast %450 : vector<1x8xf32> to vector<1x1x8xf32>
    %455 = tpu.concatenate %451, %452, %453, %454 in 0 : vector<1x1x8xf32>, vector<1x1x8xf32>, vector<1x1x8xf32>, vector<1x1x8xf32> -> vector<4x1x8xf32>
    %456 = vector.extract_strided_slice %442 {offsets = [0, 0], sizes = [1, 8], strides = [1, 1]} : vector<1x32xf32> to vector<1x8xf32>
    %457 = vector.extract_strided_slice %442 {offsets = [0, 8], sizes = [1, 8], strides = [1, 1]} : vector<1x32xf32> to vector<1x8xf32>
    %458 = vector.extract_strided_slice %442 {offsets = [0, 16], sizes = [1, 8], strides = [1, 1]} : vector<1x32xf32> to vector<1x8xf32>
    %459 = vector.extract_strided_slice %442 {offsets = [0, 24], sizes = [1, 8], strides = [1, 1]} : vector<1x32xf32> to vector<1x8xf32>
    %460 = vector.shape_cast %456 : vector<1x8xf32> to vector<1x1x8xf32>
    %461 = vector.shape_cast %457 : vector<1x8xf32> to vector<1x1x8xf32>
    %462 = vector.shape_cast %458 : vector<1x8xf32> to vector<1x1x8xf32>
    %463 = vector.shape_cast %459 : vector<1x8xf32> to vector<1x1x8xf32>
    %464 = tpu.concatenate %460, %461, %462, %463 in 0 : vector<1x1x8xf32>, vector<1x1x8xf32>, vector<1x1x8xf32>, vector<1x1x8xf32> -> vector<4x1x8xf32>
    %465 = vector.extract_strided_slice %446 {offsets = [0, 0], sizes = [1, 8], strides = [1, 1]} : vector<1x32xf32> to vector<1x8xf32>
    %466 = vector.extract_strided_slice %446 {offsets = [0, 8], sizes = [1, 8], strides = [1, 1]} : vector<1x32xf32> to vector<1x8xf32>
    %467 = vector.extract_strided_slice %446 {offsets = [0, 16], sizes = [1, 8], strides = [1, 1]} : vector<1x32xf32> to vector<1x8xf32>
    %468 = vector.extract_strided_slice %446 {offsets = [0, 24], sizes = [1, 8], strides = [1, 1]} : vector<1x32xf32> to vector<1x8xf32>
    %469 = vector.shape_cast %465 : vector<1x8xf32> to vector<1x1x8xf32>
    %470 = vector.shape_cast %466 : vector<1x8xf32> to vector<1x1x8xf32>
    %471 = vector.shape_cast %467 : vector<1x8xf32> to vector<1x1x8xf32>
    %472 = vector.shape_cast %468 : vector<1x8xf32> to vector<1x1x8xf32>
    %473 = tpu.concatenate %469, %470, %471, %472 in 0 : vector<1x1x8xf32>, vector<1x1x8xf32>, vector<1x1x8xf32>, vector<1x1x8xf32> -> vector<4x1x8xf32>
    "tpu.trace_start"() <{level = 10 : i32, message = "hqd,hkd->hqk"}> : () -> ()
    %cst_178 = arith.constant dense<0.000000e+00> : vector<4x1x1xf32>
    %474 = tpu.matmul %455, %464, %cst_178 {dimension_numbers = #tpu.dot_dimension_numbers<[2], [2], [1], [1], [0, 0, 0, 1, 1, 1], [0], [0]>} : vector<4x1x8xf32>, vector<4x1x8xf32>, vector<4x1x1xf32> -> vector<4x1x1xf32>
    "tpu.trace_stop"() : () -> ()
    %cst_179 = arith.constant 0.176776692 : f32
    %475 = vector.broadcast %cst_179 : f32 to vector<4x1x1xf32>
    %476 = arith.mulf %474, %475 : vector<4x1x1xf32>
    %cst_180 = arith.constant dense<0xFF800000> : vector<4x1xf32>
    %477 = vector.multi_reduction <maximumf>, %476, %cst_180 [2] : vector<4x1x1xf32> to vector<4x1xf32>
    %478 = vector.shape_cast %477 : vector<4x1xf32> to vector<4x1x1xf32>
    %479 = arith.subf %476, %478 : vector<4x1x1xf32>
    %480 = math.exp %479 : vector<4x1x1xf32>
    %cst_181 = arith.constant dense<0.000000e+00> : vector<4x1xf32>
    %481 = vector.multi_reduction <add>, %480, %cst_181 [2] : vector<4x1x1xf32> to vector<4x1xf32>
    %482 = vector.shape_cast %481 : vector<4x1xf32> to vector<4x1x1xf32>
    %483 = arith.divf %480, %482 : vector<4x1x1xf32>
    "tpu.trace_start"() <{level = 10 : i32, message = "hqk,hkd->hqd"}> : () -> ()
    %cst_182 = arith.constant dense<0.000000e+00> : vector<4x1x8xf32>
    %484 = tpu.matmul %483, %473, %cst_182 {dimension_numbers = #tpu.dot_dimension_numbers<[2], [1], [1], [2], [0, 0, 0, 1, 1, 2], [0], [0]>} : vector<4x1x1xf32>, vector<4x1x8xf32>, vector<4x1x8xf32> -> vector<4x1x8xf32>
    "tpu.trace_stop"() : () -> ()
    %485 = arith.addf %455, %484 : vector<4x1x8xf32>
    %486 = vector.extract_strided_slice %485 {offsets = [0, 0, 0], sizes = [1, 1, 8], strides = [1, 1, 1]} : vector<4x1x8xf32> to vector<1x1x8xf32>
    %487 = vector.shape_cast %486 : vector<1x1x8xf32> to vector<1x8xf32>
    %488 = vector.extract_strided_slice %485 {offsets = [1, 0, 0], sizes = [1, 1, 8], strides = [1, 1, 1]} : vector<4x1x8xf32> to vector<1x1x8xf32>
    %489 = vector.shape_cast %488 : vector<1x1x8xf32> to vector<1x8xf32>
    %490 = vector.extract_strided_slice %485 {offsets = [2, 0, 0], sizes = [1, 1, 8], strides = [1, 1, 1]} : vector<4x1x8xf32> to vector<1x1x8xf32>
    %491 = vector.shape_cast %490 : vector<1x1x8xf32> to vector<1x8xf32>
    %492 = vector.extract_strided_slice %485 {offsets = [3, 0, 0], sizes = [1, 1, 8], strides = [1, 1, 1]} : vector<4x1x8xf32> to vector<1x1x8xf32>
    %493 = vector.shape_cast %492 : vector<1x1x8xf32> to vector<1x8xf32>
    %494 = tpu.concatenate %487, %489, %491, %493 in 1 : vector<1x8xf32>, vector<1x8xf32>, vector<1x8xf32>, vector<1x8xf32> -> vector<1x32xf32>
    %c0_183 = arith.constant 0 : index
    %c0_184 = arith.constant 0 : index
    %495 = vector.load %arg19[%c0_183, %c0_184] : memref<32x32xf32, #tpu.memory_space<vmem>>, vector<32x32xf32>
    %cst_185 = arith.constant dense<0.000000e+00> : vector<1x32xf32>
    %496 = tpu.matmul %494, %495, %cst_185 {dimension_numbers = #tpu.dot_dimension_numbers<[1], [0], [0], [1], [0, 0, 1, 1], [], []>} : vector<1x32xf32>, vector<32x32xf32>, vector<1x32xf32> -> vector<1x32xf32>
    %c0_186 = arith.constant 0 : index
    %c0_187 = arith.constant 0 : index
    %497 = vector.load %arg15[%c0_186, %c0_187] : memref<1x32xf32, #tpu.memory_space<vmem>>, vector<1x32xf32>
    %498 = arith.addf %496, %497 : vector<1x32xf32>
    %cst_188 = arith.constant 0.000000e+00 : f32
    %499 = vector.broadcast %cst_188 : f32 to vector<1x32xf32>
    %500 = arith.maximumf %498, %499 : vector<1x32xf32>
    %501 = arith.addf %494, %500 : vector<1x32xf32>
    %c0_189 = arith.constant 0 : index
    %c0_190 = arith.constant 0 : index
    %502 = vector.load %arg4[%c0_189, %c0_190] : memref<32x32xf32, #tpu.memory_space<vmem>>, vector<32x32xf32>
    %cst_191 = arith.constant dense<0.000000e+00> : vector<1x32xf32>
    %503 = tpu.matmul %501, %502, %cst_191 {dimension_numbers = #tpu.dot_dimension_numbers<[1], [0], [0], [1], [0, 0, 1, 1], [], []>} : vector<1x32xf32>, vector<32x32xf32>, vector<1x32xf32> -> vector<1x32xf32>
    %c0_192 = arith.constant 0 : index
    %c0_193 = arith.constant 0 : index
    %504 = vector.load %arg5[%c0_192, %c0_193] : memref<1x32xf32, #tpu.memory_space<vmem>>, vector<1x32xf32>
    %505 = arith.addf %503, %504 : vector<1x32xf32>
    %cst_194 = arith.constant dense<0.000000e+00> : vector<32xf32>
    %506 = vector.multi_reduction <add>, %505, %cst_194 [0] : vector<1x32xf32> to vector<32xf32>
    %507 = vector.shape_cast %506 : vector<32xf32> to vector<1x32xf32>
    %c0_195 = arith.constant 0 : index
    %c0_196 = arith.constant 0 : index
    %508 = vector.load %arg56[%c0_195, %c0_196] : memref<32x32xf32, #tpu.memory_space<vmem>>, vector<32x32xf32>
    %cst_197 = arith.constant dense<0.000000e+00> : vector<1x32xf32>
    %509 = tpu.matmul %507, %508, %cst_197 {dimension_numbers = #tpu.dot_dimension_numbers<[1], [0], [0], [1], [0, 0, 1, 1], [], []>} : vector<1x32xf32>, vector<32x32xf32>, vector<1x32xf32> -> vector<1x32xf32>
    %c0_198 = arith.constant 0 : index
    %c0_199 = arith.constant 0 : index
    %510 = vector.load %arg57[%c0_198, %c0_199] : memref<1x32xf32, #tpu.memory_space<vmem>>, vector<1x32xf32>
    %511 = arith.addf %509, %510 : vector<1x32xf32>
    %cst_200 = arith.constant 0.000000e+00 : f32
    %512 = vector.broadcast %cst_200 : f32 to vector<1x32xf32>
    %513 = arith.maximumf %511, %512 : vector<1x32xf32>
    %c0_201 = arith.constant 0 : index
    %c0_202 = arith.constant 0 : index
    %514 = vector.load %arg58[%c0_201, %c0_202] : memref<32x32xf32, #tpu.memory_space<vmem>>, vector<32x32xf32>
    %cst_203 = arith.constant dense<0.000000e+00> : vector<1x32xf32>
    %515 = tpu.matmul %513, %514, %cst_203 {dimension_numbers = #tpu.dot_dimension_numbers<[1], [0], [0], [1], [0, 0, 1, 1], [], []>} : vector<1x32xf32>, vector<32x32xf32>, vector<1x32xf32> -> vector<1x32xf32>
    %c0_204 = arith.constant 0 : index
    %c0_205 = arith.constant 0 : index
    %516 = vector.load %arg59[%c0_204, %c0_205] : memref<1x32xf32, #tpu.memory_space<vmem>>, vector<1x32xf32>
    %517 = arith.addf %515, %516 : vector<1x32xf32>
    %cst_206 = arith.constant 0.000000e+00 : f32
    %518 = vector.broadcast %cst_206 : f32 to vector<1x32xf32>
    %519 = arith.maximumf %517, %518 : vector<1x32xf32>
    %c0_207 = arith.constant 0 : index
    %c0_208 = arith.constant 0 : index
    %520 = vector.load %arg60[%c0_207, %c0_208] : memref<32x32xf32, #tpu.memory_space<vmem>>, vector<32x32xf32>
    %cst_209 = arith.constant dense<0.000000e+00> : vector<1x32xf32>
    %521 = tpu.matmul %519, %520, %cst_209 {dimension_numbers = #tpu.dot_dimension_numbers<[1], [0], [0], [1], [0, 0, 1, 1], [], []>} : vector<1x32xf32>, vector<32x32xf32>, vector<1x32xf32> -> vector<1x32xf32>
    %c0_210 = arith.constant 0 : index
    %c0_211 = arith.constant 0 : index
    %522 = vector.load %arg61[%c0_210, %c0_211] : memref<1x32xf32, #tpu.memory_space<vmem>>, vector<1x32xf32>
    %523 = arith.addf %521, %522 : vector<1x32xf32>
    %cst_212 = arith.constant 0.000000e+00 : f32
    %524 = vector.broadcast %cst_212 : f32 to vector<1x32xf32>
    %525 = arith.maximumf %523, %524 : vector<1x32xf32>
    %c0_213 = arith.constant 0 : index
    %c0_214 = arith.constant 0 : index
    %526 = vector.load %arg62[%c0_213, %c0_214] : memref<32x32xf32, #tpu.memory_space<vmem>>, vector<32x32xf32>
    %cst_215 = arith.constant dense<0.000000e+00> : vector<1x32xf32>
    %527 = tpu.matmul %525, %526, %cst_215 {dimension_numbers = #tpu.dot_dimension_numbers<[1], [0], [0], [1], [0, 0, 1, 1], [], []>} : vector<1x32xf32>, vector<32x32xf32>, vector<1x32xf32> -> vector<1x32xf32>
    %c0_216 = arith.constant 0 : index
    %c0_217 = arith.constant 0 : index
    %528 = vector.load %arg63[%c0_216, %c0_217] : memref<1x32xf32, #tpu.memory_space<vmem>>, vector<1x32xf32>
    %529 = arith.addf %527, %528 : vector<1x32xf32>
    %cst_218 = arith.constant 0.000000e+00 : f32
    %530 = vector.broadcast %cst_218 : f32 to vector<1x32xf32>
    %531 = arith.maximumf %529, %530 : vector<1x32xf32>
    %c0_219 = arith.constant 0 : index
    %c0_220 = arith.constant 0 : index
    %532 = vector.load %arg2[%c0_219, %c0_220] : memref<32x1xf32, #tpu.memory_space<vmem>>, vector<32x1xf32>
    %cst_221 = arith.constant dense<0.000000e+00> : vector<1x1xf32>
    %533 = tpu.matmul %531, %532, %cst_221 {dimension_numbers = #tpu.dot_dimension_numbers<[1], [0], [0], [1], [0, 0, 1, 1], [], []>} : vector<1x32xf32>, vector<32x1xf32>, vector<1x1xf32> -> vector<1x1xf32>
    %c0_222 = arith.constant 0 : index
    %c0_223 = arith.constant 0 : index
    %534 = vector.load %arg3[%c0_222, %c0_223] : memref<1x1xf32, #tpu.memory_space<vmem>>, vector<1x1xf32>
    %535 = arith.addf %533, %534 : vector<1x1xf32>
    %cst_224 = arith.constant 0.000000e+00 : f32
    %536 = vector.broadcast %cst_224 : f32 to vector<1x1xf32>
    %537 = arith.subf %536, %535 : vector<1x1xf32>
    %538 = math.exp %537 : vector<1x1xf32>
    %cst_225 = arith.constant 1.000000e+00 : f32
    %539 = vector.broadcast %cst_225 : f32 to vector<1x1xf32>
    %540 = arith.addf %539, %538 : vector<1x1xf32>
    %cst_226 = arith.constant 1.000000e+00 : f32
    %541 = vector.broadcast %cst_226 : f32 to vector<1x1xf32>
    %542 = arith.divf %541, %540 : vector<1x1xf32>
    %543 = math.exp %535 : vector<1x1xf32>
    %cst_227 = arith.constant 1.000000e+00 : f32
    %544 = vector.broadcast %cst_227 : f32 to vector<1x1xf32>
    %545 = arith.addf %544, %543 : vector<1x1xf32>
    %546 = arith.divf %543, %545 : vector<1x1xf32>
    %cst_228 = arith.constant 0.000000e+00 : f32
    %547 = vector.broadcast %cst_228 : f32 to vector<1x1xf32>
    %548 = arith.cmpf oge, %535, %547 : vector<1x1xf32>
    %549 = arith.select %548, %542, %546 : vector<1x1xi1>, vector<1x1xf32>
    %550 = vector.shape_cast %549 : vector<1x1xf32> to vector<1x1xf32>
    %551 = vector.broadcast %550 : vector<1x1xf32> to vector<1x128xf32>
    %c0_229 = arith.constant 0 : index
    %c0_230 = arith.constant 0 : index
    %c0_231 = arith.constant 0 : index
    %552 = vector.load %arg73[%c0_229, %c0_230, %c0_231] : memref<1x1x128xf32, #tpu.memory_space<vmem>>, vector<1x1x128xf32>
    %553 = vector.shape_cast %552 : vector<1x1x128xf32> to vector<1x128xf32>
    %554 = vector.shape_cast %551 : vector<1x128xf32> to vector<1x1x128xf32>
    tpu.vector_store %arg73[%c0_229, %c0_230, %c0_231], %554 {strides = array<i32>} : memref<1x1x128xf32, #tpu.memory_space<vmem>>, vector<1x1x128xf32>,
    return
  }
  func.func @transform_0(%arg0: i32) -> (i32, i32, i32) {
    %c0_i32 = arith.constant 0 : i32
    %c0_i32_0 = arith.constant 0 : i32
    %c0_i32_1 = arith.constant 0 : i32
    return %arg0, %c0_i32, %c0_i32_0 : i32, i32, i32
  }
  func.func @transform_1(%arg0: i32) -> (i32, i32) {
    %c0_i32 = arith.constant 0 : i32
    %c0_i32_0 = arith.constant 0 : i32
    %c0_i32_1 = arith.constant 0 : i32
    return %c0_i32, %c0_i32_0 : i32, i32
  }
  func.func @transform_2(%arg0: i32) -> (i32, i32) {
    %c0_i32 = arith.constant 0 : i32
    %c0_i32_0 = arith.constant 0 : i32
    %c0_i32_1 = arith.constant 0 : i32
    return %c0_i32, %c0_i32_0 : i32, i32
  }
  func.func @transform_3(%arg0: i32) -> (i32, i32) {
    %c0_i32 = arith.constant 0 : i32
    %c0_i32_0 = arith.constant 0 : i32
    %c0_i32_1 = arith.constant 0 : i32
    return %c0_i32, %c0_i32_0 : i32, i32
  }
  func.func @transform_4(%arg0: i32) -> (i32, i32) {
    %c0_i32 = arith.constant 0 : i32
    %c0_i32_0 = arith.constant 0 : i32
    %c0_i32_1 = arith.constant 0 : i32
    return %c0_i32, %c0_i32_0 : i32, i32
  }
  func.func @transform_5(%arg0: i32) -> (i32, i32) {
    %c0_i32 = arith.constant 0 : i32
    %c0_i32_0 = arith.constant 0 : i32
    %c0_i32_1 = arith.constant 0 : i32
    return %c0_i32, %c0_i32_0 : i32, i32
  }
  func.func @transform_6(%arg0: i32) -> (i32, i32) {
    %c0_i32 = arith.constant 0 : i32
    %c0_i32_0 = arith.constant 0 : i32
    %c0_i32_1 = arith.constant 0 : i32
    return %c0_i32, %c0_i32_0 : i32, i32
  }
  func.func @transform_7(%arg0: i32) -> (i32, i32) {
    %c0_i32 = arith.constant 0 : i32
    %c0_i32_0 = arith.constant 0 : i32
    %c0_i32_1 = arith.constant 0 : i32
    return %c0_i32, %c0_i32_0 : i32, i32
  }
  func.func @transform_8(%arg0: i32) -> (i32, i32) {
    %c0_i32 = arith.constant 0 : i32
    %c0_i32_0 = arith.constant 0 : i32
    %c0_i32_1 = arith.constant 0 : i32
    return %c0_i32, %c0_i32_0 : i32, i32
  }
  func.func @transform_9(%arg0: i32) -> (i32, i32) {
    %c0_i32 = arith.constant 0 : i32
    %c0_i32_0 = arith.constant 0 : i32
    %c0_i32_1 = arith.constant 0 : i32
    return %c0_i32, %c0_i32_0 : i32, i32
  }
  func.func @transform_10(%arg0: i32) -> (i32, i32) {
    %c0_i32 = arith.constant 0 : i32
    %c0_i32_0 = arith.constant 0 : i32
    %c0_i32_1 = arith.constant 0 : i32
    return %c0_i32, %c0_i32_0 : i32, i32
  }
  func.func @transform_11(%arg0: i32) -> (i32, i32) {
    %c0_i32 = arith.constant 0 : i32
    %c0_i32_0 = arith.constant 0 : i32
    %c0_i32_1 = arith.constant 0 : i32
    return %c0_i32, %c0_i32_0 : i32, i32
  }
  func.func @transform_12(%arg0: i32) -> (i32, i32) {
    %c0_i32 = arith.constant 0 : i32
    %c0_i32_0 = arith.constant 0 : i32
    %c0_i32_1 = arith.constant 0 : i32
    return %c0_i32, %c0_i32_0 : i32, i32
  }
  func.func @transform_13(%arg0: i32) -> (i32, i32) {
    %c0_i32 = arith.constant 0 : i32
    %c0_i32_0 = arith.constant 0 : i32
    %c0_i32_1 = arith.constant 0 : i32
    return %c0_i32, %c0_i32_0 : i32, i32
  }
  func.func @transform_14(%arg0: i32) -> (i32, i32) {
    %c0_i32 = arith.constant 0 : i32
    %c0_i32_0 = arith.constant 0 : i32
    %c0_i32_1 = arith.constant 0 : i32
    return %c0_i32, %c0_i32_0 : i32, i32
  }
  func.func @transform_15(%arg0: i32) -> (i32, i32) {
    %c0_i32 = arith.constant 0 : i32
    %c0_i32_0 = arith.constant 0 : i32
    %c0_i32_1 = arith.constant 0 : i32
    return %c0_i32, %c0_i32_0 : i32, i32
  }
  func.func @transform_16(%arg0: i32) -> (i32, i32) {
    %c0_i32 = arith.constant 0 : i32
    %c0_i32_0 = arith.constant 0 : i32
    %c0_i32_1 = arith.constant 0 : i32
    return %c0_i32, %c0_i32_0 : i32, i32
  }
  func.func @transform_17(%arg0: i32) -> (i32, i32) {
    %c0_i32 = arith.constant 0 : i32
    %c0_i32_0 = arith.constant 0 : i32
    %c0_i32_1 = arith.constant 0 : i32
    return %c0_i32, %c0_i32_0 : i32, i32
  }
  func.func @transform_18(%arg0: i32) -> (i32, i32) {
    %c0_i32 = arith.constant 0 : i32
    %c0_i32_0 = arith.constant 0 : i32
    %c0_i32_1 = arith.constant 0 : i32
    return %c0_i32, %c0_i32_0 : i32, i32
  }
  func.func @transform_19(%arg0: i32) -> (i32, i32) {
    %c0_i32 = arith.constant 0 : i32
    %c0_i32_0 = arith.constant 0 : i32
    %c0_i32_1 = arith.constant 0 : i32
    return %c0_i32, %c0_i32_0 : i32, i32
  }
  func.func @transform_20(%arg0: i32) -> (i32, i32) {
    %c0_i32 = arith.constant 0 : i32
    %c0_i32_0 = arith.constant 0 : i32
    %c0_i32_1 = arith.constant 0 : i32
    return %c0_i32, %c0_i32_0 : i32, i32
  }
  func.func @transform_21(%arg0: i32) -> (i32, i32) {
    %c0_i32 = arith.constant 0 : i32
    %c0_i32_0 = arith.constant 0 : i32
    %c0_i32_1 = arith.constant 0 : i32
    return %c0_i32, %c0_i32_0 : i32, i32
  }
  func.func @transform_22(%arg0: i32) -> (i32, i32) {
    %c0_i32 = arith.constant 0 : i32
    %c0_i32_0 = arith.constant 0 : i32
    %c0_i32_1 = arith.constant 0 : i32
    return %c0_i32, %c0_i32_0 : i32, i32
  }
  func.func @transform_23(%arg0: i32) -> (i32, i32) {
    %c0_i32 = arith.constant 0 : i32
    %c0_i32_0 = arith.constant 0 : i32
    %c0_i32_1 = arith.constant 0 : i32
    return %c0_i32, %c0_i32_0 : i32, i32
  }
  func.func @transform_24(%arg0: i32) -> (i32, i32) {
    %c0_i32 = arith.constant 0 : i32
    %c0_i32_0 = arith.constant 0 : i32
    %c0_i32_1 = arith.constant 0 : i32
    return %c0_i32, %c0_i32_0 : i32, i32
  }
  func.func @transform_25(%arg0: i32) -> (i32, i32) {
    %c0_i32 = arith.constant 0 : i32
    %c0_i32_0 = arith.constant 0 : i32
    %c0_i32_1 = arith.constant 0 : i32
    return %c0_i32, %c0_i32_0 : i32, i32
  }
  func.func @transform_26(%arg0: i32) -> (i32, i32) {
    %c0_i32 = arith.constant 0 : i32
    %c0_i32_0 = arith.constant 0 : i32
    %c0_i32_1 = arith.constant 0 : i32
    return %c0_i32, %c0_i32_0 : i32, i32
  }
  func.func @transform_27(%arg0: i32) -> (i32, i32) {
    %c0_i32 = arith.constant 0 : i32
    %c0_i32_0 = arith.constant 0 : i32
    %c0_i32_1 = arith.constant 0 : i32
    return %c0_i32, %c0_i32_0 : i32, i32
  }
  func.func @transform_28(%arg0: i32) -> (i32, i32) {
    %c0_i32 = arith.constant 0 : i32
    %c0_i32_0 = arith.constant 0 : i32
    %c0_i32_1 = arith.constant 0 : i32
    return %c0_i32, %c0_i32_0 : i32, i32
  }
  func.func @transform_29(%arg0: i32) -> (i32, i32) {
    %c0_i32 = arith.constant 0 : i32
    %c0_i32_0 = arith.constant 0 : i32
    %c0_i32_1 = arith.constant 0 : i32
    return %c0_i32, %c0_i32_0 : i32, i32
  }
  func.func @transform_30(%arg0: i32) -> (i32, i32) {
    %c0_i32 = arith.constant 0 : i32
    %c0_i32_0 = arith.constant 0 : i32
    %c0_i32_1 = arith.constant 0 : i32
    return %c0_i32, %c0_i32_0 : i32, i32
  }
  func.func @transform_31(%arg0: i32) -> (i32, i32) {
    %c0_i32 = arith.constant 0 : i32
    %c0_i32_0 = arith.constant 0 : i32
    %c0_i32_1 = arith.constant 0 : i32
    return %c0_i32, %c0_i32_0 : i32, i32
  }
  func.func @transform_32(%arg0: i32) -> (i32, i32) {
    %c0_i32 = arith.constant 0 : i32
    %c0_i32_0 = arith.constant 0 : i32
    %c0_i32_1 = arith.constant 0 : i32
    return %c0_i32, %c0_i32_0 : i32, i32
  }
  func.func @transform_33(%arg0: i32) -> (i32, i32) {
    %c0_i32 = arith.constant 0 : i32
    %c0_i32_0 = arith.constant 0 : i32
    %c0_i32_1 = arith.constant 0 : i32
    return %c0_i32, %c0_i32_0 : i32, i32
  }
  func.func @transform_34(%arg0: i32) -> (i32, i32) {
    %c0_i32 = arith.constant 0 : i32
    %c0_i32_0 = arith.constant 0 : i32
    %c0_i32_1 = arith.constant 0 : i32
    return %c0_i32, %c0_i32_0 : i32, i32
  }
  func.func @transform_35(%arg0: i32) -> (i32, i32) {
    %c0_i32 = arith.constant 0 : i32
    %c0_i32_0 = arith.constant 0 : i32
    %c0_i32_1 = arith.constant 0 : i32
    return %c0_i32, %c0_i32_0 : i32, i32
  }
  func.func @transform_36(%arg0: i32) -> (i32, i32) {
    %c0_i32 = arith.constant 0 : i32
    %c0_i32_0 = arith.constant 0 : i32
    %c0_i32_1 = arith.constant 0 : i32
    return %c0_i32, %c0_i32_0 : i32, i32
  }
  func.func @transform_37(%arg0: i32) -> (i32, i32) {
    %c0_i32 = arith.constant 0 : i32
    %c0_i32_0 = arith.constant 0 : i32
    %c0_i32_1 = arith.constant 0 : i32
    return %c0_i32, %c0_i32_0 : i32, i32
  }
  func.func @transform_38(%arg0: i32) -> (i32, i32) {
    %c0_i32 = arith.constant 0 : i32
    %c0_i32_0 = arith.constant 0 : i32
    %c0_i32_1 = arith.constant 0 : i32
    return %c0_i32, %c0_i32_0 : i32, i32
  }
  func.func @transform_39(%arg0: i32) -> (i32, i32) {
    %c0_i32 = arith.constant 0 : i32
    %c0_i32_0 = arith.constant 0 : i32
    %c0_i32_1 = arith.constant 0 : i32
    return %c0_i32, %c0_i32_0 : i32, i32
  }
  func.func @transform_40(%arg0: i32) -> (i32, i32) {
    %c0_i32 = arith.constant 0 : i32
    %c0_i32_0 = arith.constant 0 : i32
    %c0_i32_1 = arith.constant 0 : i32
    return %c0_i32, %c0_i32_0 : i32, i32
  }
  func.func @transform_41(%arg0: i32) -> (i32, i32) {
    %c0_i32 = arith.constant 0 : i32
    %c0_i32_0 = arith.constant 0 : i32
    %c0_i32_1 = arith.constant 0 : i32
    return %c0_i32, %c0_i32_0 : i32, i32
  }
  func.func @transform_42(%arg0: i32) -> (i32, i32) {
    %c0_i32 = arith.constant 0 : i32
    %c0_i32_0 = arith.constant 0 : i32
    %c0_i32_1 = arith.constant 0 : i32
    return %c0_i32, %c0_i32_0 : i32, i32
  }
  func.func @transform_43(%arg0: i32) -> (i32, i32) {
    %c0_i32 = arith.constant 0 : i32
    %c0_i32_0 = arith.constant 0 : i32
    %c0_i32_1 = arith.constant 0 : i32
    return %c0_i32, %c0_i32_0 : i32, i32
  }
  func.func @transform_44(%arg0: i32) -> (i32, i32) {
    %c0_i32 = arith.constant 0 : i32
    %c0_i32_0 = arith.constant 0 : i32
    %c0_i32_1 = arith.constant 0 : i32
    return %c0_i32, %c0_i32_0 : i32, i32
  }
  func.func @transform_45(%arg0: i32) -> (i32, i32) {
    %c0_i32 = arith.constant 0 : i32
    %c0_i32_0 = arith.constant 0 : i32
    %c0_i32_1 = arith.constant 0 : i32
    return %c0_i32, %c0_i32_0 : i32, i32
  }
  func.func @transform_46(%arg0: i32) -> (i32, i32) {
    %c0_i32 = arith.constant 0 : i32
    %c0_i32_0 = arith.constant 0 : i32
    %c0_i32_1 = arith.constant 0 : i32
    return %c0_i32, %c0_i32_0 : i32, i32
  }
  func.func @transform_47(%arg0: i32) -> (i32, i32) {
    %c0_i32 = arith.constant 0 : i32
    %c0_i32_0 = arith.constant 0 : i32
    %c0_i32_1 = arith.constant 0 : i32
    return %c0_i32, %c0_i32_0 : i32, i32
  }
  func.func @transform_48(%arg0: i32) -> (i32, i32) {
    %c0_i32 = arith.constant 0 : i32
    %c0_i32_0 = arith.constant 0 : i32
    %c0_i32_1 = arith.constant 0 : i32
    return %c0_i32, %c0_i32_0 : i32, i32
  }
  func.func @transform_49(%arg0: i32) -> (i32, i32) {
    %c0_i32 = arith.constant 0 : i32
    %c0_i32_0 = arith.constant 0 : i32
    %c0_i32_1 = arith.constant 0 : i32
    return %c0_i32, %c0_i32_0 : i32, i32
  }
  func.func @transform_50(%arg0: i32) -> (i32, i32) {
    %c0_i32 = arith.constant 0 : i32
    %c0_i32_0 = arith.constant 0 : i32
    %c0_i32_1 = arith.constant 0 : i32
    return %c0_i32, %c0_i32_0 : i32, i32
  }
  func.func @transform_51(%arg0: i32) -> (i32, i32) {
    %c0_i32 = arith.constant 0 : i32
    %c0_i32_0 = arith.constant 0 : i32
    %c0_i32_1 = arith.constant 0 : i32
    return %c0_i32, %c0_i32_0 : i32, i32
  }
  func.func @transform_52(%arg0: i32) -> (i32, i32) {
    %c0_i32 = arith.constant 0 : i32
    %c0_i32_0 = arith.constant 0 : i32
    %c0_i32_1 = arith.constant 0 : i32
    return %c0_i32, %c0_i32_0 : i32, i32
  }
  func.func @transform_53(%arg0: i32) -> (i32, i32) {
    %c0_i32 = arith.constant 0 : i32
    %c0_i32_0 = arith.constant 0 : i32
    %c0_i32_1 = arith.constant 0 : i32
    return %c0_i32, %c0_i32_0 : i32, i32
  }
  func.func @transform_54(%arg0: i32) -> (i32, i32) {
    %c0_i32 = arith.constant 0 : i32
    %c0_i32_0 = arith.constant 0 : i32
    %c0_i32_1 = arith.constant 0 : i32
    return %c0_i32, %c0_i32_0 : i32, i32
  }
  func.func @transform_55(%arg0: i32) -> (i32, i32) {
    %c0_i32 = arith.constant 0 : i32
    %c0_i32_0 = arith.constant 0 : i32
    %c0_i32_1 = arith.constant 0 : i32
    return %c0_i32, %c0_i32_0 : i32, i32
  }
  func.func @transform_56(%arg0: i32) -> (i32, i32) {
    %c0_i32 = arith.constant 0 : i32
    %c0_i32_0 = arith.constant 0 : i32
    %c0_i32_1 = arith.constant 0 : i32
    return %c0_i32, %c0_i32_0 : i32, i32
  }
  func.func @transform_57(%arg0: i32) -> (i32, i32) {
    %c0_i32 = arith.constant 0 : i32
    %c0_i32_0 = arith.constant 0 : i32
    %c0_i32_1 = arith.constant 0 : i32
    return %c0_i32, %c0_i32_0 : i32, i32
  }
  func.func @transform_58(%arg0: i32) -> (i32, i32) {
    %c0_i32 = arith.constant 0 : i32
    %c0_i32_0 = arith.constant 0 : i32
    %c0_i32_1 = arith.constant 0 : i32
    return %c0_i32, %c0_i32_0 : i32, i32
  }
  func.func @transform_59(%arg0: i32) -> (i32, i32) {
    %c0_i32 = arith.constant 0 : i32
    %c0_i32_0 = arith.constant 0 : i32
    %c0_i32_1 = arith.constant 0 : i32
    return %c0_i32, %c0_i32_0 : i32, i32
  }
  func.func @transform_60(%arg0: i32) -> (i32, i32) {
    %c0_i32 = arith.constant 0 : i32
    %c0_i32_0 = arith.constant 0 : i32
    %c0_i32_1 = arith.constant 0 : i32
    return %c0_i32, %c0_i32_0 : i32, i32
  }
  func.func @transform_61(%arg0: i32) -> (i32, i32) {
    %c0_i32 = arith.constant 0 : i32
    %c0_i32_0 = arith.constant 0 : i32
    %c0_i32_1 = arith.constant 0 : i32
    return %c0_i32, %c0_i32_0 : i32, i32
  }
  func.func @transform_62(%arg0: i32) -> (i32, i32) {
    %c0_i32 = arith.constant 0 : i32
    %c0_i32_0 = arith.constant 0 : i32
    %c0_i32_1 = arith.constant 0 : i32
    return %c0_i32, %c0_i32_0 : i32, i32
  }
  func.func @transform_63(%arg0: i32) -> (i32, i32) {
    %c0_i32 = arith.constant 0 : i32
    %c0_i32_0 = arith.constant 0 : i32
    %c0_i32_1 = arith.constant 0 : i32
    return %c0_i32, %c0_i32_0 : i32, i32
  }
  func.func @transform_64(%arg0: i32) -> (i32, i32) {
    %c0_i32 = arith.constant 0 : i32
    %c0_i32_0 = arith.constant 0 : i32
    %c0_i32_1 = arith.constant 0 : i32
    return %c0_i32, %c0_i32_0 : i32, i32
  }
  func.func @transform_65(%arg0: i32) -> (i32, i32) {
    %c0_i32 = arith.constant 0 : i32
    %c0_i32_0 = arith.constant 0 : i32
    %c0_i32_1 = arith.constant 0 : i32
    return %c0_i32, %c0_i32_0 : i32, i32
  }
  func.func @transform_66(%arg0: i32) -> (i32, i32) {
    %c0_i32 = arith.constant 0 : i32
    %c0_i32_0 = arith.constant 0 : i32
    %c0_i32_1 = arith.constant 0 : i32
    return %c0_i32, %c0_i32_0 : i32, i32
  }
  func.func @transform_67(%arg0: i32) -> (i32, i32) {
    %c0_i32 = arith.constant 0 : i32
    %c0_i32_0 = arith.constant 0 : i32
    %c0_i32_1 = arith.constant 0 : i32
    return %c0_i32, %c0_i32_0 : i32, i32
  }
  func.func @transform_68(%arg0: i32) -> (i32, i32) {
    %c0_i32 = arith.constant 0 : i32
    %c0_i32_0 = arith.constant 0 : i32
    %c0_i32_1 = arith.constant 0 : i32
    return %c0_i32, %c0_i32_0 : i32, i32
  }
  func.func @transform_69(%arg0: i32) -> (i32, i32) {
    %c0_i32 = arith.constant 0 : i32
    %c0_i32_0 = arith.constant 0 : i32
    %c0_i32_1 = arith.constant 0 : i32
    return %c0_i32, %c0_i32_0 : i32, i32
  }
  func.func @transform_70(%arg0: i32) -> (i32, i32) {
    %c0_i32 = arith.constant 0 : i32
    %c0_i32_0 = arith.constant 0 : i32
    %c0_i32_1 = arith.constant 0 : i32
    return %c0_i32, %c0_i32_0 : i32, i32
  }
  func.func @transform_71(%arg0: i32) -> (i32, i32) {
    %c0_i32 = arith.constant 0 : i32
    %c0_i32_0 = arith.constant 0 : i32
    %c0_i32_1 = arith.constant 0 : i32
    return %c0_i32, %c0_i32_0 : i32, i32
  }
  func.func @transform_72(%arg0: i32) -> (i32, i32, i32) {
    %c0_i32 = arith.constant 0 : i32
    %c0_i32_0 = arith.constant 0 : i32
    %c0_i32_1 = arith.constant 0 : i32
    return %arg0, %c0_i32, %c0_i32_0 : i32, i32, i32
  }
}

</mosaic_0001>

<bundles_post_ra>
// kernel: sthvnet_forward.1
= control target key start
LH: loop header
LB: loop body
LE: loop exit
PB: predicated region body
PF: predicated region fallthrough
CT: control target
= control target key end

     0   :  { %s10521_s6 = smov 1   ;;  %s10522_s10 = smov 2   ;;  %s12801_s0 = inlined_call_operand.smem [shape: u32[73], index: -1, kind: input, shape index: {}] }
   0x1   :  { %s10674_s5 = sld [smem:[%s12801_s0]]   ;;  %s10523_s14 = smov 3  }
   0x2   :  { %s10679_s9 = sld [smem:[%s12801_s0 + %s10521_s6]]   ;;  %s10524_s18 = smov 4  }
   0x3   :  { %s10684_s13 = sld [smem:[%s12801_s0 + %s10522_s10]]   ;;  %s10525_s22 = smov 5  }
   0x4   :  { %s10689_s17 = sld [smem:[%s12801_s0 + %s10523_s14]]   ;;  %s10526_s26 = smov 6  }
   0x5   :  { %s10694_s21 = sld [smem:[%s12801_s0 + %s10524_s18]]   ;;  %s10527_s30 = smov 7  }
   0x6   :  { %s10699_s25 = sld [smem:[%s12801_s0 + %s10525_s22]]   ;;  %s10528_s4 = smov 8  }
   0x7   :  { %12914 = sst [smem:[#allocation134_spill]] %s10674_s5  ;;  %s10529_s10 = smov 9  }
   0x8   :  { %12915 = sst [smem:[#allocation135_spill]] %s10679_s9  ;;  %s10530_s15 = smov 10  }
   0x9   :  { %s10704_s29 = sld [smem:[%s12801_s0 + %s10526_s26]]   ;;  %s10531_s20 = smov 11   ;;  %v150_v0 = vstv %s10684_s13 }
   0xa   :  { %12916 = sst [smem:[#allocation136_spill]] %s10689_s17  ;;  %s10532_s26 = smov 12   ;;  %151 = vst [vmem:[#allocation2] sm:$0x1] %v150_v0 }
   0xb   :  { %12917 = sst [smem:[#allocation137_spill]] %s10694_s21  ;;  %s10533_s1 = smov 13  }
   0xc   :  { %s10709_s3 = sld [smem:[%s12801_s0 + %s10527_s30]]   ;;  %s10534_s7 = smov 14  }
   0xd   :  { %s10714_s8 = sld [smem:[%s12801_s0 + %s10528_s4]]   ;;  %s10536_s22 = smov 16  }
   0xe   :  { %s10719_s14 = sld [smem:[%s12801_s0 + %s10529_s10]]   ;;  %s10537_s28 = smov 17  }
   0xf   :  { %12918 = sst [smem:[#allocation138_spill]] %s10704_s29  ;;  %s10559_s29 = smov 39  }
  0x10   :  { %s10724_s19 = sld [smem:[%s12801_s0 + %s10530_s15]]   ;;  %s10535_s15 = smov 15  }
  0x11   :  { %s10729_s24 = sld [smem:[%s12801_s0 + %s10531_s20]]   ;;  %s10563_s13 = smov 43  }
  0x12   :  { %12919 = sst [smem:[#allocation139_spill]] %s10709_s3 }
  0x13   :  { %12920 = sst [smem:[#allocation140_spill]] %s10714_s8 }
  0x14   :  { %12921 = sst [smem:[#allocation141_spill]] %s10719_s14 }
  0x15   :  { %s10734_s30 = sld [smem:[%s12801_s0 + %s10532_s26]]  }
  0x16   :  { %12922 = sst [smem:[#allocation142_spill]] %s10724_s19 }
  0x17   :  { %s10739_s6 = sld [smem:[%s12801_s0 + %s10533_s1]]  }
  0x18   :  { %s10744_s12 = sld [smem:[%s12801_s0 + %s10534_s7]]   ;;  %s10538_s7 = smov 18  }
  0x19   :  { %s10749_s20 = sld [smem:[%s12801_s0 + %s10535_s15]]   ;;  %s10539_s15 = smov 19  }
  0x1a   :  { %s10754_s27 = sld [smem:[%s12801_s0 + %s10536_s22]]   ;;  %s10540_s22 = smov 20  }
  0x1b   :  { %12923 = sst [smem:[#allocation143_spill]] %s10734_s30 }
  0x1c   :  { %s10759_s4 = sld [smem:[%s12801_s0 + %s10537_s28]]   ;;  %s10541_s28 = smov 21  }
  0x1d   :  { %12924 = sst [smem:[#allocation144_spill]] %s10739_s6 }
  0x1e   :  { %12925 = sst [smem:[#allocation145_spill]] %s10744_s12 }
  0x1f   :  { %s10764_s9 = sld [smem:[%s12801_s0 + %s10538_s7]]   ;;  %s10542_s7 = smov 22  }
  0x20   :  { %12926 = sst [smem:[#allocation146_spill]] %s10754_s27 }
  0x21   :  { %s10769_s21 = sld [smem:[%s12801_s0 + %s10539_s15]]   ;;  %s10543_s15 = smov 23  }
  0x22   :  { %12927 = sst [smem:[#allocation147_spill]] %s10759_s4 }
  0x23   :  { %s10774_s17 = sld [smem:[%s12801_s0 + %s10540_s22]]   ;;  %s10544_s22 = smov 24  }
  0x24   :  { %s10779_s5 = sld [smem:[%s12801_s0 + %s10541_s28]]   ;;  %s10545_s28 = smov 25  }
  0x25   :  { %12928 = sst [smem:[#allocation148_spill]] %s10764_s9 }
  0x26   :  { %s10784_s9 = sld [smem:[%s12801_s0 + %s10542_s7]]   ;;  %s10546_s7 = smov 26  }
  0x27   :  { %s10789_s27 = sld [smem:[%s12801_s0 + %s10543_s15]]   ;;  %s10547_s15 = smov 27  }
  0x28   :  { %s10799_s12 = sld [smem:[%s12801_s0 + %s10545_s28]]   ;;  %s10549_s28 = smov 29  }
  0x29   :  { %12929 = sst [smem:[#allocation149_spill]] %s10774_s17 }
  0x2a   :  { %12930 = sst [smem:[#allocation150_spill]] %s10779_s5 }
  0x2b   :  { %s10794_s17 = sld [smem:[%s12801_s0 + %s10544_s22]]   ;;  %s10548_s22 = smov 28  }
  0x2c   :  { %12931 = sst [smem:[#allocation151_spill]] %s10784_s9 }
  0x2d   :  { %s10804_s9 = sld [smem:[%s12801_s0 + %s10546_s7]]   ;;  %s10550_s7 = smov 30  }
  0x2e   :  { %12933 = sst [smem:[#allocation153_spill]] %s10799_s12 }
  0x2f   :  { %s10809_s30 = sld [smem:[%s12801_s0 + %s10547_s15]]   ;;  %s10551_s15 = smov 31  }
  0x30   :  { %s10819_s19 = sld [smem:[%s12801_s0 + %s10549_s28]]   ;;  %s10553_s28 = smov 33  }
  0x31   :  { %12932 = sst [smem:[#allocation152_spill]] %s10794_s17 }
  0x32   :  { %s10814_s17 = sld [smem:[%s12801_s0 + %s10548_s22]]   ;;  %s10552_s22 = smov 32  }
  0x33   :  { %12934 = sst [smem:[#allocation154_spill]] %s10804_s9 }
  0x34   :  { %s10824_s9 = sld [smem:[%s12801_s0 + %s10550_s7]]   ;;  %s10554_s7 = smov 34  }
  0x35   :  { %s10829_s8 = sld [smem:[%s12801_s0 + %s10551_s15]]   ;;  %s10555_s15 = smov 35  }
  0x36   :  { %s10834_s1 = sld [smem:[%s12801_s0 + %s10552_s22]]   ;;  %s10556_s22 = smov 36  }
  0x37   :  { %s10839_s10 = sld [smem:[%s12801_s0 + %s10553_s28]]  }
  0x38   :  { %12935 = sst [smem:[#allocation155_spill]] %s10814_s17  ;;  %s10557_s17 = smov 37  }
  0x39   :  { %s10844_s16 = sld [smem:[%s12801_s0 + %s10554_s7]]   ;;  %s10562_s7 = smov 42  }
  0x3a   :  { %12936 = sst [smem:[#allocation156_spill]] %s10824_s9  ;;  %s10558_s9 = smov 38  }
  0x3b   :  { %12937 = sst [smem:[#allocation157_spill]] %s10829_s8 }
  0x3c   :  { %12938 = sst [smem:[#allocation158_spill]] %s10834_s1  ;;  %s10560_s1 = smov 40  }
  0x3d   :  { %12939 = sst [smem:[#allocation159_spill]] %s10839_s10 }
  0x3e   :  { %s10849_s23 = sld [smem:[%s12801_s0 + %s10555_s15]]  }
  0x3f   :  { %12940 = sst [smem:[#allocation160_spill]] %s10844_s16 }
  0x40   :  { %s10854_s8 = sld [smem:[%s12801_s0 + %s10556_s22]]  }
  0x41   :  { %s10859_s10 = sld [smem:[%s12801_s0 + %s10557_s17]]   ;;  %s10561_s17 = smov 41  }
  0x42   :  { %s10864_s16 = sld [smem:[%s12801_s0 + %s10558_s9]]  }
  0x43   :  { %s10875_s28 = sld [smem:[%s12801_s0 + %s10560_s1]]   ;;  %s10564_s1 = smov 44  }
  0x44   :  { %12941 = sst [smem:[#allocation161_spill]] %s10849_s23 }
  0x45   :  { %s10869_s23 = sld [smem:[%s12801_s0 + %s10559_s29]]  }
  0x46   :  { %12942 = sst [smem:[#allocation162_spill]] %s10854_s8 }
  0x47   :  { %12943 = sst [smem:[#allocation163_spill]] %s10859_s10  ;;  %s10565_s10 = smov 45  }
  0x48   :  { %12944 = sst [smem:[#allocation164_spill]] %s10864_s16  ;;  %s10566_s16 = smov 46  }
  0x49   :  { %12946 = sst [smem:[#allocation166_spill]] %s10875_s28 }
  0x4a   :  { %s10880_s9 = sld [smem:[%s12801_s0 + %s10561_s17]]  }
  0x4b   :  { %12945 = sst [smem:[#allocation165_spill]] %s10869_s23  ;;  %s10568_s23 = smov 48  }
  0x4c   :  { %s10885_s29 = sld [smem:[%s12801_s0 + %s10562_s7]]  }
  0x4d   :  { %s10890_s22 = sld [smem:[%s12801_s0 + %s10563_s13]]   ;;  %s10567_s13 = smov 47  }
  0x4e   :  { %s10895_s28 = sld [smem:[%s12801_s0 + %s10564_s1]]  }
  0x50   :  { %12947 = sst [smem:[#allocation167_spill]] %s10880_s9 }
  0x51   :  { %s10900_s9 = sld [smem:[%s12801_s0 + %s10565_s10]]   ;;  %s10569_s10 = smov 49  }
  0x52   :  { %12948 = sst [smem:[#allocation168_spill]] %s10885_s29 }
  0x53   :  { %12949 = sst [smem:[#allocation169_spill]] %s10890_s22 }
  0x54   :  { %12950 = sst [smem:[#allocation170_spill]] %s10895_s28 }
  0x55   :  { %s10905_s29 = sld [smem:[%s12801_s0 + %s10566_s16]]   ;;  %s10570_s16 = smov 50  }
  0x56   :  { %s10910_s22 = sld [smem:[%s12801_s0 + %s10567_s13]]   ;;  %s10571_s13 = smov 51  }
  0x57   :  { %12951 = sst [smem:[#allocation171_spill]] %s10900_s9 }
  0x58   :  { %s10915_s28 = sld [smem:[%s12801_s0 + %s10568_s23]]   ;;  %s10572_s23 = smov 52  }
  0x59   :  { %s10920_s9 = sld [smem:[%s12801_s0 + %s10569_s10]]   ;;  %s10573_s10 = smov 53  }
  0x5b   :  { %12952 = sst [smem:[#allocation172_spill]] %s10905_s29 }
  0x5c   :  { %12953 = sst [smem:[#allocation173_spill]] %s10910_s22 }
  0x5d   :  { %s10925_s29 = sld [smem:[%s12801_s0 + %s10570_s16]]   ;;  %s10574_s16 = smov 54  }
  0x5e   :  { %12954 = sst [smem:[#allocation174_spill]] %s10915_s28 }
  0x5f   :  { %12955 = sst [smem:[#allocation175_spill]] %s10920_s9 }
  0x60   :  { %s10930_s22 = sld [smem:[%s12801_s0 + %s10571_s13]]   ;;  %s10575_s13 = smov 55  }
  0x61   :  { %s10935_s28 = sld [smem:[%s12801_s0 + %s10572_s23]]   ;;  %s10576_s23 = smov 56  }
  0x62   :  { %s10940_s9 = sld [smem:[%s12801_s0 + %s10573_s10]]   ;;  %s10577_s10 = smov 57  }
  0x63   :  { %12956 = sst [smem:[#allocation176_spill]] %s10925_s29 }
  0x64   :  { %s10945_s29 = sld [smem:[%s12801_s0 + %s10574_s16]]   ;;  %s10578_s16 = smov 58  }
  0x66   :  { %12957 = sst [smem:[#allocation177_spill]] %s10930_s22 }
  0x67   :  { %12958 = sst [smem:[#allocation178_spill]] %s10935_s28 }
  0x68   :  { %12959 = sst [smem:[#allocation179_spill]] %s10940_s9 }
  0x69   :  { %s10950_s22 = sld [smem:[%s12801_s0 + %s10575_s13]]   ;;  %s10579_s13 = smov 59  }
  0x6a   :  { %12960 = sst [smem:[#allocation180_spill]] %s10945_s29 }
  0x6b   :  { %s10955_s28 = sld [smem:[%s12801_s0 + %s10576_s23]]   ;;  %s10580_s23 = smov 60  }
  0x6c   :  { %s10960_s9 = sld [smem:[%s12801_s0 + %s10577_s10]]   ;;  %s10581_s10 = smov 61  }
  0x6d   :  { %s10965_s29 = sld [smem:[%s12801_s0 + %s10578_s16]]   ;;  %s10582_s16 = smov 62  }
  0x6f   :  { %12961 = sst [smem:[#allocation181_spill]] %s10950_s22 }
  0x70   :  { %s10970_s22 = sld [smem:[%s12801_s0 + %s10579_s13]]   ;;  %s10583_s13 = smov 63  }
  0x71   :  { %12962 = sst [smem:[#allocation182_spill]] %s10955_s28 }
  0x72   :  { %12963 = sst [smem:[#allocation183_spill]] %s10960_s9 }
  0x73   :  { %12964 = sst [smem:[#allocation184_spill]] %s10965_s29 }
  0x74   :  { %s10975_s28 = sld [smem:[%s12801_s0 + %s10580_s23]]   ;;  %s10584_s23 = smov 64  }
  0x75   :  { %s10980_s9 = sld [smem:[%s12801_s0 + %s10581_s10]]   ;;  %s10585_s10 = smov 65  }
  0x76   :  { %12965 = sst [smem:[#allocation185_spill]] %s10970_s22 }
  0x77   :  { %s10985_s29 = sld [smem:[%s12801_s0 + %s10582_s16]]   ;;  %s10586_s16 = smov 66  }
  0x78   :  { %s10990_s22 = sld [smem:[%s12801_s0 + %s10583_s13]]   ;;  %s10587_s13 = smov 67  }
  0x7a   :  { %12966 = sst [smem:[#allocation186_spill]] %s10975_s28 }
  0x7b   :  { %12967 = sst [smem:[#allocation187_spill]] %s10980_s9 }
  0x7c   :  { %s10995_s28 = sld [smem:[%s12801_s0 + %s10584_s23]]   ;;  %s10588_s23 = smov 68  }
  0x7d   :  { %12968 = sst [smem:[#allocation188_spill]] %s10985_s29 }
  0x7e   :  { %12969 = sst [smem:[#allocation189_spill]] %s10990_s22 }
  0x7f   :  { %s11000_s9 = sld [smem:[%s12801_s0 + %s10585_s10]]   ;;  %s10589_s10 = smov 69  }
  0x80   :  { %s11005_s29 = sld [smem:[%s12801_s0 + %s10586_s16]]   ;;  %s10590_s16 = smov 70  }
  0x81   :  { %s11010_s22 = sld [smem:[%s12801_s0 + %s10587_s13]]   ;;  %s10591_s13 = smov 71  }
  0x82   :  { %12970 = sst [smem:[#allocation190_spill]] %s10995_s28 }
  0x83   :  { %s11015_s28 = sld [smem:[%s12801_s0 + %s10588_s23]]   ;;  %s10592_s23 = smov 72  }
  0x85   :  { %12971 = sst [smem:[#allocation191_spill]] %s11000_s9 }
  0x86   :  { %12972 = sst [smem:[#allocation192_spill]] %s11005_s29 }
  0x87   :  { %12973 = sst [smem:[#allocation193_spill]] %s11010_s22 }
  0x88   :  { %s11020_s9 = sld [smem:[%s12801_s0 + %s10589_s10]]  }
  0x89   :  { %12974 = sst [smem:[#allocation194_spill]] %s11015_s28 }
  0x8a   :  { %s11025_s29 = sld [smem:[%s12801_s0 + %s10590_s16]]  }
  0x8b   :  { %s11030_s22 = sld [smem:[%s12801_s0 + %s10591_s13]]  }
  0x8c   :  { %s11035_s28 = sld [smem:[%s12801_s0 + %s10592_s23]]  }
  0x8e   :  { %12975 = sst [smem:[#allocation195_spill]] %s11020_s9 }
  0x92   :  { %12976 = sst [smem:[#allocation196_spill]] %s11035_s28 }
  0x93   :  { %152 = vsyncpa [#allocation4], 0 }
  0x94   :  { %154 = vsyncpa [#allocation4 + $0x1], 0 }
  0x95   :  { %155 = vsyncpa [#allocation6], 0 }
  0x96   :  { %156 = vsyncpa [#allocation9], 0 }
  0x97   :  { %157 = vsyncpa [#allocation12], 0 }
  0x98   :  { %158 = vsyncpa [#allocation15], 0 }
  0x99   :  { %159 = vsyncpa [#allocation18], 0 }
  0x9a   :  { %160 = vsyncpa [#allocation21], 0 }
  0x9b   :  { %161 = vsyncpa [#allocation24], 0 }
  0x9c   :  { %162 = vsyncpa [#allocation27], 0 }
  0x9d   :  { %163 = vsyncpa [#allocation30], 0 }
  0x9e   :  { %164 = vsyncpa [#allocation33], 0 }
  0x9f   :  { %165 = vsyncpa [#allocation36], 0 }
  0xa0   :  { %166 = vsyncpa [#allocation39], 0 }
  0xa1   :  { %167 = vsyncpa [#allocation42], 0 }
  0xa2   :  { %168 = vsyncpa [#allocation45], 0 }
  0xa3   :  { %169 = vsyncpa [#allocation48], 0 }
  0xa4   :  { %170 = vsyncpa [#allocation51], 0 }
  0xa5   :  { %171 = vsyncpa [#allocation54], 0 }
  0xa6   :  { %172 = vsyncpa [#allocation57], 0 }
  0xa7   :  { %173 = vsyncpa [#allocation60], 0 }
  0xa8   :  { %174 = vsyncpa [#allocation63], 0 }
  0xa9   :  { %175 = vsyncpa [#allocation66], 0 }
  0xaa   :  { %176 = vsyncpa [#allocation69], 0 }
  0xab   :  { %177 = vsyncpa [#allocation72], 0 }
  0xac   :  { %178 = vsyncpa [#allocation75], 0 }
  0xad   :  { %179 = vsyncpa [#allocation78], 0 }
  0xae   :  { %180 = vsyncpa [#allocation81], 0 }
  0xaf   :  { %181 = vsyncpa [#allocation84], 0 }
  0xb0   :  { %182 = vsyncpa [#allocation87], 0 }
  0xb1   :  { %183 = vsyncpa [#allocation90], 0 }
  0xb2   :  { %184 = vsyncpa [#allocation93], 0 }
  0xb3   :  { %185 = vsyncpa [#allocation96], 0 }
  0xb4   :  { %186 = vsyncpa [#allocation99], 0  ;;  %s11037_s0 = smov 0   ;;  %s11039_s10 = smov 0  }
  0xb5   :  { %s11041_s17 = smov 0   ;;  %s11043_s2 = smov 0  }
  0xb6 LB: > { %s12977_s14 = sld [smem:[#allocation141_spill]]  ;;  %s11056_s16 = sadd.s32 4294967295, %s10519_s2   ;;  %s10515_s17 = sphi %s11041_s17, %s13073_s17   ;;  %s10511_s10 = sphi %s11039_s10, %s13072_s10   ;;  %s10507_s0 = sphi %s11037_s0, %s13070_s0   ;;  %s10519_s2 = sphi %s11043_s2, %s13069_s2  }
  0xb7   : > { %s12978_s8 = sld [smem:[#allocation162_spill]]  ;;  %s11059_s7 = sadd.s32 1, %s10519_s2  }
  0xb8   : > { %s12979_s12 = sld [smem:[#allocation153_spill]]  ;;  %s196_s11 = ssub.s32 %s10519_s2, %s11059_s7 }
  0xb9   : > { %s12980_s6 = sld [smem:[#allocation144_spill]]  ;;  %s199_s13 = sadd.s32 1, %s10515_s17 }
  0xba   : > { %s12981_s5 = sld [smem:[#allocation150_spill]]  ;;  %p197_p0 = scmp.eq.s32.totalorder %s196_s11, 0 }
  0xbb   : > { %s12982_s4 = sld [smem:[#allocation147_spill]]  ;;  %p206_p1 = scmp.ne.s32.totalorder %s10515_s17, %s10511_s10 }
  0xbc   : > { %s12983_s3 = sld [smem:[#allocation139_spill]]  ;;  %p207_p2 = scmp.eq.s32.totalorder %s10519_s2, 0 }
  0xbd   : > { %12984 = sst [smem:[#allocation197_spill]] %s10511_s10  ;;  %p212_p3 = scmp.ne.s32.totalorder %s10511_s10, %s10507_s0 }
  0xbe   : > { %12985 = sst [smem:[#allocation198_spill]] %s11059_s7  ;;  %p11071_p4 = por %p207_p2, %p206_p1 }
  0xbf   : > { %s11069_s15 = scalar_select %p197_p0, %s10515_s17, %s199_s13  }
  0xc0   : > { %p213_p5 = scmp.eq.s32.totalorder %s11056_s16, 0  ;;  %p7487_p6 = scmp.ge.s32.totalorder %s10519_s2, 1 }
  0xc1   : > { %12986 = sst [smem:[#allocation199_spill]] %s11069_s15  ;;  %p1740_p7 = scmp.lt.s32.totalorder %s10519_s2, 3 }
  0xc2   : > { %p11080_p8 = por %p213_p5, %p212_p3 }
  0xc3   : > { %p11084_p9 = pnand %p7487_p6, %p1740_p7 }
  0xc4   : > { %s12988_s23 = scalar_select %p11080_p8, 1, 0 }
  0xc5   : > { %1744 = sbr.rel (%p11084_p9) target bundleno = 1041 (0x411), region = 12  ;;  %s1764_s26 = sshll.u32 (!%p11084_p9), %s10699_s25, 4  ;;  %s1765_s26 = int_to_ptr.hbm [resolvable:$true] %s1764_s26 }
  0xc6   : > { %12989 = sst [smem:[#allocation200_spill]] %s12988_s23  ;;  %s10593_s0 = smov (!%p11084_p9), [#allocation5]  }
  0xc7   : > { %s1766_s11 = sshll.u32 (!%p11084_p9), %s10593_s0, 4  ;;  %s1788_s13 = sshll.u32 (!%p11084_p9), %s12983_s3, 4  ;;  %s1767_s11 = int_to_ptr.vmem [resolvable:$true] %s1766_s11  ;;  %s11092_s13 = int_to_ptr.hbm [resolvable:$true] %s1788_s13 }
  0xc8   : > { %s8535_s15 = sshra.s32 (!%p11084_p9), %s1765_s26, 4  ;;  %s8541_s28 = scalar_lea.hbm (!%p11084_p9), %s10699_s25, 1  ;;  %s8536_s15 = int_to_ptr.hbm [resolvable:$true] %s8535_s15 }
  0xc9   : > { %s8537_s7 = scalar_lea.hbm (!%p11084_p9), %s8536_s15, 1  ;;  %p8542_p13 = scmp.lt.s32.totalorder (!%p11084_p9), %s8536_s15, %s10699_s25 }
  0xca   : > { %p8538_p10 = scmp.ne.s32.totalorder %s8536_s15, %s8537_s7  ;;  %p8543_p0 = scmp.lt.s32.totalorder %s8541_s28, %s8537_s7 }
  0xcc   : > { %p8539_p11 = pnand %p8538_p10, %p213_p5  ;;  %p8544_p1 = por %p8543_p0, %p8542_p13 }
  0xce   : > { %p8540_p12 = pneg %p8539_p11 }
  0xd0   : > { %p8545_p2 = pnand %p8544_p1, %p8540_p12 }
  0xd2   : > { %8548 = shalt.err (!%p8545_p2)
}
  0xd3   : > { %7766 = dma.hbm_to_vmem [thread:$0]  (%p213_p5), %s1765_s26, 16, %s1767_s11, [#allocation6]  }
  0xd4   : > { %s1811_s0 = sshll.u32 %s12977_s14, 4  ;;  %s10594_s9 = smov [#allocation8]   ;;  %s11101_s0 = int_to_ptr.hbm [resolvable:$true] %s1811_s0 }
  0xd5   : > { %s1790_s23 = sshll.u32 %s10594_s9, 4  ;;  %s8563_s10 = sshra.s32 %s11092_s13, 4  ;;  %s1791_s23 = int_to_ptr.vmem [resolvable:$true] %s1790_s23  ;;  %s8564_s10 = int_to_ptr.hbm [resolvable:$true] %s8563_s10 }
  0xd6   : > { %s8565_s28 = scalar_lea.hbm %s8564_s10, 1  ;;  %s8569_s7 = scalar_lea.hbm %s12983_s3, 1 }
  0xd7   : > { %p8566_p3 = scmp.ne.s32.totalorder %s8564_s10, %s8565_s28  ;;  %p8570_p10 = scmp.lt.s32.totalorder %s8564_s10, %s12983_s3 }
  0xd8   : > { %p8571_p11 = scmp.lt.s32.totalorder %s8569_s7, %s8565_s28 }
  0xd9   : > { %p8567_p6 = pnand %p8566_p3, %p213_p5 }
  0xda   : > { %p8572_p12 = por %p8571_p11, %p8570_p10 }
  0xdb   : > { %p8568_p7 = pneg %p8567_p6 }
  0xdd   : > { %p8573_p13 = pnand %p8572_p12, %p8568_p7 }
  0xdf   : > { %8576 = shalt.err (!%p8573_p13)
}
  0xe0   : > { %7770 = dma.hbm_to_vmem [thread:$0]  (%p213_p5), %s11092_s13, 16, %s1791_s23, [#allocation9]  }
  0xe1   : > { %s10595_s9 = smov [#allocation11]   ;;  %s8591_s26 = sshra.s32 %s11101_s0, 4  ;;  %s8592_s26 = int_to_ptr.hbm [resolvable:$true] %s8591_s26 }
  0xe2   : > { %s1813_s15 = sshll.u32 %s10595_s9, 4  ;;  %s8593_s11 = scalar_lea.hbm %s8592_s26, 32  ;;  %s1814_s15 = int_to_ptr.vmem [resolvable:$true] %s1813_s15 }
  0xe3   : > { %p8594_p0 = scmp.ne.s32.totalorder %s8592_s26, %s8593_s11  ;;  %s8597_s10 = scalar_lea.hbm %s12977_s14, 32 }
  0xe4   : > { %p8598_p3 = scmp.lt.s32.totalorder %s8592_s26, %s12977_s14  ;;  %p8599_p6 = scmp.lt.s32.totalorder %s8597_s10, %s8593_s11 }
  0xe5   : > { %p8595_p1 = pnand %p8594_p0, %p213_p5 }
  0xe6   : > { %p8600_p7 = por %p8599_p6, %p8598_p3 }
  0xe7   : > { %p8596_p2 = pneg %p8595_p1 }
  0xe9   : > { %p8601_p10 = pnand %p8600_p7, %p8596_p2 }
  0xeb   : > { %8604 = shalt.err (!%p8601_p10)
}
  0xec   : > { %s12861_s28 = smov 128   ;;  %s12865_s23 = smov 8  }
  0xed   : > { %7774 = dma.hbm_to_vmem [thread:$0]  (%p213_p5), %s11101_s0, 512, %s1814_s15, [#allocation12], %s12861_s28, %s12861_s28, %s12865_s23  }
  0xee   : > { %s1839_s13 = sshll.u32 %s10729_s24, 4  ;;  %s10598_s7 = smov [#allocation14]   ;;  %s1840_s13 = int_to_ptr.hbm [resolvable:$true] %s1839_s13 }
  0xef   : > { %s1841_s9 = sshll.u32 %s10598_s7, 4  ;;  %s1868_s26 = sshll.u32 %s12980_s6, 4  ;;  %s1842_s9 = int_to_ptr.vmem [resolvable:$true] %s1841_s9  ;;  %s1869_s26 = int_to_ptr.hbm [resolvable:$true] %s1868_s26 }
  0xf0   : > { %s8619_s11 = sshra.s32 %s1840_s13, 4  ;;  %s8625_s3 = scalar_lea.hbm %s10729_s24, 32  ;;  %s8620_s11 = int_to_ptr.hbm [resolvable:$true] %s8619_s11 }
  0xf1   : > { %s8621_s10 = scalar_lea.hbm %s8620_s11, 32  ;;  %p8626_p0 = scmp.lt.s32.totalorder %s8620_s11, %s10729_s24 }
  0xf2   : > { %p8622_p11 = scmp.ne.s32.totalorder %s8620_s11, %s8621_s10  ;;  %p8627_p1 = scmp.lt.s32.totalorder %s8625_s3, %s8621_s10 }
  0xf4   : > { %p8623_p12 = pnand %p8622_p11, %p213_p5  ;;  %p8628_p2 = por %p8627_p1, %p8626_p0 }
  0xf6   : > { %p8624_p13 = pneg %p8623_p12 }
  0xf8   : > { %p8629_p3 = pnand %p8628_p2, %p8624_p13 }
  0xfa   : > { %8632 = shalt.err (!%p8629_p3)
}
  0xfb   : > { %7778 = dma.hbm_to_vmem [thread:$0]  (%p213_p5), %s1840_s13, 512, %s1842_s9, [#allocation15], %s12861_s28, %s12861_s28, %s12865_s23  }
  0xfc   : > { %s10599_s0 = smov [#allocation17]   ;;  %s1892_s7 = sshll.u32 %s10749_s20, 4  ;;  %s11134_s7 = int_to_ptr.hbm [resolvable:$true] %s1892_s7 }
  0xfd   : > { %s1870_s15 = sshll.u32 %s10599_s0, 4  ;;  %s8647_s3 = sshra.s32 %s1869_s26, 4  ;;  %s1871_s15 = int_to_ptr.vmem [resolvable:$true] %s1870_s15  ;;  %s8648_s3 = int_to_ptr.hbm [resolvable:$true] %s8647_s3 }
  0xfe   : > { %s8649_s11 = scalar_lea.hbm %s8648_s3, 1  ;;  %s8653_s10 = scalar_lea.hbm %s12980_s6, 1 }
  0xff   : > { %p8650_p6 = scmp.ne.s32.totalorder %s8648_s3, %s8649_s11  ;;  %p8654_p11 = scmp.lt.s32.totalorder %s8648_s3, %s12980_s6 }
 0x100   : > { %p8655_p12 = scmp.lt.s32.totalorder %s8653_s10, %s8649_s11 }
 0x101   : > { %p8651_p7 = pnand %p8650_p6, %p213_p5 }
 0x102   : > { %p8656_p13 = por %p8655_p12, %p8654_p11 }
 0x103   : > { %p8652_p10 = pneg %p8651_p7 }
 0x105   : > { %p8657_p0 = pnand %p8656_p13, %p8652_p10 }
 0x107   : > { %8660 = shalt.err (!%p8657_p0)
}
 0x108   : > { %7782 = dma.hbm_to_vmem [thread:$0]  (%p213_p5), %s1869_s26, 16, %s1871_s15, [#allocation18]  }
 0x109   : > { %s1915_s13 = sshll.u32 %s12982_s4, 4  ;;  %s10600_s9 = smov [#allocation20]   ;;  %s11143_s13 = int_to_ptr.hbm [resolvable:$true] %s1915_s13 }
 0x10a   : > { %s1894_s0 = sshll.u32 %s10600_s9, 4  ;;  %s8675_s28 = sshra.s32 %s11134_s7, 4  ;;  %s1895_s0 = int_to_ptr.vmem [resolvable:$true] %s1894_s0  ;;  %s8676_s28 = int_to_ptr.hbm [resolvable:$true] %s8675_s28 }
 0x10b   : > { %s8677_s3 = scalar_lea.hbm %s8676_s28, 1  ;;  %s8681_s11 = scalar_lea.hbm %s10749_s20, 1 }
 0x10c   : > { %p8678_p1 = scmp.ne.s32.totalorder %s8676_s28, %s8677_s3  ;;  %p8682_p6 = scmp.lt.s32.totalorder %s8676_s28, %s10749_s20 }
 0x10d   : > { %p8683_p7 = scmp.lt.s32.totalorder %s8681_s11, %s8677_s3 }
 0x10e   : > { %p8679_p2 = pnand %p8678_p1, %p213_p5 }
 0x10f   : > { %p8684_p10 = por %p8683_p7, %p8682_p6 }
 0x110   : > { %p8680_p3 = pneg %p8679_p2 }
 0x112   : > { %p8685_p11 = pnand %p8684_p10, %p8680_p3 }
 0x114   : > { %8688 = shalt.err (!%p8685_p11)
}
 0x115   : > { %7786 = dma.hbm_to_vmem [thread:$0]  (%p213_p5), %s11134_s7, 16, %s1895_s0, [#allocation21]  }
 0x116   : > { %s10601_s26 = smov [#allocation23]   ;;  %s1943_s10 = sshll.u32 %s10769_s21, 4  ;;  %s11154_s10 = int_to_ptr.hbm [resolvable:$true] %s1943_s10 }
 0x117   : > { %s1917_s15 = sshll.u32 %s10601_s26, 4  ;;  %s8703_s28 = sshra.s32 %s11143_s13, 4  ;;  %s1918_s15 = int_to_ptr.vmem [resolvable:$true] %s1917_s15  ;;  %s8704_s28 = int_to_ptr.hbm [resolvable:$true] %s8703_s28 }
 0x118   : > { %s8705_s9 = scalar_lea.hbm %s8704_s28, 32  ;;  %s8709_s3 = scalar_lea.hbm %s12982_s4, 32 }
 0x119   : > { %p8706_p12 = scmp.ne.s32.totalorder %s8704_s28, %s8705_s9  ;;  %p8710_p1 = scmp.lt.s32.totalorder %s8704_s28, %s12982_s4 }
 0x11a   : > { %p8711_p2 = scmp.lt.s32.totalorder %s8709_s3, %s8705_s9 }
 0x11b   : > { %p8707_p13 = pnand %p8706_p12, %p213_p5 }
 0x11c   : > { %p8712_p3 = por %p8711_p2, %p8710_p1 }
 0x11d   : > { %p8708_p0 = pneg %p8707_p13 }
 0x11f   : > { %p8713_p6 = pnand %p8712_p3, %p8708_p0 }
 0x121   : > { %8716 = shalt.err (!%p8713_p6)
}
 0x122   : > { %s12991_s7 = smov 128   ;;  %s1971_s0 = sshll.u32 %s12981_s5, 4  ;;  %s11168_s0 = int_to_ptr.hbm [resolvable:$true] %s1971_s0 }
 0x123   : > { %7790 = dma.hbm_to_vmem [thread:$0]  (%p213_p5), %s11143_s13, 512, %s1918_s15, [#allocation24], %s12991_s7, %s12991_s7, %s12865_s23  }
 0x124   : > { %s10602_s11 = smov [#allocation26]   ;;  %s8731_s28 = sshra.s32 %s11154_s10, 4  ;;  %s8732_s28 = int_to_ptr.hbm [resolvable:$true] %s8731_s28 }
 0x125   : > { %s1945_s26 = sshll.u32 %s10602_s11, 4  ;;  %s8733_s9 = scalar_lea.hbm %s8732_s28, 32  ;;  %s1946_s26 = int_to_ptr.vmem [resolvable:$true] %s1945_s26 }
 0x126   : > { %p8734_p7 = scmp.ne.s32.totalorder %s8732_s28, %s8733_s9  ;;  %s8737_s3 = scalar_lea.hbm %s10769_s21, 32 }
 0x127   : > { %p8738_p12 = scmp.lt.s32.totalorder %s8732_s28, %s10769_s21  ;;  %p8739_p13 = scmp.lt.s32.totalorder %s8737_s3, %s8733_s9 }
 0x128   : > { %p8735_p10 = pnand %p8734_p7, %p213_p5 }
 0x129   : > { %p8740_p0 = por %p8739_p13, %p8738_p12 }
 0x12a   : > { %p8736_p11 = pneg %p8735_p10 }
 0x12c   : > { %p8741_p1 = pnand %p8740_p0, %p8736_p11 }
 0x12e   : > { %8744 = shalt.err (!%p8741_p1)
}
 0x12f   : > { %7794 = dma.hbm_to_vmem [thread:$0]  (%p213_p5), %s11154_s10, 512, %s1946_s26, [#allocation27], %s12991_s7, %s12991_s7, %s12865_s23  }
 0x130   : > { %s10603_s13 = smov [#allocation29]   ;;  %s1998_s11 = sshll.u32 %s10789_s27, 4  ;;  %s11182_s11 = int_to_ptr.hbm [resolvable:$true] %s1998_s11 }
 0x131   : > { %s1973_s15 = sshll.u32 %s10603_s13, 4  ;;  %s8759_s28 = sshra.s32 %s11168_s0, 4  ;;  %s1974_s15 = int_to_ptr.vmem [resolvable:$true] %s1973_s15  ;;  %s8760_s28 = int_to_ptr.hbm [resolvable:$true] %s8759_s28 }
 0x132   : > { %s8761_s9 = scalar_lea.hbm %s8760_s28, 16  ;;  %s8765_s3 = scalar_lea.hbm %s12981_s5, 16 }
 0x133   : > { %p8762_p2 = scmp.ne.s32.totalorder %s8760_s28, %s8761_s9  ;;  %p8766_p7 = scmp.lt.s32.totalorder %s8760_s28, %s12981_s5 }
 0x134   : > { %p8767_p10 = scmp.lt.s32.totalorder %s8765_s3, %s8761_s9 }
 0x135   : > { %p8763_p3 = pnand %p8762_p2, %p213_p5 }
 0x136   : > { %p8768_p11 = por %p8767_p10, %p8766_p7 }
 0x137   : > { %p8764_p6 = pneg %p8763_p3 }
 0x139   : > { %p8769_p12 = pnand %p8768_p11, %p8764_p6 }
 0x13b   : > { %8772 = shalt.err (!%p8769_p12)
}
 0x13c   : > { %7798 = dma.hbm_to_vmem [thread:$0]  (%p213_p5), %s11168_s0, 256, %s1974_s15, [#allocation30], %s12991_s7, %s12991_s7, %s12865_s23  }
 0x13d   : > { %s2022_s10 = sshll.u32 %s12979_s12, 4  ;;  %s10604_s26 = smov [#allocation32]   ;;  %s11196_s10 = int_to_ptr.hbm [resolvable:$true] %s2022_s10 }
 0x13e   : > { %s2000_s13 = sshll.u32 %s10604_s26, 4  ;;  %s8787_s28 = sshra.s32 %s11182_s11, 4  ;;  %s2001_s13 = int_to_ptr.vmem [resolvable:$true] %s2000_s13  ;;  %s8788_s28 = int_to_ptr.hbm [resolvable:$true] %s8787_s28 }
 0x13f   : > { %s8789_s9 = scalar_lea.hbm %s8788_s28, 1  ;;  %s8793_s3 = scalar_lea.hbm %s10789_s27, 1 }
 0x140   : > { %p8790_p13 = scmp.ne.s32.totalorder %s8788_s28, %s8789_s9  ;;  %p8794_p2 = scmp.lt.s32.totalorder %s8788_s28, %s10789_s27 }
 0x141   : > { %p8795_p3 = scmp.lt.s32.totalorder %s8793_s3, %s8789_s9 }
 0x142   : > { %p8791_p0 = pnand %p8790_p13, %p213_p5 }
 0x143   : > { %p8796_p6 = por %p8795_p3, %p8794_p2 }
 0x144   : > { %p8792_p1 = pneg %p8791_p0 }
 0x146   : > { %p8797_p7 = pnand %p8796_p6, %p8792_p1 }
 0x148   : > { %8800 = shalt.err (!%p8797_p7)
}
 0x149   : > { %7802 = dma.hbm_to_vmem [thread:$0]  (%p213_p5), %s11182_s11, 16, %s2001_s13, [#allocation33]  }
 0x14a   : > { %s10605_s0 = smov [#allocation35]   ;;  %s2045_s26 = sshll.u32 %s10809_s30, 4  ;;  %s11207_s26 = int_to_ptr.hbm [resolvable:$true] %s2045_s26 }
 0x14b   : > { %s2024_s15 = sshll.u32 %s10605_s0, 4  ;;  %s8815_s28 = sshra.s32 %s11196_s10, 4  ;;  %s2025_s15 = int_to_ptr.vmem [resolvable:$true] %s2024_s15  ;;  %s8816_s28 = int_to_ptr.hbm [resolvable:$true] %s8815_s28 }
 0x14c   : > { %s8817_s9 = scalar_lea.hbm %s8816_s28, 1  ;;  %s8821_s3 = scalar_lea.hbm %s12979_s12, 1 }
 0x14d   : > { %p8818_p10 = scmp.ne.s32.totalorder %s8816_s28, %s8817_s9  ;;  %p8822_p13 = scmp.lt.s32.totalorder %s8816_s28, %s12979_s12 }
 0x14e   : > { %p8823_p0 = scmp.lt.s32.totalorder %s8821_s3, %s8817_s9 }
 0x14f   : > { %p8819_p11 = pnand %p8818_p10, %p213_p5 }
 0x150   : > { %p8824_p1 = por %p8823_p0, %p8822_p13 }
 0x151   : > { %p8820_p12 = pneg %p8819_p11 }
 0x153   : > { %p8825_p2 = pnand %p8824_p1, %p8820_p12 }
 0x155   : > { %8828 = shalt.err (!%p8825_p2)
}
 0x156   : > { %7806 = dma.hbm_to_vmem [thread:$0]  (%p213_p5), %s11196_s10, 16, %s2025_s15, [#allocation36]  }
 0x157   : > { %s2074_s11 = sshll.u32 %s10819_s19, 4  ;;  %s10606_s13 = smov [#allocation38]   ;;  %s11218_s11 = int_to_ptr.hbm [resolvable:$true] %s2074_s11 }
 0x158   : > { %s2047_s0 = sshll.u32 %s10606_s13, 4  ;;  %s8843_s28 = sshra.s32 %s11207_s26, 4  ;;  %s2048_s0 = int_to_ptr.vmem [resolvable:$true] %s2047_s0  ;;  %s8844_s28 = int_to_ptr.hbm [resolvable:$true] %s8843_s28 }
 0x159   : > { %s8845_s9 = scalar_lea.hbm %s8844_s28, 32  ;;  %s8849_s3 = scalar_lea.hbm %s10809_s30, 32 }
 0x15a   : > { %p8846_p3 = scmp.ne.s32.totalorder %s8844_s28, %s8845_s9  ;;  %p8850_p10 = scmp.lt.s32.totalorder %s8844_s28, %s10809_s30 }
 0x15b   : > { %p8851_p11 = scmp.lt.s32.totalorder %s8849_s3, %s8845_s9 }
 0x15c   : > { %p8847_p6 = pnand %p8846_p3, %p213_p5 }
 0x15d   : > { %p8852_p12 = por %p8851_p11, %p8850_p10 }
 0x15e   : > { %p8848_p7 = pneg %p8847_p6 }
 0x160   : > { %p8853_p13 = pnand %p8852_p12, %p8848_p7 }
 0x162   : > { %8856 = shalt.err (!%p8853_p13)
}
 0x163   : > { %s12992_s10 = sld [smem:[#allocation157_spill]]  ;;  %s10607_s13 = smov [#allocation41]  }
 0x164   : > { %7810 = dma.hbm_to_vmem [thread:$0]  (%p213_p5), %s11207_s26, 512, %s2048_s0, [#allocation39], %s12991_s7, %s12991_s7, %s12865_s23  }
 0x165   : > { %s2076_s4 = sshll.u32 %s10607_s13, 4  ;;  %s8871_s28 = sshra.s32 %s11218_s11, 4  ;;  %s2077_s4 = int_to_ptr.vmem [resolvable:$true] %s2076_s4  ;;  %s8872_s28 = int_to_ptr.hbm [resolvable:$true] %s8871_s28 }
 0x166   : > { %s8873_s9 = scalar_lea.hbm %s8872_s28, 8  ;;  %s8877_s3 = scalar_lea.hbm %s10819_s19, 8 }
 0x167   : > { %p8874_p0 = scmp.ne.s32.totalorder %s8872_s28, %s8873_s9  ;;  %p8878_p3 = scmp.lt.s32.totalorder %s8872_s28, %s10819_s19 }
 0x168   : > { %p8879_p6 = scmp.lt.s32.totalorder %s8877_s3, %s8873_s9 }
 0x169   : > { %s12993_s15 = smov %s12992_s10  ;;  %s2098_s5 = sshll.u32 %s12992_s10, 4  ;;  %s11232_s5 = int_to_ptr.hbm [resolvable:$true] %s2098_s5 }
 0x16a   : > { %p8875_p1 = pnand %p8874_p0, %p213_p5  ;;  %p8880_p7 = por %p8879_p6, %p8878_p3 }
 0x16c   : > { %p8876_p2 = pneg %p8875_p1 }
 0x16e   : > { %p8881_p10 = pnand %p8880_p7, %p8876_p2 }
 0x170   : > { %8884 = shalt.err (!%p8881_p10)
}
 0x171   : > { %s12994_s26 = sld [smem:[#allocation159_spill]]  ;;  %s10608_s10 = smov [#allocation44]  }
 0x172   : > { %7814 = dma.hbm_to_vmem [thread:$0]  (%p213_p5), %s11218_s11, 128, %s2077_s4, [#allocation42]  }
 0x173   : > { %s2100_s13 = sshll.u32 %s10608_s10, 4  ;;  %s8899_s28 = sshra.s32 %s11232_s5, 4  ;;  %s2101_s13 = int_to_ptr.vmem [resolvable:$true] %s2100_s13  ;;  %s8900_s28 = int_to_ptr.hbm [resolvable:$true] %s8899_s28 }
 0x174   : > { %s8901_s9 = scalar_lea.hbm %s8900_s28, 1  ;;  %s8905_s3 = scalar_lea.hbm %s12993_s15, 1 }
 0x175   : > { %p8902_p11 = scmp.ne.s32.totalorder %s8900_s28, %s8901_s9  ;;  %p8906_p0 = scmp.lt.s32.totalorder %s8900_s28, %s12993_s15 }
 0x176   : > { %p8907_p1 = scmp.lt.s32.totalorder %s8905_s3, %s8901_s9 }
 0x177   : > { %s2122_s0 = sshll.u32 %s12994_s26, 4  ;;  %p8903_p12 = pnand %p8902_p11, %p213_p5  ;;  %s11243_s0 = int_to_ptr.hbm [resolvable:$true] %s2122_s0 }
 0x178   : > { %p8908_p2 = por %p8907_p1, %p8906_p0 }
 0x179   : > { %p8904_p13 = pneg %p8903_p12 }
 0x17b   : > { %p8909_p3 = pnand %p8908_p2, %p8904_p13 }
 0x17d   : > { %8912 = shalt.err (!%p8909_p3)
}
 0x17e   : > { %7818 = dma.hbm_to_vmem [thread:$0]  (%p213_p5), %s11232_s5, 16, %s2101_s13, [#allocation45]  }
 0x17f   : > { %s10609_s4 = smov [#allocation47]   ;;  %s2151_s10 = sshll.u32 %s12978_s8, 4  ;;  %s11254_s10 = int_to_ptr.hbm [resolvable:$true] %s2151_s10 }
 0x180   : > { %s2124_s11 = sshll.u32 %s10609_s4, 4  ;;  %s8927_s28 = sshra.s32 %s11243_s0, 4  ;;  %s2125_s11 = int_to_ptr.vmem [resolvable:$true] %s2124_s11  ;;  %s8928_s28 = int_to_ptr.hbm [resolvable:$true] %s8927_s28 }
 0x181   : > { %s8929_s9 = scalar_lea.hbm %s8928_s28, 1  ;;  %s8933_s3 = scalar_lea.hbm %s12994_s26, 1 }
 0x182   : > { %p8930_p6 = scmp.ne.s32.totalorder %s8928_s28, %s8929_s9  ;;  %p8934_p11 = scmp.lt.s32.totalorder %s8928_s28, %s12994_s26 }
 0x183   : > { %p8935_p12 = scmp.lt.s32.totalorder %s8933_s3, %s8929_s9 }
 0x184   : > { %p8931_p7 = pnand %p8930_p6, %p213_p5 }
 0x185   : > { %p8936_p13 = por %p8935_p12, %p8934_p11 }
 0x186   : > { %p8932_p10 = pneg %p8931_p7 }
 0x188   : > { %p8937_p0 = pnand %p8936_p13, %p8932_p10 }
 0x18a   : > { %8940 = shalt.err (!%p8937_p0)
}
 0x18b   : > { %s12995_s5 = sld [smem:[#allocation164_spill]]  ;;  %s10610_s4 = smov [#allocation50]  }
 0x18c   : > { %7822 = dma.hbm_to_vmem [thread:$0]  (%p213_p5), %s11243_s0, 16, %s2125_s11, [#allocation48]  }
 0x18d   : > { %s2153_s23 = sshll.u32 %s10610_s4, 4  ;;  %s8955_s28 = sshra.s32 %s11254_s10, 4  ;;  %s2154_s23 = int_to_ptr.vmem [resolvable:$true] %s2153_s23  ;;  %s8956_s28 = int_to_ptr.hbm [resolvable:$true] %s8955_s28 }
 0x18e   : > { %s8957_s9 = scalar_lea.hbm %s8956_s28, 8  ;;  %s8961_s3 = scalar_lea.hbm %s12978_s8, 8 }
 0x18f   : > { %p8958_p1 = scmp.ne.s32.totalorder %s8956_s28, %s8957_s9  ;;  %p8962_p6 = scmp.lt.s32.totalorder %s8956_s28, %s12978_s8 }
 0x190   : > { %p8963_p7 = scmp.lt.s32.totalorder %s8961_s3, %s8957_s9 }
 0x191   : > { %s2176_s13 = sshll.u32 %s12995_s5, 4  ;;  %p8959_p2 = pnand %p8958_p1, %p213_p5  ;;  %s11265_s13 = int_to_ptr.hbm [resolvable:$true] %s2176_s13 }
 0x192   : > { %p8964_p10 = por %p8963_p7, %p8962_p6 }
 0x193   : > { %p8960_p3 = pneg %p8959_p2 }
 0x195   : > { %p8965_p11 = pnand %p8964_p10, %p8960_p3 }
 0x197   : > { %8968 = shalt.err (!%p8965_p11)
}
 0x198   : > { %s12996_s0 = sld [smem:[#allocation167_spill]]  ;;  %s10611_s4 = smov [#allocation53]  }
 0x199   : > { %7826 = dma.hbm_to_vmem [thread:$0]  (%p213_p5), %s11254_s10, 128, %s2154_s23, [#allocation51]  }
 0x19a   : > { %s2178_s6 = sshll.u32 %s10611_s4, 4  ;;  %s8983_s28 = sshra.s32 %s11265_s13, 4  ;;  %s2179_s6 = int_to_ptr.vmem [resolvable:$true] %s2178_s6  ;;  %s8984_s28 = int_to_ptr.hbm [resolvable:$true] %s8983_s28 }
 0x19b   : > { %s8985_s9 = scalar_lea.hbm %s8984_s28, 16  ;;  %s8989_s3 = scalar_lea.hbm %s12995_s5, 16 }
 0x19c   : > { %p8986_p12 = scmp.ne.s32.totalorder %s8984_s28, %s8985_s9  ;;  %p8990_p1 = scmp.lt.s32.totalorder %s8984_s28, %s12995_s5 }
 0x19d   : > { %p8991_p2 = scmp.lt.s32.totalorder %s8989_s3, %s8985_s9 }
 0x19e   : > { %s12997_s11 = smov %s12996_s0  ;;  %s2206_s12 = sshll.u32 %s12996_s0, 4  ;;  %s11276_s12 = int_to_ptr.hbm [resolvable:$true] %s2206_s12 }
 0x19f   : > { %p8987_p13 = pnand %p8986_p12, %p213_p5  ;;  %p8992_p3 = por %p8991_p2, %p8990_p1 }
 0x1a1   : > { %p8988_p0 = pneg %p8987_p13 }
 0x1a3   : > { %p8993_p6 = pnand %p8992_p3, %p8988_p0 }
 0x1a5   : > { %8996 = shalt.err (!%p8993_p6)
}
 0x1a6   : > { %s12998_s23 = smov 8   ;;  %s12999_s10 = sld [smem:[#allocation169_spill]] }
 0x1a7   : > { %7830 = dma.hbm_to_vmem [thread:$0]  (%p213_p5), %s11265_s13, 256, %s2179_s6, [#allocation54], %s12991_s7, %s12991_s7, %s12998_s23  }
 0x1a8   : > { %s10612_s8 = smov [#allocation56]   ;;  %s9011_s28 = sshra.s32 %s11276_s12, 4  ;;  %s9012_s28 = int_to_ptr.hbm [resolvable:$true] %s9011_s28 }
 0x1a9   : > { %s2208_s14 = sshll.u32 %s10612_s8, 4  ;;  %s9013_s9 = scalar_lea.hbm %s9012_s28, 1  ;;  %s2209_s14 = int_to_ptr.vmem [resolvable:$true] %s2208_s14 }
 0x1aa   : > { %p9014_p7 = scmp.ne.s32.totalorder %s9012_s28, %s9013_s9  ;;  %s9017_s3 = scalar_lea.hbm %s12997_s11, 1 }
 0x1ab   : > { %p9018_p12 = scmp.lt.s32.totalorder %s9012_s28, %s12997_s11  ;;  %p9019_p13 = scmp.lt.s32.totalorder %s9017_s3, %s9013_s9 }
 0x1ac   : > { %s13000_s4 = smov %s12999_s10  ;;  %s2229_s0 = sshll.u32 %s12999_s10, 4  ;;  %s11290_s0 = int_to_ptr.hbm [resolvable:$true] %s2229_s0 }
 0x1ad   : > { %p9015_p10 = pnand %p9014_p7, %p213_p5  ;;  %p9020_p0 = por %p9019_p13, %p9018_p12 }
 0x1af   : > { %p9016_p11 = pneg %p9015_p10 }
 0x1b1   : > { %p9021_p1 = pnand %p9020_p0, %p9016_p11 }
 0x1b3   : > { %9024 = shalt.err (!%p9021_p1)
}
 0x1b4   : > { %s13001_s8 = sld [smem:[#allocation171_spill]]  ;;  %s10613_s6 = smov [#allocation59]  }
 0x1b5   : > { %7834 = dma.hbm_to_vmem [thread:$0]  (%p213_p5), %s11276_s12, 16, %s2209_s14, [#allocation57]  }
 0x1b6   : > { %s2231_s13 = sshll.u32 %s10613_s6, 4  ;;  %s9039_s28 = sshra.s32 %s11290_s0, 4  ;;  %s2232_s13 = int_to_ptr.vmem [resolvable:$true] %s2231_s13  ;;  %s9040_s28 = int_to_ptr.hbm [resolvable:$true] %s9039_s28 }
 0x1b7   : > { %s9041_s9 = scalar_lea.hbm %s9040_s28, 32  ;;  %s9045_s3 = scalar_lea.hbm %s13000_s4, 32 }
 0x1b8   : > { %p9042_p2 = scmp.ne.s32.totalorder %s9040_s28, %s9041_s9  ;;  %p9046_p7 = scmp.lt.s32.totalorder %s9040_s28, %s13000_s4 }
 0x1b9   : > { %p9047_p10 = scmp.lt.s32.totalorder %s9045_s3, %s9041_s9 }
 0x1ba   : > { %s2257_s10 = sshll.u32 %s13001_s8, 4  ;;  %p9043_p3 = pnand %p9042_p2, %p213_p5  ;;  %s11301_s10 = int_to_ptr.hbm [resolvable:$true] %s2257_s10 }
 0x1bb   : > { %p9048_p11 = por %p9047_p10, %p9046_p7 }
 0x1bc   : > { %p9044_p6 = pneg %p9043_p3 }
 0x1be   : > { %p9049_p12 = pnand %p9048_p11, %p9044_p6 }
 0x1c0   : > { %9052 = shalt.err (!%p9049_p12)
}
 0x1c1   : > { %s13002_s14 = sld [smem:[#allocation173_spill]]  ;;  %s10614_s6 = smov [#allocation62]  }
 0x1c2   : > { %7838 = dma.hbm_to_vmem [thread:$0]  (%p213_p5), %s11290_s0, 512, %s2232_s13, [#allocation60], %s12991_s7, %s12991_s7, %s12998_s23  }
 0x1c3   : > { %s2259_s5 = sshll.u32 %s10614_s6, 4  ;;  %s9067_s28 = sshra.s32 %s11301_s10, 4  ;;  %s2260_s5 = int_to_ptr.vmem [resolvable:$true] %s2259_s5  ;;  %s9068_s28 = int_to_ptr.hbm [resolvable:$true] %s9067_s28 }
 0x1c4   : > { %s9069_s9 = scalar_lea.hbm %s9068_s28, 32  ;;  %s9073_s3 = scalar_lea.hbm %s13001_s8, 32 }
 0x1c5   : > { %p9070_p13 = scmp.ne.s32.totalorder %s9068_s28, %s9069_s9  ;;  %p9074_p2 = scmp.lt.s32.totalorder %s9068_s28, %s13001_s8 }
 0x1c6   : > { %p9075_p3 = scmp.lt.s32.totalorder %s9073_s3, %s9069_s9 }
 0x1c7   : > { %s2286_s12 = sshll.u32 %s13002_s14, 4  ;;  %p9071_p0 = pnand %p9070_p13, %p213_p5  ;;  %s11315_s12 = int_to_ptr.hbm [resolvable:$true] %s2286_s12 }
 0x1c8   : > { %p9076_p6 = por %p9075_p3, %p9074_p2 }
 0x1c9   : > { %p9072_p1 = pneg %p9071_p0 }
 0x1cb   : > { %p9077_p7 = pnand %p9076_p6, %p9072_p1 }
 0x1cd   : > { %9080 = shalt.err (!%p9077_p7)
}
 0x1ce   : > { %s13003_s0 = sld [smem:[#allocation175_spill]]  ;;  %s10615_s6 = smov [#allocation65]  }
 0x1cf   : > { %7842 = dma.hbm_to_vmem [thread:$0]  (%p213_p5), %s11301_s10, 512, %s2260_s5, [#allocation63], %s12991_s7, %s12991_s7, %s12998_s23  }
 0x1d0   : > { %s2288_s4 = sshll.u32 %s10615_s6, 4  ;;  %s9095_s28 = sshra.s32 %s11315_s12, 4  ;;  %s2289_s4 = int_to_ptr.vmem [resolvable:$true] %s2288_s4  ;;  %s9096_s28 = int_to_ptr.hbm [resolvable:$true] %s9095_s28 }
 0x1d1   : > { %s9097_s9 = scalar_lea.hbm %s9096_s28, 1  ;;  %s9101_s3 = scalar_lea.hbm %s13002_s14, 1 }
 0x1d2   : > { %p9098_p10 = scmp.ne.s32.totalorder %s9096_s28, %s9097_s9  ;;  %p9102_p13 = scmp.lt.s32.totalorder %s9096_s28, %s13002_s14 }
 0x1d3   : > { %p9103_p0 = scmp.lt.s32.totalorder %s9101_s3, %s9097_s9 }
 0x1d4   : > { %s13004_s13 = smov %s13003_s0  ;;  %s2310_s11 = sshll.u32 %s13003_s0, 4  ;;  %s11329_s11 = int_to_ptr.hbm [resolvable:$true] %s2310_s11 }
 0x1d5   : > { %p9099_p11 = pnand %p9098_p10, %p213_p5  ;;  %p9104_p1 = por %p9103_p0, %p9102_p13 }
 0x1d7   : > { %p9100_p12 = pneg %p9099_p11 }
 0x1d9   : > { %p9105_p2 = pnand %p9104_p1, %p9100_p12 }
 0x1db   : > { %9108 = shalt.err (!%p9105_p2)
}
 0x1dc   : > { %s13005_s5 = sld [smem:[#allocation177_spill]]  ;;  %s10616_s0 = smov [#allocation68]  }
 0x1dd   : > { %7846 = dma.hbm_to_vmem [thread:$0]  (%p213_p5), %s11315_s12, 16, %s2289_s4, [#allocation66]  }
 0x1de   : > { %s2312_s6 = sshll.u32 %s10616_s0, 4  ;;  %s9123_s28 = sshra.s32 %s11329_s11, 4  ;;  %s2313_s6 = int_to_ptr.vmem [resolvable:$true] %s2312_s6  ;;  %s9124_s28 = int_to_ptr.hbm [resolvable:$true] %s9123_s28 }
 0x1df   : > { %s9125_s9 = scalar_lea.hbm %s9124_s28, 1  ;;  %s9129_s3 = scalar_lea.hbm %s13004_s13, 1 }
 0x1e0   : > { %p9126_p3 = scmp.ne.s32.totalorder %s9124_s28, %s9125_s9  ;;  %p9130_p10 = scmp.lt.s32.totalorder %s9124_s28, %s13004_s13 }
 0x1e1   : > { %p9131_p11 = scmp.lt.s32.totalorder %s9129_s3, %s9125_s9 }
 0x1e2   : > { %s2333_s10 = sshll.u32 %s13005_s5, 4  ;;  %p9127_p6 = pnand %p9126_p3, %p213_p5  ;;  %s11340_s10 = int_to_ptr.hbm [resolvable:$true] %s2333_s10 }
 0x1e3   : > { %p9132_p12 = por %p9131_p11, %p9130_p10 }
 0x1e4   : > { %p9128_p7 = pneg %p9127_p6 }
 0x1e6   : > { %p9133_p13 = pnand %p9132_p12, %p9128_p7 }
 0x1e8   : > { %9136 = shalt.err (!%p9133_p13)
}
 0x1e9   : > { %s13006_s4 = sld [smem:[#allocation179_spill]]  ;;  %s10617_s12 = smov [#allocation71]  }
 0x1ea   : > { %7850 = dma.hbm_to_vmem [thread:$0]  (%p213_p5), %s11329_s11, 16, %s2313_s6, [#allocation69]  }
 0x1eb   : > { %s2335_s0 = sshll.u32 %s10617_s12, 4  ;;  %s9151_s28 = sshra.s32 %s11340_s10, 4  ;;  %s2336_s0 = int_to_ptr.vmem [resolvable:$true] %s2335_s0  ;;  %s9152_s28 = int_to_ptr.hbm [resolvable:$true] %s9151_s28 }
 0x1ec   : > { %s9153_s9 = scalar_lea.hbm %s9152_s28, 32  ;;  %s9157_s3 = scalar_lea.hbm %s13005_s5, 32 }
 0x1ed   : > { %p9154_p0 = scmp.ne.s32.totalorder %s9152_s28, %s9153_s9  ;;  %p9158_p3 = scmp.lt.s32.totalorder %s9152_s28, %s13005_s5 }
 0x1ee   : > { %p9159_p6 = scmp.lt.s32.totalorder %s9157_s3, %s9153_s9 }
 0x1ef   : > { %s2361_s8 = sshll.u32 %s13006_s4, 4  ;;  %p9155_p1 = pnand %p9154_p0, %p213_p5  ;;  %s11351_s8 = int_to_ptr.hbm [resolvable:$true] %s2361_s8 }
 0x1f0   : > { %p9160_p7 = por %p9159_p6, %p9158_p3 }
 0x1f1   : > { %p9156_p2 = pneg %p9155_p1 }
 0x1f3   : > { %p9161_p10 = pnand %p9160_p7, %p9156_p2 }
 0x1f5   : > { %9164 = shalt.err (!%p9161_p10)
}
 0x1f6   : > { %s13007_s11 = sld [smem:[#allocation181_spill]]  ;;  %s10618_s12 = smov [#allocation74]  }
 0x1f7   : > { %7854 = dma.hbm_to_vmem [thread:$0]  (%p213_p5), %s11340_s10, 512, %s2336_s0, [#allocation72], %s12991_s7, %s12991_s7, %s12998_s23  }
 0x1f8   : > { %s2363_s13 = sshll.u32 %s10618_s12, 4  ;;  %s9179_s28 = sshra.s32 %s11351_s8, 4  ;;  %s2364_s13 = int_to_ptr.vmem [resolvable:$true] %s2363_s13  ;;  %s9180_s28 = int_to_ptr.hbm [resolvable:$true] %s9179_s28 }
 0x1f9   : > { %s9181_s9 = scalar_lea.hbm %s9180_s28, 32  ;;  %s9185_s3 = scalar_lea.hbm %s13006_s4, 32 }
 0x1fa   : > { %p9182_p11 = scmp.ne.s32.totalorder %s9180_s28, %s9181_s9  ;;  %p9186_p0 = scmp.lt.s32.totalorder %s9180_s28, %s13006_s4 }
 0x1fb   : > { %p9187_p1 = scmp.lt.s32.totalorder %s9185_s3, %s9181_s9 }
 0x1fc   : > { %s2389_s6 = sshll.u32 %s13007_s11, 4  ;;  %p9183_p12 = pnand %p9182_p11, %p213_p5  ;;  %s11365_s6 = int_to_ptr.hbm [resolvable:$true] %s2389_s6 }
 0x1fd   : > { %p9188_p2 = por %p9187_p1, %p9186_p0 }
 0x1fe   : > { %p9184_p13 = pneg %p9183_p12 }
 0x200   : > { %p9189_p3 = pnand %p9188_p2, %p9184_p13 }
 0x202   : > { %9192 = shalt.err (!%p9189_p3)
}
 0x203   : > { %s13008_s10 = sld [smem:[#allocation183_spill]]  ;;  %s10619_s0 = smov [#allocation77]  }
 0x204   : > { %7858 = dma.hbm_to_vmem [thread:$0]  (%p213_p5), %s11351_s8, 512, %s2364_s13, [#allocation75], %s12991_s7, %s12991_s7, %s12998_s23  }
 0x205   : > { %s2391_s5 = sshll.u32 %s10619_s0, 4  ;;  %s9207_s28 = sshra.s32 %s11365_s6, 4  ;;  %s2392_s5 = int_to_ptr.vmem [resolvable:$true] %s2391_s5  ;;  %s9208_s28 = int_to_ptr.hbm [resolvable:$true] %s9207_s28 }
 0x206   : > { %s9209_s9 = scalar_lea.hbm %s9208_s28, 32  ;;  %s9213_s3 = scalar_lea.hbm %s13007_s11, 32 }
 0x207   : > { %p9210_p6 = scmp.ne.s32.totalorder %s9208_s28, %s9209_s9  ;;  %p9214_p11 = scmp.lt.s32.totalorder %s9208_s28, %s13007_s11 }
 0x208   : > { %p9215_p12 = scmp.lt.s32.totalorder %s9213_s3, %s9209_s9 }
 0x209   : > { %s13009_s12 = smov %s13008_s10  ;;  %s2415_s14 = sshll.u32 %s13008_s10, 4  ;;  %s11379_s14 = int_to_ptr.hbm [resolvable:$true] %s2415_s14 }
 0x20a   : > { %p9211_p7 = pnand %p9210_p6, %p213_p5  ;;  %p9216_p13 = por %p9215_p12, %p9214_p11 }
 0x20c   : > { %p9212_p10 = pneg %p9211_p7 }
 0x20e   : > { %p9217_p0 = pnand %p9216_p13, %p9212_p10 }
 0x210   : > { %9220 = shalt.err (!%p9217_p0)
}
 0x211   : > { %s13010_s8 = sld [smem:[#allocation185_spill]]  ;;  %s10620_s10 = smov [#allocation80]  }
 0x212   : > { %7862 = dma.hbm_to_vmem [thread:$0]  (%p213_p5), %s11365_s6, 512, %s2392_s5, [#allocation78], %s12991_s7, %s12991_s7, %s12998_s23  }
 0x213   : > { %s2417_s0 = sshll.u32 %s10620_s10, 4  ;;  %s9235_s28 = sshra.s32 %s11379_s14, 4  ;;  %s2418_s0 = int_to_ptr.vmem [resolvable:$true] %s2417_s0  ;;  %s9236_s28 = int_to_ptr.hbm [resolvable:$true] %s9235_s28 }
 0x214   : > { %s9237_s9 = scalar_lea.hbm %s9236_s28, 32  ;;  %s9241_s3 = scalar_lea.hbm %s13009_s12, 32 }
 0x215   : > { %p9238_p1 = scmp.ne.s32.totalorder %s9236_s28, %s9237_s9  ;;  %p9242_p6 = scmp.lt.s32.totalorder %s9236_s28, %s13009_s12 }
 0x216   : > { %p9243_p7 = scmp.lt.s32.totalorder %s9241_s3, %s9237_s9 }
 0x217   : > { %s2441_s13 = sshll.u32 %s13010_s8, 4  ;;  %p9239_p2 = pnand %p9238_p1, %p213_p5  ;;  %s11393_s13 = int_to_ptr.hbm [resolvable:$true] %s2441_s13 }
 0x218   : > { %p9244_p10 = por %p9243_p7, %p9242_p6 }
 0x219   : > { %p9240_p3 = pneg %p9239_p2 }
 0x21b   : > { %p9245_p11 = pnand %p9244_p10, %p9240_p3 }
 0x21d   : > { %9248 = shalt.err (!%p9245_p11)
}
 0x21e   : > { %s13011_s5 = sld [smem:[#allocation187_spill]]  ;;  %s10621_s6 = smov [#allocation83]  }
 0x21f   : > { %7866 = dma.hbm_to_vmem [thread:$0]  (%p213_p5), %s11379_s14, 512, %s2418_s0, [#allocation81], %s12991_s7, %s12991_s7, %s12998_s23  }
 0x220   : > { %s2443_s10 = sshll.u32 %s10621_s6, 4  ;;  %s9263_s28 = sshra.s32 %s11393_s13, 4  ;;  %s2444_s10 = int_to_ptr.vmem [resolvable:$true] %s2443_s10  ;;  %s9264_s28 = int_to_ptr.hbm [resolvable:$true] %s9263_s28 }
 0x221   : > { %s9265_s9 = scalar_lea.hbm %s9264_s28, 32  ;;  %s9269_s3 = scalar_lea.hbm %s13010_s8, 32 }
 0x222   : > { %p9266_p12 = scmp.ne.s32.totalorder %s9264_s28, %s9265_s9  ;;  %p9270_p1 = scmp.lt.s32.totalorder %s9264_s28, %s13010_s8 }
 0x223   : > { %p9271_p2 = scmp.lt.s32.totalorder %s9269_s3, %s9265_s9 }
 0x224   : > { %s2467_s4 = sshll.u32 %s13011_s5, 4  ;;  %p9267_p13 = pnand %p9266_p12, %p213_p5  ;;  %s11407_s4 = int_to_ptr.hbm [resolvable:$true] %s2467_s4 }
 0x225   : > { %p9272_p3 = por %p9271_p2, %p9270_p1 }
 0x226   : > { %p9268_p0 = pneg %p9267_p13 }
 0x228   : > { %p9273_p6 = pnand %p9272_p3, %p9268_p0 }
 0x22a   : > { %9276 = shalt.err (!%p9273_p6)
}
 0x22b   : > { %s13012_s14 = sld [smem:[#allocation189_spill]]  ;;  %s10622_s6 = smov [#allocation86]  }
 0x22c   : > { %7870 = dma.hbm_to_vmem [thread:$0]  (%p213_p5), %s11393_s13, 512, %s2444_s10, [#allocation84], %s12991_s7, %s12991_s7, %s12998_s23  }
 0x22d   : > { %s2469_s11 = sshll.u32 %s10622_s6, 4  ;;  %s9291_s28 = sshra.s32 %s11407_s4, 4  ;;  %s2470_s11 = int_to_ptr.vmem [resolvable:$true] %s2469_s11  ;;  %s9292_s28 = int_to_ptr.hbm [resolvable:$true] %s9291_s28 }
 0x22e   : > { %s9293_s9 = scalar_lea.hbm %s9292_s28, 32  ;;  %s9297_s3 = scalar_lea.hbm %s13011_s5, 32 }
 0x22f   : > { %p9294_p7 = scmp.ne.s32.totalorder %s9292_s28, %s9293_s9  ;;  %p9298_p12 = scmp.lt.s32.totalorder %s9292_s28, %s13011_s5 }
 0x230   : > { %p9299_p13 = scmp.lt.s32.totalorder %s9297_s3, %s9293_s9 }
 0x231   : > { %s2494_s0 = sshll.u32 %s13012_s14, 4  ;;  %p9295_p10 = pnand %p9294_p7, %p213_p5  ;;  %s11421_s0 = int_to_ptr.hbm [resolvable:$true] %s2494_s0 }
 0x232   : > { %p9300_p0 = por %p9299_p13, %p9298_p12 }
 0x233   : > { %p9296_p11 = pneg %p9295_p10 }
 0x235   : > { %p9301_p1 = pnand %p9300_p0, %p9296_p11 }
 0x237   : > { %9304 = shalt.err (!%p9301_p1)
}
 0x238   : > { %s13013_s13 = sld [smem:[#allocation191_spill]]  ;;  %s10623_s10 = smov [#allocation89]  }
 0x239   : > { %7874 = dma.hbm_to_vmem [thread:$0]  (%p213_p5), %s11407_s4, 512, %s2470_s11, [#allocation87], %s12991_s7, %s12991_s7, %s12998_s23  }
 0x23a   : > { %s2496_s6 = sshll.u32 %s10623_s10, 4  ;;  %s9319_s28 = sshra.s32 %s11421_s0, 4  ;;  %s2497_s6 = int_to_ptr.vmem [resolvable:$true] %s2496_s6  ;;  %s9320_s28 = int_to_ptr.hbm [resolvable:$true] %s9319_s28 }
 0x23b   : > { %s9321_s9 = scalar_lea.hbm %s9320_s28, 1  ;;  %s9325_s3 = scalar_lea.hbm %s13012_s14, 1 }
 0x23c   : > { %p9322_p2 = scmp.ne.s32.totalorder %s9320_s28, %s9321_s9  ;;  %p9326_p7 = scmp.lt.s32.totalorder %s9320_s28, %s13012_s14 }
 0x23d   : > { %p9327_p10 = scmp.lt.s32.totalorder %s9325_s3, %s9321_s9 }
 0x23e   : > { %s2518_s8 = sshll.u32 %s13013_s13, 4  ;;  %p9323_p3 = pnand %p9322_p2, %p213_p5  ;;  %s11435_s8 = int_to_ptr.hbm [resolvable:$true] %s2518_s8 }
 0x23f   : > { %p9328_p11 = por %p9327_p10, %p9326_p7 }
 0x240   : > { %p9324_p6 = pneg %p9323_p3 }
 0x242   : > { %p9329_p12 = pnand %p9328_p11, %p9324_p6 }
 0x244   : > { %9332 = shalt.err (!%p9329_p12)
}
 0x245   : > { %s13014_s4 = sld [smem:[#allocation193_spill]]  ;;  %s10624_s10 = smov [#allocation92]  }
 0x246   : > { %7878 = dma.hbm_to_vmem [thread:$0]  (%p213_p5), %s11421_s0, 16, %s2497_s6, [#allocation90]  }
 0x247   : > { %s2520_s5 = sshll.u32 %s10624_s10, 4  ;;  %s9347_s28 = sshra.s32 %s11435_s8, 4  ;;  %s2521_s5 = int_to_ptr.vmem [resolvable:$true] %s2520_s5  ;;  %s9348_s28 = int_to_ptr.hbm [resolvable:$true] %s9347_s28 }
 0x248   : > { %s9349_s9 = scalar_lea.hbm %s9348_s28, 1  ;;  %s9353_s3 = scalar_lea.hbm %s13013_s13, 1 }
 0x249   : > { %p9350_p13 = scmp.ne.s32.totalorder %s9348_s28, %s9349_s9  ;;  %p9354_p2 = scmp.lt.s32.totalorder %s9348_s28, %s13013_s13 }
 0x24a   : > { %p9355_p3 = scmp.lt.s32.totalorder %s9353_s3, %s9349_s9 }
 0x24b   : > { %s2542_s11 = sshll.u32 %s13014_s4, 4  ;;  %p9351_p0 = pnand %p9350_p13, %p213_p5  ;;  %s11446_s11 = int_to_ptr.hbm [resolvable:$true] %s2542_s11 }
 0x24c   : > { %p9356_p6 = por %p9355_p3, %p9354_p2 }
 0x24d   : > { %p9352_p1 = pneg %p9351_p0 }
 0x24f   : > { %p9357_p7 = pnand %p9356_p6, %p9352_p1 }
 0x251   : > { %9360 = shalt.err (!%p9357_p7)
}
 0x252   : > { %7882 = dma.hbm_to_vmem [thread:$0]  (%p213_p5), %s11435_s8, 16, %s2521_s5, [#allocation93]  }
 0x253   : > { %s10625_s0 = smov [#allocation95]   ;;  %s2570_s10 = sshll.u32 %s11025_s29, 4  ;;  %s11457_s10 = int_to_ptr.hbm [resolvable:$true] %s2570_s10 }
 0x254   : > { %s2544_s6 = sshll.u32 %s10625_s0, 4  ;;  %s9375_s28 = sshra.s32 %s11446_s11, 4  ;;  %s2545_s6 = int_to_ptr.vmem [resolvable:$true] %s2544_s6  ;;  %s9376_s28 = int_to_ptr.hbm [resolvable:$true] %s9375_s28 }
 0x255   : > { %s9377_s9 = scalar_lea.hbm %s9376_s28, 1  ;;  %s9381_s3 = scalar_lea.hbm %s13014_s4, 1 }
 0x256   : > { %p9378_p10 = scmp.ne.s32.totalorder %s9376_s28, %s9377_s9  ;;  %p9382_p13 = scmp.lt.s32.totalorder %s9376_s28, %s13014_s4 }
 0x257   : > { %p9383_p0 = scmp.lt.s32.totalorder %s9381_s3, %s9377_s9 }
 0x258   : > { %p9379_p11 = pnand %p9378_p10, %p213_p5 }
 0x259   : > { %p9384_p1 = por %p9383_p0, %p9382_p13 }
 0x25a   : > { %p9380_p12 = pneg %p9379_p11 }
 0x25c   : > { %p9385_p2 = pnand %p9384_p1, %p9380_p12 }
 0x25e   : > { %9388 = shalt.err (!%p9385_p2)
}
 0x25f   : > { %s13015_s8 = sld [smem:[#allocation138_spill]]  ;;  %s10626_s0 = smov [#allocation98]  }
 0x260   : > { %7886 = dma.hbm_to_vmem [thread:$0]  (%p213_p5), %s11446_s11, 16, %s2545_s6, [#allocation96]  }
 0x261   : > { %s2572_s12 = sshll.u32 %s10626_s0, 4  ;;  %s9403_s28 = sshra.s32 %s11457_s10, 4  ;;  %s2573_s12 = int_to_ptr.vmem [resolvable:$true] %s2572_s12  ;;  %s9404_s28 = int_to_ptr.hbm [resolvable:$true] %s9403_s28 }
 0x262   : > { %s9405_s9 = scalar_lea.hbm %s9404_s28, 32  ;;  %s9409_s3 = scalar_lea.hbm %s11025_s29, 32 }
 0x263   : > { %p9406_p3 = scmp.ne.s32.totalorder %s9404_s28, %s9405_s9  ;;  %p9410_p10 = scmp.lt.s32.totalorder %s9404_s28, %s11025_s29 }
 0x264   : > { %p9411_p11 = scmp.lt.s32.totalorder %s9409_s3, %s9405_s9 }
 0x265   : > { %s1776_s5 = sshll.u32 %s13015_s8, 4  ;;  %p9407_p6 = pnand %p9406_p3, %p213_p5  ;;  %s11468_s5 = int_to_ptr.hbm [resolvable:$true] %s1776_s5 }
 0x266   : > { %p9412_p12 = por %p9411_p11, %p9410_p10 }
 0x267   : > { %p9408_p7 = pneg %p9407_p6 }
 0x269   : > { %p9413_p13 = pnand %p9412_p12, %p9408_p7 }
 0x26b   : > { %9416 = shalt.err (!%p9413_p13)
}
 0x26c   : > { %s13016_s11 = sld [smem:[#allocation140_spill]]  ;;  %s10627_s6 = smov [#allocation7]  }
 0x26d   : > { %7890 = dma.hbm_to_vmem [thread:$0]  (%p213_p5), %s11457_s10, 512, %s2573_s12, [#allocation99], %s12991_s7, %s12991_s7, %s12998_s23  }
 0x26e   : > { %s1778_s0 = sshll.u32 %s10627_s6, 4  ;;  %s9431_s28 = sshra.s32 %s11468_s5, 4  ;;  %s1779_s0 = int_to_ptr.vmem [resolvable:$true] %s1778_s0  ;;  %s9432_s28 = int_to_ptr.hbm [resolvable:$true] %s9431_s28 }
 0x26f   : > { %s9433_s9 = scalar_lea.hbm %s9432_s28, 1  ;;  %s9437_s3 = scalar_lea.hbm %s13015_s8, 1 }
 0x270   : > { %p9434_p0 = scmp.ne.s32.totalorder %s9432_s28, %s9433_s9  ;;  %p9438_p3 = scmp.lt.s32.totalorder %s9432_s28, %s13015_s8 }
 0x271   : > { %p9439_p6 = scmp.lt.s32.totalorder %s9437_s3, %s9433_s9 }
 0x272   : > { %s1800_s4 = sshll.u32 %s13016_s11, 4  ;;  %p9435_p1 = pnand %p9434_p0, %p213_p5  ;;  %s11482_s4 = int_to_ptr.hbm [resolvable:$true] %s1800_s4 }
 0x273   : > { %p9440_p7 = por %p9439_p6, %p9438_p3 }
 0x274   : > { %p9436_p2 = pneg %p9435_p1 }
 0x276   : > { %p9441_p10 = pnand %p9440_p7, %p9436_p2 }
 0x278   : > { %9444 = shalt.err (!%p9441_p10)
}
 0x279   : > { %s13017_s12 = sld [smem:[#allocation142_spill]]  ;;  %s10628_s6 = smov [#allocation10]  }
 0x27a   : > { %7768 = dma.hbm_to_vmem [thread:$0]  (%p213_p5), %s11468_s5, 16, %s1779_s0, [#allocation6]  }
 0x27b   : > { %s1802_s13 = sshll.u32 %s10628_s6, 4  ;;  %s9459_s28 = sshra.s32 %s11482_s4, 4  ;;  %s1803_s13 = int_to_ptr.vmem [resolvable:$true] %s1802_s13  ;;  %s9460_s28 = int_to_ptr.hbm [resolvable:$true] %s9459_s28 }
 0x27c   : > { %s9461_s9 = scalar_lea.hbm %s9460_s28, 1  ;;  %s9465_s3 = scalar_lea.hbm %s13016_s11, 1 }
 0x27d   : > { %p9462_p11 = scmp.ne.s32.totalorder %s9460_s28, %s9461_s9  ;;  %p9466_p0 = scmp.lt.s32.totalorder %s9460_s28, %s13016_s11 }
 0x27e   : > { %p9467_p1 = scmp.lt.s32.totalorder %s9465_s3, %s9461_s9 }
 0x27f   : > { %s1825_s10 = sshll.u32 %s13017_s12, 4  ;;  %p9463_p12 = pnand %p9462_p11, %p213_p5  ;;  %s11493_s10 = int_to_ptr.hbm [resolvable:$true] %s1825_s10 }
 0x280   : > { %p9468_p2 = por %p9467_p1, %p9466_p0 }
 0x281   : > { %p9464_p13 = pneg %p9463_p12 }
 0x283   : > { %p9469_p3 = pnand %p9468_p2, %p9464_p13 }
 0x285   : > { %9472 = shalt.err (!%p9469_p3)
}
 0x286   : > { %s13018_s5 = sld [smem:[#allocation143_spill]]  ;;  %s10629_s0 = smov [#allocation13]  }
 0x287   : > { %7772 = dma.hbm_to_vmem [thread:$0]  (%p213_p5), %s11482_s4, 16, %s1803_s13, [#allocation9]  }
 0x288   : > { %s1827_s6 = sshll.u32 %s10629_s0, 4  ;;  %s9487_s28 = sshra.s32 %s11493_s10, 4  ;;  %s1828_s6 = int_to_ptr.vmem [resolvable:$true] %s1827_s6  ;;  %s9488_s28 = int_to_ptr.hbm [resolvable:$true] %s9487_s28 }
 0x289   : > { %s9489_s9 = scalar_lea.hbm %s9488_s28, 32  ;;  %s9493_s3 = scalar_lea.hbm %s13017_s12, 32 }
 0x28a   : > { %p9490_p6 = scmp.ne.s32.totalorder %s9488_s28, %s9489_s9  ;;  %p9494_p11 = scmp.lt.s32.totalorder %s9488_s28, %s13017_s12 }
 0x28b   : > { %p9495_p12 = scmp.lt.s32.totalorder %s9493_s3, %s9489_s9 }
 0x28c   : > { %s1853_s8 = sshll.u32 %s13018_s5, 4  ;;  %p9491_p7 = pnand %p9490_p6, %p213_p5  ;;  %s11504_s8 = int_to_ptr.hbm [resolvable:$true] %s1853_s8 }
 0x28d   : > { %p9496_p13 = por %p9495_p12, %p9494_p11 }
 0x28e   : > { %p9492_p10 = pneg %p9491_p7 }
 0x290   : > { %p9497_p0 = pnand %p9496_p13, %p9492_p10 }
 0x292   : > { %9500 = shalt.err (!%p9497_p0)
}
 0x293   : > { %s13019_s13 = sld [smem:[#allocation145_spill]]  ;;  %s10630_s0 = smov [#allocation16]  }
 0x294   : > { %7776 = dma.hbm_to_vmem [thread:$0]  (%p213_p5), %s11493_s10, 512, %s1828_s6, [#allocation12], %s12991_s7, %s12991_s7, %s12998_s23  }
 0x295   : > { %s1855_s11 = sshll.u32 %s10630_s0, 4  ;;  %s9515_s28 = sshra.s32 %s11504_s8, 4  ;;  %s1856_s11 = int_to_ptr.vmem [resolvable:$true] %s1855_s11  ;;  %s9516_s28 = int_to_ptr.hbm [resolvable:$true] %s9515_s28 }
 0x296   : > { %s9517_s9 = scalar_lea.hbm %s9516_s28, 32  ;;  %s9521_s3 = scalar_lea.hbm %s13018_s5, 32 }
 0x297   : > { %p9518_p1 = scmp.ne.s32.totalorder %s9516_s28, %s9517_s9  ;;  %p9522_p6 = scmp.lt.s32.totalorder %s9516_s28, %s13018_s5 }
 0x298   : > { %p9523_p7 = scmp.lt.s32.totalorder %s9521_s3, %s9517_s9 }
 0x299   : > { %s1880_s4 = sshll.u32 %s13019_s13, 4  ;;  %p9519_p2 = pnand %p9518_p1, %p213_p5  ;;  %s11518_s4 = int_to_ptr.hbm [resolvable:$true] %s1880_s4 }
 0x29a   : > { %p9524_p10 = por %p9523_p7, %p9522_p6 }
 0x29b   : > { %p9520_p3 = pneg %p9519_p2 }
 0x29d   : > { %p9525_p11 = pnand %p9524_p10, %p9520_p3 }
 0x29f   : > { %9528 = shalt.err (!%p9525_p11)
}
 0x2a0   : > { %s13020_s10 = sld [smem:[#allocation146_spill]]  ;;  %s10631_s0 = smov [#allocation19]  }
 0x2a1   : > { %7780 = dma.hbm_to_vmem [thread:$0]  (%p213_p5), %s11504_s8, 512, %s1856_s11, [#allocation15], %s12991_s7, %s12991_s7, %s12998_s23  }
 0x2a2   : > { %s1882_s12 = sshll.u32 %s10631_s0, 4  ;;  %s9543_s28 = sshra.s32 %s11518_s4, 4  ;;  %s1883_s12 = int_to_ptr.vmem [resolvable:$true] %s1882_s12  ;;  %s9544_s28 = int_to_ptr.hbm [resolvable:$true] %s9543_s28 }
 0x2a3   : > { %s9545_s9 = scalar_lea.hbm %s9544_s28, 1  ;;  %s9549_s3 = scalar_lea.hbm %s13019_s13, 1 }
 0x2a4   : > { %p9546_p12 = scmp.ne.s32.totalorder %s9544_s28, %s9545_s9  ;;  %p9550_p1 = scmp.lt.s32.totalorder %s9544_s28, %s13019_s13 }
 0x2a5   : > { %p9551_p2 = scmp.lt.s32.totalorder %s9549_s3, %s9545_s9 }
 0x2a6   : > { %s13021_s6 = smov %s13020_s10  ;;  %s1904_s14 = sshll.u32 %s13020_s10, 4  ;;  %s11532_s14 = int_to_ptr.hbm [resolvable:$true] %s1904_s14 }
 0x2a7   : > { %p9547_p13 = pnand %p9546_p12, %p213_p5  ;;  %p9552_p3 = por %p9551_p2, %p9550_p1 }
 0x2a9   : > { %p9548_p0 = pneg %p9547_p13 }
 0x2ab   : > { %p9553_p6 = pnand %p9552_p3, %p9548_p0 }
 0x2ad   : > { %9556 = shalt.err (!%p9553_p6)
}
 0x2ae   : > { %s13022_s8 = sld [smem:[#allocation148_spill]]  ;;  %s10632_s10 = smov [#allocation22]  }
 0x2af   : > { %7784 = dma.hbm_to_vmem [thread:$0]  (%p213_p5), %s11518_s4, 16, %s1883_s12, [#allocation18]  }
 0x2b0   : > { %s1906_s0 = sshll.u32 %s10632_s10, 4  ;;  %s9571_s28 = sshra.s32 %s11532_s14, 4  ;;  %s1907_s0 = int_to_ptr.vmem [resolvable:$true] %s1906_s0  ;;  %s9572_s28 = int_to_ptr.hbm [resolvable:$true] %s9571_s28 }
 0x2b1   : > { %s9573_s9 = scalar_lea.hbm %s9572_s28, 1  ;;  %s9577_s3 = scalar_lea.hbm %s13021_s6, 1 }
 0x2b2   : > { %p9574_p7 = scmp.ne.s32.totalorder %s9572_s28, %s9573_s9  ;;  %p9578_p12 = scmp.lt.s32.totalorder %s9572_s28, %s13021_s6 }
 0x2b3   : > { %p9579_p13 = scmp.lt.s32.totalorder %s9577_s3, %s9573_s9 }
 0x2b4   : > { %s1929_s11 = sshll.u32 %s13022_s8, 4  ;;  %p9575_p10 = pnand %p9574_p7, %p213_p5  ;;  %s11543_s11 = int_to_ptr.hbm [resolvable:$true] %s1929_s11 }
 0x2b5   : > { %p9580_p0 = por %p9579_p13, %p9578_p12 }
 0x2b6   : > { %p9576_p11 = pneg %p9575_p10 }
 0x2b8   : > { %p9581_p1 = pnand %p9580_p0, %p9576_p11 }
 0x2ba   : > { %9584 = shalt.err (!%p9581_p1)
}
 0x2bb   : > { %s13023_s12 = sld [smem:[#allocation149_spill]]  ;;  %s10633_s4 = smov [#allocation25]  }
 0x2bc   : > { %7788 = dma.hbm_to_vmem [thread:$0]  (%p213_p5), %s11532_s14, 16, %s1907_s0, [#allocation21]  }
 0x2bd   : > { %s1931_s10 = sshll.u32 %s10633_s4, 4  ;;  %s9599_s28 = sshra.s32 %s11543_s11, 4  ;;  %s1932_s10 = int_to_ptr.vmem [resolvable:$true] %s1931_s10  ;;  %s9600_s28 = int_to_ptr.hbm [resolvable:$true] %s9599_s28 }
 0x2be   : > { %s9601_s9 = scalar_lea.hbm %s9600_s28, 32  ;;  %s9605_s3 = scalar_lea.hbm %s13022_s8, 32 }
 0x2bf   : > { %p9602_p2 = scmp.ne.s32.totalorder %s9600_s28, %s9601_s9  ;;  %p9606_p7 = scmp.lt.s32.totalorder %s9600_s28, %s13022_s8 }
 0x2c0   : > { %p9607_p10 = scmp.lt.s32.totalorder %s9605_s3, %s9601_s9 }
 0x2c1   : > { %s1957_s5 = sshll.u32 %s13023_s12, 4  ;;  %p9603_p3 = pnand %p9602_p2, %p213_p5  ;;  %s11554_s5 = int_to_ptr.hbm [resolvable:$true] %s1957_s5 }
 0x2c2   : > { %p9608_p11 = por %p9607_p10, %p9606_p7 }
 0x2c3   : > { %p9604_p6 = pneg %p9603_p3 }
 0x2c5   : > { %p9609_p12 = pnand %p9608_p11, %p9604_p6 }
 0x2c7   : > { %9612 = shalt.err (!%p9609_p12)
}
 0x2c8   : > { %s13024_s14 = sld [smem:[#allocation151_spill]]  ;;  %s10634_s4 = smov [#allocation28]  }
 0x2c9   : > { %7792 = dma.hbm_to_vmem [thread:$0]  (%p213_p5), %s11543_s11, 512, %s1932_s10, [#allocation24], %s12991_s7, %s12991_s7, %s12998_s23  }
 0x2ca   : > { %s1959_s6 = sshll.u32 %s10634_s4, 4  ;;  %s9627_s28 = sshra.s32 %s11554_s5, 4  ;;  %s1960_s6 = int_to_ptr.vmem [resolvable:$true] %s1959_s6  ;;  %s9628_s28 = int_to_ptr.hbm [resolvable:$true] %s9627_s28 }
 0x2cb   : > { %s9629_s9 = scalar_lea.hbm %s9628_s28, 32  ;;  %s9633_s3 = scalar_lea.hbm %s13023_s12, 32 }
 0x2cc   : > { %p9630_p13 = scmp.ne.s32.totalorder %s9628_s28, %s9629_s9  ;;  %p9634_p2 = scmp.lt.s32.totalorder %s9628_s28, %s13023_s12 }
 0x2cd   : > { %p9635_p3 = scmp.lt.s32.totalorder %s9633_s3, %s9629_s9 }
 0x2ce   : > { %s1986_s0 = sshll.u32 %s13024_s14, 4  ;;  %p9631_p0 = pnand %p9630_p13, %p213_p5  ;;  %s11568_s0 = int_to_ptr.hbm [resolvable:$true] %s1986_s0 }
 0x2cf   : > { %p9636_p6 = por %p9635_p3, %p9634_p2 }
 0x2d0   : > { %p9632_p1 = pneg %p9631_p0 }
 0x2d2   : > { %p9637_p7 = pnand %p9636_p6, %p9632_p1 }
 0x2d4   : > { %9640 = shalt.err (!%p9637_p7)
}
 0x2d5   : > { %s13025_s11 = sld [smem:[#allocation152_spill]]  ;;  %s10635_s10 = smov [#allocation31]  }
 0x2d6   : > { %7796 = dma.hbm_to_vmem [thread:$0]  (%p213_p5), %s11554_s5, 512, %s1960_s6, [#allocation27], %s12991_s7, %s12991_s7, %s12998_s23  }
 0x2d7   : > { %s1988_s4 = sshll.u32 %s10635_s10, 4  ;;  %s9655_s28 = sshra.s32 %s11568_s0, 4  ;;  %s1989_s4 = int_to_ptr.vmem [resolvable:$true] %s1988_s4  ;;  %s9656_s28 = int_to_ptr.hbm [resolvable:$true] %s9655_s28 }
 0x2d8   : > { %s9657_s9 = scalar_lea.hbm %s9656_s28, 1  ;;  %s9661_s3 = scalar_lea.hbm %s13024_s14, 1 }
 0x2d9   : > { %p9658_p10 = scmp.ne.s32.totalorder %s9656_s28, %s9657_s9  ;;  %p9662_p13 = scmp.lt.s32.totalorder %s9656_s28, %s13024_s14 }
 0x2da   : > { %p9663_p0 = scmp.lt.s32.totalorder %s9661_s3, %s9657_s9 }
 0x2db   : > { %s2010_s8 = sshll.u32 %s13025_s11, 4  ;;  %p9659_p11 = pnand %p9658_p10, %p213_p5  ;;  %s11582_s8 = int_to_ptr.hbm [resolvable:$true] %s2010_s8 }
 0x2dc   : > { %p9664_p1 = por %p9663_p0, %p9662_p13 }
 0x2dd   : > { %p9660_p12 = pneg %p9659_p11 }
 0x2df   : > { %p9665_p2 = pnand %p9664_p1, %p9660_p12 }
 0x2e1   : > { %9668 = shalt.err (!%p9665_p2)
}
 0x2e2   : > { %s13026_s5 = sld [smem:[#allocation154_spill]]  ;;  %s10636_s10 = smov [#allocation34]  }
 0x2e3   : > { %7800 = dma.hbm_to_vmem [thread:$0]  (%p213_p5), %s11568_s0, 16, %s1989_s4, [#allocation30]  }
 0x2e4   : > { %s2012_s12 = sshll.u32 %s10636_s10, 4  ;;  %s9683_s28 = sshra.s32 %s11582_s8, 4  ;;  %s2013_s12 = int_to_ptr.vmem [resolvable:$true] %s2012_s12  ;;  %s9684_s28 = int_to_ptr.hbm [resolvable:$true] %s9683_s28 }
 0x2e5   : > { %s9685_s9 = scalar_lea.hbm %s9684_s28, 1  ;;  %s9689_s3 = scalar_lea.hbm %s13025_s11, 1 }
 0x2e6   : > { %p9686_p3 = scmp.ne.s32.totalorder %s9684_s28, %s9685_s9  ;;  %p9690_p10 = scmp.lt.s32.totalorder %s9684_s28, %s13025_s11 }
 0x2e7   : > { %p9691_p11 = scmp.lt.s32.totalorder %s9689_s3, %s9685_s9 }
 0x2e8   : > { %s2034_s6 = sshll.u32 %s13026_s5, 4  ;;  %p9687_p6 = pnand %p9686_p3, %p213_p5  ;;  %s11593_s6 = int_to_ptr.hbm [resolvable:$true] %s2034_s6 }
 0x2e9   : > { %p9692_p12 = por %p9691_p11, %p9690_p10 }
 0x2ea   : > { %p9688_p7 = pneg %p9687_p6 }
 0x2ec   : > { %p9693_p13 = pnand %p9692_p12, %p9688_p7 }
 0x2ee   : > { %9696 = shalt.err (!%p9693_p13)
}
 0x2ef   : > { %s13027_s0 = sld [smem:[#allocation155_spill]]  ;;  %s10637_s10 = smov [#allocation37]  }
 0x2f0   : > { %7804 = dma.hbm_to_vmem [thread:$0]  (%p213_p5), %s11582_s8, 16, %s2013_s12, [#allocation33]  }
 0x2f1   : > { %s2036_s13 = sshll.u32 %s10637_s10, 4  ;;  %s9711_s28 = sshra.s32 %s11593_s6, 4  ;;  %s2037_s13 = int_to_ptr.vmem [resolvable:$true] %s2036_s13  ;;  %s9712_s28 = int_to_ptr.hbm [resolvable:$true] %s9711_s28 }
 0x2f2   : > { %s9713_s9 = scalar_lea.hbm %s9712_s28, 8  ;;  %s9717_s3 = scalar_lea.hbm %s13026_s5, 8 }
 0x2f3   : > { %p9714_p0 = scmp.ne.s32.totalorder %s9712_s28, %s9713_s9  ;;  %p9718_p3 = scmp.lt.s32.totalorder %s9712_s28, %s13026_s5 }
 0x2f4   : > { %p9719_p6 = scmp.lt.s32.totalorder %s9717_s3, %s9713_s9 }
 0x2f5   : > { %s13028_s4 = smov %s13027_s0  ;;  %s2059_s14 = sshll.u32 %s13027_s0, 4  ;;  %s11604_s14 = int_to_ptr.hbm [resolvable:$true] %s2059_s14 }
 0x2f6   : > { %p9715_p1 = pnand %p9714_p0, %p213_p5  ;;  %p9720_p7 = por %p9719_p6, %p9718_p3 }
 0x2f8   : > { %p9716_p2 = pneg %p9715_p1 }
 0x2fa   : > { %p9721_p10 = pnand %p9720_p7, %p9716_p2 }
 0x2fc   : > { %9724 = shalt.err (!%p9721_p10)
}
 0x2fd   : > { %s13029_s8 = sld [smem:[#allocation156_spill]]  ;;  %s10638_s0 = smov [#allocation40]  }
 0x2fe   : > { %7808 = dma.hbm_to_vmem [thread:$0]  (%p213_p5), %s11593_s6, 128, %s2037_s13, [#allocation36]  }
 0x2ff   : > { %s2061_s10 = sshll.u32 %s10638_s0, 4  ;;  %s9739_s28 = sshra.s32 %s11604_s14, 4  ;;  %s2062_s10 = int_to_ptr.vmem [resolvable:$true] %s2061_s10  ;;  %s9740_s28 = int_to_ptr.hbm [resolvable:$true] %s9739_s28 }
 0x300   : > { %s9741_s9 = scalar_lea.hbm %s9740_s28, 32  ;;  %s9745_s3 = scalar_lea.hbm %s13028_s4, 32 }
 0x301   : > { %p9742_p11 = scmp.ne.s32.totalorder %s9740_s28, %s9741_s9  ;;  %p9746_p0 = scmp.lt.s32.totalorder %s9740_s28, %s13028_s4 }
 0x302   : > { %p9747_p1 = scmp.lt.s32.totalorder %s9745_s3, %s9741_s9 }
 0x303   : > { %s2086_s12 = sshll.u32 %s13029_s8, 4  ;;  %p9743_p12 = pnand %p9742_p11, %p213_p5  ;;  %s11615_s12 = int_to_ptr.hbm [resolvable:$true] %s2086_s12 }
 0x304   : > { %p9748_p2 = por %p9747_p1, %p9746_p0 }
 0x305   : > { %p9744_p13 = pneg %p9743_p12 }
 0x307   : > { %p9749_p3 = pnand %p9748_p2, %p9744_p13 }
 0x309   : > { %9752 = shalt.err (!%p9749_p3)
}
 0x30a   : > { %s13030_s13 = sld [smem:[#allocation158_spill]]  ;;  %s10639_s6 = smov [#allocation43]  }
 0x30b   : > { %7812 = dma.hbm_to_vmem [thread:$0]  (%p213_p5), %s11604_s14, 512, %s2062_s10, [#allocation39], %s12991_s7, %s12991_s7, %s12998_s23  }
 0x30c   : > { %s2088_s0 = sshll.u32 %s10639_s6, 4  ;;  %s9767_s28 = sshra.s32 %s11615_s12, 4  ;;  %s2089_s0 = int_to_ptr.vmem [resolvable:$true] %s2088_s0  ;;  %s9768_s28 = int_to_ptr.hbm [resolvable:$true] %s9767_s28 }
 0x30d   : > { %s9769_s9 = scalar_lea.hbm %s9768_s28, 1  ;;  %s9773_s3 = scalar_lea.hbm %s13029_s8, 1 }
 0x30e   : > { %p9770_p6 = scmp.ne.s32.totalorder %s9768_s28, %s9769_s9  ;;  %p9774_p11 = scmp.lt.s32.totalorder %s9768_s28, %s13029_s8 }
 0x30f   : > { %p9775_p12 = scmp.lt.s32.totalorder %s9773_s3, %s9769_s9 }
 0x310   : > { %s2110_s5 = sshll.u32 %s13030_s13, 4  ;;  %p9771_p7 = pnand %p9770_p6, %p213_p5  ;;  %s11629_s5 = int_to_ptr.hbm [resolvable:$true] %s2110_s5 }
 0x311   : > { %p9776_p13 = por %p9775_p12, %p9774_p11 }
 0x312   : > { %p9772_p10 = pneg %p9771_p7 }
 0x314   : > { %p9777_p0 = pnand %p9776_p13, %p9772_p10 }
 0x316   : > { %9780 = shalt.err (!%p9777_p0)
}
 0x317   : > { %s13031_s14 = sld [smem:[#allocation160_spill]]  ;;  %s10640_s6 = smov [#allocation46]  }
 0x318   : > { %7816 = dma.hbm_to_vmem [thread:$0]  (%p213_p5), %s11615_s12, 16, %s2089_s0, [#allocation42]  }
 0x319   : > { %s2112_s4 = sshll.u32 %s10640_s6, 4  ;;  %s9795_s28 = sshra.s32 %s11629_s5, 4  ;;  %s2113_s4 = int_to_ptr.vmem [resolvable:$true] %s2112_s4  ;;  %s9796_s28 = int_to_ptr.hbm [resolvable:$true] %s9795_s28 }
 0x31a   : > { %s9797_s9 = scalar_lea.hbm %s9796_s28, 1  ;;  %s9801_s3 = scalar_lea.hbm %s13030_s13, 1 }
 0x31b   : > { %p9798_p1 = scmp.ne.s32.totalorder %s9796_s28, %s9797_s9  ;;  %p9802_p6 = scmp.lt.s32.totalorder %s9796_s28, %s13030_s13 }
 0x31c   : > { %p9803_p7 = scmp.lt.s32.totalorder %s9801_s3, %s9797_s9 }
 0x31d   : > { %s2133_s10 = sshll.u32 %s13031_s14, 4  ;;  %p9799_p2 = pnand %p9798_p1, %p213_p5  ;;  %s11640_s10 = int_to_ptr.hbm [resolvable:$true] %s2133_s10 }
 0x31e   : > { %p9804_p10 = por %p9803_p7, %p9802_p6 }
 0x31f   : > { %p9800_p3 = pneg %p9799_p2 }
 0x321   : > { %p9805_p11 = pnand %p9804_p10, %p9800_p3 }
 0x323   : > { %9808 = shalt.err (!%p9805_p11)
}
 0x324   : > { %s13032_s12 = sld [smem:[#allocation163_spill]]  ;;  %s10641_s0 = smov [#allocation49]  }
 0x325   : > { %7820 = dma.hbm_to_vmem [thread:$0]  (%p213_p5), %s11629_s5, 16, %s2113_s4, [#allocation45]  }
 0x326   : > { %s2135_s6 = sshll.u32 %s10641_s0, 4  ;;  %s9823_s28 = sshra.s32 %s11640_s10, 4  ;;  %s2136_s6 = int_to_ptr.vmem [resolvable:$true] %s2135_s6  ;;  %s9824_s28 = int_to_ptr.hbm [resolvable:$true] %s9823_s28 }
 0x327   : > { %s9825_s9 = scalar_lea.hbm %s9824_s28, 32  ;;  %s9829_s3 = scalar_lea.hbm %s13031_s14, 32 }
 0x328   : > { %p9826_p12 = scmp.ne.s32.totalorder %s9824_s28, %s9825_s9  ;;  %p9830_p1 = scmp.lt.s32.totalorder %s9824_s28, %s13031_s14 }
 0x329   : > { %p9831_p2 = scmp.lt.s32.totalorder %s9829_s3, %s9825_s9 }
 0x32a   : > { %s2162_s8 = sshll.u32 %s13032_s12, 4  ;;  %p9827_p13 = pnand %p9826_p12, %p213_p5  ;;  %s11651_s8 = int_to_ptr.hbm [resolvable:$true] %s2162_s8 }
 0x32b   : > { %p9832_p3 = por %p9831_p2, %p9830_p1 }
 0x32c   : > { %p9828_p0 = pneg %p9827_p13 }
 0x32e   : > { %p9833_p6 = pnand %p9832_p3, %p9828_p0 }
 0x330   : > { %9836 = shalt.err (!%p9833_p6)
}
 0x331   : > { %s13033_s5 = sld [smem:[#allocation166_spill]]  ;;  %s10642_s0 = smov [#allocation52]  }
 0x332   : > { %7824 = dma.hbm_to_vmem [thread:$0]  (%p213_p5), %s11640_s10, 512, %s2136_s6, [#allocation48], %s12991_s7, %s12991_s7, %s12998_s23  }
 0x333   : > { %s2164_s11 = sshll.u32 %s10642_s0, 4  ;;  %s9851_s28 = sshra.s32 %s11651_s8, 4  ;;  %s2165_s11 = int_to_ptr.vmem [resolvable:$true] %s2164_s11  ;;  %s9852_s28 = int_to_ptr.hbm [resolvable:$true] %s9851_s28 }
 0x334   : > { %s9853_s9 = scalar_lea.hbm %s9852_s28, 32  ;;  %s9857_s3 = scalar_lea.hbm %s13032_s12, 32 }
 0x335   : > { %p9854_p7 = scmp.ne.s32.totalorder %s9852_s28, %s9853_s9  ;;  %p9858_p12 = scmp.lt.s32.totalorder %s9852_s28, %s13032_s12 }
 0x336   : > { %p9859_p13 = scmp.lt.s32.totalorder %s9857_s3, %s9853_s9 }
 0x337   : > { %s2194_s4 = sshll.u32 %s13033_s5, 4  ;;  %p9855_p10 = pnand %p9854_p7, %p213_p5  ;;  %s11665_s4 = int_to_ptr.hbm [resolvable:$true] %s2194_s4 }
 0x338   : > { %p9860_p0 = por %p9859_p13, %p9858_p12 }
 0x339   : > { %p9856_p11 = pneg %p9855_p10 }
 0x33b   : > { %p9861_p1 = pnand %p9860_p0, %p9856_p11 }
 0x33d   : > { %9864 = shalt.err (!%p9861_p1)
}
 0x33e   : > { %s13034_s10 = sld [smem:[#allocation168_spill]]  ;;  %s10643_s0 = smov [#allocation55]  }
 0x33f   : > { %7828 = dma.hbm_to_vmem [thread:$0]  (%p213_p5), %s11651_s8, 512, %s2165_s11, [#allocation51], %s12991_s7, %s12991_s7, %s12998_s23  }
 0x340   : > { %s2196_s13 = sshll.u32 %s10643_s0, 4  ;;  %s9879_s28 = sshra.s32 %s11665_s4, 4  ;;  %s2197_s13 = int_to_ptr.vmem [resolvable:$true] %s2196_s13  ;;  %s9880_s28 = int_to_ptr.hbm [resolvable:$true] %s9879_s28 }
 0x341   : > { %s9881_s9 = scalar_lea.hbm %s9880_s28, 1  ;;  %s9885_s3 = scalar_lea.hbm %s13033_s5, 1 }
 0x342   : > { %p9882_p2 = scmp.ne.s32.totalorder %s9880_s28, %s9881_s9  ;;  %p9886_p7 = scmp.lt.s32.totalorder %s9880_s28, %s13033_s5 }
 0x343   : > { %p9887_p10 = scmp.lt.s32.totalorder %s9885_s3, %s9881_s9 }
 0x344   : > { %s13035_s6 = smov %s13034_s10  ;;  %s2218_s14 = sshll.u32 %s13034_s10, 4  ;;  %s11679_s14 = int_to_ptr.hbm [resolvable:$true] %s2218_s14 }
 0x345   : > { %p9883_p3 = pnand %p9882_p2, %p213_p5  ;;  %p9888_p11 = por %p9887_p10, %p9886_p7 }
 0x347   : > { %p9884_p6 = pneg %p9883_p3 }
 0x349   : > { %p9889_p12 = pnand %p9888_p11, %p9884_p6 }
 0x34b   : > { %9892 = shalt.err (!%p9889_p12)
}
 0x34c   : > { %s13036_s11 = sld [smem:[#allocation170_spill]]  ;;  %s10644_s10 = smov [#allocation58]  }
 0x34d   : > { %7832 = dma.hbm_to_vmem [thread:$0]  (%p213_p5), %s11665_s4, 16, %s2197_s13, [#allocation54]  }
 0x34e   : > { %s2220_s0 = sshll.u32 %s10644_s10, 4  ;;  %s9907_s28 = sshra.s32 %s11679_s14, 4  ;;  %s2221_s0 = int_to_ptr.vmem [resolvable:$true] %s2220_s0  ;;  %s9908_s28 = int_to_ptr.hbm [resolvable:$true] %s9907_s28 }
 0x34f   : > { %s9909_s9 = scalar_lea.hbm %s9908_s28, 1  ;;  %s9913_s3 = scalar_lea.hbm %s13035_s6, 1 }
 0x350   : > { %p9910_p13 = scmp.ne.s32.totalorder %s9908_s28, %s9909_s9  ;;  %p9914_p2 = scmp.lt.s32.totalorder %s9908_s28, %s13035_s6 }
 0x351   : > { %p9915_p3 = scmp.lt.s32.totalorder %s9913_s3, %s9909_s9 }
 0x352   : > { %s2243_s8 = sshll.u32 %s13036_s11, 4  ;;  %p9911_p0 = pnand %p9910_p13, %p213_p5  ;;  %s11690_s8 = int_to_ptr.hbm [resolvable:$true] %s2243_s8 }
 0x353   : > { %p9916_p6 = por %p9915_p3, %p9914_p2 }
 0x354   : > { %p9912_p1 = pneg %p9911_p0 }
 0x356   : > { %p9917_p7 = pnand %p9916_p6, %p9912_p1 }
 0x358   : > { %9920 = shalt.err (!%p9917_p7)
}
 0x359   : > { %s13037_s13 = sld [smem:[#allocation172_spill]]  ;;  %s10645_s4 = smov [#allocation61]  }
 0x35a   : > { %7836 = dma.hbm_to_vmem [thread:$0]  (%p213_p5), %s11679_s14, 16, %s2221_s0, [#allocation57]  }
 0x35b   : > { %s2245_s10 = sshll.u32 %s10645_s4, 4  ;;  %s9935_s28 = sshra.s32 %s11690_s8, 4  ;;  %s2246_s10 = int_to_ptr.vmem [resolvable:$true] %s2245_s10  ;;  %s9936_s28 = int_to_ptr.hbm [resolvable:$true] %s9935_s28 }
 0x35c   : > { %s9937_s9 = scalar_lea.hbm %s9936_s28, 32  ;;  %s9941_s3 = scalar_lea.hbm %s13036_s11, 32 }
 0x35d   : > { %p9938_p10 = scmp.ne.s32.totalorder %s9936_s28, %s9937_s9  ;;  %p9942_p13 = scmp.lt.s32.totalorder %s9936_s28, %s13036_s11 }
 0x35e   : > { %p9943_p0 = scmp.lt.s32.totalorder %s9941_s3, %s9937_s9 }
 0x35f   : > { %s2271_s5 = sshll.u32 %s13037_s13, 4  ;;  %p9939_p11 = pnand %p9938_p10, %p213_p5  ;;  %s11701_s5 = int_to_ptr.hbm [resolvable:$true] %s2271_s5 }
 0x360   : > { %p9944_p1 = por %p9943_p0, %p9942_p13 }
 0x361   : > { %p9940_p12 = pneg %p9939_p11 }
 0x363   : > { %p9945_p2 = pnand %p9944_p1, %p9940_p12 }
 0x365   : > { %9948 = shalt.err (!%p9945_p2)
}
 0x366   : > { %s13038_s14 = sld [smem:[#allocation174_spill]]  ;;  %s10646_s4 = smov [#allocation64]  }
 0x367   : > { %7840 = dma.hbm_to_vmem [thread:$0]  (%p213_p5), %s11690_s8, 512, %s2246_s10, [#allocation60], %s12991_s7, %s12991_s7, %s12998_s23  }
 0x368   : > { %s2273_s6 = sshll.u32 %s10646_s4, 4  ;;  %s9963_s28 = sshra.s32 %s11701_s5, 4  ;;  %s2274_s6 = int_to_ptr.vmem [resolvable:$true] %s2273_s6  ;;  %s9964_s28 = int_to_ptr.hbm [resolvable:$true] %s9963_s28 }
 0x369   : > { %s9965_s9 = scalar_lea.hbm %s9964_s28, 32  ;;  %s9969_s3 = scalar_lea.hbm %s13037_s13, 32 }
 0x36a   : > { %p9966_p3 = scmp.ne.s32.totalorder %s9964_s28, %s9965_s9  ;;  %p9970_p10 = scmp.lt.s32.totalorder %s9964_s28, %s13037_s13 }
 0x36b   : > { %p9971_p11 = scmp.lt.s32.totalorder %s9969_s3, %s9965_s9 }
 0x36c   : > { %s2298_s0 = sshll.u32 %s13038_s14, 4  ;;  %p9967_p6 = pnand %p9966_p3, %p213_p5  ;;  %s11715_s0 = int_to_ptr.hbm [resolvable:$true] %s2298_s0 }
 0x36d   : > { %p9972_p12 = por %p9971_p11, %p9970_p10 }
 0x36e   : > { %p9968_p7 = pneg %p9967_p6 }
 0x370   : > { %p9973_p13 = pnand %p9972_p12, %p9968_p7 }
 0x372   : > { %9976 = shalt.err (!%p9973_p13)
}
 0x373   : > { %s13039_s8 = sld [smem:[#allocation176_spill]]  ;;  %s10647_s10 = smov [#allocation67]  }
 0x374   : > { %7844 = dma.hbm_to_vmem [thread:$0]  (%p213_p5), %s11701_s5, 512, %s2274_s6, [#allocation63], %s12991_s7, %s12991_s7, %s12998_s23  }
 0x375   : > { %s2300_s4 = sshll.u32 %s10647_s10, 4  ;;  %s9991_s28 = sshra.s32 %s11715_s0, 4  ;;  %s2301_s4 = int_to_ptr.vmem [resolvable:$true] %s2300_s4  ;;  %s9992_s28 = int_to_ptr.hbm [resolvable:$true] %s9991_s28 }
 0x376   : > { %s9993_s9 = scalar_lea.hbm %s9992_s28, 1  ;;  %s9997_s3 = scalar_lea.hbm %s13038_s14, 1 }
 0x377   : > { %p9994_p0 = scmp.ne.s32.totalorder %s9992_s28, %s9993_s9  ;;  %p9998_p3 = scmp.lt.s32.totalorder %s9992_s28, %s13038_s14 }
 0x378   : > { %p9999_p6 = scmp.lt.s32.totalorder %s9997_s3, %s9993_s9 }
 0x379   : > { %s2322_s11 = sshll.u32 %s13039_s8, 4  ;;  %p9995_p1 = pnand %p9994_p0, %p213_p5  ;;  %s11729_s11 = int_to_ptr.hbm [resolvable:$true] %s2322_s11 }
 0x37a   : > { %p10000_p7 = por %p9999_p6, %p9998_p3 }
 0x37b   : > { %p9996_p2 = pneg %p9995_p1 }
 0x37d   : > { %p10001_p10 = pnand %p10000_p7, %p9996_p2 }
 0x37f   : > { %10004 = shalt.err (!%p10001_p10)
}
 0x380   : > { %s13040_s5 = sld [smem:[#allocation178_spill]]  ;;  %s10648_s10 = smov [#allocation70]  }
 0x381   : > { %7848 = dma.hbm_to_vmem [thread:$0]  (%p213_p5), %s11715_s0, 16, %s2301_s4, [#allocation66]  }
 0x382   : > { %s2324_s12 = sshll.u32 %s10648_s10, 4  ;;  %s10019_s28 = sshra.s32 %s11729_s11, 4  ;;  %s2325_s12 = int_to_ptr.vmem [resolvable:$true] %s2324_s12  ;;  %s10020_s28 = int_to_ptr.hbm [resolvable:$true] %s10019_s28 }
 0x383   : > { %s10021_s9 = scalar_lea.hbm %s10020_s28, 1  ;;  %s10025_s3 = scalar_lea.hbm %s13039_s8, 1 }
 0x384   : > { %p10022_p11 = scmp.ne.s32.totalorder %s10020_s28, %s10021_s9  ;;  %p10026_p0 = scmp.lt.s32.totalorder %s10020_s28, %s13039_s8 }
 0x385   : > { %p10027_p1 = scmp.lt.s32.totalorder %s10025_s3, %s10021_s9 }
 0x386   : > { %s2347_s6 = sshll.u32 %s13040_s5, 4  ;;  %p10023_p12 = pnand %p10022_p11, %p213_p5  ;;  %s11740_s6 = int_to_ptr.hbm [resolvable:$true] %s2347_s6 }
 0x387   : > { %p10028_p2 = por %p10027_p1, %p10026_p0 }
 0x388   : > { %p10024_p13 = pneg %p10023_p12 }
 0x38a   : > { %p10029_p3 = pnand %p10028_p2, %p10024_p13 }
 0x38c   : > { %10032 = shalt.err (!%p10029_p3)
}
 0x38d   : > { %s13041_s0 = sld [smem:[#allocation180_spill]]  ;;  %s10649_s10 = smov [#allocation73]  }
 0x38e   : > { %7852 = dma.hbm_to_vmem [thread:$0]  (%p213_p5), %s11729_s11, 16, %s2325_s12, [#allocation69]  }
 0x38f   : > { %s2349_s13 = sshll.u32 %s10649_s10, 4  ;;  %s10047_s28 = sshra.s32 %s11740_s6, 4  ;;  %s2350_s13 = int_to_ptr.vmem [resolvable:$true] %s2349_s13  ;;  %s10048_s28 = int_to_ptr.hbm [resolvable:$true] %s10047_s28 }
 0x390   : > { %s10049_s9 = scalar_lea.hbm %s10048_s28, 32  ;;  %s10053_s3 = scalar_lea.hbm %s13040_s5, 32 }
 0x391   : > { %p10050_p6 = scmp.ne.s32.totalorder %s10048_s28, %s10049_s9  ;;  %p10054_p11 = scmp.lt.s32.totalorder %s10048_s28, %s13040_s5 }
 0x392   : > { %p10055_p12 = scmp.lt.s32.totalorder %s10053_s3, %s10049_s9 }
 0x393   : > { %s13042_s4 = smov %s13041_s0  ;;  %s2375_s14 = sshll.u32 %s13041_s0, 4  ;;  %s11751_s14 = int_to_ptr.hbm [resolvable:$true] %s2375_s14 }
 0x394   : > { %p10051_p7 = pnand %p10050_p6, %p213_p5  ;;  %p10056_p13 = por %p10055_p12, %p10054_p11 }
 0x396   : > { %p10052_p10 = pneg %p10051_p7 }
 0x398   : > { %p10057_p0 = pnand %p10056_p13, %p10052_p10 }
 0x39a   : > { %10060 = shalt.err (!%p10057_p0)
}
 0x39b   : > { %s13043_s12 = sld [smem:[#allocation182_spill]]  ;;  %s10650_s0 = smov [#allocation76]  }
 0x39c   : > { %7856 = dma.hbm_to_vmem [thread:$0]  (%p213_p5), %s11740_s6, 512, %s2350_s13, [#allocation72], %s12991_s7, %s12991_s7, %s12998_s23  }
 0x39d   : > { %s2377_s10 = sshll.u32 %s10650_s0, 4  ;;  %s10075_s28 = sshra.s32 %s11751_s14, 4  ;;  %s2378_s10 = int_to_ptr.vmem [resolvable:$true] %s2377_s10  ;;  %s10076_s28 = int_to_ptr.hbm [resolvable:$true] %s10075_s28 }
 0x39e   : > { %s10077_s9 = scalar_lea.hbm %s10076_s28, 32  ;;  %s10081_s3 = scalar_lea.hbm %s13042_s4, 32 }
 0x39f   : > { %p10078_p1 = scmp.ne.s32.totalorder %s10076_s28, %s10077_s9  ;;  %p10082_p6 = scmp.lt.s32.totalorder %s10076_s28, %s13042_s4 }
 0x3a0   : > { %p10083_p7 = scmp.lt.s32.totalorder %s10081_s3, %s10077_s9 }
 0x3a1   : > { %s2404_s11 = sshll.u32 %s13043_s12, 4  ;;  %p10079_p2 = pnand %p10078_p1, %p213_p5  ;;  %s11765_s11 = int_to_ptr.hbm [resolvable:$true] %s2404_s11 }
 0x3a2   : > { %p10084_p10 = por %p10083_p7, %p10082_p6 }
 0x3a3   : > { %p10080_p3 = pneg %p10079_p2 }
 0x3a5   : > { %p10085_p11 = pnand %p10084_p10, %p10080_p3 }
 0x3a7   : > { %10088 = shalt.err (!%p10085_p11)
}
 0x3a8   : > { %s13044_s13 = sld [smem:[#allocation184_spill]]  ;;  %s10651_s6 = smov [#allocation79]  }
 0x3a9   : > { %7860 = dma.hbm_to_vmem [thread:$0]  (%p213_p5), %s11751_s14, 512, %s2378_s10, [#allocation75], %s12991_s7, %s12991_s7, %s12998_s23  }
 0x3aa   : > { %s2406_s0 = sshll.u32 %s10651_s6, 4  ;;  %s10103_s28 = sshra.s32 %s11765_s11, 4  ;;  %s2407_s0 = int_to_ptr.vmem [resolvable:$true] %s2406_s0  ;;  %s10104_s28 = int_to_ptr.hbm [resolvable:$true] %s10103_s28 }
 0x3ab   : > { %s10105_s9 = scalar_lea.hbm %s10104_s28, 1  ;;  %s10109_s3 = scalar_lea.hbm %s13043_s12, 1 }
 0x3ac   : > { %p10106_p12 = scmp.ne.s32.totalorder %s10104_s28, %s10105_s9  ;;  %p10110_p1 = scmp.lt.s32.totalorder %s10104_s28, %s13043_s12 }
 0x3ad   : > { %p10111_p2 = scmp.lt.s32.totalorder %s10109_s3, %s10105_s9 }
 0x3ae   : > { %s2430_s5 = sshll.u32 %s13044_s13, 4  ;;  %p10107_p13 = pnand %p10106_p12, %p213_p5  ;;  %s11779_s5 = int_to_ptr.hbm [resolvable:$true] %s2430_s5 }
 0x3af   : > { %p10112_p3 = por %p10111_p2, %p10110_p1 }
 0x3b0   : > { %p10108_p0 = pneg %p10107_p13 }
 0x3b2   : > { %p10113_p6 = pnand %p10112_p3, %p10108_p0 }
 0x3b4   : > { %10116 = shalt.err (!%p10113_p6)
}
 0x3b5   : > { %s13045_s14 = sld [smem:[#allocation186_spill]]  ;;  %s10652_s6 = smov [#allocation82]  }
 0x3b6   : > { %7864 = dma.hbm_to_vmem [thread:$0]  (%p213_p5), %s11765_s11, 16, %s2407_s0, [#allocation78]  }
 0x3b7   : > { %s2432_s4 = sshll.u32 %s10652_s6, 4  ;;  %s10131_s28 = sshra.s32 %s11779_s5, 4  ;;  %s2433_s4 = int_to_ptr.vmem [resolvable:$true] %s2432_s4  ;;  %s10132_s28 = int_to_ptr.hbm [resolvable:$true] %s10131_s28 }
 0x3b8   : > { %s10133_s9 = scalar_lea.hbm %s10132_s28, 1  ;;  %s10137_s3 = scalar_lea.hbm %s13044_s13, 1 }
 0x3b9   : > { %p10134_p7 = scmp.ne.s32.totalorder %s10132_s28, %s10133_s9  ;;  %p10138_p12 = scmp.lt.s32.totalorder %s10132_s28, %s13044_s13 }
 0x3ba   : > { %p10139_p13 = scmp.lt.s32.totalorder %s10137_s3, %s10133_s9 }
 0x3bb   : > { %s2456_s10 = sshll.u32 %s13045_s14, 4  ;;  %p10135_p10 = pnand %p10134_p7, %p213_p5  ;;  %s11790_s10 = int_to_ptr.hbm [resolvable:$true] %s2456_s10 }
 0x3bc   : > { %p10140_p0 = por %p10139_p13, %p10138_p12 }
 0x3bd   : > { %p10136_p11 = pneg %p10135_p10 }
 0x3bf   : > { %p10141_p1 = pnand %p10140_p0, %p10136_p11 }
 0x3c1   : > { %10144 = shalt.err (!%p10141_p1)
}
 0x3c2   : > { %s13046_s11 = sld [smem:[#allocation188_spill]]  ;;  %s10653_s0 = smov [#allocation85]  }
 0x3c3   : > { %7868 = dma.hbm_to_vmem [thread:$0]  (%p213_p5), %s11779_s5, 16, %s2433_s4, [#allocation81]  }
 0x3c4   : > { %s2458_s6 = sshll.u32 %s10653_s0, 4  ;;  %s10159_s28 = sshra.s32 %s11790_s10, 4  ;;  %s2459_s6 = int_to_ptr.vmem [resolvable:$true] %s2458_s6  ;;  %s10160_s28 = int_to_ptr.hbm [resolvable:$true] %s10159_s28 }
 0x3c5   : > { %s10161_s9 = scalar_lea.hbm %s10160_s28, 1  ;;  %s10165_s3 = scalar_lea.hbm %s13045_s14, 1 }
 0x3c6   : > { %p10162_p2 = scmp.ne.s32.totalorder %s10160_s28, %s10161_s9  ;;  %p10166_p7 = scmp.lt.s32.totalorder %s10160_s28, %s13045_s14 }
 0x3c7   : > { %p10167_p10 = scmp.lt.s32.totalorder %s10165_s3, %s10161_s9 }
 0x3c8   : > { %s2482_s8 = sshll.u32 %s13046_s11, 4  ;;  %p10163_p3 = pnand %p10162_p2, %p213_p5  ;;  %s11801_s8 = int_to_ptr.hbm [resolvable:$true] %s2482_s8 }
 0x3c9   : > { %p10168_p11 = por %p10167_p10, %p10166_p7 }
 0x3ca   : > { %p10164_p6 = pneg %p10163_p3 }
 0x3cc   : > { %p10169_p12 = pnand %p10168_p11, %p10164_p6 }
 0x3ce   : > { %10172 = shalt.err (!%p10169_p12)
}
 0x3cf   : > { %s13047_s5 = sld [smem:[#allocation190_spill]]  ;;  %s10654_s0 = smov [#allocation88]  }
 0x3d0   : > { %7872 = dma.hbm_to_vmem [thread:$0]  (%p213_p5), %s11790_s10, 16, %s2459_s6, [#allocation84]  }
 0x3d1   : > { %s2484_s12 = sshll.u32 %s10654_s0, 4  ;;  %s10187_s28 = sshra.s32 %s11801_s8, 4  ;;  %s2485_s12 = int_to_ptr.vmem [resolvable:$true] %s2484_s12  ;;  %s10188_s28 = int_to_ptr.hbm [resolvable:$true] %s10187_s28 }
 0x3d2   : > { %s10189_s9 = scalar_lea.hbm %s10188_s28, 1  ;;  %s10193_s3 = scalar_lea.hbm %s13046_s11, 1 }
 0x3d3   : > { %p10190_p13 = scmp.ne.s32.totalorder %s10188_s28, %s10189_s9  ;;  %p10194_p2 = scmp.lt.s32.totalorder %s10188_s28, %s13046_s11 }
 0x3d4   : > { %p10195_p3 = scmp.lt.s32.totalorder %s10193_s3, %s10189_s9 }
 0x3d5   : > { %s2506_s4 = sshll.u32 %s13047_s5, 4  ;;  %p10191_p0 = pnand %p10190_p13, %p213_p5  ;;  %s11812_s4 = int_to_ptr.hbm [resolvable:$true] %s2506_s4 }
 0x3d6   : > { %p10196_p6 = por %p10195_p3, %p10194_p2 }
 0x3d7   : > { %p10192_p1 = pneg %p10191_p0 }
 0x3d9   : > { %p10197_p7 = pnand %p10196_p6, %p10192_p1 }
 0x3db   : > { %10200 = shalt.err (!%p10197_p7)
}
 0x3dc   : > { %s13048_s10 = sld [smem:[#allocation192_spill]]  ;;  %s10655_s0 = smov [#allocation91]  }
 0x3dd   : > { %7876 = dma.hbm_to_vmem [thread:$0]  (%p213_p5), %s11801_s8, 16, %s2485_s12, [#allocation87]  }
 0x3de   : > { %s2508_s13 = sshll.u32 %s10655_s0, 4  ;;  %s10215_s28 = sshra.s32 %s11812_s4, 4  ;;  %s2509_s13 = int_to_ptr.vmem [resolvable:$true] %s2508_s13  ;;  %s10216_s28 = int_to_ptr.hbm [resolvable:$true] %s10215_s28 }
 0x3df   : > { %s10217_s9 = scalar_lea.hbm %s10216_s28, 1  ;;  %s10221_s3 = scalar_lea.hbm %s13047_s5, 1 }
 0x3e0   : > { %p10218_p10 = scmp.ne.s32.totalorder %s10216_s28, %s10217_s9  ;;  %p10222_p13 = scmp.lt.s32.totalorder %s10216_s28, %s13047_s5 }
 0x3e1   : > { %p10223_p0 = scmp.lt.s32.totalorder %s10221_s3, %s10217_s9 }
 0x3e2   : > { %s13049_s6 = smov %s13048_s10  ;;  %s2530_s14 = sshll.u32 %s13048_s10, 4  ;;  %s11823_s14 = int_to_ptr.hbm [resolvable:$true] %s2530_s14 }
 0x3e3   : > { %p10219_p11 = pnand %p10218_p10, %p213_p5  ;;  %p10224_p1 = por %p10223_p0, %p10222_p13 }
 0x3e5   : > { %p10220_p12 = pneg %p10219_p11 }
 0x3e7   : > { %p10225_p2 = pnand %p10224_p1, %p10220_p12 }
 0x3e9   : > { %10228 = shalt.err (!%p10225_p2)
}
 0x3ea   : > { %s13050_s8 = sld [smem:[#allocation194_spill]]  ;;  %s10656_s10 = smov [#allocation94]  }
 0x3eb   : > { %7880 = dma.hbm_to_vmem [thread:$0]  (%p213_p5), %s11812_s4, 16, %s2509_s13, [#allocation90]  }
 0x3ec   : > { %s2532_s0 = sshll.u32 %s10656_s10, 4  ;;  %s10243_s28 = sshra.s32 %s11823_s14, 4  ;;  %s2533_s0 = int_to_ptr.vmem [resolvable:$true] %s2532_s0  ;;  %s10244_s28 = int_to_ptr.hbm [resolvable:$true] %s10243_s28 }
 0x3ed   : > { %s10245_s9 = scalar_lea.hbm %s10244_s28, 1  ;;  %s10249_s3 = scalar_lea.hbm %s13049_s6, 1 }
 0x3ee   : > { %p10246_p3 = scmp.ne.s32.totalorder %s10244_s28, %s10245_s9  ;;  %p10250_p10 = scmp.lt.s32.totalorder %s10244_s28, %s13049_s6 }
 0x3ef   : > { %p10251_p11 = scmp.lt.s32.totalorder %s10249_s3, %s10245_s9 }
 0x3f0   : > { %s2553_s12 = sshll.u32 %s13050_s8, 4  ;;  %p10247_p6 = pnand %p10246_p3, %p213_p5  ;;  %s11834_s12 = int_to_ptr.hbm [resolvable:$true] %s2553_s12 }
 0x3f1   : > { %p10252_p12 = por %p10251_p11, %p10250_p10 }
 0x3f2   : > { %p10248_p7 = pneg %p10247_p6 }
 0x3f4   : > { %p10253_p13 = pnand %p10252_p12, %p10248_p7 }
 0x3f6   : > { %10256 = shalt.err (!%p10253_p13)
}
 0x3f7   : > { %7884 = dma.hbm_to_vmem [thread:$0]  (%p213_p5), %s11823_s14, 16, %s2533_s0, [#allocation93]  }
 0x3f8   : > { %s10657_s13 = smov [#allocation97]   ;;  %s2584_s10 = sshll.u32 %s11030_s22, 4  ;;  %s2585_s10 = int_to_ptr.hbm [resolvable:$true] %s2584_s10 }
 0x3f9   : > { %s2555_s4 = sshll.u32 %s10657_s13, 4  ;;  %s10271_s5 = sshra.s32 %s11834_s12, 4  ;;  %s2556_s4 = int_to_ptr.vmem [resolvable:$true] %s2555_s4  ;;  %s10272_s5 = int_to_ptr.hbm [resolvable:$true] %s10271_s5 }
 0x3fa   : > { %s10273_s28 = scalar_lea.hbm %s10272_s5, 32  ;;  %s10277_s9 = scalar_lea.hbm %s13050_s8, 32 }
 0x3fb   : > { %p10274_p0 = scmp.ne.s32.totalorder %s10272_s5, %s10273_s28  ;;  %p10278_p3 = scmp.lt.s32.totalorder %s10272_s5, %s13050_s8 }
 0x3fc   : > { %p10279_p6 = scmp.lt.s32.totalorder %s10277_s9, %s10273_s28 }
 0x3fd   : > { %p10275_p1 = pnand %p10274_p0, %p213_p5 }
 0x3fe   : > { %p10280_p7 = por %p10279_p6, %p10278_p3 }
 0x3ff   : > { %p10276_p2 = pneg %p10275_p1 }
 0x401   : > { %p10281_p10 = pnand %p10280_p7, %p10276_p2 }
 0x403   : > { %10284 = shalt.err (!%p10281_p10)
}
 0x404   : > { %7888 = dma.hbm_to_vmem [thread:$0]  (%p213_p5), %s11834_s12, 512, %s2556_s4, [#allocation96], %s12991_s7, %s12991_s7, %s12998_s23  }
 0x405   : > { %s10658_s14 = smov [#allocation100]   ;;  %s10299_s3 = sshra.s32 %s2585_s10, 4  ;;  %s10300_s3 = int_to_ptr.hbm [resolvable:$true] %s10299_s3 }
 0x406   : > { %s2586_s0 = sshll.u32 %s10658_s14, 4  ;;  %s10301_s5 = scalar_lea.hbm %s10300_s3, 32  ;;  %s2587_s0 = int_to_ptr.vmem [resolvable:$true] %s2586_s0 }
 0x407   : > { %p10302_p11 = scmp.ne.s32.totalorder %s10300_s3, %s10301_s5  ;;  %s10305_s13 = scalar_lea.hbm %s11030_s22, 32 }
 0x408   : > { %p10306_p0 = scmp.lt.s32.totalorder %s10300_s3, %s11030_s22  ;;  %p10307_p1 = scmp.lt.s32.totalorder %s10305_s13, %s10301_s5 }
 0x409   : > { %p10303_p12 = pnand %p10302_p11, %p213_p5 }
 0x40a   : > { %p10308_p2 = por %p10307_p1, %p10306_p0 }
 0x40b   : > { %p10304_p13 = pneg %p10303_p12 }
 0x40d   : > { %p10309_p3 = pnand %p10308_p2, %p10304_p13 }
 0x40f   : > { %10312 = shalt.err (!%p10309_p3)
}
 0x410   : > { %7892 = dma.hbm_to_vmem [thread:$0]  (%p213_p5), %s2585_s10, 512, %s2587_s0, [#allocation99], %s12991_s7, %s12991_s7, %s12998_s23  }
 0x411 PF: > { %s13051_s12 = sld [smem:[#allocation134_spill]]  ;;  %s2600_s4 = sand.u32 1, %s10515_s17  }
 0x412   : > { %s7554_s28 = sshll.u32 %s10519_s2, 3  ;;  %p8091_p6 = scmp.lt.s32.totalorder %s10519_s2, 2 }
 0x413   : > { %s7553_s9 = sshll.u32 %s2600_s4, 3  ;;  %s2601_s23 = scalar_lea.sflag [#allocation4], %s2600_s4 }
 0x414   : > { %s2604_s5 = scalar_lea.vmem [#allocation3], %s7553_s9  ;;  %p11871_p7 = pnand %p8091_p6, %p11071_p4 }
 0x415   : > { %s2612_s13 = sshll.u32 %s2604_s5, 4  ;;  %s2613_s13 = int_to_ptr.vmem [resolvable:$true] %s2612_s13 }
 0x416   : > { %p10331_p11 = pneg %p11871_p7 }
 0x417   : > { %s2608_s14 = scalar_lea.hbm %s13051_s12, %s7554_s28  ;;  %s10334_s2 = scalar_lea.hbm %s13051_s12, 16 }
 0x418   : > { %s2610_s3 = sshll.u32 %s2608_s14, 4  ;;  %s2611_s3 = int_to_ptr.hbm [resolvable:$true] %s2610_s3 }
 0x419   : > { %s10327_s10 = sshra.s32 %s2611_s3, 4  ;;  %s10328_s10 = int_to_ptr.hbm [resolvable:$true] %s10327_s10 }
 0x41a   : > { %s10329_s0 = scalar_lea.hbm %s10328_s10, 8  ;;  %p10335_p0 = scmp.lt.s32.totalorder %s10328_s10, %s13051_s12 }
 0x41b   : > { %p10330_p10 = scmp.ne.s32.totalorder %s10328_s10, %s10329_s0  ;;  %p10336_p1 = scmp.lt.s32.totalorder %s10334_s2, %s10329_s0 }
 0x41d   : > { %p10332_p12 = pnand %p10331_p11, %p10330_p10  ;;  %p10337_p2 = por %p10336_p1, %p10335_p0 }
 0x41f   : > { %p10333_p13 = pneg %p10332_p12 }
 0x421   : > { %p10338_p3 = pnand %p10337_p2, %p10333_p13 }
 0x423   : > { %10341 = shalt.err (!%p10338_p3)
}
 0x424   : > { %8026 = dma.hbm_to_vmem [thread:$0]  (!%p11871_p7), %s2611_s3, 128, %s2613_s13, %s2601_s23  }
 0x425   : > { %2621 = sbr.rel (%p11084_p9) target bundleno = 8961 (0x2301), region = 308  ;;  %s13053_s18 = sld [smem:[#allocation197_spill]] (!%p11084_p9) }
 0x42b   : > { %s2623_s28 = sand.u32 1, %s13053_s18  }
 0x42c   : > { %s11884_s9 = sshll.u32 %s2623_s28, 3  ;;  %s2624_s14 = scalar_lea.sflag [#allocation4], %s2623_s28 }
 0x42d   : > { %s2627_s5 = scalar_lea.vmem [#allocation3], %s11884_s9 }
 0x42e   : > { %10374 = dma.done.wait (%p11080_p8), %s2624_s14, 128  }
 0x42f   : > { %10376 = vsyncadd (%p11080_p8), %s2624_s14, 4294967168 }
 0x430   : > { %10378 = dma.done.wait (%p213_p5), [#allocation6], 32  }
 0x431   : > { %10380 = vsyncadd (%p213_p5), [#allocation6], 4294967264 }
 0x432   : > { %10382 = dma.done.wait (%p213_p5), [#allocation9], 32  }
 0x433   : > { %10384 = vsyncadd (%p213_p5), [#allocation9], 4294967264 }
 0x434   : > { %10386 = dma.done.wait (%p213_p5), [#allocation12], 1024  }
 0x435   : > { %10388 = vsyncadd (%p213_p5), [#allocation12], 4294966272 }
 0x436   : > { %10390 = dma.done.wait (%p213_p5), [#allocation15], 1024  }
 0x437   : > { %10392 = vsyncadd (%p213_p5), [#allocation15], 4294966272 }
 0x438   : > { %10394 = dma.done.wait (%p213_p5), [#allocation18], 32  }
 0x439   : > { %10396 = vsyncadd (%p213_p5), [#allocation18], 4294967264 }
 0x43a   : > { %10398 = dma.done.wait (%p213_p5), [#allocation21], 32  }
 0x43b   : > { %10400 = vsyncadd (%p213_p5), [#allocation21], 4294967264 }
 0x43c   : > { %10402 = dma.done.wait (%p213_p5), [#allocation24], 1024  }
 0x43d   : > { %10404 = vsyncadd (%p213_p5), [#allocation24], 4294966272 }
 0x43e   : > { %10406 = dma.done.wait (%p213_p5), [#allocation27], 1024  }
 0x43f   : > { %10408 = vsyncadd (%p213_p5), [#allocation27], 4294966272 }
 0x440   : > { %10410 = dma.done.wait (%p213_p5), [#allocation30], 272  }
 0x441   : > { %10412 = vsyncadd (%p213_p5), [#allocation30], 4294967024 }
 0x442   : > { %10414 = dma.done.wait (%p213_p5), [#allocation33], 32  }
 0x443   : > { %10416 = vsyncadd (%p213_p5), [#allocation33], 4294967264 }
 0x444   : > { %10418 = dma.done.wait (%p213_p5), [#allocation36], 144  }
 0x445   : > { %10420 = vsyncadd (%p213_p5), [#allocation36], 4294967152 }
 0x446   : > { %10422 = dma.done.wait (%p213_p5), [#allocation39], 1024  }
 0x447   : > { %10424 = vsyncadd (%p213_p5), [#allocation39], 4294966272 }
 0x448   : > { %10426 = dma.done.wait (%p213_p5), [#allocation42], 144  }
 0x449   : > { %10428 = vsyncadd (%p213_p5), [#allocation42], 4294967152 }
 0x44a   : > { %10430 = dma.done.wait (%p213_p5), [#allocation45], 32  }
 0x44b   : > { %10432 = vsyncadd (%p213_p5), [#allocation45], 4294967264 }
 0x44c   : > { %10434 = dma.done.wait (%p213_p5), [#allocation48], 528  }
 0x44d   : > { %10436 = vsyncadd (%p213_p5), [#allocation48], 4294966768 }
 0x44e   : > { %10438 = dma.done.wait (%p213_p5), [#allocation51], 640  }
 0x44f   : > { %10440 = vsyncadd (%p213_p5), [#allocation51], 4294966656 }
 0x450   : > { %10442 = dma.done.wait (%p213_p5), [#allocation54], 272  }
 0x451   : > { %10444 = vsyncadd (%p213_p5), [#allocation54], 4294967024 }
 0x452   : > { %10446 = dma.done.wait (%p213_p5), [#allocation57], 32  }
 0x453   : > { %10448 = vsyncadd (%p213_p5), [#allocation57], 4294967264 }
 0x454   : > { %10450 = dma.done.wait (%p213_p5), [#allocation60], 1024  }
 0x455   : > { %10452 = vsyncadd (%p213_p5), [#allocation60], 4294966272 }
 0x456   : > { %10454 = dma.done.wait (%p213_p5), [#allocation63], 1024  }
 0x457   : > { %10456 = vsyncadd (%p213_p5), [#allocation63], 4294966272 }
 0x458   : > { %10458 = dma.done.wait (%p213_p5), [#allocation66], 32  }
 0x459   : > { %10460 = vsyncadd (%p213_p5), [#allocation66], 4294967264 }
 0x45a   : > { %10462 = dma.done.wait (%p213_p5), [#allocation69], 32  }
 0x45b   : > { %10464 = vsyncadd (%p213_p5), [#allocation69], 4294967264 }
 0x45c   : > { %10466 = dma.done.wait (%p213_p5), [#allocation72], 1024  }
 0x45d   : > { %10468 = vsyncadd (%p213_p5), [#allocation72], 4294966272 }
 0x45e   : > { %10470 = dma.done.wait (%p213_p5), [#allocation75], 1024  }
 0x45f   : > { %10472 = vsyncadd (%p213_p5), [#allocation75], 4294966272 }
 0x460   : > { %10474 = dma.done.wait (%p213_p5), [#allocation78], 528  }
 0x461   : > { %10476 = vsyncadd (%p213_p5), [#allocation78], 4294966768 }
 0x462   : > { %10478 = dma.done.wait (%p213_p5), [#allocation81], 528  }
 0x463   : > { %10480 = vsyncadd (%p213_p5), [#allocation81], 4294966768 }
 0x464   : > { %10482 = dma.done.wait (%p213_p5), [#allocation84], 528  }
 0x465   : > { %10484 = vsyncadd (%p213_p5), [#allocation84], 4294966768 }
 0x466   : > { %10486 = dma.done.wait (%p213_p5), [#allocation87], 528  }
 0x467   : > { %10488 = vsyncadd (%p213_p5), [#allocation87], 4294966768 }
 0x468   : > { %10490 = dma.done.wait (%p213_p5), [#allocation90], 32  }
 0x469   : > { %10492 = vsyncadd (%p213_p5), [#allocation90], 4294967264 }
 0x46a   : > { %10494 = dma.done.wait (%p213_p5), [#allocation93], 32  }
 0x46b   : > { %10496 = vsyncadd (%p213_p5), [#allocation93], 4294967264 }
 0x46c   : > { %10498 = dma.done.wait (%p213_p5), [#allocation96], 528  }
 0x46d   : > { %10500 = vsyncadd (%p213_p5), [#allocation96], 4294966768 }
 0x46e   : > { %10502 = dma.done.wait (%p213_p5), [#allocation99], 1024  }
 0x46f   : > { %10504 = vsyncadd (%p213_p5), [#allocation99], 4294966272  ;;  %vm3156_vm0 = vcmask 64512   ;;  %v3116_v1 = vld [vmem:[#allocation40 + $0x18] sm:$0xff]  ;;  %v12021_v3 = vld [vmem:[%s2627_s5] sm:$0xff]  ;;  %vm3121_vm1 = vcmask 261120  }
 0x470   : > { %v3151_v2 = vld [vmem:[#allocation37] sm:$0xff]  ;;  %3140 = vmatpush.msra.mxu0 %v3116_v1  ;;  %v3115_v4 = vld [vmem:[#allocation40 + $0x10] sm:$0xff]  ;;  %v3114_v5 = vld [vmem:[#allocation40 + $0x8] sm:$0xff]  ;;  %s10659_s1 = smov 112   ;;  %s10660_s3 = smov 104  }
 0x471   : > { %3175 = vmatpush.msra.mxu1 %v3151_v2  ;;  %v3113_v6 = vld [vmem:[#allocation40] sm:$0xff]  ;;  %v3112_v8 = vld [vmem:[#allocation29 + $0x8] sm:$0xff]  ;;  %v8365_v9 = vld [vmem:[#allocation31] ss:$0 sm:$0xff]  ;;  %s10661_s13 = smov 120   ;;  %s10662_s7 = smov 8  }
 0x472   : > { %7623 = vmatmul.msk.f32.vlgmr.msra.gmra.mxu1 %vm3156_vm0, %v12021_v3  ;;  %3141 = vmatpush.msra.mxu0 %v3115_v4  ;;  %v3111_v7 = vld [vmem:[#allocation29] sm:$0xff]  ;;  %v8366_v12 = vld [vmem:[#allocation34] ss:$0 sm:$0xff]  ;;  %v8367_v27 = vld [vmem:[#allocation35] ss:$0 sm:$0xff]  ;;  %s10663_s23 = smov 24  }
 0x473   : > { %v3180_v17 = vld [vmem:[#allocation41] sm:$0xff]  ;;  %s10664_s10 = smov 16   ;;  %s13059_s0 = sld [smem:[#allocation161_spill]] }
 0x474   : > { %3142 = vmatpush.msra.mxu0 %v3114_v5  ;;  %3200 = vmatpush.msra.mxu2 %v3180_v17  ;;  %s13061_s2 = sld [smem:[#allocation165_spill]]  ;;  %p3107_p4 = scmp.lt.s32.totalorder %s11056_s16, 1 }
 0x475   : > { %7624 = vmatmul.msk.f32.vlgmr.msra.gmra.mxu2 %vm3156_vm0, %v12021_v3  ;;  %s13064_s4 = sld [smem:[#allocation195_spill]] }
 0x476   : > { %3143 = vmatpush.msra.mxu0 %v3113_v6  ;;  %s13065_s28 = sld [smem:[#allocation136_spill]]  ;;  %s13075_s16 = smov (!%p3107_p4, %s11056_s16), 1 }
 0x477   : > { %7621 = vmatmul.msk.f32.vlgmr.msra.gmra.mxu0 %vm3121_vm1, %v3111_v7  ;;  %s13066_s9 = sld [smem:[#allocation137_spill]] }
 0x478   : > { %s13067_s14 = sld [smem:[#allocation135_spill]] }
 0x479   : > { %s13060_s18 = smov %s13059_s0  ;;  %s13068_s5 = sld [smem:[#allocation196_spill]] }
 0x47f   : > { %7622 = vmatmul.msk.f32.gmra.mxu0 %vm3121_vm1, %v3112_v8 }
 0x4ef   : > { %v3177_v10 = vpop.f32.mrf.mxu1 }
 0x4f0   : > { %v3178_v11 = vadd.f32 %v8365_v9, %v3177_v10 }
 0x4f2   : > { %3228 = vrot.lane.b32.xlu0 %v3178_v11, %s10659_s1  ;;  %7625 = vmatpush.xpose.msk.msra.mxu3 %vm3156_vm0, %v3178_v11 }
 0x4f4   : > { %v3145_v13 = vpop.f32.mrf.mxu0 }
 0x4f5   : > { %v12029_v14 = vadd.f32 %v8366_v12, %v3145_v13 }
 0x4f7   : > { %3213 = vrot.lane.b32.xlu1 %v12029_v14, %s10659_s1  ;;  %7626 = vmatmul.msk.f32.vlgmr.msra.gmra.mxu3 %vm3156_vm0, %v12029_v14 }
 0x4f8   : > { %v3202_v28 = vpop.f32.mrf.mxu2 }
 0x4f9   : > { %v12080_v29 = vadd.f32 %v8367_v27, %v3202_v28 }
 0x4fa   : > { %3230 = vrot.lane.b32.xlu0 %v3178_v11, %s10660_s3 }
 0x4fb   : > { %3579 = vmatpush.msrb.mxu0 %v12080_v29 }
 0x4fc   : > { %v3148_v15 = vpop.f32.mrf.mxu0 }
 0x4fd   : > { %v12036_v16 = vadd.f32 %v8366_v12, %v3148_v15 }
 0x4ff   : > { %3215 = vrot.lane.b32.xlu2 %v12036_v16, %s10659_s1  ;;  %3219 = vrot.lane.b32.xlu1 %v12029_v14, %s10660_s3 }
 0x500   : > { %7627 = vmatmul.msk.f32.gmra.mxu3 %vm3156_vm0, %v12036_v16 }
 0x502   : > { %3221 = vrot.lane.b32.xlu0 %v12036_v16, %s10660_s3 }
 0x507   : > { %3207 = vrot.lane.b32.xlu1 %v12029_v14, %s10661_s13  ;;  %3226 = vrot.lane.b32.xlu2 %v3178_v11, %s10661_s13 }
 0x50f   : > { %3209 = vrot.lane.b32.xlu2 %v12036_v16, %s10661_s13 }
 0x559   : > { %v12053_v18 = vpop.permute.xlu2 %3215 }
 0x561   : > { %v3227_v19 = vpop.permute.xlu2 %3226 }
 0x562   : > { %7628 = vmatpush.xpose.msk.msrb.mxu1 %vm3156_vm0, %v3227_v19 }
 0x564   : > { %v3229_v20 = vpop.permute.xlu0 %3228 }
 0x565   : > { %7631 = vmatpush.xpose.msk.msrb.mxu2 %vm3156_vm0, %v3229_v20 }
 0x569   : > { %v12057_v21 = vpop.permute.xlu1 %3213  ;;  %v12076_v26 = vpop.permute.xlu2 %3209 }
 0x56a   : > { %7632 = vmatmul.msk.f32.vlgmr.msrb.gmra.mxu2 %vm3156_vm0, %v12057_v21 }
 0x56c   : > { %v3231_v22 = vpop.permute.xlu0 %3230 }
 0x56d   : > { %7634 = vmatpush.xpose.msk.msrb.mxu3 %vm3156_vm0, %v3231_v22 }
 0x571   : > { %v12062_v23 = vpop.permute.xlu1 %3219 }
 0x572   : > { %7633 = vmatmul.msk.f32.gmra.mxu2 %vm3156_vm0, %v12053_v18  ;;  %7635 = vmatmul.msk.f32.vlgmr.msrb.gmra.mxu3 %vm3156_vm0, %v12062_v23 }
 0x574   : > { %v12068_v24 = vpop.permute.xlu0 %3221 }
 0x579   : > { %v12070_v25 = vpop.permute.xlu1 %3207 }
 0x57a   : > { %7629 = vmatmul.msk.f32.vlgmr.msrb.gmra.mxu1 %vm3156_vm0, %v12070_v25  ;;  %7636 = vmatmul.msk.f32.gmra.mxu3 %vm3156_vm0, %v12068_v24  ;;  %v3265_v30 = vpop.f32.mrf.mxu3 }
 0x57b   : > { %v3358_v51 = vmul.f32 0.17677669, %v3265_v30 }
 0x57d   : > { %v3366_v53 = vsel %vm3156_vm0, %v3358_v51, -inf }
 0x582   : > { %7630 = vmatmul.msk.f32.gmra.mxu1 %vm3156_vm0, %v12076_v26 }
 0x583   : > { %v3268_v31 = vpop.f32.mrf.mxu3 }
 0x584   : > { %v3359_v50 = vmul.f32 0.17677669, %v3268_v31 }
 0x586   : > { %v3369_v52 = vsel %vm3156_vm0, %v3359_v50, -inf }
 0x5ed   : > { %v3323_v32 = vpop.f32.mrf.mxu2 }
 0x5ee   : > { %v3362_v33 = vmul.f32 0.17677669, %v3323_v32 }
 0x5f0   : > { %v3378_v34 = vsel %vm3156_vm0, %v3362_v33, -inf }
 0x5f1   : > { %3379 = vmax.xlane.f32.xlu0 %v3378_v34 }
 0x5f5   : > { %v3352_v35 = vpop.f32.mrf.mxu3  ;;  %v3326_v41 = vpop.f32.mrf.mxu2 }
 0x5f6   : > { %v3364_v36 = vmul.f32 0.17677669, %v3352_v35  ;;  %v3363_v43 = vmul.f32 0.17677669, %v3326_v41 }
 0x5f7   : > { %v3294_v37 = vpop.f32.mrf.mxu1 }
 0x5f8   : > { %v3360_v38 = vmul.f32 0.17677669, %v3294_v37  ;;  %v3384_v39 = vsel %vm3156_vm0, %v3364_v36, -inf  ;;  %v3381_v48 = vsel %vm3156_vm0, %v3363_v43, -inf }
 0x5f9   : > { %3385 = vmax.xlane.f32.xlu1 %v3384_v39 }
 0x5fa   : > { %v3372_v40 = vsel %vm3156_vm0, %v3360_v38, -inf }
 0x5fb   : > { %3373 = vmax.xlane.f32.xlu2 %v3372_v40 }
 0x5fd   : > { %v3355_v42 = vpop.f32.mrf.mxu3 }
 0x5fe   : > { %v3365_v44 = vmul.f32 0.17677669, %v3355_v42 }
 0x5ff   : > { %v3297_v45 = vpop.f32.mrf.mxu1 }
 0x600   : > { %v3361_v46 = vmul.f32 0.17677669, %v3297_v45  ;;  %v3387_v47 = vsel %vm3156_vm0, %v3365_v44, -inf }
 0x601   : > { %3388 = vmax.xlane.f32.xlu0 %v3387_v47 }
 0x602   : > { %v3375_v49 = vsel %vm3156_vm0, %v3361_v46, -inf }
 0x603   : > { %3382 = vmax.xlane.f32.xlu2 %v3381_v48  ;;  %3376 = vmax.xlane.f32.xlu1 %v3375_v49 }
 0x609   : > { %3370 = vmax.xlane.f32.xlu0 %v3369_v52 }
 0x60b   : > { %3367 = vmax.xlane.f32.xlu2 %v3366_v53 }
 0x664   : > { %v3380_v54 = vpop.xlane.xlu0 %3379 }
 0x665   : > { %v3394_v55 = vsub.f32 %v3362_v33, %v3380_v54 }
 0x667   : > { %v3406_v56 = vmul.f32 1.442695, %v3394_v55 }
 0x669   : > { %8383 = vpow2.f32 %v3406_v56 }
 0x66c   : > { %v3386_v57 = vpop.xlane.xlu1 %3385 }
 0x66d   : > { %v3396_v58 = vsub.f32 %v3364_v36, %v3386_v57 }
 0x66e   : > { %v3374_v59 = vpop.xlane.xlu2 %3373 }
 0x66f   : > { %v12091_v60 = vpop.eup %8383  ;;  %v3410_v61 = vmul.f32 1.442695, %v3396_v58  ;;  %v3392_v62 = vsub.f32 %v3360_v38, %v3374_v59 }
 0x670   : > { %v3426_v63 = vsel %vm3156_vm0, %v12091_v60, 0.0 }
 0x671   : > { %8385 = vpow2.f32 %v3410_v61  ;;  %v3402_v0 = vmul.f32 1.442695, %v3392_v62  ;;  %3427 = vadd.xlane.f32.xlu1 %v3426_v63 }
 0x673   : > { %8387 = vpow2.f32 %v3402_v0 }
 0x674   : > { %v3389_v1 = vpop.xlane.xlu0 %3388 }
 0x675   : > { %v3397_v2 = vsub.f32 %v3365_v44, %v3389_v1 }
 0x676   : > { %v3383_v4 = vpop.xlane.xlu2 %3382  ;;  %v3377_v5 = vpop.xlane.xlu1 %3376 }
 0x677   : > { %v12095_v6 = vpop.eup %8385  ;;  %v3412_v7 = vmul.f32 1.442695, %v3397_v2  ;;  %v3395_v8 = vsub.f32 %v3363_v43, %v3383_v4  ;;  %v3393_v9 = vsub.f32 %v3361_v46, %v3377_v5 }
 0x678   : > { %v3432_v10 = vsel %vm3156_vm0, %v12095_v6, 0.0 }
 0x679   : > { %v12099_v11 = vpop.eup %8387  ;;  %8389 = vpow2.f32 %v3412_v7  ;;  %v3408_v12 = vmul.f32 1.442695, %v3395_v8  ;;  %v3404_v13 = vmul.f32 1.442695, %v3393_v9  ;;  %3433 = vadd.xlane.f32.xlu2 %v3432_v10 }
 0x67a   : > { %v3420_v15 = vsel %vm3156_vm0, %v12099_v11, 0.0 }
 0x67b   : > { %8391 = vpow2.f32 %v3408_v12  ;;  %3421 = vadd.xlane.f32.xlu0 %v3420_v15 }
 0x67c   : > { %8393 = vpow2.f32 %v3404_v13  ;;  %v3371_v30 = vpop.xlane.xlu0 %3370 }
 0x67d   : > { %v3391_v31 = vsub.f32 %v3359_v50, %v3371_v30 }
 0x67e   : > { %v3368_v32 = vpop.xlane.xlu2 %3367 }
 0x67f   : > { %v12103_v17 = vpop.eup %8389  ;;  %v3400_v33 = vmul.f32 1.442695, %v3391_v31  ;;  %v3390_v34 = vsub.f32 %v3358_v51, %v3368_v32 }
 0x680   : > { %v3435_v19 = vsel %vm3156_vm0, %v12103_v17, 0.0 }
 0x681   : > { %v12107_v20 = vpop.eup %8391  ;;  %3436 = vadd.xlane.f32.xlu2 %v3435_v19  ;;  %8395 = vpow2.f32 %v3400_v33  ;;  %v3398_v35 = vmul.f32 1.442695, %v3390_v34 }
 0x682   : > { %v12109_v22 = vpop.eup %8393  ;;  %v3429_v27 = vsel %vm3156_vm0, %v12107_v20, 0.0 }
 0x683   : > { %3430 = vadd.xlane.f32.xlu1 %v3429_v27  ;;  %v3423_v28 = vsel %vm3156_vm0, %v12109_v22, 0.0  ;;  %8397 = vpow2.f32 %v3398_v35 }
 0x684   : > { %3424 = vadd.xlane.f32.xlu0 %v3423_v28 }
 0x687   : > { %v12121_v36 = vpop.eup %8395 }
 0x688   : > { %v3417_v37 = vsel %vm3156_vm0, %v12121_v36, 0.0 }
 0x689   : > { %v12125_v38 = vpop.eup %8397 }
 0x68a   : > { %v3414_v39 = vsel %vm3156_vm0, %v12125_v38, 0.0 }
 0x698   : > { %3233 = vrot.lane.b32.xlu0 %v12080_v29, %s10661_s13 }
 0x699   : > { %3239 = vrot.lane.b32.xlu2 %v12080_v29, %s10660_s3 }
 0x69c   : > { %3236 = vrot.lane.b32.xlu1 %v12080_v29, %s10659_s1 }
 0x6c2   : > { %3418 = vadd.xlane.f32.xlu0 %v3417_v37 }
 0x6c6   : > { %3415 = vadd.xlane.f32.xlu1 %v3414_v39 }
 0x6e4   : > { %v12129_v29 = vpop.xlane.xlu1 %3427 }
 0x6e5   : > { %8399 = vrcp.f32 %v12129_v29  ;;  %vm3503_vm14 = vweird.f32 %v12129_v29 }
 0x6eb   : > { %v12135_v42 = vpop.eup %8399 }
 0x6ec   : > { %v3434_v40 = vpop.xlane.xlu2 %3433  ;;  %v3499_v47 = vmul.f32 %v12135_v42, %v12129_v29  ;;  %vm3504_vm11 = vweird.f32 %v12135_v42 }
 0x6ed   : > { %8401 = vrcp.f32 %v3434_v40  ;;  %v3537_v51 = vand.u32 2147483647, %v3434_v40  ;;  %v3539_v52 = vand.u32 2147483648, %v3434_v40  ;;  %vm3533_vm3 = vweird.f32 %v3434_v40 }
 0x6ee   : > { %v12132_v41 = vpop.xlane.xlu0 %3421  ;;  %v3500_v56 = vsub.f32 1.0, %v3499_v47 }
 0x6ef   : > { %8403 = vrcp.f32 %v12132_v41  ;;  %v3540_v59 = vor.u32 1.1754944e-38, %v3539_v52  ;;  %vm3538_vm5 = vcmp.eq.f32.partialorder %v3537_v51, 8.507059e+37  ;;  %vm3473_vm8 = vweird.f32 %v12132_v41 }
 0x6f0   : > { %v3501_v5 = vmul.f32 %v12135_v42, %v3500_v56  ;;  %v3477_v30 = vand.u32 2147483647, %v12132_v41 }
 0x6f2   : > { %v3502_v32 = vadd.f32 %v12135_v42, %v3501_v5  ;;  %vm3478_vm15 = vcmp.eq.f32.partialorder %v3477_v30, 8.507059e+37 }
 0x6f3   : > { %v8402_v43 = vpop.eup %8401 }
 0x6f4   : > { %v3529_v44 = vmul.f32 %v8402_v43, %v3434_v40  ;;  %v3437_v45 = vpop.xlane.xlu2 %3436  ;;  %vm3534_vm2 = vweird.f32 %v8402_v43  ;;  %v3509_v40 = vand.u32 2147483648, %v12129_v29 }
 0x6f5   : > { %v12137_v46 = vpop.eup %8403  ;;  %8405 = vrcp.f32 %v3437_v45  ;;  %vm3535_vm4 = vmor %vm3533_vm3, %vm3534_vm2  ;;  %v3552_v10 = vand.u32 2147483647, %v3437_v45  ;;  %v3554_v12 = vand.u32 2147483648, %v3437_v45  ;;  %vm3548_vm10 = vweird.f32 %v3437_v45 }
 0x6f6   : > { %v3530_v48 = vsub.f32 1.0, %v3529_v44  ;;  %v3469_v49 = vmul.f32 %v12137_v46, %v12132_v41  ;;  %v12143_v50 = vpop.xlane.xlu1 %3430  ;;  %vm3474_vm6 = vweird.f32 %v12137_v46  ;;  %v3507_v44 = vand.u32 2147483647, %v12129_v29  ;;  %vm12182_vm2 = vmor %vm3503_vm14, %vm3504_vm11 }
 0x6f7   : > { %8407 = vrcp.f32 %v12143_v50  ;;  %v12146_v53 = vpop.xlane.xlu0 %3424  ;;  %vm12165_vm9 = vmor %vm3473_vm8, %vm3474_vm6  ;;  %vm3553_vm13 = vcmp.eq.f32.partialorder %v3552_v10, 8.507059e+37  ;;  %v3555_v33 = vor.u32 1.1754944e-38, %v3554_v12 }
 0x6f8   : > { %v3531_v54 = vmul.f32 %v8402_v43, %v3530_v48  ;;  %v3470_v55 = vsub.f32 1.0, %v3469_v49  ;;  %8409 = vrcp.f32 %v12146_v53  ;;  %v3506_v48 = vsel %vm12182_vm2, %v12135_v42, %v3502_v32 }
 0x6f9   : > { %v3494_v51 = vand.u32 2147483648, %v12146_v53 }
 0x6fa   : > { %v3532_v57 = vadd.f32 %v8402_v43, %v3531_v54  ;;  %v3471_v62 = vmul.f32 %v12137_v46, %v3470_v55  ;;  %v3492_v55 = vand.u32 2147483647, %v12146_v53 }
 0x6fb   : > { %v8406_v58 = vpop.eup %8405 }
 0x6fc   : > { %v3536_v61 = vsel %vm3535_vm4, %v8402_v43, %v3532_v57  ;;  %v3544_v63 = vmul.f32 %v8406_v58, %v3437_v45  ;;  %v3240_v0 = vpop.permute.xlu2 %3239  ;;  %v3472_v13 = vadd.f32 %v12137_v46, %v3471_v62  ;;  %vm3549_vm7 = vweird.f32 %v8406_v58 }
 0x6fd   : > { %v12150_v1 = vpop.eup %8407  ;;  %3666 = vmatpush.msra.mxu3 %v3240_v0  ;;  %v3541_v2 = vsel %vm3538_vm5, %v3540_v59, %v3536_v61  ;;  %vm3550_vm12 = vmor %vm3548_vm10, %vm3549_vm7  ;;  %vm3508_vm4 = vcmp.eq.f32.partialorder %v3507_v44, 8.507059e+37  ;;  %vm3488_vm5 = vweird.f32 %v12146_v53  ;;  %v3524_v59 = vand.u32 2147483648, %v12143_v50 }
 0x6fe   : > { %v12152_v4 = vpop.eup %8409  ;;  %v3545_v7 = vsub.f32 1.0, %v3544_v63  ;;  %v3542_v8 = vmul.f32 %v12095_v6, %v3541_v2  ;;  %v3514_v15 = vmul.f32 %v12150_v1, %v12143_v50  ;;  %v3479_v6 = vand.u32 2147483648, %v12132_v41 }
 0x6ff   : > { %v3484_v9 = vmul.f32 %v12152_v4, %v12146_v53  ;;  %v3476_v34 = vsel %vm12165_vm9, %v12137_v46, %v3472_v13  ;;  %vm3489_vm3 = vweird.f32 %v12152_v4  ;;  %vm3519_vm7 = vweird.f32 %v12150_v1 }
 0x700   : > { %7643 = vmatmul.msk.f32.vlgmr.msra.gmra.mxu3 %vm3156_vm0, %v3542_v8  ;;  %v3546_v19 = vmul.f32 %v8406_v58, %v3545_v7  ;;  %v3515_v35 = vsub.f32 1.0, %v3514_v15  ;;  %v3480_v41 = vor.u32 1.1754944e-38, %v3479_v6  ;;  %vm3490_vm6 = vmor %vm3488_vm5, %vm3489_vm3  ;;  %vm3493_vm8 = vcmp.eq.f32.partialorder %v3492_v55, 8.507059e+37 }
 0x701   : > { %v3485_v27 = vsub.f32 1.0, %v3484_v9  ;;  %vm3518_vm9 = vweird.f32 %v12143_v50  ;;  %v3525_v0 = vor.u32 1.1754944e-38, %v3524_v59 }
 0x702   : > { %v3547_v31 = vadd.f32 %v8406_v58, %v3546_v19  ;;  %v3481_v46 = vsel %vm3478_vm15, %v3480_v41, %v3476_v34  ;;  %v3516_v29 = vmul.f32 %v12150_v1, %v3515_v35  ;;  %vm3520_vm10 = vmor %vm3518_vm9, %vm3519_vm7  ;;  %vm3711_vm7 = vcmask 195584  }
 0x703   : > { %v3486_v37 = vmul.f32 %v12152_v4, %v3485_v27  ;;  %v3482_v54 = vmul.f32 %v12099_v11, %v3481_v46  ;;  %v3522_v11 = vand.u32 2147483647, %v12143_v50 }
 0x704   : > { %v3551_v39 = vsel %vm3550_vm12, %v8406_v58, %v3547_v31  ;;  %v3517_v57 = vadd.f32 %v12150_v1, %v3516_v29  ;;  %v3495_v58 = vor.u32 1.1754944e-38, %v3494_v51  ;;  %v3716_v29 = vld [vmem:[#allocation38 + $0x10] sm:$0xff] }
 0x705   : > { %v3556_v43 = vsel %vm3553_vm13, %v3555_v33, %v3551_v39  ;;  %v3487_v49 = vadd.f32 %v12152_v4, %v3486_v37  ;;  %vm3523_vm11 = vcmp.eq.f32.partialorder %v3522_v11, 8.507059e+37  ;;  %v3755_v51 = vld [vmem:[#allocation50] sm:$0xff] }
 0x706   : > { %v3557_v45 = vmul.f32 %v12103_v17, %v3556_v43  ;;  %v3510_v17 = vor.u32 1.1754944e-38, %v3509_v40  ;;  %v3521_v63 = vsel %vm3520_vm10, %v12150_v1, %v3517_v57 }
 0x707   : > { %v3491_v56 = vsel %vm3490_vm6, %v12152_v4, %v3487_v49  ;;  %v3526_v4 = vsel %vm3523_vm11, %v3525_v0, %v3521_v63  ;;  %v3717_v49 = vld [vmem:[#allocation38 + $0x18] sm:$0xff]  ;;  %vm3708_vm6 = vcmask 130048   ;;  %v3820_v63 = vld [vmem:[#allocation52 + $0x18] sm:$0xff]  ;;  %v3782_v0 = vld [vmem:[#allocation49 + $0x10] sm:$0xff] }
 0x708   : > { %7644 = vmatmul.msk.f32.gmra.mxu3 %vm3156_vm0, %v3557_v45  ;;  %v3511_v42 = vsel %vm3508_vm4, %v3510_v17, %v3506_v48  ;;  %v3496_v53 = vsel %vm3493_vm8, %v3495_v58, %v3491_v56  ;;  %3740 = vmatpush.msra.mxu0 %v3717_v49  ;;  %v3714_v17 = vld [vmem:[#allocation38] sm:$0xff] }
 0x709   : > { %v3512_v62 = vmul.f32 %v12091_v60, %v3511_v42  ;;  %v3497_v2 = vmul.f32 %v12109_v22, %v3496_v53  ;;  %v3527_v60 = vmul.f32 %v12107_v20, %v3526_v4  ;;  %v3783_v53 = vld [vmem:[#allocation49 + $0x18] sm:$0xff]  ;;  %v3781_v4 = vld [vmem:[#allocation49 + $0x8] sm:$0xff] }
 0x70a   : > { %v3234_v52 = vpop.permute.xlu0 %3233  ;;  %3741 = vmatpush.msra.mxu0 %v3716_v29 }
 0x70b   : > { %3608 = vmatpush.msra.mxu1 %v3234_v52 }
 0x70c   : > { %7639 = vmatmul.msk.f32.vlgmr.msra.gmra.mxu1 %vm3156_vm0, %v3482_v54 }
 0x70d   : > { %3775 = vmatpush.msrb.mxu1 %v3755_v51 }
 0x70e   : > { %v3237_v61 = vpop.permute.xlu1 %3236 }
 0x70f   : > { %3637 = vmatpush.msra.mxu2 %v3237_v61  ;;  %3837 = vmatpush.msra.mxu1 %v3820_v63 }
 0x710   : > { %7641 = vmatmul.msk.f32.vlgmr.msra.gmra.mxu2 %vm3156_vm0, %v3512_v62 }
 0x711   : > { %3806 = vmatpush.msrb.mxu2 %v3783_v53 }
 0x713   : > { %3807 = vmatpush.msrb.mxu2 %v3782_v0 }
 0x714   : > { %7640 = vmatmul.msk.f32.gmra.mxu1 %vm3156_vm0, %v3497_v2  ;;  %v3819_v2 = vld [vmem:[#allocation52 + $0x10] sm:$0xff] }
 0x715   : > { %3838 = vmatpush.msra.mxu1 %v3819_v2  ;;  %3808 = vmatpush.msrb.mxu2 %v3781_v4 }
 0x718   : > { %7642 = vmatmul.msk.f32.gmra.mxu2 %vm3156_vm0, %v3527_v60  ;;  %v3780_v60 = vld [vmem:[#allocation49] sm:$0xff] }
 0x719   : > { %3809 = vmatpush.msrb.mxu2 %v3780_v60 }
 0x71c   : > { %7647 = vmatmul.msk.f32.vlgmr.msrb.gmra.mxu1 %vm3156_vm0, %v12021_v3 }
 0x735   : > { %v3419_v5 = vpop.xlane.xlu0 %3418 }
 0x736   : > { %8411 = vrcp.f32 %v3419_v5  ;;  %v3464_v30 = vand.u32 2147483648, %v3419_v5  ;;  %vm3458_vm3 = vweird.f32 %v3419_v5  ;;  %v3462_v33 = vand.u32 2147483647, %v3419_v5 }
 0x738   : > { %v3465_v35 = vor.u32 1.1754944e-38, %v3464_v30  ;;  %vm3463_vm5 = vcmp.eq.f32.partialorder %v3462_v33, 8.507059e+37 }
 0x739   : > { %v3416_v50 = vpop.xlane.xlu1 %3415 }
 0x73a   : > { %8413 = vrcp.f32 %v3416_v50  ;;  %v3449_v13 = vand.u32 2147483648, %v3416_v50  ;;  %v3447_v19 = vand.u32 2147483647, %v3416_v50  ;;  %vm3443_vm13 = vweird.f32 %v3416_v50 }
 0x73c   : > { %v8412_v7 = vpop.eup %8411  ;;  %v3450_v20 = vor.u32 1.1754944e-38, %v3449_v13  ;;  %vm3448_vm15 = vcmp.eq.f32.partialorder %v3447_v19, 8.507059e+37 }
 0x73d   : > { %v3454_v8 = vmul.f32 %v8412_v7, %v3419_v5  ;;  %vm3459_vm2 = vweird.f32 %v8412_v7  ;;  %v3817_v5 = vld [vmem:[#allocation52] sm:$0xff] }
 0x73e   : > { %vm3460_vm4 = vmor %vm3458_vm3, %vm3459_vm2 }
 0x73f   : > { %v3455_v10 = vsub.f32 1.0, %v3454_v8 }
 0x740   : > { %v8414_v9 = vpop.eup %8413 }
 0x741   : > { %v3439_v1 = vmul.f32 %v8414_v9, %v3416_v50  ;;  %v3456_v22 = vmul.f32 %v8412_v7, %v3455_v10  ;;  %vm3444_vm12 = vweird.f32 %v8414_v9  ;;  %v8369_v50 = vld [vmem:[#allocation46] ss:$0 sm:$0xff] }
 0x742   : > { %vm3445_vm14 = vmor %vm3443_vm13, %vm3444_vm12 }
 0x743   : > { %v3440_v12 = vsub.f32 1.0, %v3439_v1  ;;  %v3457_v28 = vadd.f32 %v8412_v7, %v3456_v22 }
 0x745   : > { %v3441_v15 = vmul.f32 %v8414_v9, %v3440_v12  ;;  %v3461_v34 = vsel %vm3460_vm4, %v8412_v7, %v3457_v28 }
 0x746   : > { %v3466_v37 = vsel %vm3463_vm5, %v3465_v35, %v3461_v34 }
 0x747   : > { %v3442_v6 = vadd.f32 %v8414_v9, %v3441_v15  ;;  %v3467_v39 = vmul.f32 %v12121_v36, %v3466_v37 }
 0x749   : > { %v3446_v27 = vsel %vm3445_vm14, %v8414_v9, %v3442_v6  ;;  %v8368_v9 = vld [vmem:[#allocation32] ss:$0 sm:$0xff] }
 0x74a   : > { %v3451_v31 = vsel %vm3448_vm15, %v3450_v20, %v3446_v27  ;;  %v8371_v20 = vld [vmem:[#allocation43] ss:$0 sm:$0xff] }
 0x74b   : > { %v3452_v32 = vmul.f32 %v12125_v38, %v3451_v31 }
 0x74d   : > { %7637 = vmatmul.msk.f32.vlgmr.msrb.gmra.mxu0 %vm3156_vm0, %v3452_v32 }
 0x755   : > { %7638 = vmatmul.msk.f32.gmra.mxu0 %vm3156_vm0, %v3467_v39 }
 0x783   : > { %v3668_v40 = vpop.f32.mrf.mxu3 }
 0x789   : > { %v3610_v41 = vpop.f32.mrf.mxu1 }
 0x78a   : > { %v3676_v43 = vadd.f32 %v3610_v41, %v12070_v25  ;;  %v3680_v25 = vadd.f32 %v3668_v40, %v12062_v23 }
 0x78b   : > { %v3671_v44 = vpop.f32.mrf.mxu3 }
 0x78c   : > { %v3681_v45 = vadd.f32 %v3671_v44, %v12068_v24  ;;  %3684 = vrot.lane.b32.xlu2 %v3676_v43, %s10662_s7  ;;  %v8370_v44 = vld [vmem:[#allocation47] ss:$0 sm:$0xff] }
 0x78e   : > { %3702 = vrot.lane.b32.xlu1 %v3681_v45, %s10663_s23 }
 0x791   : > { %v3613_v38 = vpop.f32.mrf.mxu1 }
 0x792   : > { %v3677_v47 = vadd.f32 %v3613_v38, %v12076_v26  ;;  %v3715_v26 = vld [vmem:[#allocation38 + $0x8] sm:$0xff] }
 0x793   : > { %v3639_v36 = vpop.f32.mrf.mxu2  ;;  %3742 = vmatpush.msra.mxu0 %v3715_v26 }
 0x794   : > { %3686 = vrot.lane.b32.xlu2 %v3677_v47, %s10662_s7  ;;  %v3678_v46 = vadd.f32 %v3639_v36, %v12057_v21 }
 0x795   : > { %3743 = vmatpush.msra.mxu0 %v3714_v17 }
 0x799   : > { %v3777_v7 = vpop.f32.mrf.mxu1 }
 0x79a   : > { %v12239_v8 = vadd.f32 %v8369_v50, %v3777_v7 }
 0x79b   : > { %v3642_v24 = vpop.f32.mrf.mxu2 }
 0x79c   : > { %3692 = vrot.lane.b32.xlu2 %v3678_v46, %s10664_s10  ;;  %v3679_v48 = vadd.f32 %v3642_v24, %v12053_v18  ;;  %3855 = vrot.lane.b32.xlu1 %v12239_v8, %s10660_s3 }
 0x7a4   : > { %3700 = vrot.lane.b32.xlu2 %v3680_v25, %s10663_s23  ;;  %3849 = vrot.lane.b32.xlu1 %v12239_v8, %s10661_s13 }
 0x7ac   : > { %3694 = vrot.lane.b32.xlu2 %v3679_v48, %s10664_s10 }
 0x7ca   : > { %v3581_v54 = vpop.f32.mrf.mxu0 }
 0x7cb   : > { %v3674_v18 = vadd.f32 %v3581_v54, %v12029_v14 }
 0x7d2   : > { %v3584_v58 = vpop.f32.mrf.mxu0 }
 0x7d3   : > { %v3675_v59 = vadd.f32 %v3584_v58, %v12036_v16  ;;  %v3818_v16 = vld [vmem:[#allocation52 + $0x8] sm:$0xff] }
 0x7d4   : > { %3839 = vmatpush.msra.mxu1 %v3818_v16 }
 0x7d6   : > { %3840 = vmatpush.msra.mxu1 %v3817_v5 }
 0x7e6   : > { %v3685_v21 = vpop.permute.xlu2 %3684 }
 0x7e7   : > { %v3706_v55 = vsel %vm3156_vm0, %v3674_v18, %v3685_v21 }
 0x7ee   : > { %v3687_v23 = vpop.permute.xlu2 %3686 }
 0x7ef   : > { %v3707_v3 = vsel %vm3156_vm0, %v3675_v59, %v3687_v23 }
 0x7f6   : > { %v3693_v52 = vpop.permute.xlu2 %3692 }
 0x7f7   : > { %v3709_v42 = vsel %vm3708_vm6, %v3706_v55, %v3693_v52 }
 0x7fe   : > { %v3701_v56 = vpop.permute.xlu2 %3700 }
 0x7ff   : > { %v3712_v57 = vsel %vm3711_vm7, %v3709_v42, %v3701_v56 }
 0x800   : > { %7645 = vmatmul.msk.f32.vlgmr.msra.gmra.mxu0 %vm3121_vm1, %v3712_v57  ;;  %v3703_v62 = vpop.permute.xlu1 %3702 }
 0x806   : > { %v3695_v61 = vpop.permute.xlu2 %3694 }
 0x807   : > { %v3710_v14 = vsel %vm3708_vm6, %v3707_v3, %v3695_v61 }
 0x808   : > { %v3713_v11 = vsel %vm3711_vm7, %v3710_v14, %v3703_v62 }
 0x809   : > { %7646 = vmatmul.msk.f32.gmra.mxu0 %vm3121_vm1, %v3713_v11 }
 0x80e   : > { %v12263_v35 = vpop.permute.xlu1 %3855 }
 0x816   : > { %v12275_v36 = vpop.permute.xlu1 %3849 }
 0x87d   : > { %v3745_v10 = vpop.f32.mrf.mxu0 }
 0x87e   : > { %v3746_v1 = vadd.f32 %v8368_v9, %v3745_v10 }
 0x880   : > { %v3751_v12 = vmax.f32 %v3746_v1, 0.0 }
 0x882   : > { %v3753_v13 = vadd.f32 %v3751_v12, %v3712_v57 }
 0x884   : > { %7648 = vmatmul.msk.f32.vlgmr.msrb.gmra.mxu2 %vm3121_vm1, %v3753_v13  ;;  %7650 = vmatmul.msk.f32.vlgmr.msra.gmra.mxu1 %vm3121_vm1, %v3753_v13 }
 0x886   : > { %v3748_v22 = vpop.f32.mrf.mxu0 }
 0x887   : > { %v3749_v15 = vadd.f32 %v8368_v9, %v3748_v22 }
 0x889   : > { %v3752_v19 = vmax.f32 %v3749_v15, 0.0 }
 0x88b   : > { %v3754_v6 = vadd.f32 %v3752_v19, %v3713_v11 }
 0x88d   : > { %7649 = vmatmul.msk.f32.gmra.mxu2 %vm3121_vm1, %v3754_v6  ;;  %7651 = vmatmul.msk.f32.gmra.mxu1 %vm3121_vm1, %v3754_v6 }
 0x901   : > { %v3842_v40 = vpop.f32.mrf.mxu1 }
 0x902   : > { %v3843_v47 = vadd.f32 %v8370_v44, %v3842_v40 }
 0x907   : > { %v3811_v27 = vpop.f32.mrf.mxu2 }
 0x908   : > { %v3812_v28 = vadd.f32 %v8371_v20, %v3811_v27 }
 0x90a   : > { %3864 = vrot.lane.b32.xlu2 %v3812_v28, %s10659_s1  ;;  %v3845_v43 = vpop.f32.mrf.mxu1 }
 0x90b   : > { %v3846_v45 = vadd.f32 %v8370_v44, %v3845_v43 }
 0x90d   : > { %v8338_v53 = vpack.i.bf16 %v3843_v47, %v3846_v45 }
 0x910   : > { %v3814_v30 = vpop.f32.mrf.mxu2 }
 0x911   : > { %v3815_v31 = vadd.f32 %v8371_v20, %v3814_v30 }
 0x913   : > { %3870 = vrot.lane.b32.xlu2 %v3815_v31, %s10660_s3  ;;  %3866 = vrot.lane.b32.xlu0 %v3815_v31, %s10659_s1 }
 0x914   : > { %7652 = vmatpush.xpose.msk.msrb.mxu3 %vm3156_vm0, %v3815_v31 }
 0x918   : > { %7653 = vmatpush.xpose.msk.msrb.mxu3 %vm3156_vm0, %v3812_v28 }
 0x91b   : > { %7654 = vmatmul.msk.f32.vlgmr.msrb.gmra.mxu3 %vm3156_vm0, %v12239_v8  ;;  %3868 = vrot.lane.b32.xlu2 %v3812_v28, %s10660_s3 }
 0x91c   : > { %3852 = vrot.lane.b32.xlu0 %v12239_v8, %s10659_s1 }
 0x923   : > { %3862 = vrot.lane.b32.xlu2 %v3815_v31, %s10661_s13 }
 0x924   : > { %3860 = vrot.lane.b32.xlu0 %v3812_v28, %s10661_s13 }
 0x964   : > { %v3865_v32 = vpop.permute.xlu2 %3864 }
 0x96d   : > { %v3871_v33 = vpop.permute.xlu2 %3870 }
 0x96e   : > { %7661 = vmatpush.xpose.msk.msra.mxu3 %vm3156_vm0, %v3871_v33 }
 0x975   : > { %v3869_v34 = vpop.permute.xlu2 %3868 }
 0x976   : > { %7662 = vmatpush.xpose.msk.msra.mxu3 %vm3156_vm0, %v3869_v34 }
 0x979   : > { %7663 = vmatmul.msk.f32.vlgmr.msra.gmra.mxu3 %vm3156_vm0, %v12263_v35 }
 0x97d   : > { %v3863_v37 = vpop.permute.xlu2 %3862 }
 0x97e   : > { %7655 = vmatpush.xpose.msk.msrb.mxu0 %vm3156_vm0, %v3863_v37 }
 0x985   : > { %v3867_v39 = vpop.permute.xlu0 %3866 }
 0x986   : > { %7658 = vmatpush.xpose.msk.msra.mxu2 %vm3156_vm0, %v3867_v39 }
 0x98a   : > { %7659 = vmatpush.xpose.msk.msra.mxu2 %vm3156_vm0, %v3865_v32 }
 0x98e   : > { %v12270_v41 = vpop.permute.xlu0 %3852 }
 0x98f   : > { %7660 = vmatmul.msk.f32.vlgmr.msra.gmra.mxu2 %vm3156_vm0, %v12270_v41 }
 0x996   : > { %v3861_v38 = vpop.permute.xlu0 %3860 }
 0x997   : > { %7656 = vmatpush.xpose.msk.msrb.mxu0 %vm3156_vm0, %v3861_v38 }
 0x99a   : > { %7657 = vmatmul.msk.f32.vlgmr.msrb.gmra.mxu0 %vm3156_vm0, %v12275_v36 }
 0x99b   : > { %4113 = vmatpush.msra.mxu0 %v3846_v45 }
 0x99d   : > { %4114 = vmatpush.msra.mxu0 %v3843_v47 }
 0x99e   : > { %v3915_v46 = vpop.f32.mrf.mxu3 }
 0x99f   : > { %v3996_v51 = vmul.f32 0.17677669, %v3915_v46 }
 0x9a1   : > { %v4000_v52 = vsel %vm3708_vm6, %v3996_v51, -inf }
 0x9fc   : > { %v3993_v25 = vpop.f32.mrf.mxu3 }
 0x9fd   : > { %v3999_v24 = vmul.f32 0.17677669, %v3993_v25 }
 0x9ff   : > { %v4009_v48 = vsel %vm3708_vm6, %v3999_v24, -inf }
 0xa00   : > { %4010 = vmax.xlane.f32.xlu0 %v4009_v48 }
 0xa12   : > { %v3967_v49 = vpop.f32.mrf.mxu2 }
 0xa13   : > { %v3998_v29 = vmul.f32 0.17677669, %v3967_v49 }
 0xa15   : > { %v4006_v26 = vsel %vm3708_vm6, %v3998_v29, -inf }
 0xa16   : > { %4007 = vmax.xlane.f32.xlu2 %v4006_v26 }
 0xa17   : > { %v3941_v17 = vpop.f32.mrf.mxu0 }
 0xa18   : > { %v3997_v21 = vmul.f32 0.17677669, %v3941_v17 }
 0xa1a   : > { %v4003_v23 = vsel %vm3708_vm6, %v3997_v21, -inf }
 0xa1b   : > { %4004 = vmax.xlane.f32.xlu1 %v4003_v23 }
 0xa1e   : > { %4001 = vmax.xlane.f32.xlu2 %v4000_v52 }
 0xa73   : > { %v4011_v54 = vpop.xlane.xlu0 %4010 }
 0xa74   : > { %v4015_v18 = vsub.f32 %v3999_v24, %v4011_v54 }
 0xa76   : > { %v4022_v55 = vmul.f32 1.442695, %v4015_v18 }
 0xa78   : > { %8415 = vpow2.f32 %v4022_v55 }
 0xa7e   : > { %v8416_v42 = vpop.eup %8415 }
 0xa7f   : > { %v4033_v56 = vsel %vm3708_vm6, %v8416_v42, 0.0 }
 0xa80   : > { %4034 = vadd.xlane.f32.xlu1 %v4033_v56 }
 0xa89   : > { %v4008_v57 = vpop.xlane.xlu2 %4007 }
 0xa8a   : > { %v4014_v58 = vsub.f32 %v3998_v29, %v4008_v57 }
 0xa8c   : > { %v4020_v59 = vmul.f32 1.442695, %v4014_v58 }
 0xa8e   : > { %8417 = vpow2.f32 %v4020_v59  ;;  %v4005_v3 = vpop.xlane.xlu1 %4004 }
 0xa8f   : > { %v4013_v61 = vsub.f32 %v3997_v21, %v4005_v3 }
 0xa91   : > { %v4018_v62 = vmul.f32 1.442695, %v4013_v61  ;;  %v4002_v2 = vpop.xlane.xlu2 %4001 }
 0xa92   : > { %v4012_v4 = vsub.f32 %v3996_v51, %v4002_v2 }
 0xa93   : > { %8419 = vpow2.f32 %v4018_v62 }
 0xa94   : > { %v12284_v14 = vpop.eup %8417  ;;  %v4016_v16 = vmul.f32 1.442695, %v4012_v4 }
 0xa95   : > { %v4030_v11 = vsel %vm3708_vm6, %v12284_v14, 0.0 }
 0xa96   : > { %4031 = vadd.xlane.f32.xlu0 %v4030_v11  ;;  %8421 = vpow2.f32 %v4016_v16 }
 0xa99   : > { %v12288_v63 = vpop.eup %8419  ;;  %8339 = vrot.lane.b32.xlu1 %v8338_v53, %s10660_s3 }
 0xa9a   : > { %v4027_v0 = vsel %vm3708_vm6, %v12288_v63, 0.0 }
 0xa9b   : > { %4028 = vadd.xlane.f32.xlu2 %v4027_v0 }
 0xa9c   : > { %v12295_v60 = vpop.eup %8421 }
 0xa9d   : > { %v4024_v5 = vsel %vm3708_vm6, %v12295_v60, 0.0 }
 0xaaa   : > { %8334 = vrot.lane.b32.xlu0 %v8338_v53, %s10659_s1 }
 0xab3   : > { %8344 = vrot.lane.b32.xlu2 %v8338_v53, %s10661_s13 }
 0xad4   : > { %4025 = vadd.xlane.f32.xlu0 %v4024_v5 }
 0xaf3   : > { %v4035_v50 = vpop.xlane.xlu1 %4034 }
 0xaf4   : > { %8423 = vrcp.f32 %v4035_v50  ;;  %v4092_v13 = vand.u32 2147483648, %v4035_v50  ;;  %vm4086_vm9 = vweird.f32 %v4035_v50  ;;  %v4090_v22 = vand.u32 2147483647, %v4035_v50 }
 0xaf6   : > { %v4093_v6 = vor.u32 1.1754944e-38, %v4092_v13  ;;  %vm4091_vm11 = vcmp.eq.f32.partialorder %v4090_v22, 8.507059e+37  ;;  %v4207_v13 = vld [vmem:[%s13060_s18] sm:$0xff] }
 0xafa   : > { %v8424_v7 = vpop.eup %8423 }
 0xafb   : > { %v4082_v9 = vmul.f32 %v8424_v7, %v4035_v50  ;;  %vm4087_vm8 = vweird.f32 %v8424_v7 }
 0xafc   : > { %vm4088_vm10 = vmor %vm4086_vm9, %vm4087_vm8 }
 0xafd   : > { %v4083_v10 = vsub.f32 1.0, %v4082_v9 }
 0xaff   : > { %v4084_v1 = vmul.f32 %v8424_v7, %v4083_v10 }
 0xb01   : > { %v4085_v12 = vadd.f32 %v8424_v7, %v4084_v1  ;;  %v4210_v1 = vld [vmem:[%s13059_s0 + $0x18] sm:$0xff] }
 0xb02   : > { %4230 = vmatpush.msrb.mxu0 %v4210_v1 }
 0xb03   : > { %v4089_v15 = vsel %vm4088_vm10, %v8424_v7, %v4085_v12  ;;  %v4208_v12 = vld [vmem:[%s13060_s18 + $0x8] sm:$0xff] }
 0xb04   : > { %v4094_v27 = vsel %vm4091_vm11, %v4093_v6, %v4089_v15 }
 0xb05   : > { %v4095_v32 = vmul.f32 %v8416_v42, %v4094_v27 }
 0xb09   : > { %v4032_v19 = vpop.xlane.xlu0 %4031 }
 0xb0a   : > { %8425 = vrcp.f32 %v4032_v19  ;;  %v4077_v38 = vand.u32 2147483648, %v4032_v19  ;;  %vm4071_vm13 = vweird.f32 %v4032_v19  ;;  %v4075_v46 = vand.u32 2147483647, %v4032_v19 }
 0xb0b   : > { %v8340_v20 = vpop.permute.xlu1 %8339 }
 0xb0c   : > { %v8341_v28 = vunpack.i.l.bf16 %v8340_v20  ;;  %v8342_v30 = vunpack.i.h.bf16 %v8340_v20  ;;  %v4078_v17 = vor.u32 1.1754944e-38, %v4077_v38  ;;  %vm4076_vm2 = vcmp.eq.f32.partialorder %v4075_v46, 8.507059e+37  ;;  %v8372_v38 = vld [vmem:[#allocation44] ss:$0 sm:$0xff] }
 0xb0e   : > { %v4029_v31 = vpop.xlane.xlu2 %4028  ;;  %4182 = vmatpush.msrb.mxu3 %v8341_v28  ;;  %v4244_v28 = vld [vmem:[#allocation62 + $0x10] sm:$0xff] }
 0xb0f   : > { %8427 = vrcp.f32 %v4029_v31  ;;  %v4062_v24 = vand.u32 2147483648, %v4029_v31  ;;  %v4060_v26 = vand.u32 2147483647, %v4029_v31  ;;  %vm4056_vm3 = vweird.f32 %v4029_v31 }
 0xb10   : > { %v8426_v33 = vpop.eup %8425  ;;  %4183 = vmatpush.msrb.mxu3 %v8342_v30  ;;  %v4282_v30 = vld [vmem:[#allocation59 + $0x18] sm:$0xff] }
 0xb11   : > { %v4067_v34 = vmul.f32 %v8426_v33, %v4032_v19  ;;  %7667 = vmatmul.msk.f32.vlgmr.msrb.gmra.mxu3 %vm3708_vm6, %v4095_v32  ;;  %vm4072_vm12 = vweird.f32 %v8426_v33  ;;  %v4063_v52 = vor.u32 1.1754944e-38, %v4062_v24  ;;  %vm4061_vm5 = vcmp.eq.f32.partialorder %v4060_v26, 8.507059e+37  ;;  %v4243_v32 = vld [vmem:[#allocation62 + $0x8] sm:$0xff]  ;;  %v8374_v26 = vld [vmem:[%s13061_s2] ss:$0 sm:$0xff] }
 0xb12   : > { %vm4073_vm14 = vmor %vm4071_vm13, %vm4072_vm12 }
 0xb13   : > { %v4068_v37 = vsub.f32 1.0, %v4067_v34  ;;  %v4312_v34 = vld [vmem:[#allocation64 + $0x10] sm:$0xff] }
 0xb15   : > { %v8428_v39 = vpop.eup %8427  ;;  %v4069_v40 = vmul.f32 %v8426_v33, %v4068_v37  ;;  %v4280_v37 = vld [vmem:[#allocation59 + $0x8] sm:$0xff] }
 0xb16   : > { %v4052_v43 = vmul.f32 %v8428_v39, %v4029_v31  ;;  %v8345_v44 = vpop.permute.xlu2 %8344  ;;  %vm4057_vm15 = vweird.f32 %v8428_v39  ;;  %v4313_v31 = vld [vmem:[#allocation64 + $0x18] sm:$0xff] }
 0xb17   : > { %v4070_v45 = vadd.f32 %v8426_v33, %v4069_v40  ;;  %v8346_v47 = vunpack.i.l.bf16 %v8345_v44  ;;  %v8347_v48 = vunpack.i.h.bf16 %v8345_v44  ;;  %vm4058_vm4 = vmor %vm4056_vm3, %vm4057_vm15  ;;  %4330 = vmatpush.msra.mxu3 %v4313_v31  ;;  %v4240_v40 = vld [vmem:[#allocation53] sm:$0xff]  ;;  %v4310_v44 = vld [vmem:[#allocation64] sm:$0xff] }
 0xb18   : > { %v4053_v25 = vsub.f32 1.0, %v4052_v43  ;;  %v4279_v43 = vld [vmem:[#allocation59] sm:$0xff] }
 0xb19   : > { %4136 = vmatpush.msrb.mxu1 %v8346_v47  ;;  %v4074_v49 = vsel %vm4073_vm14, %v8426_v33, %v4070_v45  ;;  %v4281_v33 = vld [vmem:[#allocation59 + $0x10] sm:$0xff]  ;;  %4331 = vmatpush.msra.mxu3 %v4312_v34 }
 0xb1a   : > { %v4054_v29 = vmul.f32 %v8428_v39, %v4053_v25  ;;  %v4079_v23 = vsel %vm4076_vm2, %v4078_v17, %v4074_v49  ;;  %v4241_v45 = vld [vmem:[#allocation53 + $0x8] sm:$0xff]  ;;  %v8375_v17 = vld [vmem:[#allocation58] ss:$0 sm:$0xff] }
 0xb1b   : > { %4137 = vmatpush.msrb.mxu1 %v8347_v48  ;;  %v4080_v57 = vmul.f32 %v12284_v14, %v4079_v23  ;;  %v8373_v48 = vld [vmem:[#allocation56] ss:$0 sm:$0xff] }
 0xb1c   : > { %v4055_v21 = vadd.f32 %v8428_v39, %v4054_v29  ;;  %v8335_v51 = vpop.permute.xlu0 %8334 }
 0xb1d   : > { %v8336_v54 = vunpack.i.l.bf16 %v8335_v51  ;;  %v8337_v42 = vunpack.i.h.bf16 %v8335_v51 }
 0xb1e   : > { %v4059_v18 = vsel %vm4058_vm4, %v8428_v39, %v4055_v21  ;;  %v4311_v39 = vld [vmem:[#allocation64 + $0x8] sm:$0xff] }
 0xb1f   : > { %v4064_v55 = vsel %vm4061_vm5, %v4063_v52, %v4059_v18  ;;  %4159 = vmatpush.msrb.mxu2 %v8336_v54  ;;  %4332 = vmatpush.msra.mxu3 %v4311_v39 }
 0xb20   : > { %v4065_v56 = vmul.f32 %v12288_v63, %v4064_v55 }
 0xb21   : > { %4160 = vmatpush.msrb.mxu2 %v8337_v42  ;;  %4333 = vmatpush.msra.mxu3 %v4310_v44 }
 0xb22   : > { %7665 = vmatmul.msk.f32.vlgmr.msrb.gmra.mxu1 %vm3708_vm6, %v4065_v56  ;;  %7666 = vmatmul.msk.f32.vlgmr.msrb.gmra.mxu2 %vm3708_vm6, %v4080_v57 }
 0xb23   : > { %4302 = vmatpush.msra.mxu2 %v4282_v30 }
 0xb25   : > { %4303 = vmatpush.msra.mxu2 %v4281_v33 }
 0xb27   : > { %4304 = vmatpush.msra.mxu2 %v4280_v37 }
 0xb29   : > { %4305 = vmatpush.msra.mxu2 %v4279_v43 }
 0xb47   : > { %v4026_v58 = vpop.xlane.xlu0 %4025 }
 0xb48   : > { %8429 = vrcp.f32 %v4026_v58  ;;  %v4047_v62 = vand.u32 2147483648, %v4026_v58  ;;  %v4045_v53 = vand.u32 2147483647, %v4026_v58  ;;  %vm4041_vm9 = vweird.f32 %v4026_v58 }
 0xb4a   : > { %v4048_v63 = vor.u32 1.1754944e-38, %v4047_v62  ;;  %vm4046_vm11 = vcmp.eq.f32.partialorder %v4045_v53, 8.507059e+37 }
 0xb4e   : > { %v8430_v59 = vpop.eup %8429 }
 0xb4f   : > { %v4037_v3 = vmul.f32 %v8430_v59, %v4026_v58  ;;  %vm4042_vm8 = vweird.f32 %v8430_v59 }
 0xb50   : > { %vm4043_vm10 = vmor %vm4041_vm9, %vm4042_vm8 }
 0xb51   : > { %v4038_v61 = vsub.f32 1.0, %v4037_v3 }
 0xb53   : > { %v4039_v11 = vmul.f32 %v8430_v59, %v4038_v61 }
 0xb55   : > { %v4040_v0 = vadd.f32 %v8430_v59, %v4039_v11 }
 0xb57   : > { %v4044_v14 = vsel %vm4043_vm10, %v8430_v59, %v4040_v0 }
 0xb58   : > { %v4049_v2 = vsel %vm4046_vm11, %v4048_v63, %v4044_v14 }
 0xb59   : > { %v4050_v4 = vmul.f32 %v12295_v60, %v4049_v2  ;;  %v4209_v60 = vld [vmem:[%s13060_s18 + $0x10] sm:$0xff] }
 0xb5a   : > { %4231 = vmatpush.msrb.mxu0 %v4209_v60 }
 0xb5b   : > { %7664 = vmatmul.msk.f32.vlgmr.msra.gmra.mxu0 %vm3708_vm6, %v4050_v4 }
 0xb5c   : > { %4232 = vmatpush.msrb.mxu0 %v4208_v12 }
 0xb5e   : > { %4233 = vmatpush.msrb.mxu0 %v4207_v13 }
 0xb94   : > { %v4185_v50 = vpop.f32.mrf.mxu3 }
 0xb95   : > { %v4191_v10 = vadd.f32 %v4185_v50, %v12263_v35 }
 0xb9f   : > { %v4139_v16 = vpop.f32.mrf.mxu1 }
 0xba0   : > { %v4189_v5 = vadd.f32 %v4139_v16, %v12275_v36  ;;  %v4245_v36 = vld [vmem:[#allocation62 + $0x18] sm:$0xff] }
 0xba1   : > { %4268 = vmatpush.msra.mxu1 %v4245_v36 }
 0xba2   : > { %4193 = vrot.lane.b32.xlu1 %v4189_v5, %s10662_s7 }
 0xba3   : > { %4269 = vmatpush.msra.mxu1 %v4244_v28 }
 0xba5   : > { %v4162_v7 = vpop.f32.mrf.mxu2  ;;  %4270 = vmatpush.msra.mxu1 %v4243_v32 }
 0xba6   : > { %v4190_v9 = vadd.f32 %v4162_v7, %v12270_v41 }
 0xba8   : > { %4197 = vrot.lane.b32.xlu2 %v4190_v9, %s10664_s10 }
 0xbaa   : > { %4201 = vrot.lane.b32.xlu1 %v4191_v10, %s10663_s23 }
 0xbd8   : > { %v4116_v22 = vpop.f32.mrf.mxu0 }
 0xbd9   : > { %v4188_v41 = vadd.f32 %v4116_v22, %v12239_v8  ;;  %v4242_v8 = vld [vmem:[#allocation62] sm:$0xff] }
 0xbda   : > { %4271 = vmatpush.msra.mxu1 %v4242_v8 }
 0xbdb   : > { %7669 = vmatmul.msk.f32.vlgmr.msra.gmra.mxu1 %vm3121_vm1, %v4240_v40 }
 0xbe3   : > { %7670 = vmatmul.msk.f32.gmra.mxu1 %vm3121_vm1, %v4241_v45 }
 0xc02   : > { %v4198_v19 = vpop.permute.xlu2 %4197 }
 0xc14   : > { %v4194_v15 = vpop.permute.xlu1 %4193 }
 0xc15   : > { %v4204_v35 = vsel %vm3156_vm0, %v4188_v41, %v4194_v15 }
 0xc16   : > { %v4205_v20 = vsel %vm3708_vm6, %v4204_v35, %v4198_v19 }
 0xc1c   : > { %v4202_v6 = vpop.permute.xlu1 %4201 }
 0xc1d   : > { %v4206_v27 = vsel %vm3711_vm7, %v4205_v20, %v4202_v6 }
 0xc1e   : > { %7668 = vmatmul.msk.f32.vlgmr.msrb.gmra.mxu0 %vm3121_vm1, %v4206_v27 }
 0xc58   : > { %v4273_v49 = vpop.f32.mrf.mxu1 }
 0xc59   : > { %v12329_v29 = vadd.f32 %v8373_v48, %v4273_v49 }
 0xc5b   : > { %4340 = vrot.lane.b32.xlu2 %v12329_v29, %s10661_s13  ;;  %4352 = vrot.lane.b32.xlu0 %v12329_v29, %s10660_s3 }
 0xc60   : > { %v4276_v54 = vpop.f32.mrf.mxu1 }
 0xc61   : > { %v12342_v18 = vadd.f32 %v8373_v48, %v4276_v54 }
 0xc9b   : > { %v4235_v47 = vpop.f32.mrf.mxu0 }
 0xc9c   : > { %v4236_v46 = vadd.f32 %v8372_v38, %v4235_v47 }
 0xc9e   : > { %v4238_v25 = vmax.f32 %v4236_v46, 0.0 }
 0xca0   : > { %v12323_v24 = vadd.f32 %v4238_v25, %v4206_v27 }
 0xca2   : > { %7671 = vmatmul.msk.f32.vlgmr.msra.gmra.mxu2 %vm3121_vm1, %v12323_v24  ;;  %7672 = vmatmul.msk.f32.vlgmr.msra.gmra.mxu3 %vm3121_vm1, %v12323_v24 }
 0xcb5   : > { %v12357_v55 = vpop.permute.xlu2 %4340 }
 0xccd   : > { %v12367_v58 = vpop.permute.xlu0 %4352 }
 0xd25   : > { %v4307_v21 = vpop.f32.mrf.mxu2  ;;  %v4335_v51 = vpop.f32.mrf.mxu3 }
 0xd26   : > { %v4308_v23 = vadd.f32 %v8374_v26, %v4307_v21  ;;  %v12336_v52 = vadd.f32 %v8375_v17, %v4335_v51 }
 0xd28   : > { %4361 = vrot.lane.b32.xlu1 %v4308_v23, %s10659_s1  ;;  %4359 = vrot.lane.b32.xlu2 %v4308_v23, %s10661_s13 }
 0xd29   : > { %7673 = vmatpush.xpose.msk.msra.mxu0 %vm3156_vm0, %v4308_v23 }
 0xd2c   : > { %7674 = vmatmul.msk.f32.vlgmr.msra.gmra.mxu0 %vm3156_vm0, %v12329_v29 }
 0xd2d   : > { %4712 = vmatpush.msrb.mxu0 %v12336_v52 }
 0xd30   : > { %4346 = vrot.lane.b32.xlu1 %v12329_v29, %s10659_s1  ;;  %4342 = vrot.lane.b32.xlu2 %v12342_v18, %s10661_s13 }
 0xd34   : > { %7675 = vmatmul.msk.f32.gmra.mxu0 %vm3156_vm0, %v12342_v18 }
 0xd38   : > { %4348 = vrot.lane.b32.xlu1 %v12342_v18, %s10659_s1  ;;  %4363 = vrot.lane.b32.xlu2 %v4308_v23, %s10660_s3 }
 0xd40   : > { %4354 = vrot.lane.b32.xlu1 %v12342_v18, %s10660_s3 }
 0xd82   : > { %v4360_v42 = vpop.permute.xlu2 %4359 }
 0xd83   : > { %7676 = vmatpush.xpose.msk.msrb.mxu2 %vm3156_vm0, %v4360_v42 }
 0xd86   : > { %7677 = vmatmul.msk.f32.vlgmr.msrb.gmra.mxu2 %vm3156_vm0, %v12357_v55 }
 0xd8a   : > { %v12362_v56 = vpop.permute.xlu2 %4342 }
 0xd8e   : > { %7678 = vmatmul.msk.f32.gmra.mxu2 %vm3156_vm0, %v12362_v56 }
 0xd92   : > { %v4364_v57 = vpop.permute.xlu2 %4363 }
 0xd93   : > { %7682 = vmatpush.xpose.msk.msrb.mxu1 %vm3156_vm0, %v4364_v57 }
 0xd96   : > { %7683 = vmatmul.msk.f32.vlgmr.msrb.gmra.mxu1 %vm3156_vm0, %v12367_v58 }
 0xd9a   : > { %v4362_v59 = vpop.permute.xlu1 %4361 }
 0xd9b   : > { %7679 = vmatpush.xpose.msk.msrb.mxu3 %vm3156_vm0, %v4362_v59 }
 0xda2   : > { %v12372_v3 = vpop.permute.xlu1 %4346 }
 0xda3   : > { %7680 = vmatmul.msk.f32.vlgmr.msrb.gmra.mxu3 %vm3156_vm0, %v12372_v3 }
 0xda9   : > { %v4398_v5 = vpop.f32.mrf.mxu0 }
 0xdaa   : > { %v12376_v61 = vpop.permute.xlu1 %4348  ;;  %v12387_v7 = vmul.f32 0.17677669, %v4398_v5 }
 0xdab   : > { %7681 = vmatmul.msk.f32.gmra.mxu3 %vm3156_vm0, %v12376_v61 }
 0xdac   : > { %v4499_v9 = vsel %vm3156_vm0, %v12387_v7, -inf }
 0xdb1   : > { %v4401_v35 = vpop.f32.mrf.mxu0 }
 0xdb2   : > { %v12380_v62 = vpop.permute.xlu1 %4354  ;;  %v4492_v19 = vmul.f32 0.17677669, %v4401_v35 }
 0xdb3   : > { %7684 = vmatmul.msk.f32.gmra.mxu1 %vm3156_vm0, %v12380_v62 }
 0xdb4   : > { %v4502_v6 = vsel %vm3156_vm0, %v4492_v19, -inf }
 0xe09   : > { %v4427_v11 = vpop.f32.mrf.mxu2 }
 0xe0a   : > { %v4493_v53 = vmul.f32 0.17677669, %v4427_v11 }
 0xe0c   : > { %v4505_v0 = vsel %vm3156_vm0, %v4493_v53, -inf }
 0xe0d   : > { %4506 = vmax.xlane.f32.xlu2 %v4505_v0 }
 0xe11   : > { %v4430_v63 = vpop.f32.mrf.mxu2 }
 0xe12   : > { %v4494_v14 = vmul.f32 0.17677669, %v4430_v63 }
 0xe13   : > { %v4485_v2 = vpop.f32.mrf.mxu1 }
 0xe14   : > { %v4497_v4 = vmul.f32 0.17677669, %v4485_v2  ;;  %v4508_v16 = vsel %vm3156_vm0, %v4494_v14, -inf }
 0xe15   : > { %4509 = vmax.xlane.f32.xlu0 %v4508_v16 }
 0xe16   : > { %v4517_v50 = vsel %vm3156_vm0, %v4497_v4, -inf }
 0xe17   : > { %4518 = vmax.xlane.f32.xlu2 %v4517_v50 }
 0xe1d   : > { %4500 = vmax.xlane.f32.xlu0 %v4499_v9 }
 0xe26   : > { %v4456_v10 = vpop.f32.mrf.mxu3 }
 0xe27   : > { %v4495_v1 = vmul.f32 0.17677669, %v4456_v10 }
 0xe29   : > { %v4511_v60 = vsel %vm3156_vm0, %v4495_v1, -inf }
 0xe2a   : > { %4512 = vmax.xlane.f32.xlu1 %v4511_v60 }
 0xe2e   : > { %v4459_v12 = vpop.f32.mrf.mxu3 }
 0xe2f   : > { %v4496_v13 = vmul.f32 0.17677669, %v4459_v12 }
 0xe30   : > { %v4488_v36 = vpop.f32.mrf.mxu1 }
 0xe31   : > { %v4498_v22 = vmul.f32 0.17677669, %v4488_v36  ;;  %v4514_v15 = vsel %vm3156_vm0, %v4496_v13, -inf }
 0xe32   : > { %4515 = vmax.xlane.f32.xlu1 %v4514_v15 }
 0xe33   : > { %v4520_v41 = vsel %vm3156_vm0, %v4498_v22, -inf }
 0xe34   : > { %4521 = vmax.xlane.f32.xlu2 %v4520_v41 }
 0xe3c   : > { %4503 = vmax.xlane.f32.xlu2 %v4502_v6 }
 0xe80   : > { %v4507_v20 = vpop.xlane.xlu2 %4506 }
 0xe81   : > { %v4525_v27 = vsub.f32 %v4493_v53, %v4507_v20  ;;  %v4889_v20 = vld [vmem:[#allocation74 + $0x18] sm:$0xff] }
 0xe83   : > { %v4535_v28 = vmul.f32 1.442695, %v4525_v27  ;;  %v4888_v27 = vld [vmem:[#allocation74 + $0x10] sm:$0xff] }
 0xe85   : > { %8431 = vpow2.f32 %v4535_v28 }
 0xe88   : > { %v4510_v38 = vpop.xlane.xlu0 %4509 }
 0xe89   : > { %v4526_v26 = vsub.f32 %v4494_v14, %v4510_v38 }
 0xe8a   : > { %v4519_v30 = vpop.xlane.xlu2 %4518 }
 0xe8b   : > { %v12395_v31 = vpop.eup %8431  ;;  %v4529_v32 = vsub.f32 %v4497_v4, %v4519_v30  ;;  %v4537_v21 = vmul.f32 1.442695, %v4526_v26 }
 0xe8c   : > { %v4553_v33 = vsel %vm3156_vm0, %v12395_v31, 0.0 }
 0xe8d   : > { %v4543_v34 = vmul.f32 1.442695, %v4529_v32  ;;  %4554 = vadd.xlane.f32.xlu1 %v4553_v33 }
 0xe8f   : > { %8433 = vpow2.f32 %v4543_v34 }
 0xe90   : > { %v4501_v11 = vpop.xlane.xlu0 %4500 }
 0xe91   : > { %v4523_v53 = vsub.f32 %v12387_v7, %v4501_v11 }
 0xe93   : > { %v4531_v0 = vmul.f32 1.442695, %v4523_v53 }
 0xe95   : > { %v12399_v8 = vpop.eup %8433 }
 0xe96   : > { %v4565_v37 = vsel %vm3156_vm0, %v12399_v8, 0.0 }
 0xe97   : > { %4566 = vadd.xlane.f32.xlu2 %v4565_v37  ;;  %v4887_v37 = vld [vmem:[#allocation74 + $0x8] sm:$0xff] }
 0xe9d   : > { %v4513_v39 = vpop.xlane.xlu1 %4512 }
 0xe9e   : > { %v4527_v40 = vsub.f32 %v4495_v1, %v4513_v39 }
 0xea0   : > { %v4539_v43 = vmul.f32 1.442695, %v4527_v40 }
 0xea2   : > { %8435 = vpow2.f32 %v4539_v43 }
 0xea5   : > { %v4516_v44 = vpop.xlane.xlu1 %4515 }
 0xea6   : > { %v4528_v45 = vsub.f32 %v4496_v13, %v4516_v44 }
 0xea7   : > { %v4522_v47 = vpop.xlane.xlu2 %4521 }
 0xea8   : > { %v12403_v46 = vpop.eup %8435  ;;  %v4541_v25 = vmul.f32 1.442695, %v4528_v45  ;;  %v4530_v48 = vsub.f32 %v4498_v22, %v4522_v47 }
 0xea9   : > { %v4559_v49 = vsel %vm3156_vm0, %v12403_v46, 0.0 }
 0xeaa   : > { %8437 = vpow2.f32 %v4541_v25  ;;  %v4545_v17 = vmul.f32 1.442695, %v4530_v48  ;;  %4560 = vadd.xlane.f32.xlu0 %v4559_v49 }
 0xeac   : > { %8439 = vpow2.f32 %v4545_v17 }
 0xead   : > { %8441 = vpow2.f32 %v4537_v21 }
 0xeae   : > { %8443 = vpow2.f32 %v4531_v0 }
 0xeaf   : > { %4366 = vrot.lane.b32.xlu2 %v12336_v52, %s10661_s13  ;;  %v4504_v2 = vpop.xlane.xlu2 %4503 }
 0xeb0   : > { %v12409_v51 = vpop.eup %8437  ;;  %v4524_v4 = vsub.f32 %v4492_v19, %v4504_v2 }
 0xeb1   : > { %v4562_v23 = vsel %vm3156_vm0, %v12409_v51, 0.0 }
 0xeb2   : > { %v12413_v54 = vpop.eup %8439  ;;  %4563 = vadd.xlane.f32.xlu0 %v4562_v23  ;;  %v4533_v16 = vmul.f32 1.442695, %v4524_v4 }
 0xeb3   : > { %v4568_v42 = vsel %vm3156_vm0, %v12413_v54, 0.0  ;;  %v12417_v57 = vpop.eup %8441 }
 0xeb4   : > { %4569 = vadd.xlane.f32.xlu1 %v4568_v42  ;;  %v4556_v59 = vsel %vm3156_vm0, %v12417_v57, 0.0  ;;  %v12424_v63 = vpop.eup %8443  ;;  %8445 = vpow2.f32 %v4533_v16 }
 0xeb5   : > { %v4547_v14 = vsel %vm3156_vm0, %v12424_v63, 0.0 }
 0xeba   : > { %v12430_v5 = vpop.eup %8445 }
 0xebb   : > { %v4550_v50 = vsel %vm3156_vm0, %v12430_v5, 0.0 }
 0xebc   : > { %4557 = vadd.xlane.f32.xlu1 %v4556_v59 }
 0xec6   : > { %4369 = vrot.lane.b32.xlu0 %v12336_v52, %s10659_s1 }
 0xed5   : > { %4372 = vrot.lane.b32.xlu1 %v12336_v52, %s10660_s3 }
 0xed8   : > { %4548 = vadd.xlane.f32.xlu2 %v4547_v14 }
 0xef0   : > { %4551 = vadd.xlane.f32.xlu0 %v4550_v50 }
 0xf00   : > { %v4555_v7 = vpop.xlane.xlu1 %4554 }
 0xf01   : > { %8447 = vrcp.f32 %v4555_v7  ;;  %v4612_v60 = vand.u32 2147483648, %v4555_v7  ;;  %v4610_v13 = vand.u32 2147483647, %v4555_v7  ;;  %vm4606_vm13 = vweird.f32 %v4555_v7 }
 0xf03   : > { %v4613_v22 = vor.u32 1.1754944e-38, %v4612_v60  ;;  %vm4611_vm15 = vcmp.eq.f32.partialorder %v4610_v13, 8.507059e+37 }
 0xf07   : > { %v8448_v9 = vpop.eup %8447 }
 0xf08   : > { %v4602_v10 = vmul.f32 %v8448_v9, %v4555_v7  ;;  %vm4607_vm12 = vweird.f32 %v8448_v9 }
 0xf09   : > { %vm4608_vm14 = vmor %vm4606_vm13, %vm4607_vm12 }
 0xf0a   : > { %v4603_v1 = vsub.f32 1.0, %v4602_v10  ;;  %v12434_v52 = vpop.xlane.xlu2 %4566 }
 0xf0c   : > { %v4604_v12 = vmul.f32 %v8448_v9, %v4603_v1 }
 0xf0e   : > { %v4605_v36 = vadd.f32 %v8448_v9, %v4604_v12 }
 0xf10   : > { %v4609_v15 = vsel %vm4608_vm14, %v8448_v9, %v4605_v36 }
 0xf11   : > { %v4614_v41 = vsel %vm4611_vm15, %v4613_v22, %v4609_v15 }
 0xf12   : > { %v4367_v35 = vpop.permute.xlu2 %4366  ;;  %v4615_v19 = vmul.f32 %v12395_v31, %v4614_v41  ;;  %v4886_v31 = vld [vmem:[#allocation74] sm:$0xff]  ;;  %v4672_v41 = vand.u32 2147483648, %v12434_v52 }
 0xf13   : > { %4741 = vmatpush.msra.mxu2 %v4367_v35 }
 0xf14   : > { %7687 = vmatmul.msk.f32.vlgmr.msra.gmra.mxu2 %vm3156_vm0, %v4615_v19  ;;  %v4670_v19 = vand.u32 2147483647, %v12434_v52 }
 0xf15   : > { %4906 = vmatpush.msrb.mxu2 %v4889_v20 }
 0xf17   : > { %4907 = vmatpush.msrb.mxu2 %v4888_v27 }
 0xf19   : > { %4908 = vmatpush.msrb.mxu2 %v4887_v37 }
 0xf1b   : > { %4909 = vmatpush.msrb.mxu2 %v4886_v31 }
 0xf1d   : > { %v4561_v6 = vpop.xlane.xlu0 %4560 }
 0xf1e   : > { %8449 = vrcp.f32 %v4561_v6  ;;  %v4642_v38 = vand.u32 2147483648, %v4561_v6  ;;  %vm4636_vm3 = vweird.f32 %v4561_v6  ;;  %v4640_v49 = vand.u32 2147483647, %v4561_v6 }
 0xf20   : > { %v4643_v21 = vor.u32 1.1754944e-38, %v4642_v38  ;;  %vm4641_vm5 = vcmp.eq.f32.partialorder %v4640_v49, 8.507059e+37 }
 0xf24   : > { %v8450_v28 = vpop.eup %8449 }
 0xf25   : > { %v4632_v30 = vmul.f32 %v8450_v28, %v4561_v6  ;;  %v4564_v32 = vpop.xlane.xlu0 %4563  ;;  %vm4637_vm2 = vweird.f32 %v8450_v28 }
 0xf26   : > { %8451 = vrcp.f32 %v4564_v32  ;;  %vm4638_vm4 = vmor %vm4636_vm3, %vm4637_vm2  ;;  %v4657_v0 = vand.u32 2147483648, %v4564_v32  ;;  %vm4651_vm9 = vweird.f32 %v4564_v32  ;;  %v4655_v50 = vand.u32 2147483647, %v4564_v32 }
 0xf27   : > { %8453 = vrcp.f32 %v12434_v52  ;;  %v4633_v33 = vsub.f32 1.0, %v4632_v30  ;;  %v12439_v34 = vpop.xlane.xlu1 %4569  ;;  %vm4666_vm2 = vweird.f32 %v12434_v52 }
 0xf28   : > { %8455 = vrcp.f32 %v12439_v34  ;;  %v4658_v60 = vor.u32 1.1754944e-38, %v4657_v0  ;;  %vm4656_vm13 = vcmp.eq.f32.partialorder %v4655_v50, 8.507059e+37 }
 0xf29   : > { %v4634_v39 = vmul.f32 %v8450_v28, %v4633_v33  ;;  %v4673_v33 = vor.u32 1.1754944e-38, %v4672_v41  ;;  %v4847_v41 = vld [vmem:[#allocation61 + $0x10] sm:$0xff] }
 0xf2b   : > { %v4635_v45 = vadd.f32 %v8450_v28, %v4634_v39 }
 0xf2c   : > { %v8452_v40 = vpop.eup %8451 }
 0xf2d   : > { %v12441_v43 = vpop.eup %8453  ;;  %v4647_v44 = vmul.f32 %v8452_v40, %v4564_v32  ;;  %v4639_v26 = vsel %vm4638_vm4, %v8450_v28, %v4635_v45  ;;  %vm4652_vm8 = vweird.f32 %v8452_v40 }
 0xf2e   : > { %v4662_v48 = vmul.f32 %v12441_v43, %v12434_v52  ;;  %v12446_v42 = vpop.eup %8455  ;;  %v4644_v59 = vsel %vm4641_vm5, %v4643_v21, %v4639_v26  ;;  %vm4653_vm10 = vmor %vm4651_vm9, %vm4652_vm8  ;;  %vm4667_vm12 = vweird.f32 %v12441_v43  ;;  %vm4671_vm5 = vcmp.eq.f32.partialorder %v4670_v19, 8.507059e+37  ;;  %v4845_v19 = vld [vmem:[#allocation61] sm:$0xff] }
 0xf2f   : > { %v4648_v47 = vsub.f32 1.0, %v4647_v44  ;;  %v4558_v25 = vpop.xlane.xlu1 %4557  ;;  %v4645_v16 = vmul.f32 %v12403_v46, %v4644_v59  ;;  %v4677_v7 = vmul.f32 %v12446_v42, %v12439_v34  ;;  %vm4668_vm4 = vmor %vm4666_vm2, %vm4667_vm12  ;;  %vm4682_vm8 = vweird.f32 %v12446_v42 }
 0xf30   : > { %8457 = vrcp.f32 %v4558_v25  ;;  %v4663_v23 = vsub.f32 1.0, %v4662_v48  ;;  %v4627_v10 = vand.u32 2147483648, %v4558_v25  ;;  %v4625_v13 = vand.u32 2147483647, %v4558_v25 }
 0xf31   : > { %v4649_v17 = vmul.f32 %v8452_v40, %v4648_v47  ;;  %v4678_v46 = vsub.f32 1.0, %v4677_v7  ;;  %vm4621_vm14 = vweird.f32 %v4558_v25  ;;  %vm4681_vm9 = vweird.f32 %v12439_v34 }
 0xf32   : > { %v4664_v2 = vmul.f32 %v12441_v43, %v4663_v23  ;;  %v4628_v35 = vor.u32 1.1754944e-38, %v4627_v10  ;;  %vm4626_vm3 = vcmp.eq.f32.partialorder %v4625_v13, 8.507059e+37 }
 0xf33   : > { %v4650_v53 = vadd.f32 %v8452_v40, %v4649_v17  ;;  %v4679_v30 = vmul.f32 %v12446_v42, %v4678_v46 }
 0xf34   : > { %v4665_v36 = vadd.f32 %v12441_v43, %v4664_v2 }
 0xf35   : > { %v4654_v1 = vsel %vm4653_vm10, %v8452_v40, %v4650_v53  ;;  %v4680_v52 = vadd.f32 %v12446_v42, %v4679_v30  ;;  %vm4683_vm10 = vmor %vm4681_vm9, %vm4682_vm8 }
 0xf36   : > { %v8458_v11 = vpop.eup %8457  ;;  %v4659_v22 = vsel %vm4656_vm13, %v4658_v60, %v4654_v1  ;;  %v4669_v28 = vsel %vm4668_vm4, %v12441_v43, %v4665_v36  ;;  %v8376_v36 = vld [vmem:[#allocation68] ss:$0 sm:$0xff] }
 0xf37   : > { %v4617_v14 = vmul.f32 %v8458_v11, %v4558_v25  ;;  %vm4622_vm11 = vweird.f32 %v8458_v11  ;;  %v4660_v20 = vmul.f32 %v12409_v51, %v4659_v22  ;;  %v4674_v37 = vsel %vm4671_vm5, %v4673_v33, %v4669_v28 }
 0xf38   : > { %v4370_v4 = vpop.permute.xlu0 %4369  ;;  %vm4623_vm15 = vmor %vm4621_vm14, %vm4622_vm11  ;;  %v4687_v51 = vand.u32 2147483648, %v12439_v34  ;;  %v4675_v39 = vmul.f32 %v12399_v8, %v4674_v37  ;;  %v4684_v40 = vsel %vm4683_vm10, %v12446_v42, %v4680_v52 }
 0xf39   : > { %v4618_v9 = vsub.f32 1.0, %v4617_v14  ;;  %4770 = vmatpush.msra.mxu3 %v4370_v4 }
 0xf3a   : > { %7689 = vmatmul.msk.f32.vlgmr.msra.gmra.mxu3 %vm3156_vm0, %v4645_v16  ;;  %v4688_v43 = vor.u32 1.1754944e-38, %v4687_v51 }
 0xf3b   : > { %v4619_v12 = vmul.f32 %v8458_v11, %v4618_v9 }
 0xf3d   : > { %v4620_v15 = vadd.f32 %v8458_v11, %v4619_v12 }
 0xf3f   : > { %v4624_v6 = vsel %vm4623_vm15, %v8458_v11, %v4620_v15 }
 0xf40   : > { %v4629_v27 = vsel %vm4626_vm3, %v4628_v35, %v4624_v6  ;;  %v4846_v35 = vld [vmem:[#allocation61 + $0x8] sm:$0xff] }
 0xf41   : > { %v4630_v32 = vmul.f32 %v12417_v57, %v4629_v27  ;;  %v4685_v57 = vand.u32 2147483647, %v12439_v34 }
 0xf42   : > { %7690 = vmatmul.msk.f32.gmra.mxu3 %vm3156_vm0, %v4660_v20 }
 0xf43   : > { %7688 = vmatmul.msk.f32.gmra.mxu2 %vm3156_vm0, %v4630_v32  ;;  %vm4686_vm11 = vcmp.eq.f32.partialorder %v4685_v57, 8.507059e+37 }
 0xf44   : > { %v4689_v45 = vsel %vm4686_vm11, %v4688_v43, %v4684_v40  ;;  %v4917_v40 = vld [vmem:[#allocation71 + $0x18] sm:$0xff] }
 0xf45   : > { %v4690_v38 = vmul.f32 %v12413_v54, %v4689_v45  ;;  %v4954_v43 = vld [vmem:[#allocation76 + $0x18] sm:$0xff]  ;;  %4940 = vmatpush.msrb.mxu3 %v4917_v40  ;;  %v4953_v45 = vld [vmem:[#allocation76 + $0x10] sm:$0xff] }
 0xf47   : > { %v4373_v31 = vpop.permute.xlu1 %4372 }
 0xf48   : > { %4799 = vmatpush.msra.mxu1 %v4373_v31 }
 0xf49   : > { %7691 = vmatmul.msk.f32.vlgmr.msra.gmra.mxu1 %vm3156_vm0, %v4675_v39 }
 0xf4a   : > { %4971 = vmatpush.msrb.mxu1 %v4954_v43 }
 0xf4b   : > { %7695 = vmatmul.msk.f32.vlgmr.msrb.gmra.mxu2 %vm3121_vm1, %v12323_v24  ;;  %v4549_v44 = vpop.xlane.xlu2 %4548 }
 0xf4c   : > { %8459 = vrcp.f32 %v4549_v44  ;;  %v4582_v25 = vand.u32 2147483648, %v4549_v44  ;;  %v4580_v49 = vand.u32 2147483647, %v4549_v44  ;;  %vm4576_vm13 = vweird.f32 %v4549_v44  ;;  %4972 = vmatpush.msrb.mxu1 %v4953_v45 }
 0xf4e   : > { %v4583_v17 = vor.u32 1.1754944e-38, %v4582_v25  ;;  %vm4581_vm15 = vcmp.eq.f32.partialorder %v4580_v49, 8.507059e+37 }
 0xf51   : > { %7692 = vmatmul.msk.f32.gmra.mxu1 %vm3156_vm0, %v4690_v38  ;;  %v4915_v38 = vld [vmem:[#allocation71 + $0x8] sm:$0xff] }
 0xf52   : > { %v8460_v8 = vpop.eup %8459 }
 0xf53   : > { %v4572_v34 = vmul.f32 %v8460_v8, %v4549_v44  ;;  %vm4577_vm12 = vweird.f32 %v8460_v8  ;;  %v4916_v44 = vld [vmem:[#allocation71 + $0x10] sm:$0xff] }
 0xf54   : > { %vm4578_vm14 = vmor %vm4576_vm13, %vm4577_vm12  ;;  %4941 = vmatpush.msrb.mxu3 %v4916_v44 }
 0xf55   : > { %v4573_v47 = vsub.f32 1.0, %v4572_v34  ;;  %v4951_v34 = vld [vmem:[#allocation76] sm:$0xff] }
 0xf56   : > { %4942 = vmatpush.msrb.mxu3 %v4915_v38 }
 0xf57   : > { %v4574_v48 = vmul.f32 %v8460_v8, %v4573_v47  ;;  %v8377_v47 = vld [vmem:[#allocation55] ss:$0 sm:$0xff] }
 0xf59   : > { %v4575_v26 = vadd.f32 %v8460_v8, %v4574_v48 }
 0xf5b   : > { %v4579_v24 = vsel %vm4578_vm14, %v8460_v8, %v4575_v26  ;;  %v4914_v8 = vld [vmem:[#allocation71] sm:$0xff] }
 0xf5c   : > { %v4584_v21 = vsel %vm4581_vm15, %v4583_v17, %v4579_v24  ;;  %4943 = vmatpush.msrb.mxu3 %v4914_v8 }
 0xf5d   : > { %v4585_v23 = vmul.f32 %v12424_v63, %v4584_v21 }
 0xf5f   : > { %7685 = vmatmul.msk.f32.vlgmr.msrb.gmra.mxu0 %vm3156_vm0, %v4585_v23 }
 0xf63   : > { %v4552_v54 = vpop.xlane.xlu0 %4551 }
 0xf64   : > { %8461 = vrcp.f32 %v4552_v54  ;;  %v4597_v53 = vand.u32 2147483648, %v4552_v54  ;;  %v4595_v14 = vand.u32 2147483647, %v4552_v54  ;;  %vm4591_vm3 = vweird.f32 %v4552_v54 }
 0xf66   : > { %v4598_v4 = vor.u32 1.1754944e-38, %v4597_v53  ;;  %vm4596_vm5 = vcmp.eq.f32.partialorder %v4595_v14, 8.507059e+37 }
 0xf6a   : > { %v8462_v42 = vpop.eup %8461 }
 0xf6b   : > { %v4587_v59 = vmul.f32 %v8462_v42, %v4552_v54  ;;  %vm4592_vm2 = vweird.f32 %v8462_v42  ;;  %v8379_v54 = vld [vmem:[#allocation65] ss:$0 sm:$0xff] }
 0xf6c   : > { %vm4593_vm4 = vmor %vm4591_vm3, %vm4592_vm2 }
 0xf6d   : > { %v4588_v11 = vsub.f32 1.0, %v4587_v59 }
 0xf6f   : > { %v4589_v0 = vmul.f32 %v8462_v42, %v4588_v11 }
 0xf71   : > { %v4590_v2 = vadd.f32 %v8462_v42, %v4589_v0 }
 0xf73   : > { %v4594_v16 = vsel %vm4593_vm4, %v8462_v42, %v4590_v2 }
 0xf74   : > { %v4599_v50 = vsel %vm4596_vm5, %v4598_v4, %v4594_v16 }
 0xf75   : > { %v4600_v63 = vmul.f32 %v12430_v5, %v4599_v50 }
 0xf77   : > { %7686 = vmatmul.msk.f32.gmra.mxu0 %vm3156_vm0, %v4600_v63 }
 0xf97   : > { %v4743_v7 = vpop.f32.mrf.mxu2 }
 0xf98   : > { %v4809_v12 = vadd.f32 %v4743_v7, %v12357_v55 }
 0xfbd   : > { %v4772_v5 = vpop.f32.mrf.mxu3 }
 0xfbe   : > { %v4811_v22 = vadd.f32 %v4772_v5, %v12372_v3  ;;  %v4848_v3 = vld [vmem:[#allocation61 + $0x18] sm:$0xff] }
 0xfbf   : > { %4871 = vmatpush.msra.mxu0 %v4848_v3 }
 0xfc1   : > { %4872 = vmatpush.msra.mxu0 %v4847_v41 }
 0xfc3   : > { %4873 = vmatpush.msra.mxu0 %v4846_v35 }
 0xfc5   : > { %4874 = vmatpush.msra.mxu0 %v4845_v19 }
 0xfc6   : > { %v4801_v9 = vpop.f32.mrf.mxu1  ;;  %v4746_v1 = vpop.f32.mrf.mxu2 }
 0xfc7   : > { %v4813_v10 = vadd.f32 %v4801_v9, %v12367_v58  ;;  %v4810_v55 = vadd.f32 %v4746_v1, %v12362_v56  ;;  %v4775_v58 = vpop.f32.mrf.mxu3 }
 0xfc9   : > { %4833 = vrot.lane.b32.xlu1 %v4813_v10, %s10663_s23  ;;  %v8378_v10 = vld [vmem:[#allocation70] ss:$0 sm:$0xff] }
 0xfce   : > { %v4804_v60 = vpop.f32.mrf.mxu1  ;;  %v4911_v46 = vpop.f32.mrf.mxu2 }
 0xfcf   : > { %v4814_v13 = vadd.f32 %v4804_v60, %v12380_v62  ;;  %v12487_v15 = vadd.f32 %v8376_v36, %v4911_v46  ;;  %v4812_v62 = vadd.f32 %v4775_v58, %v12376_v61 }
 0xfd1   : > { %4835 = vrot.lane.b32.xlu2 %v4814_v13, %s10663_s23  ;;  %4817 = vrot.lane.b32.xlu1 %v4809_v12, %s10662_s7 }
 0xfd9   : > { %4825 = vrot.lane.b32.xlu1 %v4811_v22, %s10664_s10  ;;  %4989 = vrot.lane.b32.xlu2 %v12487_v15, %s10660_s3 }
 0xfdc   : > { %v4714_v20 = vpop.f32.mrf.mxu0 }
 0xfdd   : > { %v4807_v27 = vadd.f32 %v4714_v20, %v12329_v29 }
 0xfe1   : > { %4983 = vrot.lane.b32.xlu2 %v12487_v15, %s10661_s13  ;;  %4819 = vrot.lane.b32.xlu1 %v4810_v55, %s10662_s7 }
 0xfe9   : > { %4827 = vrot.lane.b32.xlu1 %v4812_v62, %s10664_s10 }
 0xff4   : > { %v4717_v37 = vpop.f32.mrf.mxu0 }
 0xff5   : > { %v4808_v52 = vadd.f32 %v4717_v37, %v12342_v18  ;;  %v4952_v18 = vld [vmem:[#allocation76 + $0x8] sm:$0xff] }
 0xff6   : > { %4973 = vmatpush.msrb.mxu1 %v4952_v18 }
 0xff8   : > { %4974 = vmatpush.msrb.mxu1 %v4951_v34 }
0x102b   : > { %v4836_v39 = vpop.permute.xlu2 %4835 }
0x1033   : > { %v12532_v63 = vpop.permute.xlu2 %4989 }
0x103b   : > { %v4834_v6 = vpop.permute.xlu1 %4833  ;;  %v12538_v12 = vpop.permute.xlu2 %4983 }
0x1043   : > { %v4818_v56 = vpop.permute.xlu1 %4817 }
0x1044   : > { %v4839_v28 = vsel %vm3156_vm0, %v4807_v27, %v4818_v56 }
0x104b   : > { %v4826_v30 = vpop.permute.xlu1 %4825 }
0x104c   : > { %v4841_v61 = vsel %vm3708_vm6, %v4839_v28, %v4826_v30 }
0x104d   : > { %v4843_v32 = vsel %vm3711_vm7, %v4841_v61, %v4834_v6 }
0x104e   : > { %7693 = vmatmul.msk.f32.vlgmr.msra.gmra.mxu0 %vm3121_vm1, %v4843_v32 }
0x1053   : > { %v4820_v33 = vpop.permute.xlu1 %4819 }
0x1054   : > { %v4840_v51 = vsel %vm3156_vm0, %v4808_v52, %v4820_v33 }
0x105b   : > { %v4828_v31 = vpop.permute.xlu1 %4827 }
0x105c   : > { %v4842_v57 = vsel %vm3708_vm6, %v4840_v51, %v4828_v31 }
0x105d   : > { %v4844_v29 = vsel %vm3711_vm7, %v4842_v57, %v4836_v39 }
0x105e   : > { %7694 = vmatmul.msk.f32.gmra.mxu0 %vm3121_vm1, %v4844_v29 }
0x10cb   : > { %v4876_v25 = vpop.f32.mrf.mxu0 }
0x10cc   : > { %v4877_v48 = vadd.f32 %v8377_v47, %v4876_v25 }
0x10ce   : > { %v4882_v49 = vmax.f32 %v4877_v48, 0.0 }
0x10d0   : > { %v4884_v26 = vadd.f32 %v4882_v49, %v4843_v32 }
0x10d2   : > { %7696 = vmatmul.msk.f32.vlgmr.msrb.gmra.mxu3 %vm3121_vm1, %v4884_v26  ;;  %7698 = vmatmul.msk.f32.vlgmr.msrb.gmra.mxu1 %vm3121_vm1, %v4884_v26 }
0x10db   : > { %v4879_v17 = vpop.f32.mrf.mxu0 }
0x10dc   : > { %v4880_v24 = vadd.f32 %v8377_v47, %v4879_v17 }
0x10de   : > { %v4883_v21 = vmax.f32 %v4880_v24, 0.0 }
0x10e0   : > { %v4885_v23 = vadd.f32 %v4883_v21, %v4844_v29 }
0x10e2   : > { %7697 = vmatmul.msk.f32.gmra.mxu3 %vm3121_vm1, %v4885_v23  ;;  %7699 = vmatmul.msk.f32.gmra.mxu1 %vm3121_vm1, %v4885_v23 }
0x114f   : > { %v4976_v50 = vpop.f32.mrf.mxu1 }
0x1150   : > { %v4977_v13 = vadd.f32 %v8378_v10, %v4976_v50 }
0x1155   : > { %v4945_v42 = vpop.f32.mrf.mxu3 }
0x1156   : > { %v4946_v59 = vadd.f32 %v8379_v54, %v4945_v42 }
0x1158   : > { %4998 = vrot.lane.b32.xlu1 %v4946_v59, %s10659_s1 }
0x115f   : > { %v4979_v9 = vpop.f32.mrf.mxu1 }
0x1160   : > { %v4980_v1 = vadd.f32 %v8378_v10, %v4979_v9 }
0x1162   : > { %v8348_v40 = vpack.i.bf16 %v4977_v13, %v4980_v1 }
0x1165   : > { %v4948_v11 = vpop.f32.mrf.mxu3 }
0x1166   : > { %v4949_v53 = vadd.f32 %v8379_v54, %v4948_v11 }
0x1168   : > { %5004 = vrot.lane.b32.xlu1 %v4949_v53, %s10660_s3  ;;  %5000 = vrot.lane.b32.xlu0 %v4949_v53, %s10659_s1 }
0x1169   : > { %7700 = vmatpush.xpose.msk.msra.mxu2 %vm3156_vm0, %v4949_v53 }
0x116d   : > { %7701 = vmatpush.xpose.msk.msra.mxu2 %vm3156_vm0, %v4946_v59 }
0x1170   : > { %7702 = vmatmul.msk.f32.vlgmr.msra.gmra.mxu2 %vm3156_vm0, %v12487_v15  ;;  %4986 = vrot.lane.b32.xlu1 %v12487_v15, %s10659_s1 }
0x1171   : > { %5002 = vrot.lane.b32.xlu0 %v4946_v59, %s10660_s3 }
0x1178   : > { %4994 = vrot.lane.b32.xlu1 %v4946_v59, %s10661_s13 }
0x1179   : > { %4996 = vrot.lane.b32.xlu0 %v4949_v53, %s10661_s13 }
0x11ca   : > { %v4999_v0 = vpop.permute.xlu1 %4998 }
0x11da   : > { %v5005_v14 = vpop.permute.xlu1 %5004  ;;  %v5001_v2 = vpop.permute.xlu0 %5000 }
0x11db   : > { %7706 = vmatpush.xpose.msk.msrb.mxu2 %vm3156_vm0, %v5001_v2  ;;  %7709 = vmatpush.xpose.msk.msra.mxu3 %vm3156_vm0, %v5005_v14 }
0x11df   : > { %7707 = vmatpush.xpose.msk.msrb.mxu2 %vm3156_vm0, %v4999_v0 }
0x11e2   : > { %v12527_v4 = vpop.permute.xlu1 %4986 }
0x11e3   : > { %v5003_v16 = vpop.permute.xlu0 %5002  ;;  %7708 = vmatmul.msk.f32.vlgmr.msrb.gmra.mxu2 %vm3156_vm0, %v12527_v4 }
0x11e4   : > { %7710 = vmatpush.xpose.msk.msra.mxu3 %vm3156_vm0, %v5003_v16 }
0x11e7   : > { %7711 = vmatmul.msk.f32.vlgmr.msra.gmra.mxu3 %vm3156_vm0, %v12532_v63 }
0x11ea   : > { %v4995_v60 = vpop.permute.xlu1 %4994 }
0x11eb   : > { %v4997_v7 = vpop.permute.xlu0 %4996 }
0x11ec   : > { %7703 = vmatpush.xpose.msk.msrb.mxu0 %vm3156_vm0, %v4997_v7 }
0x11f0   : > { %7704 = vmatpush.xpose.msk.msrb.mxu0 %vm3156_vm0, %v4995_v60 }
0x11f3   : > { %7705 = vmatmul.msk.f32.vlgmr.msrb.gmra.mxu0 %vm3156_vm0, %v12538_v12  ;;  %v5049_v36 = vpop.f32.mrf.mxu2 }
0x11f4   : > { %5247 = vmatpush.msra.mxu0 %v4980_v1  ;;  %v5130_v19 = vmul.f32 0.17677669, %v5049_v36 }
0x11f6   : > { %5248 = vmatpush.msra.mxu0 %v4977_v13  ;;  %v5134_v6 = vsel %vm3708_vm6, %v5130_v19, -inf }
0x1266   : > { %v5101_v5 = vpop.f32.mrf.mxu2 }
0x1267   : > { %v5132_v46 = vmul.f32 0.17677669, %v5101_v5 }
0x1269   : > { %v5140_v22 = vsel %vm3708_vm6, %v5132_v46, -inf }
0x126a   : > { %v5127_v55 = vpop.f32.mrf.mxu3  ;;  %5141 = vmax.xlane.f32.xlu0 %v5140_v22 }
0x126b   : > { %v5133_v58 = vmul.f32 0.17677669, %v5127_v55 }
0x126d   : > { %v5143_v62 = vsel %vm3708_vm6, %v5133_v58, -inf }
0x126e   : > { %5144 = vmax.xlane.f32.xlu1 %v5143_v62 }
0x1270   : > { %v5075_v3 = vpop.f32.mrf.mxu0 }
0x1271   : > { %v5131_v41 = vmul.f32 0.17677669, %v5075_v3 }
0x1273   : > { %v5137_v35 = vsel %vm3708_vm6, %v5131_v41, -inf }
0x1274   : > { %5138 = vmax.xlane.f32.xlu2 %v5137_v35 }
0x127c   : > { %5135 = vmax.xlane.f32.xlu2 %v5134_v6 }
0x12dd   : > { %v5142_v56 = vpop.xlane.xlu0 %5141 }
0x12de   : > { %v5148_v20 = vsub.f32 %v5132_v46, %v5142_v56 }
0x12e0   : > { %v5154_v27 = vmul.f32 1.442695, %v5148_v20 }
0x12e1   : > { %v5145_v28 = vpop.xlane.xlu1 %5144 }
0x12e2   : > { %8463 = vpow2.f32 %v5154_v27  ;;  %v5149_v30 = vsub.f32 %v5133_v58, %v5145_v28 }
0x12e4   : > { %v5156_v61 = vmul.f32 1.442695, %v5149_v30 }
0x12e6   : > { %8465 = vpow2.f32 %v5156_v61 }
0x12e7   : > { %v5139_v32 = vpop.xlane.xlu2 %5138 }
0x12e8   : > { %v12546_v33 = vpop.eup %8463  ;;  %v5147_v37 = vsub.f32 %v5131_v41, %v5139_v32 }
0x12e9   : > { %v5164_v52 = vsel %vm3708_vm6, %v12546_v33, 0.0 }
0x12ea   : > { %v5152_v51 = vmul.f32 1.442695, %v5147_v37  ;;  %5165 = vadd.xlane.f32.xlu0 %v5164_v52 }
0x12ec   : > { %v12550_v31 = vpop.eup %8465  ;;  %8467 = vpow2.f32 %v5152_v51 }
0x12ed   : > { %v5167_v39 = vsel %vm3708_vm6, %v12550_v31, 0.0 }
0x12ee   : > { %5168 = vadd.xlane.f32.xlu1 %v5167_v39 }
0x12ef   : > { %v5136_v43 = vpop.xlane.xlu2 %5135 }
0x12f0   : > { %v5146_v44 = vsub.f32 %v5130_v19, %v5136_v43 }
0x12f2   : > { %v12554_v57 = vpop.eup %8467  ;;  %v5150_v45 = vmul.f32 1.442695, %v5146_v44 }
0x12f3   : > { %v5161_v29 = vsel %vm3708_vm6, %v12554_v57, 0.0 }
0x12f4   : > { %5162 = vadd.xlane.f32.xlu2 %v5161_v29  ;;  %8469 = vpow2.f32 %v5150_v45 }
0x12fa   : > { %v12561_v38 = vpop.eup %8469 }
0x12fb   : > { %v5158_v18 = vsel %vm3708_vm6, %v12561_v38, 0.0 }
0x12fe   : > { %8349 = vrot.lane.b32.xlu0 %v8348_v40, %s10659_s1 }
0x1307   : > { %8354 = vrot.lane.b32.xlu1 %v8348_v40, %s10660_s3 }
0x130c   : > { %8359 = vrot.lane.b32.xlu2 %v8348_v40, %s10661_s13 }
0x1328   : > { %5159 = vadd.xlane.f32.xlu0 %v5158_v18 }
0x135d   : > { %v5166_v8 = vpop.xlane.xlu0 %5165 }
0x135e   : > { %8471 = vrcp.f32 %v5166_v8  ;;  %v5211_v23 = vand.u32 2147483648, %v5166_v8  ;;  %vm5205_vm9 = vweird.f32 %v5166_v8  ;;  %v5209_v42 = vand.u32 2147483647, %v5166_v8 }
0x1360   : > { %v5212_v53 = vor.u32 1.1754944e-38, %v5211_v23  ;;  %vm5210_vm11 = vcmp.eq.f32.partialorder %v5209_v42, 8.507059e+37 }
0x1361   : > { %v5169_v34 = vpop.xlane.xlu1 %5168 }
0x1362   : > { %8473 = vrcp.f32 %v5169_v34  ;;  %vm5220_vm14 = vweird.f32 %v5169_v34  ;;  %v5226_v22 = vand.u32 2147483648, %v5169_v34  ;;  %v5224_v62 = vand.u32 2147483647, %v5169_v34 }
0x1364   : > { %v8472_v47 = vpop.eup %8471  ;;  %v5227_v6 = vor.u32 1.1754944e-38, %v5226_v22  ;;  %vm5225_vm5 = vcmp.eq.f32.partialorder %v5224_v62, 8.507059e+37  ;;  %v8381_v22 = vld [vmem:[#allocation91] ss:$0 sm:$0xff] }
0x1365   : > { %v5201_v25 = vmul.f32 %v8472_v47, %v5166_v8  ;;  %vm5206_vm8 = vweird.f32 %v8472_v47 }
0x1366   : > { %vm5207_vm10 = vmor %vm5205_vm9, %vm5206_vm8 }
0x1367   : > { %v5202_v48 = vsub.f32 1.0, %v5201_v25  ;;  %v5163_v49 = vpop.xlane.xlu2 %5162 }
0x1368   : > { %v8474_v26 = vpop.eup %8473  ;;  %8475 = vrcp.f32 %v5163_v49  ;;  %v5194_v1 = vand.u32 2147483647, %v5163_v49  ;;  %v5196_v60 = vand.u32 2147483648, %v5163_v49  ;;  %vm5190_vm2 = vweird.f32 %v5163_v49 }
0x1369   : > { %v5203_v17 = vmul.f32 %v8472_v47, %v5202_v48  ;;  %v5216_v24 = vmul.f32 %v8474_v26, %v5169_v34  ;;  %vm5221_vm12 = vweird.f32 %v8474_v26 }
0x136a   : > { %vm12566_vm15 = vmor %vm5220_vm14, %vm5221_vm12  ;;  %v5197_v41 = vor.u32 1.1754944e-38, %v5196_v60  ;;  %vm5195_vm4 = vcmp.eq.f32.partialorder %v5194_v1, 8.507059e+37  ;;  %v5374_v1 = vld [vmem:[#allocation89] sm:$0x1]  ;;  %v8380_v60 = vld [vmem:[#allocation67] ss:$0 sm:$0xff] }
0x136b   : > { %v5204_v21 = vadd.f32 %v8472_v47, %v5203_v17  ;;  %v5217_v54 = vsub.f32 1.0, %v5216_v24  ;;  %v5341_v17 = vld [vmem:[#allocation73] sm:$0xff]  ;;  %vm5589_vm12 = vcmask 57344  }
0x136d   : > { %v5208_v11 = vsel %vm5207_vm10, %v8472_v47, %v5204_v21  ;;  %v5218_v0 = vmul.f32 %v8474_v26, %v5217_v54 }
0x136e   : > { %v8476_v59 = vpop.eup %8475  ;;  %v5213_v7 = vsel %vm5210_vm11, %v5212_v53, %v5208_v11  ;;  %v5437_v11 = vld [vmem:[#allocation100 + $0x18] sm:$0xff]  ;;  %v5405_v53 = vld [vmem:[#allocation97 + $0x10] sm:$0xff] }
0x136f   : > { %v5186_v14 = vmul.f32 %v8476_v59, %v5163_v49  ;;  %v8360_v2 = vpop.permute.xlu2 %8359  ;;  %v5219_v36 = vadd.f32 %v8474_v26, %v5218_v0  ;;  %vm5191_vm13 = vweird.f32 %v8476_v59  ;;  %v5214_v55 = vmul.f32 %v12546_v33, %v5213_v7  ;;  %v5344_v49 = vld [vmem:[#allocation73 + $0x18] sm:$0xff]  ;;  %v5436_v0 = vld [vmem:[#allocation100 + $0x10] sm:$0xff] }
0x1370   : > { %v8361_v16 = vunpack.i.l.bf16 %v8360_v2  ;;  %v8350_v50 = vpop.permute.xlu0 %8349  ;;  %v8362_v13 = vunpack.i.h.bf16 %v8360_v2  ;;  %vm5192_vm3 = vmor %vm5190_vm2, %vm5191_vm13  ;;  %5364 = vmatpush.msrb.mxu0 %v5344_v49  ;;  %v5403_v2 = vld [vmem:[#allocation97] sm:$0xff]  ;;  %v5377_v7 = vld [vmem:[#allocation98 + $0x10] sm:$0xff] }
0x1371   : > { %v5187_v9 = vsub.f32 1.0, %v5186_v14  ;;  %v8351_v10 = vunpack.i.l.bf16 %v8350_v50  ;;  %v8352_v46 = vunpack.i.h.bf16 %v8350_v50  ;;  %v5223_v35 = vsel %vm12566_vm15, %v8474_v26, %v5219_v36  ;;  %v5343_v26 = vld [vmem:[#allocation73 + $0x10] sm:$0xff]  ;;  %v5404_v14 = vld [vmem:[#allocation97 + $0x8] sm:$0xff] }
0x1372   : > { %5270 = vmatpush.msra.mxu1 %v8361_v16  ;;  %v5228_v28 = vsel %vm5225_vm5, %v5227_v6, %v5223_v35  ;;  %5365 = vmatpush.msrb.mxu0 %v5343_v26  ;;  %v5434_v16 = vld [vmem:[#allocation100] sm:$0xff]  ;;  %v5378_v50 = vld [vmem:[#allocation98 + $0x18] sm:$0xff] }
0x1373   : > { %v5188_v5 = vmul.f32 %v8476_v59, %v5187_v9  ;;  %5293 = vmatpush.msra.mxu2 %v8351_v10  ;;  %v5229_v32 = vmul.f32 %v12550_v31, %v5228_v28  ;;  %v5376_v9 = vld [vmem:[#allocation98 + $0x8] sm:$0xff]  ;;  %v5375_v10 = vld [vmem:[#allocation98] sm:$0xff] }
0x1374   : > { %5271 = vmatpush.msra.mxu1 %v8362_v13 }
0x1375   : > { %v5189_v3 = vadd.f32 %v8476_v59, %v5188_v5  ;;  %5294 = vmatpush.msra.mxu2 %v8352_v46 }
0x1376   : > { %7714 = vmatmul.msk.f32.vlgmr.msra.gmra.mxu2 %vm3708_vm6, %v5214_v55  ;;  %5395 = vmatpush.msrb.mxu1 %v5378_v50  ;;  %v8382_v55 = vld [vmem:[#allocation95] ss:$0 sm:$0xff] }
0x1377   : > { %v5193_v19 = vsel %vm5192_vm3, %v8476_v59, %v5189_v3  ;;  %v5406_v59 = vld [vmem:[#allocation97 + $0x18] sm:$0xff] }
0x1378   : > { %v5198_v56 = vsel %vm5195_vm4, %v5197_v41, %v5193_v19  ;;  %5426 = vmatpush.msrb.mxu2 %v5406_v59  ;;  %5396 = vmatpush.msrb.mxu1 %v5377_v7  ;;  %v5379_v41 = vld [vmem:[#allocation94] sm:$0x1] }
0x1379   : > { %v8355_v20 = vpop.permute.xlu1 %8354  ;;  %v5199_v27 = vmul.f32 %v12554_v57, %v5198_v56 }
0x137a   : > { %v8356_v30 = vunpack.i.l.bf16 %v8355_v20  ;;  %v8357_v61 = vunpack.i.h.bf16 %v8355_v20  ;;  %5427 = vmatpush.msrb.mxu2 %v5405_v53  ;;  %5397 = vmatpush.msrb.mxu1 %v5376_v9 }
0x137b   : > { %7713 = vmatmul.msk.f32.vlgmr.msra.gmra.mxu1 %vm3708_vm6, %v5199_v27 }
0x137c   : > { %5316 = vmatpush.msrb.mxu3 %v8356_v30  ;;  %5428 = vmatpush.msrb.mxu2 %v5404_v14 }
0x137d   : > { %5398 = vmatpush.msrb.mxu1 %v5375_v10 }
0x137e   : > { %5317 = vmatpush.msrb.mxu3 %v8357_v61  ;;  %5429 = vmatpush.msrb.mxu2 %v5403_v2 }
0x137f   : > { %7715 = vmatmul.msk.f32.vlgmr.msrb.gmra.mxu3 %vm3708_vm6, %v5229_v32 }
0x1380   : > { %5454 = vmatpush.msra.mxu3 %v5437_v11 }
0x1382   : > { %5455 = vmatpush.msra.mxu3 %v5436_v0 }
0x1383   : > { %7717 = vmatmul.msk.f32.vlgmr.msrb.gmra.mxu1 %vm3121_vm1, %v5374_v1 }
0x139b   : > { %v5160_v33 = vpop.xlane.xlu0 %5159 }
0x139c   : > { %8477 = vrcp.f32 %v5160_v33  ;;  %v5181_v39 = vand.u32 2147483648, %v5160_v33  ;;  %v5179_v57 = vand.u32 2147483647, %v5160_v33  ;;  %vm5175_vm9 = vweird.f32 %v5160_v33 }
0x139e   : > { %v5182_v43 = vor.u32 1.1754944e-38, %v5181_v39  ;;  %vm5180_vm11 = vcmp.eq.f32.partialorder %v5179_v57, 8.507059e+37 }
0x13a2   : > { %v8478_v37 = vpop.eup %8477 }
0x13a3   : > { %v5171_v52 = vmul.f32 %v8478_v37, %v5160_v33  ;;  %vm5176_vm8 = vweird.f32 %v8478_v37 }
0x13a4   : > { %vm5177_vm10 = vmor %vm5175_vm9, %vm5176_vm8 }
0x13a5   : > { %v5172_v51 = vsub.f32 1.0, %v5171_v52 }
0x13a7   : > { %v5173_v29 = vmul.f32 %v8478_v37, %v5172_v51 }
0x13a9   : > { %v5174_v40 = vadd.f32 %v8478_v37, %v5173_v29 }
0x13ab   : > { %v5178_v44 = vsel %vm5177_vm10, %v8478_v37, %v5174_v40 }
0x13ac   : > { %v5183_v45 = vsel %vm5180_vm11, %v5182_v43, %v5178_v44 }
0x13ad   : > { %v5184_v31 = vmul.f32 %v12561_v38, %v5183_v45  ;;  %v5342_v38 = vld [vmem:[#allocation73 + $0x8] sm:$0xff] }
0x13ae   : > { %5366 = vmatpush.msrb.mxu0 %v5342_v38 }
0x13af   : > { %7712 = vmatmul.msk.f32.vlgmr.msra.gmra.mxu0 %vm3708_vm6, %v5184_v31 }
0x13b0   : > { %5367 = vmatpush.msrb.mxu0 %v5341_v17 }
0x13f8   : > { %v5273_v18 = vpop.f32.mrf.mxu1 }
0x13f9   : > { %v5323_v8 = vadd.f32 %v5273_v18, %v12538_v12  ;;  %v5296_v34 = vpop.f32.mrf.mxu2 }
0x13fa   : > { %v5324_v47 = vadd.f32 %v5296_v34, %v12527_v4 }
0x13fb   : > { %5327 = vrot.lane.b32.xlu1 %v5323_v8, %s10662_s7 }
0x13fc   : > { %5331 = vrot.lane.b32.xlu2 %v5324_v47, %s10664_s10 }
0x1400   : > { %v5400_v58 = vpop.f32.mrf.mxu1 }
0x1401   : > { %v12597_v6 = vadd.f32 %v5400_v58, %v5379_v41 }
0x1402   : > { %v5319_v25 = vpop.f32.mrf.mxu3 }
0x1403   : > { %v5325_v48 = vadd.f32 %v5319_v25, %v12532_v63 }
0x1405   : > { %5335 = vrot.lane.b32.xlu1 %v5325_v48, %s10663_s23 }
0x142c   : > { %v5250_v12 = vpop.f32.mrf.mxu0 }
0x142d   : > { %v5322_v4 = vadd.f32 %v5250_v12, %v12487_v15  ;;  %v5435_v15 = vld [vmem:[#allocation100 + $0x8] sm:$0xff] }
0x142e   : > { %5456 = vmatpush.msra.mxu3 %v5435_v15 }
0x1430   : > { %5457 = vmatpush.msra.mxu3 %v5434_v16 }
0x1456   : > { %v5332_v23 = vpop.permute.xlu2 %5331 }
0x146d   : > { %v5328_v24 = vpop.permute.xlu1 %5327 }
0x146e   : > { %v5338_v21 = vsel %vm3156_vm0, %v5322_v4, %v5328_v24 }
0x146f   : > { %v5339_v54 = vsel %vm3708_vm6, %v5338_v21, %v5332_v23 }
0x1477   : > { %v5336_v63 = vpop.permute.xlu1 %5335 }
0x1478   : > { %v5340_v42 = vsel %vm3711_vm7, %v5339_v54, %v5336_v63 }
0x1479   : > { %7716 = vmatmul.msk.f32.vlgmr.msrb.gmra.mxu0 %vm3121_vm1, %v5340_v42 }
0x14f6   : > { %v5369_v13 = vpop.f32.mrf.mxu0 }
0x14f7   : > { %v5370_v36 = vadd.f32 %v8380_v60, %v5369_v13 }
0x14f9   : > { %v5372_v5 = vmax.f32 %v5370_v36, 0.0 }
0x14fb   : > { %v5373_v46 = vadd.f32 %v5372_v5, %v5340_v42 }
0x14fd   : > { %7718 = vmatmul.msk.f32.vlgmr.msrb.gmra.mxu2 %vm3121_vm1, %v5373_v46  ;;  %7719 = vmatmul.msk.f32.vlgmr.msra.gmra.mxu3 %vm3121_vm1, %v5373_v46 }
0x1580   : > { %v5431_v62 = vpop.f32.mrf.mxu2  ;;  %v5459_v3 = vpop.f32.mrf.mxu3 }
0x1581   : > { %v5432_v35 = vadd.f32 %v8381_v22, %v5431_v62  ;;  %v12593_v19 = vadd.f32 %v8382_v55, %v5459_v3 }
0x1583   : > { %5477 = vrot.lane.b32.xlu1 %v5432_v35, %s10660_s3  ;;  %5475 = vrot.lane.b32.xlu2 %v5432_v35, %s10659_s1 }
0x1584   : > { %7720 = vmatpush.xpose.msk.msra.mxu0 %vm3156_vm0, %v5432_v35 }
0x1587   : > { %7721 = vmatmul.msk.f32.vlgmr.msra.gmra.mxu0 %vm3156_vm0, %v12597_v6 }
0x1588   : > { %5704 = vmatpush.msrb.mxu0 %v12593_v19 }
0x158b   : > { %5469 = vrot.lane.b32.xlu1 %v12597_v6, %s10660_s3  ;;  %5466 = vrot.lane.b32.xlu2 %v12597_v6, %s10659_s1 }
0x1593   : > { %5463 = vrot.lane.b32.xlu1 %v12597_v6, %s10661_s13  ;;  %5473 = vrot.lane.b32.xlu2 %v5432_v35, %s10661_s13 }
0x15dd   : > { %v5476_v56 = vpop.permute.xlu2 %5475 }
0x15de   : > { %7724 = vmatpush.xpose.msk.msra.mxu2 %vm3156_vm0, %v5476_v56 }
0x15e5   : > { %v12611_v20 = vpop.permute.xlu2 %5466 }
0x15e6   : > { %7725 = vmatmul.msk.f32.vlgmr.msra.gmra.mxu2 %vm3156_vm0, %v12611_v20 }
0x15ed   : > { %v5474_v27 = vpop.permute.xlu2 %5473 }
0x15ee   : > { %7722 = vmatpush.xpose.msk.msra.mxu1 %vm3156_vm0, %v5474_v27 }
0x15f5   : > { %v5478_v28 = vpop.permute.xlu1 %5477 }
0x15f6   : > { %7726 = vmatpush.xpose.msk.msrb.mxu3 %vm3156_vm0, %v5478_v28 }
0x15fd   : > { %v12617_v30 = vpop.permute.xlu1 %5469 }
0x15fe   : > { %7727 = vmatmul.msk.f32.vlgmr.msrb.gmra.mxu3 %vm3156_vm0, %v12617_v30 }
0x1604   : > { %v5510_v52 = vpop.f32.mrf.mxu0 }
0x1605   : > { %v12621_v61 = vpop.permute.xlu1 %5463  ;;  %v5585_v51 = vmul.f32 0.17677669, %v5510_v52 }
0x1606   : > { %7723 = vmatmul.msk.f32.vlgmr.msra.gmra.mxu1 %vm3156_vm0, %v12621_v61 }
0x1607   : > { %v5590_v39 = vsel %vm5589_vm12, %v5585_v51, -inf }
0x1669   : > { %v5558_v32 = vpop.f32.mrf.mxu2 }
0x166a   : > { %v5587_v33 = vmul.f32 0.17677669, %v5558_v32 }
0x166c   : > { %v5596_v37 = vsel %vm5589_vm12, %v5587_v33, -inf }
0x166d   : > { %5597 = vmax.xlane.f32.xlu0 %v5596_v37 }
0x1675   : > { %5591 = vmax.xlane.f32.xlu0 %v5590_v39 }
0x1681   : > { %v5582_v29 = vpop.f32.mrf.mxu3 }
0x1682   : > { %v5588_v57 = vmul.f32 0.17677669, %v5582_v29 }
0x1683   : > { %v5534_v40 = vpop.f32.mrf.mxu1 }
0x1684   : > { %v5586_v43 = vmul.f32 0.17677669, %v5534_v40  ;;  %v5599_v44 = vsel %vm5589_vm12, %v5588_v57, -inf }
0x1685   : > { %5600 = vmax.xlane.f32.xlu2 %v5599_v44 }
0x1686   : > { %v5593_v45 = vsel %vm5589_vm12, %v5586_v43, -inf }
0x1687   : > { %5594 = vmax.xlane.f32.xlu1 %v5593_v45 }
0x169d   : > { %5486 = vrot.lane.b32.xlu2 %v12593_v19, %s10660_s3 }
0x16a0   : > { %5480 = vrot.lane.b32.xlu1 %v12593_v19, %s10661_s13 }
0x16e0   : > { %v5598_v18 = vpop.xlane.xlu0 %5597 }
0x16e1   : > { %v5604_v47 = vsub.f32 %v5587_v33, %v5598_v18 }
0x16e3   : > { %v5610_v49 = vmul.f32 1.442695, %v5604_v47 }
0x16e8   : > { %v5592_v63 = vpop.xlane.xlu0 %5591 }
0x16e9   : > { %v5602_v42 = vsub.f32 %v5585_v51, %v5592_v63  ;;  %v5800_v63 = vld [vmem:[%s13064_s4 + $0x18] sm:$0xff] }
0x16ea   : > { %5817 = vmatpush.msra.mxu0 %v5800_v63 }
0x16eb   : > { %v5606_v59 = vmul.f32 1.442695, %v5602_v42  ;;  %v5799_v42 = vld [vmem:[%s13064_s4 + $0x10] sm:$0xff] }
0x16ec   : > { %5818 = vmatpush.msra.mxu0 %v5799_v42 }
0x16f8   : > { %v5601_v31 = vpop.xlane.xlu2 %5600 }
0x16f9   : > { %v5605_v38 = vsub.f32 %v5588_v57, %v5601_v31 }
0x16fa   : > { %v5595_v8 = vpop.xlane.xlu1 %5594 }
0x16fb   : > { %v5603_v34 = vsub.f32 %v5586_v43, %v5595_v8  ;;  %v5612_v12 = vmul.f32 1.442695, %v5605_v38 }
0x16fd   : > { %v5608_v25 = vmul.f32 1.442695, %v5603_v34 }
0x16ff   : > { %8479 = vpow2.f32 %v5608_v25 }
0x1700   : > { %v5487_v48 = vpop.permute.xlu2 %5486  ;;  %8481 = vpow2.f32 %v5610_v49 }
0x1701   : > { %5773 = vmatpush.msra.mxu3 %v5487_v48  ;;  %8483 = vpow2.f32 %v5612_v12 }
0x1702   : > { %8485 = vpow2.f32 %v5606_v59  ;;  %v5798_v59 = vld [vmem:[%s13064_s4 + $0x8] sm:$0xff] }
0x1703   : > { %5819 = vmatpush.msra.mxu0 %v5798_v59 }
0x1705   : > { %v8480_v26 = vpop.eup %8479 }
0x1706   : > { %v5617_v17 = vsel %vm5589_vm12, %v8480_v26, 0.0  ;;  %v12634_v24 = vpop.eup %8481 }
0x1707   : > { %5618 = vadd.xlane.f32.xlu0 %v5617_v17  ;;  %v5620_v4 = vsel %vm5589_vm12, %v12634_v24, 0.0  ;;  %v12638_v23 = vpop.eup %8483 }
0x1708   : > { %v5623_v54 = vsel %vm5589_vm12, %v12638_v23, 0.0  ;;  %v12644_v11 = vpop.eup %8485 }
0x1709   : > { %v5614_v53 = vsel %vm5589_vm12, %v12644_v11, 0.0 }
0x170f   : > { %5621 = vadd.xlane.f32.xlu0 %v5620_v4 }
0x1712   : > { %v5481_v21 = vpop.permute.xlu1 %5480 }
0x1713   : > { %5727 = vmatpush.msrb.mxu1 %v5481_v21 }
0x1717   : > { %5624 = vadd.xlane.f32.xlu0 %v5623_v54 }
0x172b   : > { %5483 = vrot.lane.b32.xlu0 %v12593_v19, %s10659_s1 }
0x1755   : > { %5615 = vadd.xlane.f32.xlu0 %v5614_v53 }
0x177a   : > { %v5619_v0 = vpop.xlane.xlu0 %5618 }
0x177b   : > { %8487 = vrcp.f32 %v5619_v0  ;;  %v5652_v50 = vand.u32 2147483648, %v5619_v0  ;;  %v5650_v9 = vand.u32 2147483647, %v5619_v0  ;;  %vm5646_vm14 = vweird.f32 %v5619_v0 }
0x177d   : > { %v5653_v60 = vor.u32 1.1754944e-38, %v5652_v50  ;;  %vm5651_vm2 = vcmp.eq.f32.partialorder %v5650_v9, 8.507059e+37  ;;  %v5858_v50 = vld [vmem:[#allocation11 + $0x18] sm:$0xff]  ;;  %v5829_v9 = vld [vmem:[#allocation14 + $0x10] sm:$0xff] }
0x1781   : > { %v8488_v14 = vpop.eup %8487 }
0x1782   : > { %v5642_v15 = vmul.f32 %v8488_v14, %v5619_v0  ;;  %v5622_v2 = vpop.xlane.xlu0 %5621  ;;  %vm5647_vm13 = vweird.f32 %v8488_v14 }
0x1783   : > { %8489 = vrcp.f32 %v5622_v2  ;;  %vm5648_vm15 = vmor %vm5646_vm14, %vm5647_vm13  ;;  %v5667_v35 = vand.u32 2147483648, %v5622_v2  ;;  %vm5661_vm4 = vweird.f32 %v5622_v2  ;;  %v5665_v56 = vand.u32 2147483647, %v5622_v2 }
0x1784   : > { %v5643_v16 = vsub.f32 1.0, %v5642_v15 }
0x1785   : > { %v5668_v37 = vor.u32 1.1754944e-38, %v5667_v35  ;;  %vm5666_vm10 = vcmp.eq.f32.partialorder %v5665_v56, 8.507059e+37  ;;  %v5859_v56 = vld [vmem:[#allocation5] sm:$0x1] }
0x1786   : > { %v5644_v7 = vmul.f32 %v8488_v14, %v5643_v16  ;;  %v5830_v16 = vld [vmem:[#allocation14 + $0x18] sm:$0xff] }
0x1787   : > { %5847 = vmatpush.msra.mxu1 %v5830_v16 }
0x1788   : > { %v5645_v10 = vadd.f32 %v8488_v14, %v5644_v7  ;;  %v5883_v7 = vld [vmem:[#allocation16 + $0x18] sm:$0xff] }
0x1789   : > { %v8490_v1 = vpop.eup %8489  ;;  %5897 = vmatpush.msrb.mxu3 %v5883_v7  ;;  %5848 = vmatpush.msra.mxu1 %v5829_v9 }
0x178a   : > { %v5649_v13 = vsel %vm5648_vm15, %v8488_v14, %v5645_v10  ;;  %v5657_v36 = vmul.f32 %v8490_v1, %v5622_v2  ;;  %v5625_v5 = vpop.xlane.xlu0 %5624  ;;  %vm5662_vm3 = vweird.f32 %v8490_v1  ;;  %v5857_v10 = vld [vmem:[#allocation11 + $0x10] sm:$0xff] }
0x178b   : > { %v5654_v46 = vsel %vm5651_vm2, %v5653_v60, %v5649_v13  ;;  %8491 = vrcp.f32 %v5625_v5  ;;  %v5682_v27 = vand.u32 2147483648, %v5625_v5  ;;  %vm5663_vm5 = vmor %vm5661_vm4, %vm5662_vm3  ;;  %v5680_v32 = vand.u32 2147483647, %v5625_v5  ;;  %v5856_v60 = vld [vmem:[#allocation11 + $0x8] sm:$0xff] }
0x178c   : > { %v5658_v22 = vsub.f32 1.0, %v5657_v36  ;;  %v5655_v55 = vmul.f32 %v8480_v26, %v5654_v46  ;;  %vm5676_vm9 = vweird.f32 %v5625_v5  ;;  %v5881_v13 = vld [vmem:[#allocation16 + $0x8] sm:$0xff]  ;;  %v5827_v36 = vld [vmem:[#allocation14] sm:$0xff]  ;;  %vm6032_vm4 = vcmask 1040384  }
0x178d   : > { %v5683_v51 = vor.u32 1.1754944e-38, %v5682_v27  ;;  %vm5681_vm13 = vcmp.eq.f32.partialorder %v5680_v32, 8.507059e+37  ;;  %v5880_v46 = vld [vmem:[#allocation16] sm:$0xff]  ;;  %v5884_v27 = vld [vmem:[#allocation10] sm:$0x1] }
0x178e   : > { %7729 = vmatmul.msk.f32.vlgmr.msrb.gmra.mxu1 %vm3156_vm0, %v5655_v55  ;;  %v5659_v58 = vmul.f32 %v8490_v1, %v5658_v22  ;;  %v5801_v22 = vld [vmem:[#allocation92] sm:$0x1] }
0x1790   : > { %v5660_v41 = vadd.f32 %v8490_v1, %v5659_v58 }
0x1791   : > { %v8492_v62 = vpop.eup %8491 }
0x1792   : > { %v5672_v3 = vmul.f32 %v8492_v62, %v5625_v5  ;;  %vm5677_vm8 = vweird.f32 %v8492_v62  ;;  %v5664_v33 = vsel %vm5663_vm5, %v8490_v1, %v5660_v41  ;;  %v5882_v1 = vld [vmem:[#allocation16 + $0x10] sm:$0xff]  ;;  %v5855_v5 = vld [vmem:[#allocation11] sm:$0xff]  ;;  %v5831_v41 = vld [vmem:[#allocation8] sm:$0x1] }
0x1793   : > { %vm5678_vm11 = vmor %vm5676_vm9, %vm5677_vm8  ;;  %v5669_v39 = vsel %vm5666_vm10, %v5668_v37, %v5664_v33  ;;  %5898 = vmatpush.msrb.mxu3 %v5882_v1 }
0x1794   : > { %v5673_v19 = vsub.f32 1.0, %v5672_v3  ;;  %v5670_v44 = vmul.f32 %v12634_v24, %v5669_v39 }
0x1795   : > { %5899 = vmatpush.msrb.mxu3 %v5881_v13 }
0x1796   : > { %v5674_v28 = vmul.f32 %v8492_v62, %v5673_v19 }
0x1797   : > { %5900 = vmatpush.msrb.mxu3 %v5880_v46 }
0x1798   : > { %v5675_v52 = vadd.f32 %v8492_v62, %v5674_v28 }
0x179a   : > { %v5679_v29 = vsel %vm5678_vm11, %v8492_v62, %v5675_v52  ;;  %vm6028_vm11 = vcmask 7168  }
0x179b   : > { %v5684_v57 = vsel %vm5681_vm13, %v5683_v51, %v5679_v29 }
0x179c   : > { %v5685_v40 = vmul.f32 %v12638_v23, %v5684_v57 }
0x179d   : > { %v5484_v43 = vpop.permute.xlu0 %5483 }
0x179e   : > { %5750 = vmatpush.msrb.mxu2 %v5484_v43  ;;  %7731 = vmatmul.msk.f32.vlgmr.msra.gmra.mxu3 %vm3156_vm0, %v5685_v40 }
0x179f   : > { %7730 = vmatmul.msk.f32.vlgmr.msrb.gmra.mxu2 %vm3156_vm0, %v5670_v44 }
0x17a0   : > { %5872 = vmatpush.msra.mxu2 %v5858_v50 }
0x17a2   : > { %5873 = vmatpush.msra.mxu2 %v5857_v10 }
0x17a4   : > { %5874 = vmatpush.msra.mxu2 %v5856_v60 }
0x17a6   : > { %5875 = vmatpush.msra.mxu2 %v5855_v5 }
0x17c8   : > { %v5616_v45 = vpop.xlane.xlu0 %5615 }
0x17c9   : > { %8493 = vrcp.f32 %v5616_v45  ;;  %v5637_v34 = vand.u32 2147483648, %v5616_v45  ;;  %v5635_v25 = vand.u32 2147483647, %v5616_v45  ;;  %vm5631_vm15 = vweird.f32 %v5616_v45 }
0x17cb   : > { %v5638_v49 = vor.u32 1.1754944e-38, %v5637_v34  ;;  %vm5636_vm3 = vcmp.eq.f32.partialorder %v5635_v25, 8.507059e+37 }
0x17cf   : > { %v8494_v31 = vpop.eup %8493 }
0x17d0   : > { %v5627_v18 = vmul.f32 %v8494_v31, %v5616_v45  ;;  %vm5632_vm14 = vweird.f32 %v8494_v31 }
0x17d1   : > { %vm5633_vm2 = vmor %vm5631_vm15, %vm5632_vm14 }
0x17d2   : > { %v5628_v8 = vsub.f32 1.0, %v5627_v18 }
0x17d4   : > { %v5629_v47 = vmul.f32 %v8494_v31, %v5628_v8 }
0x17d6   : > { %v5630_v48 = vadd.f32 %v8494_v31, %v5629_v47 }
0x17d8   : > { %v5634_v26 = vsel %vm5633_vm2, %v8494_v31, %v5630_v48 }
0x17d9   : > { %v5639_v38 = vsel %vm5636_vm3, %v5638_v49, %v5634_v26 }
0x17da   : > { %v5640_v17 = vmul.f32 %v12644_v11, %v5639_v38  ;;  %v5797_v11 = vld [vmem:[%s13064_s4] sm:$0xff] }
0x17db   : > { %5820 = vmatpush.msra.mxu0 %v5797_v11 }
0x17dc   : > { %7728 = vmatmul.msk.f32.vlgmr.msrb.gmra.mxu0 %vm3156_vm0, %v5640_v17 }
0x180b   : > { %v5729_v12 = vpop.f32.mrf.mxu1 }
0x180c   : > { %v5779_v24 = vadd.f32 %v5729_v12, %v12621_v61 }
0x180e   : > { %5783 = vrot.lane.b32.xlu2 %v5779_v24, %s10662_s7 }
0x1821   : > { %v5775_v4 = vpop.f32.mrf.mxu3 }
0x1822   : > { %v5781_v21 = vadd.f32 %v5775_v4, %v12617_v30  ;;  %v5752_v23 = vpop.f32.mrf.mxu2 }
0x1823   : > { %v5780_v54 = vadd.f32 %v5752_v23, %v12611_v20 }
0x1824   : > { %5791 = vrot.lane.b32.xlu2 %v5781_v21, %s10663_s23 }
0x1825   : > { %5787 = vrot.lane.b32.xlu1 %v5780_v54, %s10664_s10 }
0x1859   : > { %v5706_v53 = vpop.f32.mrf.mxu0 }
0x185a   : > { %v5778_v0 = vadd.f32 %v5706_v53, %v12597_v6  ;;  %v5828_v6 = vld [vmem:[#allocation14 + $0x8] sm:$0xff] }
0x185b   : > { %5849 = vmatpush.msra.mxu1 %v5828_v6 }
0x185d   : > { %5850 = vmatpush.msra.mxu1 %v5827_v36 }
0x1868   : > { %v5784_v61 = vpop.permute.xlu2 %5783 }
0x1869   : > { %v5794_v30 = vsel %vm3156_vm0, %v5778_v0, %v5784_v61 }
0x187e   : > { %v5792_v20 = vpop.permute.xlu2 %5791 }
0x1897   : > { %v5788_v14 = vpop.permute.xlu1 %5787 }
0x1898   : > { %v5795_v15 = vsel %vm3708_vm6, %v5794_v30, %v5788_v14 }
0x1899   : > { %v5796_v2 = vsel %vm3711_vm7, %v5795_v15, %v5792_v20 }
0x189a   : > { %7732 = vmatmul.msk.f32.vlgmr.msra.gmra.mxu0 %vm3121_vm1, %v5796_v2 }
0x1917   : > { %v5822_v55 = vpop.f32.mrf.mxu0 }
0x1918   : > { %v5823_v58 = vadd.f32 %v5822_v55, %v5801_v22 }
0x191a   : > { %v5825_v62 = vmax.f32 %v5823_v58, 0.0 }
0x191c   : > { %v5826_v3 = vadd.f32 %v5825_v62, %v5796_v2 }
0x191e   : > { %7733 = vmatmul.msk.f32.vlgmr.msra.gmra.mxu1 %vm3121_vm1, %v5826_v3  ;;  %7734 = vmatmul.msk.f32.vlgmr.msra.gmra.mxu2 %vm3121_vm1, %v5826_v3 }
0x191f   : > { %7735 = vmatmul.msk.f32.vlgmr.msrb.gmra.mxu3 %vm3121_vm1, %v5826_v3 }
0x199b   : > { %v5852_v35 = vpop.f32.mrf.mxu1 }
0x199c   : > { %v12673_v19 = vadd.f32 %v5852_v35, %v5831_v41 }
0x199e   : > { %5909 = vrot.lane.b32.xlu1 %v12673_v19, %s10659_s1 }
0x19a1   : > { %v5877_v28 = vpop.f32.mrf.mxu2 }
0x19a2   : > { %v5878_v32 = vadd.f32 %v5877_v28, %v5859_v56  ;;  %v5902_v33 = vpop.f32.mrf.mxu3 }
0x19a3   : > { %v5903_v37 = vadd.f32 %v5902_v33, %v5884_v27 }
0x19a4   : > { %5919 = vrot.lane.b32.xlu2 %v5878_v32, %s10659_s1  ;;  %v5932_v45 = vmul.f32 %v5878_v32, %v12673_v19 }
0x19a5   : > { %7736 = vmatpush.msk.msrb.mxu0 %vm6032_vm4, %v5903_v37 }
0x19a6   : > { %5912 = vrot.lane.b32.xlu1 %v12673_v19, %s10660_s3  ;;  %v5933_v47 = vsel %vm5589_vm12, %v5932_v45, 0.0 }
0x19ac   : > { %5922 = vrot.lane.b32.xlu2 %v5878_v32, %s10660_s3 }
0x19ae   : > { %5906 = vrot.lane.b32.xlu1 %v12673_v19, %s10661_s13 }
0x19b4   : > { %5916 = vrot.lane.b32.xlu2 %v5878_v32, %s10661_s13 }
0x19fe   : > { %v5920_v52 = vpop.permute.xlu2 %5919 }
0x1a06   : > { %v5923_v57 = vpop.permute.xlu2 %5922 }
0x1a0e   : > { %v5917_v31 = vpop.permute.xlu2 %5916 }
0x1a10   : > { %v12685_v51 = vpop.permute.xlu1 %5909 }
0x1a11   : > { %v5940_v39 = vmul.f32 %v5920_v52, %v12685_v51 }
0x1a13   : > { %v5941_v29 = vsel %vm5589_vm12, %v5940_v39, 0.0 }
0x1a14   : > { %5942 = vadd.xlane.f32.xlu0 %v5941_v29 }
0x1a18   : > { %v12689_v40 = vpop.permute.xlu1 %5912 }
0x1a19   : > { %v5944_v43 = vmul.f32 %v5923_v57, %v12689_v40 }
0x1a1b   : > { %v5945_v44 = vsel %vm5589_vm12, %v5944_v43, 0.0 }
0x1a1c   : > { %5946 = vadd.xlane.f32.xlu1 %v5945_v44 }
0x1a20   : > { %v12694_v18 = vpop.permute.xlu1 %5906 }
0x1a21   : > { %v5936_v8 = vmul.f32 %v5917_v31, %v12694_v18 }
0x1a23   : > { %v5937_v34 = vsel %vm5589_vm12, %v5936_v8, 0.0 }
0x1a24   : > { %5938 = vadd.xlane.f32.xlu2 %v5937_v34  ;;  %5934 = vadd.xlane.f32.xlu1 %v5933_v47 }
0x1a28   : > { %5928 = vrot.lane.b32.xlu0 %v5903_v37, %s10659_s1 }
0x1a30   : > { %5930 = vrot.lane.b32.xlu0 %v5903_v37, %s10660_s3 }
0x1a38   : > { %5926 = vrot.lane.b32.xlu0 %v5903_v37, %s10661_s13 }
0x1a87   : > { %v5943_v25 = vpop.xlane.xlu0 %5942 }
0x1a88   : > { %v5950_v48 = vmul.f32 0.17677669, %v5943_v25 }
0x1a8a   : > { %v5954_v49 = vsub.f32 %v5950_v48, %v5950_v48 }
0x1a8c   : > { %v5960_v26 = vmul.f32 1.442695, %v5954_v49 }
0x1a8e   : > { %8495 = vpow2.f32 %v5960_v26 }
0x1a8f   : > { %v5947_v38 = vpop.xlane.xlu1 %5946 }
0x1a90   : > { %v5951_v17 = vmul.f32 0.17677669, %v5947_v38 }
0x1a92   : > { %v5955_v12 = vsub.f32 %v5951_v17, %v5951_v17 }
0x1a94   : > { %v8496_v24 = vpop.eup %8495  ;;  %v5962_v4 = vmul.f32 1.442695, %v5955_v12 }
0x1a95   : > { %8497 = vrcp.f32 %v8496_v24  ;;  %v6009_v15 = vand.u32 2147483648, %v8496_v24  ;;  %v6007_v16 = vand.u32 2147483647, %v8496_v24  ;;  %vm6003_vm8 = vweird.f32 %v8496_v24 }
0x1a96   : > { %8499 = vpow2.f32 %v5962_v4 }
0x1a97   : > { %v5939_v21 = vpop.xlane.xlu2 %5938  ;;  %v5935_v23 = vpop.xlane.xlu1 %5934  ;;  %v6010_v10 = vor.u32 1.1754944e-38, %v6009_v15  ;;  %vm6008_vm10 = vcmp.eq.f32.partialorder %v6007_v16, 8.507059e+37  ;;  %v6182_v15 = vld [vmem:[#allocation26 + $0x18] sm:$0xff] }
0x1a98   : > { %v5949_v54 = vmul.f32 0.17677669, %v5939_v21  ;;  %v5948_v63 = vmul.f32 0.17677669, %v5935_v23  ;;  %v6235_v16 = vld [vmem:[#allocation28 + $0x18] sm:$0xff] }
0x1a9a   : > { %v5953_v42 = vsub.f32 %v5949_v54, %v5949_v54  ;;  %v5952_v59 = vsub.f32 %v5948_v63, %v5948_v63  ;;  %v5929_v11 = vpop.permute.xlu0 %5928 }
0x1a9b   : > { %v8498_v61 = vpop.eup %8497  ;;  %7740 = vmatpush.msk.msrb.mxu2 %vm6032_vm4, %v5929_v11  ;;  %v6150_v11 = vld [vmem:[#allocation13 + $0x8] sm:$0xff] }
0x1a9c   : > { %v8500_v53 = vpop.eup %8499  ;;  %v5958_v0 = vmul.f32 1.442695, %v5953_v42  ;;  %v5956_v30 = vmul.f32 1.442695, %v5952_v59  ;;  %v5999_v14 = vmul.f32 %v8498_v61, %v8496_v24  ;;  %vm6004_vm5 = vweird.f32 %v8498_v61  ;;  %v6152_v42 = vld [vmem:[#allocation13 + $0x18] sm:$0xff]  ;;  %v6151_v59 = vld [vmem:[#allocation13 + $0x10] sm:$0xff] }
0x1a9d   : > { %8501 = vrcp.f32 %v8500_v53  ;;  %vm6005_vm9 = vmor %vm6003_vm8, %vm6004_vm5  ;;  %v6024_v22 = vand.u32 2147483648, %v8500_v53  ;;  %v6022_v58 = vand.u32 2147483647, %v8500_v53  ;;  %vm6018_vm14 = vweird.f32 %v8500_v53  ;;  %6169 = vmatpush.msra.mxu0 %v6152_v42 }
0x1a9e   : > { %8503 = vpow2.f32 %v5958_v0  ;;  %v6000_v20 = vsub.f32 1.0, %v5999_v14 }
0x1a9f   : > { %8505 = vpow2.f32 %v5956_v30  ;;  %v6025_v35 = vor.u32 1.1754944e-38, %v6024_v22  ;;  %vm6023_vm2 = vcmp.eq.f32.partialorder %v6022_v58, 8.507059e+37  ;;  %6170 = vmatpush.msra.mxu0 %v6151_v59  ;;  %v6183_v58 = vld [vmem:[#allocation20] sm:$0x1] }
0x1aa0   : > { %v6001_v2 = vmul.f32 %v8498_v61, %v6000_v20 }
0x1aa1   : > { %6171 = vmatpush.msra.mxu0 %v6150_v11 }
0x1aa2   : > { %v5931_v50 = vpop.permute.xlu0 %5930  ;;  %v6002_v7 = vadd.f32 %v8498_v61, %v6001_v2  ;;  %v6210_v2 = vld [vmem:[#allocation23 + $0x18] sm:$0xff] }
0x1aa3   : > { %v8502_v9 = vpop.eup %8501  ;;  %7742 = vmatpush.msk.msra.mxu3 %vm6032_vm4, %v5931_v50  ;;  %6224 = vmatpush.msra.mxu2 %v6210_v2  ;;  %v6181_v50 = vld [vmem:[#allocation26 + $0x10] sm:$0xff] }
0x1aa4   : > { %v8504_v1 = vpop.eup %8503  ;;  %v6006_v6 = vsel %vm6005_vm9, %v8498_v61, %v6002_v7  ;;  %v6014_v60 = vmul.f32 %v8502_v9, %v8500_v53  ;;  %vm6019_vm13 = vweird.f32 %v8502_v9  ;;  %v6149_v61 = vld [vmem:[#allocation13] sm:$0xff]  ;;  %v6209_v7 = vld [vmem:[#allocation23 + $0x10] sm:$0xff] }
0x1aa5   : > { %v8506_v13 = vpop.eup %8505  ;;  %v6011_v36 = vsel %vm6008_vm10, %v6010_v10, %v6006_v6  ;;  %8507 = vrcp.f32 %v8504_v1  ;;  %vm6020_vm15 = vmor %vm6018_vm14, %vm6019_vm13  ;;  %v5994_v29 = vand.u32 2147483648, %v8504_v1  ;;  %v5992_v44 = vand.u32 2147483647, %v8504_v1  ;;  %6172 = vmatpush.msra.mxu0 %v6149_v61  ;;  %6249 = vmatpush.msrb.mxu3 %v6235_v16  ;;  %v6208_v10 = vld [vmem:[#allocation23 + $0x8] sm:$0xff]  ;;  %v6179_v6 = vld [vmem:[#allocation26] sm:$0xff] }
0x1aa6   : > { %v6012_v5 = vmul.f32 %v8496_v24, %v6011_v36  ;;  %v6015_v46 = vsub.f32 1.0, %v6014_v60  ;;  %8509 = vrcp.f32 %v8506_v13  ;;  %v5979_v57 = vand.u32 2147483648, %v8506_v13  ;;  %6225 = vmatpush.msra.mxu2 %v6209_v7  ;;  %v6207_v60 = vld [vmem:[#allocation23] sm:$0xff]  ;;  %v6153_v36 = vld [vmem:[#allocation7] sm:$0x1] }
0x1aa7   : > { %v5977_v31 = vand.u32 2147483647, %v8506_v13  ;;  %vm5988_vm8 = vweird.f32 %v8504_v1  ;;  %vm5973_vm9 = vweird.f32 %v8506_v13  ;;  %v5995_v47 = vor.u32 1.1754944e-38, %v5994_v29 }
0x1aa8   : > { %7741 = vmatmul.msk.f32.vlgmr.msrb.gmra.mxu2 %vm6028_vm11, %v6012_v5  ;;  %v6016_v55 = vmul.f32 %v8502_v9, %v6015_v46  ;;  %v5980_v25 = vor.u32 1.1754944e-38, %v5979_v57  ;;  %vm5993_vm14 = vcmp.eq.f32.partialorder %v5992_v44, 8.507059e+37 }
0x1aa9   : > { %6226 = vmatpush.msra.mxu2 %v6208_v10 }
0x1aaa   : > { %v5927_v62 = vpop.permute.xlu0 %5926  ;;  %v6017_v3 = vadd.f32 %v8502_v9, %v6016_v55 }
0x1aab   : > { %v8508_v41 = vpop.eup %8507  ;;  %7738 = vmatpush.msk.msrb.mxu1 %vm6032_vm4, %v5927_v62  ;;  %6227 = vmatpush.msra.mxu2 %v6207_v60 }
0x1aac   : > { %v8510_v56 = vpop.eup %8509  ;;  %v6021_v27 = vsel %vm6020_vm15, %v8502_v9, %v6017_v3  ;;  %v5984_v28 = vmul.f32 %v8508_v41, %v8504_v1  ;;  %vm5989_vm3 = vweird.f32 %v8508_v41  ;;  %vm5978_vm15 = vcmp.eq.f32.partialorder %v5977_v31, 8.507059e+37  ;;  %v6180_v9 = vld [vmem:[#allocation26 + $0x8] sm:$0xff] }
0x1aad   : > { %v6026_v32 = vsel %vm6023_vm2, %v6025_v35, %v6021_v27  ;;  %v5969_v33 = vmul.f32 %v8510_v56, %v8506_v13  ;;  %vm5974_vm5 = vweird.f32 %v8510_v56  ;;  %vm5990_vm10 = vmor %vm5988_vm8, %vm5989_vm3  ;;  %6199 = vmatpush.msra.mxu1 %v6182_v15  ;;  %v6236_v35 = vld [vmem:[#allocation22] sm:$0x1] }
0x1aae   : > { %v6027_v37 = vmul.f32 %v8500_v53, %v6026_v32  ;;  %v5985_v52 = vsub.f32 1.0, %v5984_v28  ;;  %vm5975_vm13 = vmor %vm5973_vm9, %vm5974_vm5 }
0x1aaf   : > { %v5970_v39 = vsub.f32 1.0, %v5969_v33  ;;  %6200 = vmatpush.msra.mxu1 %v6181_v50 }
0x1ab0   : > { %7743 = vmatmul.msk.f32.vlgmr.msra.gmra.mxu3 %vm6028_vm11, %v6027_v37  ;;  %v5986_v43 = vmul.f32 %v8508_v41, %v5985_v52 }
0x1ab1   : > { %v5971_v45 = vmul.f32 %v8510_v56, %v5970_v39  ;;  %6201 = vmatpush.msra.mxu1 %v6180_v9 }
0x1ab2   : > { %v5987_v8 = vadd.f32 %v8508_v41, %v5986_v43 }
0x1ab3   : > { %v5972_v34 = vadd.f32 %v8510_v56, %v5971_v45  ;;  %6202 = vmatpush.msra.mxu1 %v6179_v6 }
0x1ab4   : > { %v5991_v48 = vsel %vm5990_vm10, %v8508_v41, %v5987_v8  ;;  %v6211_v41 = vld [vmem:[#allocation17] sm:$0x1] }
0x1ab5   : > { %v5976_v49 = vsel %vm5975_vm13, %v8510_v56, %v5972_v34  ;;  %v5996_v26 = vsel %vm5993_vm14, %v5995_v47, %v5991_v48 }
0x1ab6   : > { %v5981_v38 = vsel %vm5978_vm15, %v5980_v25, %v5976_v49  ;;  %v5997_v17 = vmul.f32 %v8504_v1, %v5996_v26  ;;  %v6233_v1 = vld [vmem:[#allocation28 + $0x8] sm:$0xff] }
0x1ab7   : > { %v5982_v12 = vmul.f32 %v8506_v13, %v5981_v38  ;;  %v6232_v13 = vld [vmem:[#allocation28] sm:$0xff] }
0x1ab8   : > { %7739 = vmatmul.msk.f32.vlgmr.msrb.gmra.mxu1 %vm6028_vm11, %v5997_v17 }
0x1ab9   : > { %7737 = vmatmul.msk.f32.vlgmr.msrb.gmra.mxu0 %vm6028_vm11, %v5982_v12 }
0x1b2b   : > { %v6102_v24 = vpop.f32.mrf.mxu2 }
0x1b2c   : > { %v6132_v4 = vadd.f32 %v6102_v24, %v12685_v51 }
0x1b2e   : > { %6139 = vrot.lane.b32.xlu2 %v6132_v4, %s10664_s10 }
0x1b33   : > { %v6127_v21 = vpop.f32.mrf.mxu3 }
0x1b34   : > { %v6133_v23 = vadd.f32 %v6127_v21, %v12689_v40 }
0x1b35   : > { %v6077_v54 = vpop.f32.mrf.mxu1 }
0x1b36   : > { %v6131_v63 = vadd.f32 %v6077_v54, %v12694_v18  ;;  %6143 = vrot.lane.b32.xlu1 %v6133_v23, %s10663_s23  ;;  %v6052_v51 = vpop.f32.mrf.mxu0 }
0x1b37   : > { %v6130_v53 = vadd.f32 %v6052_v51, %v12673_v19  ;;  %v6234_v19 = vld [vmem:[#allocation28 + $0x10] sm:$0xff] }
0x1b38   : > { %6135 = vrot.lane.b32.xlu0 %v6131_v63, %s10662_s7  ;;  %6250 = vmatpush.msrb.mxu3 %v6234_v19 }
0x1b3a   : > { %6251 = vmatpush.msrb.mxu3 %v6233_v1 }
0x1b3c   : > { %6252 = vmatpush.msrb.mxu3 %v6232_v13 }
0x1b88   : > { %v6140_v40 = vpop.permute.xlu2 %6139 }
0x1ba8   : > { %v6144_v18 = vpop.permute.xlu1 %6143 }
0x1baa   : > { %v6136_v0 = vpop.permute.xlu0 %6135 }
0x1bab   : > { %v6146_v30 = vsel %vm3156_vm0, %v6130_v53, %v6136_v0 }
0x1bac   : > { %v6147_v14 = vsel %vm3708_vm6, %v6146_v30, %v6140_v40 }
0x1bad   : > { %v6148_v20 = vsel %vm3711_vm7, %v6147_v14, %v6144_v18 }
0x1bae   : > { %7744 = vmatmul.msk.f32.vlgmr.msra.gmra.mxu0 %vm3121_vm1, %v6148_v20 }
0x1c2b   : > { %v6174_v5 = vpop.f32.mrf.mxu0 }
0x1c2c   : > { %v6175_v46 = vadd.f32 %v6174_v5, %v6153_v36 }
0x1c2e   : > { %v6177_v22 = vmax.f32 %v6175_v46, 0.0 }
0x1c30   : > { %v6178_v55 = vadd.f32 %v6177_v22, %v6148_v20 }
0x1c32   : > { %7745 = vmatmul.msk.f32.vlgmr.msra.gmra.mxu1 %vm3121_vm1, %v6178_v55  ;;  %7746 = vmatmul.msk.f32.vlgmr.msra.gmra.mxu2 %vm3121_vm1, %v6178_v55 }
0x1c33   : > { %7747 = vmatmul.msk.f32.vlgmr.msrb.gmra.mxu3 %vm3121_vm1, %v6178_v55 }
0x1caf   : > { %v6204_v62 = vpop.f32.mrf.mxu1 }
0x1cb0   : > { %v12723_v3 = vadd.f32 %v6204_v62, %v6183_v58 }
0x1cb2   : > { %6258 = vrot.lane.b32.xlu1 %v12723_v3, %s10661_s13  ;;  %6261 = vrot.lane.b32.xlu0 %v12723_v3, %s10659_s1 }
0x1cb5   : > { %v6229_v56 = vpop.f32.mrf.mxu2 }
0x1cb6   : > { %v6230_v27 = vadd.f32 %v6229_v56, %v6211_v41  ;;  %v6254_v28 = vpop.f32.mrf.mxu3 }
0x1cb7   : > { %v6255_v32 = vadd.f32 %v6254_v28, %v6236_v35 }
0x1cb8   : > { %6274 = vrot.lane.b32.xlu2 %v6230_v27, %s10660_s3  ;;  %v6284_v47 = vmul.f32 %v6230_v27, %v12723_v3 }
0x1cb9   : > { %7748 = vmatpush.msk.msrb.mxu0 %vm6032_vm4, %v6255_v32 }
0x1cba   : > { %6264 = vrot.lane.b32.xlu0 %v12723_v3, %s10660_s3  ;;  %v6285_v25 = vsel %vm5589_vm12, %v6284_v47, 0.0 }
0x1cc2   : > { %6271 = vrot.lane.b32.xlu0 %v6230_v27, %s10659_s1 }
0x1cca   : > { %6268 = vrot.lane.b32.xlu0 %v6230_v27, %s10661_s13 }
0x1d12   : > { %v6275_v37 = vpop.permute.xlu2 %6274 }
0x1d24   : > { %v12735_v33 = vpop.permute.xlu0 %6261  ;;  %v12743_v45 = vpop.permute.xlu1 %6258 }
0x1d2c   : > { %v12737_v52 = vpop.permute.xlu0 %6264 }
0x1d2d   : > { %v6296_v39 = vmul.f32 %v6275_v37, %v12737_v52 }
0x1d2f   : > { %v6297_v29 = vsel %vm5589_vm12, %v6296_v39, 0.0 }
0x1d30   : > { %6298 = vadd.xlane.f32.xlu1 %v6297_v29 }
0x1d34   : > { %v6272_v57 = vpop.permute.xlu0 %6271 }
0x1d35   : > { %v6292_v43 = vmul.f32 %v6272_v57, %v12735_v33 }
0x1d37   : > { %v6293_v44 = vsel %vm5589_vm12, %v6292_v43, 0.0 }
0x1d38   : > { %6294 = vadd.xlane.f32.xlu2 %v6293_v44 }
0x1d3c   : > { %v6269_v31 = vpop.permute.xlu0 %6268 }
0x1d3d   : > { %v6288_v8 = vmul.f32 %v6269_v31, %v12743_v45 }
0x1d3f   : > { %v6289_v34 = vsel %vm5589_vm12, %v6288_v8, 0.0 }
0x1d40   : > { %6290 = vadd.xlane.f32.xlu0 %v6289_v34 }
0x1d49   : > { %6282 = vrot.lane.b32.xlu1 %v6255_v32, %s10660_s3 }
0x1d50   : > { %6280 = vrot.lane.b32.xlu2 %v6255_v32, %s10659_s1  ;;  %s3109_s1 = scalar_lea.vmem %s13068_s5, %s13075_s16 }
0x1d54   : > { %6278 = vrot.lane.b32.xlu0 %v6255_v32, %s10661_s13 }
0x1d79   : > { %6286 = vadd.xlane.f32.xlu2 %v6285_v25 }
0x1da3   : > { %v6299_v48 = vpop.xlane.xlu1 %6298 }
0x1da4   : > { %v6303_v49 = vmul.f32 0.17677669, %v6299_v48 }
0x1da6   : > { %v6307_v26 = vsub.f32 %v6303_v49, %v6303_v49 }
0x1da8   : > { %v6314_v38 = vmul.f32 1.442695, %v6307_v26 }
0x1daa   : > { %8511 = vpow2.f32 %v6314_v38 }
0x1dab   : > { %v6295_v17 = vpop.xlane.xlu2 %6294 }
0x1dac   : > { %v6302_v12 = vmul.f32 0.17677669, %v6295_v17 }
0x1dae   : > { %v6306_v24 = vsub.f32 %v6302_v12, %v6302_v12 }
0x1db0   : > { %v8512_v4 = vpop.eup %8511  ;;  %v6312_v21 = vmul.f32 1.442695, %v6306_v24 }
0x1db1   : > { %8513 = vrcp.f32 %v8512_v4  ;;  %v6376_v40 = vand.u32 2147483648, %v8512_v4  ;;  %v6374_v18 = vand.u32 2147483647, %v8512_v4  ;;  %vm6370_vm2 = vweird.f32 %v8512_v4 }
0x1db2   : > { %8515 = vpow2.f32 %v6312_v21 }
0x1db3   : > { %v6281_v23 = vpop.permute.xlu2 %6280  ;;  %v6291_v54 = vpop.xlane.xlu0 %6290  ;;  %v6377_v15 = vor.u32 1.1754944e-38, %v6376_v40  ;;  %vm6375_vm5 = vcmp.eq.f32.partialorder %v6374_v18, 8.507059e+37 }
0x1db4   : > { %v6301_v63 = vmul.f32 0.17677669, %v6291_v54  ;;  %7752 = vmatpush.msk.msrb.mxu2 %vm6032_vm4, %v6281_v23 }
0x1db6   : > { %v6305_v42 = vsub.f32 %v6301_v63, %v6301_v63 }
0x1db7   : > { %v8514_v59 = vpop.eup %8513 }
0x1db8   : > { %v8516_v11 = vpop.eup %8515  ;;  %v6310_v61 = vmul.f32 1.442695, %v6305_v42  ;;  %v6366_v51 = vmul.f32 %v8514_v59, %v8512_v4  ;;  %vm6371_vm12 = vweird.f32 %v8514_v59 }
0x1db9   : > { %8517 = vrcp.f32 %v8516_v11  ;;  %vm6372_vm3 = vmor %vm6370_vm2, %vm6371_vm12  ;;  %v6361_v10 = vand.u32 2147483648, %v8516_v11  ;;  %v6359_v6 = vand.u32 2147483647, %v8516_v11  ;;  %vm6355_vm9 = vweird.f32 %v8516_v11 }
0x1dba   : > { %8519 = vpow2.f32 %v6310_v61  ;;  %v6367_v53 = vsub.f32 1.0, %v6366_v51  ;;  %v6500_v61 = vld [vmem:[#allocation25 + $0x8] sm:$0xff] }
0x1dbb   : > { %v6283_v0 = vpop.permute.xlu1 %6282  ;;  %v6362_v5 = vor.u32 1.1754944e-38, %v6361_v10  ;;  %vm6360_vm13 = vcmp.eq.f32.partialorder %v6359_v6, 8.507059e+37  ;;  %v6558_v6 = vld [vmem:[#allocation77] sm:$0xff] }
0x1dbc   : > { %7754 = vmatpush.msk.msra.mxu3 %vm6032_vm4, %v6283_v0  ;;  %v6368_v30 = vmul.f32 %v8514_v59, %v6367_v53 }
0x1dbe   : > { %v6369_v14 = vadd.f32 %v8514_v59, %v6368_v30 }
0x1dbf   : > { %v8518_v20 = vpop.eup %8517 }
0x1dc0   : > { %v8520_v2 = vpop.eup %8519  ;;  %v6373_v16 = vsel %vm6372_vm3, %v8514_v59, %v6369_v14  ;;  %v6351_v50 = vmul.f32 %v8518_v20, %v8516_v11  ;;  %vm6356_vm8 = vweird.f32 %v8518_v20  ;;  %v6502_v59 = vld [vmem:[#allocation25 + $0x18] sm:$0xff] }
0x1dc1   : > { %v6378_v7 = vsel %vm6375_vm5, %v6377_v15, %v6373_v16  ;;  %8521 = vrcp.f32 %v8520_v2  ;;  %vm6357_vm10 = vmor %vm6355_vm9, %vm6356_vm8  ;;  %v6346_v41 = vand.u32 2147483648, %v8520_v2  ;;  %v6344_v56 = vand.u32 2147483647, %v8520_v2  ;;  %6519 = vmatpush.msra.mxu0 %v6502_v59  ;;  %v6532_v14 = vld [vmem:[%s13065_s28 + $0x18] sm:$0xff]  ;;  %v6530_v15 = vld [vmem:[%s13065_s28 + $0x8] sm:$0xff] }
0x1dc2   : > { %v6379_v19 = vmul.f32 %v8512_v4, %v6378_v7  ;;  %v6352_v9 = vsub.f32 1.0, %v6351_v50  ;;  %vm6340_vm15 = vweird.f32 %v8520_v2  ;;  %v6561_v16 = vld [vmem:[#allocation77 + $0x18] sm:$0xff]  ;;  %v6560_v50 = vld [vmem:[#allocation77 + $0x10] sm:$0xff] }
0x1dc3   : > { %v6347_v28 = vor.u32 1.1754944e-38, %v6346_v41  ;;  %6578 = vmatpush.msra.mxu2 %v6561_v16 }
0x1dc4   : > { %7755 = vmatmul.msk.f32.vlgmr.msra.gmra.mxu3 %vm6028_vm11, %v6379_v19  ;;  %v6353_v1 = vmul.f32 %v8518_v20, %v6352_v9 }
0x1dc5   : > { %6579 = vmatpush.msra.mxu2 %v6560_v50 }
0x1dc6   : > { %v6279_v60 = vpop.permute.xlu0 %6278  ;;  %v6354_v13 = vadd.f32 %v8518_v20, %v6353_v1  ;;  %v6559_v1 = vld [vmem:[#allocation77 + $0x8] sm:$0xff] }
0x1dc7   : > { %v8522_v36 = vpop.eup %8521  ;;  %7750 = vmatpush.msk.msrb.mxu1 %vm6032_vm4, %v6279_v60  ;;  %vm6345_vm4 = vcmp.eq.f32.partialorder %v6344_v56, 8.507059e+37  ;;  %6580 = vmatpush.msra.mxu2 %v6559_v1  ;;  %v6590_v60 = vld [vmem:[#allocation80 + $0x18] sm:$0xff] }
0x1dc8   : > { %v6358_v46 = vsel %vm6357_vm10, %v8518_v20, %v6354_v13  ;;  %v6336_v22 = vmul.f32 %v8522_v36, %v8520_v2  ;;  %vm6341_vm14 = vweird.f32 %v8522_v36  ;;  %v6531_v20 = vld [vmem:[%s13065_s28 + $0x10] sm:$0xff]  ;;  %6607 = vmatpush.msrb.mxu3 %v6590_v60  ;;  %v6533_v13 = vld [vmem:[%s13066_s9] sm:$0x1] }
0x1dc9   : > { %v6363_v55 = vsel %vm6360_vm13, %v6362_v5, %v6358_v46  ;;  %vm6342_vm12 = vmor %vm6340_vm15, %vm6341_vm14  ;;  %6549 = vmatpush.msra.mxu1 %v6532_v14  ;;  %6581 = vmatpush.msra.mxu2 %v6558_v6  ;;  %v6589_v46 = vld [vmem:[#allocation80 + $0x10] sm:$0xff] }
0x1dca   : > { %v6364_v58 = vmul.f32 %v8516_v11, %v6363_v55  ;;  %v6337_v62 = vsub.f32 1.0, %v6336_v22  ;;  %v6501_v11 = vld [vmem:[#allocation25 + $0x10] sm:$0xff]  ;;  %6608 = vmatpush.msrb.mxu3 %v6589_v46  ;;  %v6588_v22 = vld [vmem:[#allocation80 + $0x8] sm:$0xff]  ;;  %v6587_v55 = vld [vmem:[#allocation80] sm:$0xff] }
0x1dcb   : > { %6520 = vmatpush.msra.mxu0 %v6501_v11  ;;  %6550 = vmatpush.msra.mxu1 %v6531_v20 }
0x1dcc   : > { %7753 = vmatmul.msk.f32.vlgmr.msrb.gmra.mxu2 %vm6028_vm11, %v6364_v58  ;;  %v6338_v35 = vmul.f32 %v8522_v36, %v6337_v62  ;;  %6609 = vmatpush.msrb.mxu3 %v6588_v22  ;;  %v6619_v58 = vld [vmem:[#allocation83 + $0x18] sm:$0xff] }
0x1dcd   : > { %6521 = vmatpush.msra.mxu0 %v6500_v61  ;;  %6551 = vmatpush.msra.mxu1 %v6530_v15  ;;  %v6562_v62 = vld [vmem:[#allocation79] sm:$0x1] }
0x1dce   : > { %v6339_v27 = vadd.f32 %v8522_v36, %v6338_v35  ;;  %6610 = vmatpush.msrb.mxu3 %v6587_v55 }
0x1dd0   : > { %v6343_v32 = vsel %vm6342_vm12, %v8522_v36, %v6339_v27  ;;  %v6618_v27 = vld [vmem:[#allocation83 + $0x10] sm:$0xff] }
0x1dd1   : > { %v6348_v37 = vsel %vm6345_vm4, %v6347_v28, %v6343_v32  ;;  %v6617_v28 = vld [vmem:[#allocation83 + $0x8] sm:$0xff]  ;;  %v6616_v32 = vld [vmem:[#allocation83] sm:$0xff] }
0x1dd2   : > { %v6349_v39 = vmul.f32 %v8520_v2, %v6348_v37  ;;  %v6529_v2 = vld [vmem:[%s13065_s28] sm:$0xff]  ;;  %v6648_v37 = vld [vmem:[#allocation86 + $0x18] sm:$0xff] }
0x1dd3   : > { %6552 = vmatpush.msra.mxu1 %v6529_v2 }
0x1dd4   : > { %7751 = vmatmul.msk.f32.vlgmr.msrb.gmra.mxu1 %vm6028_vm11, %v6349_v39  ;;  %v6591_v39 = vld [vmem:[#allocation82] sm:$0x1] }
0x1dd5   : > { %6665 = vmatpush.msrb.mxu1 %v6648_v37 }
0x1dec   : > { %v6287_v29 = vpop.xlane.xlu2 %6286 }
0x1ded   : > { %v6300_v57 = vmul.f32 0.17677669, %v6287_v29 }
0x1def   : > { %v6304_v43 = vsub.f32 %v6300_v57, %v6300_v57 }
0x1df1   : > { %v6308_v44 = vmul.f32 1.442695, %v6304_v43 }
0x1df3   : > { %8523 = vpow2.f32 %v6308_v44  ;;  %v6647_v44 = vld [vmem:[#allocation86 + $0x10] sm:$0xff] }
0x1df4   : > { %6666 = vmatpush.msrb.mxu1 %v6647_v44 }
0x1df9   : > { %v8524_v31 = vpop.eup %8523 }
0x1dfa   : > { %8525 = vrcp.f32 %v8524_v31  ;;  %v6331_v25 = vand.u32 2147483648, %v8524_v31  ;;  %v6329_v49 = vand.u32 2147483647, %v8524_v31  ;;  %vm6325_vm3 = vweird.f32 %v8524_v31 }
0x1dfc   : > { %v6332_v38 = vor.u32 1.1754944e-38, %v6331_v25  ;;  %vm6330_vm8 = vcmp.eq.f32.partialorder %v6329_v49, 8.507059e+37 }
0x1e00   : > { %v8526_v8 = vpop.eup %8525 }
0x1e01   : > { %v6321_v34 = vmul.f32 %v8526_v8, %v8524_v31  ;;  %vm6326_vm2 = vweird.f32 %v8526_v8 }
0x1e02   : > { %vm6327_vm5 = vmor %vm6325_vm3, %vm6326_vm2 }
0x1e03   : > { %v6322_v47 = vsub.f32 1.0, %v6321_v34  ;;  %v6677_v34 = vld [vmem:[%s13067_s14 + $0x18] sm:$0xff] }
0x1e04   : > { %6694 = vmatpush.msrb.mxu2 %v6677_v34 }
0x1e05   : > { %v6323_v48 = vmul.f32 %v8526_v8, %v6322_v47  ;;  %v6620_v47 = vld [vmem:[#allocation85] sm:$0x1] }
0x1e07   : > { %v6324_v26 = vadd.f32 %v8526_v8, %v6323_v48 }
0x1e09   : > { %v6328_v17 = vsel %vm6327_vm5, %v8526_v8, %v6324_v26  ;;  %v6645_v8 = vld [vmem:[#allocation86] sm:$0xff]  ;;  %v6676_v26 = vld [vmem:[%s13067_s14 + $0x10] sm:$0xff] }
0x1e0a   : > { %v6333_v12 = vsel %vm6330_vm8, %v6332_v38, %v6328_v17  ;;  %6695 = vmatpush.msrb.mxu2 %v6676_v26  ;;  %v6675_v38 = vld [vmem:[%s13067_s14 + $0x8] sm:$0xff]  ;;  %v6674_v17 = vld [vmem:[%s13067_s14] sm:$0xff] }
0x1e0b   : > { %v6334_v24 = vmul.f32 %v8524_v31, %v6333_v12  ;;  %v6646_v31 = vld [vmem:[#allocation86 + $0x8] sm:$0xff]  ;;  %v6649_v12 = vld [vmem:[#allocation88] sm:$0x1] }
0x1e0c   : > { %6667 = vmatpush.msrb.mxu1 %v6646_v31  ;;  %6696 = vmatpush.msrb.mxu2 %v6675_v38 }
0x1e0d   : > { %7749 = vmatmul.msk.f32.vlgmr.msrb.gmra.mxu0 %vm6028_vm11, %v6334_v24 }
0x1e0e   : > { %6668 = vmatpush.msrb.mxu1 %v6645_v8  ;;  %6697 = vmatpush.msrb.mxu2 %v6674_v17 }
0x1e47   : > { %v6477_v63 = vpop.f32.mrf.mxu3 }
0x1e48   : > { %v6483_v42 = vadd.f32 %v6477_v63, %v12737_v52 }
0x1e4f   : > { %v6452_v4 = vpop.f32.mrf.mxu2 }
0x1e50   : > { %v6482_v21 = vadd.f32 %v6452_v4, %v12735_v33  ;;  %v6499_v33 = vld [vmem:[#allocation25] sm:$0xff] }
0x1e51   : > { %v6427_v23 = vpop.f32.mrf.mxu1  ;;  %6522 = vmatpush.msra.mxu0 %v6499_v33 }
0x1e52   : > { %v6481_v54 = vadd.f32 %v6427_v23, %v12743_v45  ;;  %6489 = vrot.lane.b32.xlu1 %v6482_v21, %s10664_s10  ;;  %v10665_v23 = vmov 0  }
0x1e53   : > { %6636 = vmatpush.msrb.mxu0 %v6619_v58  ;;  %8363 = vset.pattern.permute.xlu1 %v10665_v23 }
0x1e54   : > { %6485 = vrot.lane.b32.xlu0 %v6481_v54, %s10662_s7  ;;  %v6678_v54 = vld [vmem:[#allocation2] sm:$0x1] }
0x1e55   : > { %6637 = vmatpush.msrb.mxu0 %v6618_v27  ;;  %8364 = vset.pattern.permute.xlu0 %v10665_v23 }
0x1e57   : > { %6638 = vmatpush.msrb.mxu0 %v6617_v28 }
0x1e59   : > { %6639 = vmatpush.msrb.mxu0 %v6616_v32 }
0x1e5c   : > { %6493 = vrot.lane.b32.xlu0 %v6483_v42, %s10663_s23 }
0x1e8a   : > { %v6402_v45 = vpop.f32.mrf.mxu0 }
0x1e8b   : > { %v6480_v53 = vadd.f32 %v6402_v45, %v12723_v3  ;;  %v6503_v3 = vld [vmem:[#allocation19] sm:$0x1] }
0x1ec4   : > { %v6490_v0 = vpop.permute.xlu1 %6489 }
0x1ec6   : > { %v6486_v51 = vpop.permute.xlu0 %6485 }
0x1ec7   : > { %v6496_v52 = vsel %vm3156_vm0, %v6480_v53, %v6486_v51 }
0x1ec8   : > { %v6497_v30 = vsel %vm3708_vm6, %v6496_v52, %v6490_v0 }
0x1ece   : > { %v6494_v40 = vpop.permute.xlu0 %6493 }
0x1ecf   : > { %v6498_v18 = vsel %vm3711_vm7, %v6497_v30, %v6494_v40 }
0x1ed0   : > { %7756 = vmatmul.msk.f32.vlgmr.msra.gmra.mxu0 %vm3121_vm1, %v6498_v18 }
0x1f4d   : > { %v6524_v7 = vpop.f32.mrf.mxu0 }
0x1f4e   : > { %v6525_v19 = vadd.f32 %v6524_v7, %v6503_v3 }
0x1f50   : > { %v6527_v9 = vmax.f32 %v6525_v19, 0.0 }
0x1f52   : > { %v6528_v10 = vadd.f32 %v6527_v9, %v6498_v18 }
0x1f54   : > { %7757 = vmatmul.msk.f32.vlgmr.msra.gmra.mxu1 %vm3121_vm1, %v6528_v10 }
0x1fd1   : > { %v6554_v36 = vpop.f32.mrf.mxu1 }
0x1fd2   : > { %v6555_v5 = vadd.f32 %v6554_v36, %v6533_v13 }
0x1fd4   : > { %7758 = vmatmul.msk.f32.vlgmr.msra.gmra.mxu2 %vm3121_vm1, %v6555_v5 }
0x2057   : > { %v6583_v41 = vpop.f32.mrf.mxu2 }
0x2058   : > { %v6584_v35 = vadd.f32 %v6583_v41, %v6562_v62 }
0x205a   : > { %v6586_v56 = vmax.f32 %v6584_v35, 0.0 }
0x205c   : > { %7759 = vmatmul.msk.f32.vlgmr.msrb.gmra.mxu3 %vm3121_vm1, %v6586_v56 }
0x20df   : > { %v6612_v29 = vpop.f32.mrf.mxu3 }
0x20e0   : > { %v6613_v57 = vadd.f32 %v6612_v29, %v6591_v39 }
0x20e2   : > { %v6615_v43 = vmax.f32 %v6613_v57, 0.0 }
0x20e4   : > { %7760 = vmatmul.msk.f32.vlgmr.msrb.gmra.mxu0 %vm3121_vm1, %v6615_v43 }
0x2161   : > { %v6641_v25 = vpop.f32.mrf.mxu0 }
0x2162   : > { %v6642_v48 = vadd.f32 %v6641_v25, %v6620_v47 }
0x2164   : > { %v6644_v49 = vmax.f32 %v6642_v48, 0.0 }
0x2166   : > { %7761 = vmatmul.msk.f32.vlgmr.msrb.gmra.mxu1 %vm3121_vm1, %v6644_v49 }
0x21e3   : > { %v6670_v24 = vpop.f32.mrf.mxu1 }
0x21e4   : > { %v6671_v4 = vadd.f32 %v6670_v24, %v6649_v12 }
0x21e6   : > { %v6673_v21 = vmax.f32 %v6671_v4, 0.0 }
0x21e8   : > { %7762 = vmatmul.msk.f32.vlgmr.msrb.gmra.mxu2 %vm3121_vm1, %v6673_v21 }
0x226b   : > { %v6699_v63 = vpop.f32.mrf.mxu2 }
0x226c   : > { %v6700_v42 = vadd.f32 %v6699_v63, %v6678_v54 }
0x226e   : > { %v6702_v59 = vsub.f32 0.0, %v6700_v42  ;;  %v6721_v11 = vmul.f32 1.442695, %v6700_v42  ;;  %vm6739_vm14 = vcmp.ge.f32.partialorder %v6700_v42, 0.0 }
0x2270   : > { %v6703_v61 = vmul.f32 1.442695, %v6702_v59  ;;  %8527 = vpow2.f32 %v6721_v11 }
0x2272   : > { %8529 = vpow2.f32 %v6703_v61 }
0x2276   : > { %v8528_v33 = vpop.eup %8527 }
0x2277   : > { %v6723_v45 = vadd.f32 1.0, %v8528_v33 }
0x2278   : > { %v8530_v51 = vpop.eup %8529 }
0x2279   : > { %v6705_v53 = vadd.f32 1.0, %v8530_v51  ;;  %8531 = vrcp.f32 %v6723_v45  ;;  %v6735_v14 = vand.u32 2147483648, %v6723_v45  ;;  %v6733_v2 = vand.u32 2147483647, %v6723_v45 }
0x227a   : > { %vm6729_vm1 = vweird.f32 %v6723_v45 }
0x227b   : > { %8533 = vrcp.f32 %v6705_v53  ;;  %v6717_v16 = vand.u32 2147483648, %v6705_v53  ;;  %v6715_v3 = vand.u32 2147483647, %v6705_v53  ;;  %v6736_v19 = vor.u32 1.1754944e-38, %v6735_v14 }
0x227c   : > { %vm6711_vm11 = vweird.f32 %v6705_v53  ;;  %vm6734_vm9 = vcmp.eq.f32.partialorder %v6733_v2, 8.507059e+37 }
0x227d   : > { %v6718_v1 = vor.u32 1.1754944e-38, %v6717_v16  ;;  %vm6716_vm13 = vcmp.eq.f32.partialorder %v6715_v3, 8.507059e+37 }
0x227f   : > { %v8532_v52 = vpop.eup %8531 }
0x2280   : > { %v6725_v0 = vmul.f32 %v8532_v52, %v6723_v45  ;;  %vm6730_vm0 = vweird.f32 %v8532_v52 }
0x2281   : > { %v8534_v40 = vpop.eup %8533  ;;  %vm6731_vm7 = vmor %vm6729_vm1, %vm6730_vm0 }
0x2282   : > { %v6707_v30 = vmul.f32 %v8534_v40, %v6705_v53  ;;  %v6726_v18 = vsub.f32 1.0, %v6725_v0  ;;  %vm6712_vm6 = vweird.f32 %v8534_v40 }
0x2283   : > { %vm6713_vm10 = vmor %vm6711_vm11, %vm6712_vm6 }
0x2284   : > { %v6708_v20 = vsub.f32 1.0, %v6707_v30  ;;  %v6727_v15 = vmul.f32 %v8532_v52, %v6726_v18 }
0x2286   : > { %v6709_v50 = vmul.f32 %v8534_v40, %v6708_v20  ;;  %v6728_v7 = vadd.f32 %v8532_v52, %v6727_v15 }
0x2288   : > { %v6710_v9 = vadd.f32 %v8534_v40, %v6709_v50  ;;  %v6732_v10 = vsel %vm6731_vm7, %v8532_v52, %v6728_v7 }
0x2289   : > { %v6737_v6 = vsel %vm6734_vm9, %v6736_v19, %v6732_v10 }
0x228a   : > { %v6714_v60 = vsel %vm6713_vm10, %v8534_v40, %v6710_v9  ;;  %v6738_v13 = vmul.f32 %v8528_v33, %v6737_v6 }
0x228b   : > { %v6719_v36 = vsel %vm6716_vm13, %v6718_v1, %v6714_v60 }
0x228c   : > { %v6740_v5 = vsel %vm6739_vm14, %v6719_v36, %v6738_v13 }
0x228d   : > { %6743 = vperm.xlu1 %8363, %v6740_v5  }
0x22ff   : > { %v6744_v46 = vpop.permute.xlu1 %6743 }
0x2300   : > { %6746 = vst [vmem:[%s3109_s1] sm:$0x1] %v6744_v46 }
0x2301 PF: > { %s13069_s2 = sld [smem:[#allocation198_spill]]  ;;  %s13072_s10 = smov %s10515_s17 }
0x2302   : > { %s13070_s0 = sld [smem:[#allocation197_spill]] }
0x2303   : > { %s13071_s3 = sld [smem:[#allocation199_spill]] }
0x2307   : > { %p189_p5 = scmp.ge.s32.totalorder %s13069_s2, 4  }
0x2309   : > { %s13073_s17 = smov %s13071_s3  ;;  %191 = sbr.rel (!%p189_p5) target bundleno = 182 (0xb6), region = 676 }
0x230e   :  { %6764 = vsyncpa [#allocation4], 1 }
0x230f   :  { %6766 = vsyncpa [#allocation4 + $0x1], 1 }
0x2310   :  { %6767 = vsyncpa [#allocation6], 1 }
0x2311   :  { %6768 = vsyncpa [#allocation9], 1 }
0x2312   :  { %6769 = vsyncpa [#allocation12], 1 }
0x2313   :  { %6770 = vsyncpa [#allocation15], 1 }
0x2314   :  { %6771 = vsyncpa [#allocation18], 1 }
0x2315   :  { %6772 = vsyncpa [#allocation21], 1 }
0x2316   :  { %6773 = vsyncpa [#allocation24], 1 }
0x2317   :  { %6774 = vsyncpa [#allocation27], 1 }
0x2318   :  { %6775 = vsyncpa [#allocation30], 1 }
0x2319   :  { %6776 = vsyncpa [#allocation33], 1 }
0x231a   :  { %6777 = vsyncpa [#allocation36], 1 }
0x231b   :  { %6778 = vsyncpa [#allocation39], 1 }
0x231c   :  { %6779 = vsyncpa [#allocation42], 1 }
0x231d   :  { %6780 = vsyncpa [#allocation45], 1 }
0x231e   :  { %6781 = vsyncpa [#allocation48], 1 }
0x231f   :  { %6782 = vsyncpa [#allocation51], 1 }
0x2320   :  { %6783 = vsyncpa [#allocation54], 1 }
0x2321   :  { %6784 = vsyncpa [#allocation57], 1 }
0x2322   :  { %6785 = vsyncpa [#allocation60], 1 }
0x2323   :  { %6786 = vsyncpa [#allocation63], 1 }
0x2324   :  { %6787 = vsyncpa [#allocation66], 1 }
0x2325   :  { %6788 = vsyncpa [#allocation69], 1 }
0x2326   :  { %6789 = vsyncpa [#allocation72], 1 }
0x2327   :  { %6790 = vsyncpa [#allocation75], 1 }
0x2328   :  { %6791 = vsyncpa [#allocation78], 1 }
0x2329   :  { %6792 = vsyncpa [#allocation81], 1 }
0x232a   :  { %6793 = vsyncpa [#allocation84], 1 }
0x232b   :  { %6794 = vsyncpa [#allocation87], 1 }
0x232c   :  { %6795 = vsyncpa [#allocation90], 1 }
0x232d   :  { %6796 = vsyncpa [#allocation93], 1 }
0x232e   :  { %6797 = vsyncpa [#allocation96], 1 }
0x232f   :  { %6798 = vsyncpa [#allocation99], 1 }

</bundles_post_ra>
